<compile_context>
chip_gen: v6e
topology: v6e:2x2x1
jax: 0.10.0
libtpu: 0.0.40
codegen_flags: <defaults>
</compile_context>

<pallas_src>
import math

import jax
import jax.numpy as jnp
from jax.experimental import pallas as pl
from jax.experimental.pallas import tpu as pltpu


def _round_up(x, m):
    return ((x + m - 1) // m) * m


def _sine_layer_kernel(x_ref, w_ref, b_ref, o_ref):
    # bf16 MXU matmul (cast done in-kernel, hidden under DMA) with f32
    # accumulate, then bias add + sin in f32 on VPU/EUP.
    x = x_ref[...].astype(w_ref.dtype)
    acc = jnp.dot(x, w_ref[...], preferred_element_type=jnp.float32)
    o_ref[...] = jnp.sin(acc + b_ref[...]).astype(o_ref.dtype)


def make_sine_layer_params(w_torch, b_torch, omega_0, *, matmul_dtype=jnp.bfloat16):
    """One-time parameter transform (fold omega_0, transpose, cast, pad N).

    w_torch: (out_features, in_features)  -- nn.Linear.weight layout
    b_torch: (out_features,)              -- nn.Linear.bias

    Returns (w_kernel, b_kernel, out_features):
      w_kernel: (in_features, N_pad) matmul_dtype, omega_0 folded in
      b_kernel: (1, N_pad) float32, omega_0 folded in
    """
    out_features, in_features = w_torch.shape
    n_pad = _round_up(out_features, 128)                 # lane-dense output stores
    w = (omega_0 * w_torch.T).astype(matmul_dtype)       # (K, N)
    b = (omega_0 * b_torch).astype(jnp.float32).reshape(1, out_features)
    if n_pad != out_features:
        w = jnp.pad(w, ((0, 0), (0, n_pad - out_features)))
        b = jnp.pad(b, ((0, 0), (0, n_pad - out_features)))
    return w, b, out_features


def sine_layer(x, w, b, out_features, *, tm=512):
    """x: (..., K) float; w: (K, Np) omega-folded/padded; b: (1, Np) f32."""
    *lead, K = x.shape
    x2 = x.reshape(-1, K)
    M = x2.shape[0]
    Kw, Np = w.shape
    assert K == Kw and b.shape == (1, Np) and Np % 128 == 0

    # Row tile: multiple of 8 (f32 sublane); a single full-extent block for
    # small M (always a legal block shape), otherwise a big tile with a ragged
    # last grid step (Pallas drops the OOB writes).
    tm = _round_up(max(8, tm), 8)
    if M <= tm:
        tm = M
    grid = (pl.cdiv(M, tm),)

    x_bytes = jnp.dtype(x2.dtype).itemsize
    w_bytes = jnp.dtype(w.dtype).itemsize
    # Rough VMEM footprint: double-buffered x/out tiles + resident W + bias.
    vmem_need = (2 * tm * K * x_bytes + 2 * K * Np * w_bytes
                 + 2 * Np * 4 + 2 * tm * Np * 4)
    vmem_limit = int(min(max(2 * vmem_need, 32 * 1024 * 1024), 64 * 1024 * 1024))

    cost = pl.CostEstimate(
        flops=2 * M * K * Np,
        transcendentals=M * Np,
        bytes_accessed=(M * K * x_bytes + K * Np * w_bytes
                        + Np * 4 + M * Np * 4),
    )

    out = pl.pallas_call(
        _sine_layer_kernel,
        out_shape=jax.ShapeDtypeStruct((M, Np), jnp.float32),
        grid_spec=pltpu.PrefetchScalarGridSpec(
            num_scalar_prefetch=0,
            grid=grid,
            in_specs=[
                pl.BlockSpec((tm, K), lambda i: (i, 0)),   # row tile of x (f32)
                pl.BlockSpec((K, Np), lambda i: (0, 0)),   # resident weight (bf16)
                pl.BlockSpec((1, Np), lambda i: (0, 0)),   # resident bias (f32)
            ],
            out_specs=pl.BlockSpec((tm, Np), lambda i: (i, 0)),
        ),
        compiler_params=pltpu.CompilerParams(
            dimension_semantics=("parallel",),
            vmem_limit_bytes=vmem_limit,
        ),
        cost_estimate=cost,
    )(x2, w, b)

    # Strip column padding only (rows were never padded).
    if Np != out_features:
        out = out[:, :out_features]
    return out.reshape(*lead, out_features)


if __name__ == "__main__":
    # Module config (small, consistent with a SIREN layer).
    in_features, out_features = 32, 64
    omega_0 = 30.0
    M = 1000  # batch*coords flattened; not a tile multiple -> exercises ragged tile

    key = jax.random.PRNGKey(0)
    kx, kw, kb = jax.random.split(key, 3)

    # Deterministic nn.Linear-style init: U(-1/sqrt(in), 1/sqrt(in)).
    bound = 1.0 / math.sqrt(in_features)
    w_lin = jax.random.uniform(kw, (out_features, in_features), jnp.float32,
                               minval=-bound, maxval=bound)   # nn.Linear.weight
    b_lin = jax.random.uniform(kb, (out_features,), jnp.float32,
                               minval=-bound, maxval=bound)   # nn.Linear.bias
    x = jax.random.uniform(kx, (M, in_features), jnp.float32,
                           minval=-1.0, maxval=1.0)

    w_k, b_k, n_out = make_sine_layer_params(w_lin, b_lin, omega_0)
    out = sine_layer(x, w_k, b_k, n_out)
    out = jax.block_until_ready(out)
    assert out.shape == (M, out_features)

    # Reference 1: matches kernel precision (bf16-rounded x/W, f32 accumulate/sin).
    xq = x.astype(jnp.bfloat16).astype(jnp.float32)
    wq = (omega_0 * w_lin.T).astype(jnp.bfloat16).astype(jnp.float32)
    ref_q = jnp.sin(xq @ wq + (omega_0 * b_lin)[None, :])
    assert jnp.allclose(out, ref_q, atol=2e-3, rtol=2e-3), \
        float(jnp.max(jnp.abs(out - ref_q)))

    # Reference 2: true module semantics in f32; loose tolerance because bf16
    # rounding of x/W is amplified by omega_0=30 inside sin.
    ref_f32 = jnp.sin(omega_0 * (x @ w_lin.T + b_lin[None, :]))
    assert jnp.allclose(out, ref_f32, atol=0.2, rtol=0.2), \
        float(jnp.max(jnp.abs(out - ref_f32)))

    print("KERNEL_OK")
</pallas_src>

<mosaic_0001>
module attributes {stable_mosaic.version = 11 : i64} {
  func.func @_sine_layer_kernel(%arg0: i32, %arg1: memref<512x32xf32, #tpu.memory_space<vmem>>, %arg2: memref<32x128xbf16, #tpu.memory_space<vmem>>, %arg3: memref<1x128xf32, #tpu.memory_space<vmem>>, %arg4: memref<512x128xf32, #tpu.memory_space<vmem>>) attributes {dimension_semantics = [#tpu.dimension_semantics<parallel>], iteration_bounds = array<i64: 2>, scalar_prefetch = 0 : i64, scratch_operands = 0 : i64, tpu.core_type = #tpu.core_type<tc>, window_params = [{transform_indices = @transform_0, window_bounds = array<i64: 512, 32>}, {pipeline_mode = #tpu.pipeline_mode<synchronous>, transform_indices = @transform_1, window_bounds = array<i64: 32, 128>}, {pipeline_mode = #tpu.pipeline_mode<synchronous>, transform_indices = @transform_2, window_bounds = array<i64: 1, 128>}, {transform_indices = @transform_3, window_bounds = array<i64: 512, 128>}]} {
    %c0 = arith.constant 0 : index
    %c0_0 = arith.constant 0 : index
    %0 = vector.load %arg1[%c0, %c0_0] : memref<512x32xf32, #tpu.memory_space<vmem>>, vector<512x32xf32>
    %1 = arith.truncf %0 : vector<512x32xf32> to vector<512x32xbf16>
    %c0_1 = arith.constant 0 : index
    %c0_2 = arith.constant 0 : index
    %2 = vector.load %arg2[%c0_1, %c0_2] : memref<32x128xbf16, #tpu.memory_space<vmem>>, vector<32x128xbf16>
    %cst = arith.constant dense<0.000000e+00> : vector<512x128xf32>
    %3 = tpu.matmul %1, %2, %cst {dimension_numbers = #tpu.dot_dimension_numbers<[1], [0], [0], [1], [0, 0, 1, 1], [], []>} : vector<512x32xbf16>, vector<32x128xbf16>, vector<512x128xf32> -> vector<512x128xf32>
    %c0_3 = arith.constant 0 : index
    %c0_4 = arith.constant 0 : index
    %4 = vector.load %arg3[%c0_3, %c0_4] : memref<1x128xf32, #tpu.memory_space<vmem>>, vector<1x128xf32>
    %5 = vector.broadcast %4 : vector<1x128xf32> to vector<512x128xf32>
    %6 = arith.addf %3, %5 : vector<512x128xf32>
    %7 = math.sin %6 : vector<512x128xf32>
    %c0_5 = arith.constant 0 : index
    %c0_6 = arith.constant 0 : index
    %8 = vector.load %arg4[%c0_5, %c0_6] : memref<512x128xf32, #tpu.memory_space<vmem>>, vector<512x128xf32>
    tpu.vector_store %arg4[%c0_5, %c0_6], %7 {strides = array<i32>} : memref<512x128xf32, #tpu.memory_space<vmem>>, vector<512x128xf32>,
    return
  }
  func.func @transform_0(%arg0: i32) -> (i32, i32) {
    %c0_i32 = arith.constant 0 : i32
    %c0_i32_0 = arith.constant 0 : i32
    return %arg0, %c0_i32 : i32, i32
  }
  func.func @transform_1(%arg0: i32) -> (i32, i32) {
    %c0_i32 = arith.constant 0 : i32
    %c0_i32_0 = arith.constant 0 : i32
    %c0_i32_1 = arith.constant 0 : i32
    return %c0_i32, %c0_i32_0 : i32, i32
  }
  func.func @transform_2(%arg0: i32) -> (i32, i32) {
    %c0_i32 = arith.constant 0 : i32
    %c0_i32_0 = arith.constant 0 : i32
    %c0_i32_1 = arith.constant 0 : i32
    return %c0_i32, %c0_i32_0 : i32, i32
  }
  func.func @transform_3(%arg0: i32) -> (i32, i32) {
    %c0_i32 = arith.constant 0 : i32
    %c0_i32_0 = arith.constant 0 : i32
    return %arg0, %c0_i32 : i32, i32
  }
}

</mosaic_0001>

<bundles_post_ra>
// kernel: tpu_custom_call.1
= control target key start
LH: loop header
LB: loop body
LE: loop exit
PB: predicated region body
PF: predicated region fallthrough
CT: control target
= control target key end

     0   :  { %8 = vsyncpa [#allocation3], 0  ;;  %s13584_s0 = inlined_call_operand.vmem [shape: f32[1000,32], index: 0, kind: input, shape index: {}]   ;;  %s13585_s1 = inlined_call_operand.vmem [shape: bf16[32,128], index: 1, kind: input, shape index: {}]   ;;  %s13586_s2 = inlined_call_operand.vmem [shape: f32[1,128], index: 2, kind: input, shape index: {}]   ;;  %s13587_s3 = inlined_call_operand.hbm [shape: f32[1000,128], index: 3, kind: output, shape index: {}]  }
   0x1   :  { %10 = vsyncpa [#allocation3 + $0x1], 0  ;;  %s8579_s12 = smov 0   ;;  %s8581_s13 = smov 0  }
   0x2   :  { %s8583_s14 = smov 0   ;;  %s8585_s15 = smov 0  }
   0x3 LB: > { %s8600_s16 = sadd.s32 4294967295, %s8548_s15   ;;  %s7504_s17 = sadd.s32 4294967294, %s8548_s15   ;;  %s8548_s15 = sphi %s8585_s15, %s13717_s15   ;;  %s8544_s14 = sphi %s8583_s14, %s13716_s14   ;;  %s8540_s13 = sphi %s8581_s13, %s13715_s13   ;;  %s8536_s12 = sphi %s8579_s12, %s13714_s12  }
   0x4   : > { %s8604_s18 = sadd.s32 1, %s8548_s15   ;;  %s91_s19 = sadd.s32 1, %s8544_s14 }
   0x5   : > { %s88_s20 = ssub.s32 %s8548_s15, %s8604_s18  ;;  %p101_p0 = scmp.ne.s32.totalorder %s8544_s14, %s8540_s13 }
   0x6   : > { %p89_p1 = scmp.eq.s32.totalorder %s88_s20, 0  ;;  %p102_p2 = scmp.eq.s32.totalorder %s8600_s16, 1 }
   0x7   : > { %p107_p3 = scmp.ne.s32.totalorder %s8540_s13, %s8536_s12  ;;  %p108_p4 = scmp.eq.s32.totalorder %s7504_s17, 1 }
   0x8   : > { %s8615_s21 = scalar_select %p89_p1, %s8544_s14, %s91_s19  }
   0x9   : > { %p8617_p5 = por %p102_p2, %p101_p0  ;;  %p8621_p6 = por %p108_p4, %p107_p3 }
   0xa   : > { %p7507_p7 = scmp.ge.s32.totalorder %s8548_s15, 1  ;;  %p149_p8 = scmp.lt.s32.totalorder %s8548_s15, 3 }
   0xc   : > { %p150_p9 = pnand %p7507_p7, %p149_p8 }
   0xd   : > { %s8631_s26 = sshll.u32 (!%p150_p9), %s8600_s16, 6  ;;  %s174_s7 = sand.u32 (!%p150_p9), 1, %s8540_s13  }
   0xe   : > { %153 = sbr.rel (%p150_p9) target bundleno = 1873 (0x751), region = 32  ;;  %p182_p10 = scmp.lt.s32.totalorder (!%p150_p9), %s8631_s26, 124 }
   0xf   : > { %s7508_s10 = sshll.u32 (!%p150_p9), %s174_s7, 9  ;;  %s13524_s27 = scalar_lea.sflag (!%p150_p9), [#allocation3], %s174_s7 }
  0x10   : > { %s9048_s11 = scalar_lea.vmem (!%p150_p9), [#allocation2], %s7508_s10 }
  0x13   : > { %v8220_v0 = vld [vmem:[%s13585_s1 + $0x8] sm:$0xff]   ;;  %v8221_v1 = vld [vmem:[%s13585_s1] sm:$0xff]   ;;  %s183_s29 = scalar_select %p182_p10, %s8631_s26, 124  ;;  %vm316_vm0 = vcmask 261120  }
  0x14   : > { %7846 = vmatprep.subr.bf16.mxu0 %v8220_v0  ;;  %7914 = vmatprep.subr.bf16.mxu1 %v8220_v0  ;;  %s7431_s28 = ssub.s32 (%p8617_p5), 125, %s8631_s26 }
  0x15   : > { %7847 = vmatpush3.bf16.msra.mxu0 %v8220_v0  ;;  %7916 = vmatpush3.bf16.msra.mxu1 %v8220_v0  ;;  %s7510_s30 = sshll.u32 %s183_s29, 3  ;;  %p7432_p11 = scmp.lt.s32.totalorder (%p8617_p5), %s7431_s28, 64 }
  0x16   : > { %7848 = vmatprep.subr.bf16.mxu0 %v8221_v1  ;;  %7915 = vmatprep.subr.bf16.mxu1 %v8221_v1  ;;  %s8641_s6 = scalar_lea.vmem %s13584_s0, %s7510_s30 }
  0x17   : > { %v197_v2 = vld [vmem:[%s8641_s6] sm:$0xff]  ;;  %v198_v3 = vld [vmem:[%s8641_s6 + $0x8] sm:$0xff]  ;;  %v199_v7 = vld [vmem:[%s8641_s6 + $0x10] sm:$0xff] }
  0x18   : > { %v229_v4 = vld [vmem:[%s8641_s6 + $0x100] sm:$0xff]  ;;  %v261_v5 = vpack.c.bf16 %v198_v3, %v197_v2  ;;  %v230_v6 = vld [vmem:[%s8641_s6 + $0x108] sm:$0xff]  ;;  %v200_v8 = vld [vmem:[%s8641_s6 + $0x18] sm:$0xff] }
  0x19   : > { %7849 = vmatpush3.bf16.msra.mxu0 %v8221_v1  ;;  %7917 = vmatpush3.bf16.msra.mxu1 %v8221_v1  ;;  %v277_v9 = vpack.c.bf16 %v230_v6, %v229_v4  ;;  %v262_v10 = vpack.c.bf16 %v200_v8, %v199_v7  ;;  %v231_v11 = vld [vmem:[%s8641_s6 + $0x110] sm:$0xff]  ;;  %v232_v12 = vld [vmem:[%s8641_s6 + $0x118] sm:$0xff]  ;;  %v201_v13 = vld [vmem:[%s8641_s6 + $0x20] sm:$0xff] }
  0x1a   : > { %7850 = vmatprep.mubr.msk.bf16.mxu0 %vm316_vm0, %v261_v5  ;;  %v278_v14 = vpack.c.bf16 %v232_v12, %v231_v11  ;;  %v202_v15 = vld [vmem:[%s8641_s6 + $0x28] sm:$0xff]  ;;  %v233_v16 = vld [vmem:[%s8641_s6 + $0x120] sm:$0xff]  ;;  %v203_v20 = vld [vmem:[%s8641_s6 + $0x30] sm:$0xff] }
  0x1b   : > { %v234_v17 = vld [vmem:[%s8641_s6 + $0x128] sm:$0xff]  ;;  %7882 = vmatprep.mubr.msk.bf16.mxu1 %vm316_vm0, %v277_v9  ;;  %v263_v18 = vpack.c.bf16 %v202_v15, %v201_v13  ;;  %v204_v21 = vld [vmem:[%s8641_s6 + $0x38] sm:$0xff]  ;;  %v235_v22 = vld [vmem:[%s8641_s6 + $0x130] sm:$0xff] }
  0x1c   : > { %7851 = vmatmul.mubr.msk.bf16.vlgmr.msra.gmra.mxu0 %vm316_vm0, %v262_v10  ;;  %v279_v19 = vpack.c.bf16 %v234_v17, %v233_v16  ;;  %7883 = vmatmul.mubr.msk.bf16.vlgmr.msra.gmra.mxu1 %vm316_vm0, %v278_v14  ;;  %v236_v23 = vld [vmem:[%s8641_s6 + $0x138] sm:$0xff]  ;;  %v205_v24 = vld [vmem:[%s8641_s6 + $0x40] sm:$0xff]  ;;  %v206_v25 = vld [vmem:[%s8641_s6 + $0x48] sm:$0xff]  ;;  %v264_v28 = vpack.c.bf16 %v204_v21, %v203_v20 }
  0x1d   : > { %7854 = vmatprep.mubr.msk.bf16.mxu0 %vm316_vm0, %v263_v18  ;;  %v237_v26 = vld [vmem:[%s8641_s6 + $0x140] sm:$0xff]  ;;  %v238_v27 = vld [vmem:[%s8641_s6 + $0x148] sm:$0xff]  ;;  %v280_v29 = vpack.c.bf16 %v236_v23, %v235_v22  ;;  %v265_v30 = vpack.c.bf16 %v206_v25, %v205_v24  ;;  %v207_v32 = vld [vmem:[%s8641_s6 + $0x50] sm:$0xff] }
  0x1e   : > { %7886 = vmatprep.mubr.msk.bf16.mxu1 %vm316_vm0, %v279_v19  ;;  %v281_v31 = vpack.c.bf16 %v238_v27, %v237_v26  ;;  %v208_v33 = vld [vmem:[%s8641_s6 + $0x58] sm:$0xff]  ;;  %v239_v34 = vld [vmem:[%s8641_s6 + $0x150] sm:$0xff]  ;;  %v209_v36 = vld [vmem:[%s8641_s6 + $0x60] sm:$0xff] }
  0x1f   : > { %v240_v35 = vld [vmem:[%s8641_s6 + $0x158] sm:$0xff]  ;;  %v210_v37 = vld [vmem:[%s8641_s6 + $0x68] sm:$0xff]  ;;  %v241_v38 = vld [vmem:[%s8641_s6 + $0x160] sm:$0xff]  ;;  %v266_v40 = vpack.c.bf16 %v208_v33, %v207_v32 }
  0x20   : > { %v242_v39 = vld [vmem:[%s8641_s6 + $0x168] sm:$0xff]  ;;  %v282_v41 = vpack.c.bf16 %v240_v35, %v239_v34  ;;  %v267_v42 = vpack.c.bf16 %v210_v37, %v209_v36  ;;  %v211_v44 = vld [vmem:[%s8641_s6 + $0x70] sm:$0xff]  ;;  %v212_v45 = vld [vmem:[%s8641_s6 + $0x78] sm:$0xff] }
  0x21   : > { %v283_v43 = vpack.c.bf16 %v242_v39, %v241_v38  ;;  %v243_v46 = vld [vmem:[%s8641_s6 + $0x170] sm:$0xff]  ;;  %v244_v47 = vld [vmem:[%s8641_s6 + $0x178] sm:$0xff]  ;;  %v213_v48 = vld [vmem:[%s8641_s6 + $0x80] sm:$0xff]  ;;  %v268_v52 = vpack.c.bf16 %v212_v45, %v211_v44 }
  0x22   : > { %v214_v49 = vld [vmem:[%s8641_s6 + $0x88] sm:$0xff]  ;;  %v245_v50 = vld [vmem:[%s8641_s6 + $0x180] sm:$0xff]  ;;  %v284_v53 = vpack.c.bf16 %v244_v47, %v243_v46  ;;  %v215_v56 = vld [vmem:[%s8641_s6 + $0x90] sm:$0xff] }
  0x23   : > { %v246_v51 = vld [vmem:[%s8641_s6 + $0x188] sm:$0xff]  ;;  %v269_v54 = vpack.c.bf16 %v214_v49, %v213_v48  ;;  %v216_v57 = vld [vmem:[%s8641_s6 + $0x98] sm:$0xff]  ;;  %v247_v58 = vld [vmem:[%s8641_s6 + $0x190] sm:$0xff] }
  0x24   : > { %7855 = vmatmul.mubr.msk.bf16.gmra.mxu0 %vm316_vm0, %v264_v28  ;;  %7887 = vmatmul.mubr.msk.bf16.gmra.mxu1 %vm316_vm0, %v280_v29  ;;  %v285_v55 = vpack.c.bf16 %v246_v51, %v245_v50  ;;  %v248_v59 = vld [vmem:[%s8641_s6 + $0x198] sm:$0xff]  ;;  %v217_v60 = vld [vmem:[%s8641_s6 + $0xa0] sm:$0xff]  ;;  %v218_v61 = vld [vmem:[%s8641_s6 + $0xa8] sm:$0xff]  ;;  %v270_v0 = vpack.c.bf16 %v216_v57, %v215_v56 }
  0x25   : > { %7858 = vmatprep.mubr.msk.bf16.mxu0 %vm316_vm0, %v265_v30  ;;  %7890 = vmatprep.mubr.msk.bf16.mxu1 %vm316_vm0, %v281_v31  ;;  %v249_v62 = vld [vmem:[%s8641_s6 + $0x1a0] sm:$0xff]  ;;  %v250_v63 = vld [vmem:[%s8641_s6 + $0x1a8] sm:$0xff]  ;;  %v286_v1 = vpack.c.bf16 %v248_v59, %v247_v58  ;;  %v271_v2 = vpack.c.bf16 %v218_v61, %v217_v60  ;;  %v219_v4 = vld [vmem:[%s8641_s6 + $0xb0] sm:$0xff] }
  0x26   : > { %v287_v3 = vpack.c.bf16 %v250_v63, %v249_v62  ;;  %v220_v5 = vld [vmem:[%s8641_s6 + $0xb8] sm:$0xff]  ;;  %v251_v6 = vld [vmem:[%s8641_s6 + $0x1b0] sm:$0xff]  ;;  %v221_v8 = vld [vmem:[%s8641_s6 + $0xc0] sm:$0xff] }
  0x27   : > { %v252_v7 = vld [vmem:[%s8641_s6 + $0x1b8] sm:$0xff]  ;;  %v222_v9 = vld [vmem:[%s8641_s6 + $0xc8] sm:$0xff]  ;;  %v253_v10 = vld [vmem:[%s8641_s6 + $0x1c0] sm:$0xff]  ;;  %v272_v12 = vpack.c.bf16 %v220_v5, %v219_v4 }
  0x28   : > { %v254_v11 = vld [vmem:[%s8641_s6 + $0x1c8] sm:$0xff]  ;;  %v288_v13 = vpack.c.bf16 %v252_v7, %v251_v6  ;;  %v273_v14 = vpack.c.bf16 %v222_v9, %v221_v8  ;;  %v223_v16 = vld [vmem:[%s8641_s6 + $0xd0] sm:$0xff]  ;;  %v224_v17 = vld [vmem:[%s8641_s6 + $0xd8] sm:$0xff]  ;;  %v8550_v6 = vmov 683565275  }
  0x29   : > { %v289_v15 = vpack.c.bf16 %v254_v11, %v253_v10  ;;  %v255_v18 = vld [vmem:[%s8641_s6 + $0x1d0] sm:$0xff]  ;;  %v256_v19 = vld [vmem:[%s8641_s6 + $0x1d8] sm:$0xff]  ;;  %v225_v20 = vld [vmem:[%s8641_s6 + $0xe0] sm:$0xff]  ;;  %v274_v24 = vpack.c.bf16 %v224_v17, %v223_v16  ;;  %v8551_v10 = vmov 2475754826  }
  0x2a   : > { %v226_v21 = vld [vmem:[%s8641_s6 + $0xe8] sm:$0xff]  ;;  %v257_v22 = vld [vmem:[%s8641_s6 + $0x1e0] sm:$0xff]  ;;  %v290_v25 = vpack.c.bf16 %v256_v19, %v255_v18  ;;  %v227_v28 = vld [vmem:[%s8641_s6 + $0xf0] sm:$0xff]  ;;  %v8554_v16 = vmov 920167782  }
  0x2b   : > { %v258_v23 = vld [vmem:[%s8641_s6 + $0x1e8] sm:$0xff]  ;;  %v275_v26 = vpack.c.bf16 %v226_v21, %v225_v20  ;;  %v228_v29 = vld [vmem:[%s8641_s6 + $0xf8] sm:$0xff]  ;;  %v259_v30 = vld [vmem:[%s8641_s6 + $0x1f0] sm:$0xff] }
  0x2c   : > { %7859 = vmatmul.mubr.msk.bf16.gmra.mxu0 %vm316_vm0, %v266_v40  ;;  %7891 = vmatmul.mubr.msk.bf16.gmra.mxu1 %vm316_vm0, %v282_v41  ;;  %v291_v27 = vpack.c.bf16 %v258_v23, %v257_v22  ;;  %v260_v31 = vld [vmem:[%s8641_s6 + $0x1f8] sm:$0xff]  ;;  %v276_v32 = vpack.c.bf16 %v228_v29, %v227_v28  ;;  %v8743_v34 = vld [vmem:[%s13586_s2] ss:$0 sm:$0xff]  ;;  %v8555_v23 = vmov 1326507024  }
  0x2d   : > { %7862 = vmatprep.mubr.msk.bf16.mxu0 %vm316_vm0, %v267_v42  ;;  %7894 = vmatprep.mubr.msk.bf16.mxu1 %vm316_vm0, %v283_v43  ;;  %v292_v33 = vpack.c.bf16 %v260_v31, %v259_v30 }
  0x34   : > { %7863 = vmatmul.mubr.msk.bf16.gmra.mxu0 %vm316_vm0, %v268_v52  ;;  %7895 = vmatmul.mubr.msk.bf16.gmra.mxu1 %vm316_vm0, %v284_v53 }
  0x35   : > { %7866 = vmatprep.mubr.msk.bf16.mxu0 %vm316_vm0, %v269_v54  ;;  %7898 = vmatprep.mubr.msk.bf16.mxu1 %vm316_vm0, %v285_v55 }
  0x3c   : > { %7867 = vmatmul.mubr.msk.bf16.gmra.mxu0 %vm316_vm0, %v270_v0  ;;  %7899 = vmatmul.mubr.msk.bf16.gmra.mxu1 %vm316_vm0, %v286_v1 }
  0x3d   : > { %7870 = vmatprep.mubr.msk.bf16.mxu0 %vm316_vm0, %v271_v2  ;;  %7902 = vmatprep.mubr.msk.bf16.mxu1 %vm316_vm0, %v287_v3 }
  0x44   : > { %7871 = vmatmul.mubr.msk.bf16.gmra.mxu0 %vm316_vm0, %v272_v12  ;;  %7903 = vmatmul.mubr.msk.bf16.gmra.mxu1 %vm316_vm0, %v288_v13  ;;  %v8552_v12 = vmov 2131351028  }
  0x45   : > { %7874 = vmatprep.mubr.msk.bf16.mxu0 %vm316_vm0, %v273_v14  ;;  %7906 = vmatprep.mubr.msk.bf16.mxu1 %vm316_vm0, %v289_v15  ;;  %v8553_v14 = vmov 2102212464  }
  0x4c   : > { %7875 = vmatmul.mubr.msk.bf16.gmra.mxu0 %vm316_vm0, %v274_v24  ;;  %7907 = vmatmul.mubr.msk.bf16.gmra.mxu1 %vm316_vm0, %v290_v25 }
  0x4d   : > { %7878 = vmatprep.mubr.msk.bf16.mxu0 %vm316_vm0, %v275_v26  ;;  %7910 = vmatprep.mubr.msk.bf16.mxu1 %vm316_vm0, %v291_v27 }
  0x54   : > { %7879 = vmatmul.mubr.msk.bf16.gmra.mxu0 %vm316_vm0, %v276_v32  ;;  %7911 = vmatmul.mubr.msk.bf16.gmra.mxu1 %vm316_vm0, %v292_v33 }
  0xdc   : > { %v7852_v35 = vpop.f32.mrf.mxu0  ;;  %v7884_v37 = vpop.f32.mrf.mxu1 }
  0xdd   : > { %v8746_v36 = vadd.f32 %v7852_v35, %v8743_v34  ;;  %v8749_v38 = vadd.f32 %v7884_v37, %v8743_v34 }
  0xde   : > { %v447_v39 = vpop.f32.mrf.mxu0  ;;  %v575_v58 = vpop.f32.mrf.mxu1 }
  0xdf   : > { %v910_v40 = vand.u32 2147483647, %v8746_v36  ;;  %v913_v41 = vand.u32 2139095040, %v8746_v36  ;;  %v4238_v42 = vand.u32 2147483647, %v8749_v38  ;;  %v4241_v43 = vand.u32 2139095040, %v8749_v38 }
  0xe0   : > { %v8758_v46 = vadd.f32 %v8743_v34, %v447_v39  ;;  %v8765_v0 = vadd.f32 %v8743_v34, %v575_v58  ;;  %vm912_vm14 = vcmp.lt.s32.totalorder %v8746_v36, 0 }
  0xe1   : > { %v914_v44 = vshrl.u32 %v913_v41, 23  ;;  %v917_v45 = vand.u32 8388607, %v910_v40  ;;  %v4242_v47 = vshrl.u32 %v4241_v43, 23  ;;  %v4245_v48 = vand.u32 8388607, %v4238_v42 }
  0xe2   : > { %v705_v51 = vand.u32 2139095040, %v8758_v46  ;;  %v702_v56 = vand.u32 2147483647, %v8758_v46  ;;  %vm8870_vm15 = vcmp.le.f32.partialorder %v910_v40, 0.7853982 }
  0xe3   : > { %v7554_v49 = vadd.s32 4294967169, %v914_v44  ;;  %v7682_v50 = vadd.s32 4294967169, %v4242_v47  ;;  %v918_v52 = vor.u32 8388608, %v917_v45  ;;  %v4246_v54 = vor.u32 8388608, %v4245_v48 }
  0xe4   : > { %v706_v57 = vshrl.u32 %v705_v51, 23  ;;  %v8775_v4 = vand.u32 8388607, %v702_v56 }
  0xe5   : > { %v920_v53 = vadd.s32 1, %v7554_v49  ;;  %v4248_v55 = vadd.s32 1, %v7682_v50  ;;  %v8767_v1 = vshll.u32 %v918_v52, 8  ;;  %v8771_v3 = vshll.u32 %v4246_v54, 8 }
  0xe6   : > { %v7546_v60 = vadd.s32 4294967169, %v706_v57 }
  0xe7   : > { %vm921_vm1 = vcmp.gt.s32.totalorder %v920_v53, 0  ;;  %vm4249_vm2 = vcmp.gt.s32.totalorder %v4248_v55, 0 }
  0xe8   : > { %v922_v59 = vsel %vm921_vm1, %v920_v53, 0  ;;  %v4250_v63 = vsel %vm4249_vm2, %v4248_v55, 0  ;;  %v8778_v9 = vadd.s32 1, %v7546_v60 }
  0xe9   : > { %v923_v61 = vshrl.u32 %v922_v59, 5  ;;  %v924_v62 = vand.u32 31, %v922_v59  ;;  %v8769_v2 = vshrl.u32 %v4250_v63, 5  ;;  %v4252_v8 = vand.u32 31, %v4250_v63 }
  0xea   : > { %vm713_vm12 = vcmp.gt.s32.totalorder %v8778_v9, 0 }
  0xeb   : > { %v925_v5 = vsub.s32 32, %v924_v62  ;;  %v927_v7 = vshll.u32 %v8550_v6, %v924_v62  ;;  %v930_v11 = vshll.u32 %v8551_v10, %v924_v62  ;;  %v933_v13 = vshll.u32 %v8552_v12, %v924_v62 }
  0xec   : > { %v936_v15 = vshll.u32 %v8553_v14, %v924_v62  ;;  %v939_v17 = vshll.u32 %v8554_v16, %v924_v62  ;;  %vm942_vm3 = vcmp.lt.s32.totalorder %v923_v61, 1  ;;  %vm943_vm4 = vcmp.lt.s32.totalorder %v923_v61, 2 }
  0xed   : > { %v928_v18 = vshrl.u32 %v8551_v10, %v925_v5  ;;  %v931_v19 = vshrl.u32 %v8552_v12, %v925_v5  ;;  %v934_v20 = vshrl.u32 %v8553_v14, %v925_v5  ;;  %v926_v21 = vshrl.u32 %v8550_v6, %v925_v5 }
  0xee   : > { %v937_v22 = vshrl.u32 %v8554_v16, %v925_v5  ;;  %v940_v24 = vshrl.u32 %v8555_v23, %v925_v5  ;;  %v4253_v28 = vsub.s32 32, %v4252_v8  ;;  %vm944_vm5 = vcmp.lt.s32.totalorder %v923_v61, 3 }
  0xef   : > { %v929_v25 = vor.u32 %v928_v18, %v927_v7  ;;  %v932_v26 = vor.u32 %v931_v19, %v930_v11  ;;  %v935_v27 = vor.u32 %v934_v20, %v933_v13  ;;  %vm945_vm6 = vcmp.lt.s32.totalorder %v923_v61, 4 }
  0xf0   : > { %v938_v29 = vor.u32 %v937_v22, %v936_v15  ;;  %v941_v30 = vor.u32 %v940_v24, %v939_v17  ;;  %v4255_v43 = vshll.u32 %v8550_v6, %v4252_v8  ;;  %v4256_v47 = vshrl.u32 %v8551_v10, %v4253_v28 }
  0xf1   : > { %v946_v31 = vsel %vm942_vm3, %v926_v21, %v929_v25  ;;  %v947_v32 = vsel %vm945_vm6, %v935_v27, 2102212464  ;;  %v950_v33 = vsel %vm942_vm3, %v929_v25, %v932_v26  ;;  %v954_v35 = vsel %vm942_vm3, %v932_v26, %v935_v27 }
  0xf2   : > { %v948_v37 = vsel %vm944_vm5, %v932_v26, %v947_v32  ;;  %v951_v39 = vsel %vm945_vm6, %v938_v29, 920167782  ;;  %v955_v41 = vsel %vm945_vm6, %v941_v30, 1326507024  ;;  %v4258_v48 = vshll.u32 %v8551_v10, %v4252_v8 }
  0xf3   : > { %v952_v44 = vsel %vm944_vm5, %v935_v27, %v951_v39  ;;  %v956_v45 = vsel %vm944_vm5, %v938_v29, %v955_v41  ;;  %v949_v49 = vsel %vm943_vm4, %v946_v31, %v948_v37  ;;  %v4259_v52 = vshrl.u32 %v8552_v12, %v4253_v28 }
  0xf4   : > { %v953_v50 = vsel %vm943_vm4, %v950_v33, %v952_v44  ;;  %v957_v51 = vsel %vm943_vm4, %v954_v35, %v956_v45  ;;  %v4257_v58 = vor.u32 %v4256_v47, %v4255_v43  ;;  %v4261_v60 = vshll.u32 %v8552_v12, %v4252_v8 }
  0xf5   : > { %v8801_v53 = vmul.u32.u64.low %v8767_v1, %v957_v51  ;;  %v8802_v54 = vmul.u32.u64.high %v8767_v1, %v957_v51, %v8801_v53  ;;  %v8805_v55 = vmul.u32.u64.low %v8767_v1, %v953_v50  ;;  %v8806_v57 = vmul.u32.u64.high %v8767_v1, %v953_v50, %v8805_v55 }
  0xf6   : > { %v4260_v59 = vor.u32 %v4259_v52, %v4258_v48  ;;  %v4262_v62 = vshrl.u32 %v8553_v14, %v4253_v28  ;;  %v4254_v63 = vshrl.u32 %v8550_v6, %v4253_v28  ;;  %v4264_v61 = vshll.u32 %v8553_v14, %v4252_v8 }
  0xf7   : > { %v4265_v5 = vshrl.u32 %v8554_v16, %v4253_v28  ;;  %v4268_v7 = vshrl.u32 %v8555_v23, %v4253_v28  ;;  %v965_v11 = vmul.u32 %v8767_v1, %v949_v49  ;;  %v4267_v15 = vshll.u32 %v8554_v16, %v4252_v8 }
  0xf8   : > { %v4263_v13 = vor.u32 %v4262_v62, %v4261_v60  ;;  %vm4270_vm7 = vcmp.lt.s32.totalorder %v8769_v2, 1  ;;  %vm967_vm8 = vc.u32 %v8802_v54, %v8805_v55  ;;  %v968_v17 = vadd.s32 1, %v8806_v57 }
  0xf9   : > { %v4266_v18 = vor.u32 %v4265_v5, %v4264_v61  ;;  %vm4271_vm9 = vcmp.lt.s32.totalorder %v8769_v2, 2  ;;  %v4269_v19 = vor.u32 %v4268_v7, %v4267_v15  ;;  %vm4272_vm10 = vcmp.lt.s32.totalorder %v8769_v2, 3 }
  0xfa   : > { %vm4273_vm11 = vcmp.lt.s32.totalorder %v8769_v2, 4  ;;  %v4278_v20 = vsel %vm4270_vm7, %v4257_v58, %v4260_v59  ;;  %v969_v1 = vsel %vm967_vm8, %v968_v17, %v8806_v57  ;;  %v4282_v8 = vsel %vm4270_vm7, %v4260_v59, %v4263_v13 }
  0xfb   : > { %v4275_v21 = vsel %vm4273_vm11, %v4263_v13, 2102212464  ;;  %v4279_v22 = vsel %vm4273_vm11, %v4266_v18, 920167782  ;;  %v970_v24 = vadd.s32 %v969_v1, %v965_v11  ;;  %v4274_v25 = vsel %vm4270_vm7, %v4254_v63, %v4257_v58 }
  0xfc   : > { %v4280_v26 = vsel %vm4272_vm10, %v4263_v13, %v4279_v22  ;;  %v4283_v27 = vsel %vm4273_vm11, %v4269_v19, 1326507024  ;;  %v4276_v28 = vsel %vm4272_vm10, %v4260_v59, %v4275_v21  ;;  %v714_v41 = vsel %vm713_vm12, %v8778_v9, 0 }
  0xfd   : > { %v4281_v29 = vsel %vm4271_vm9, %v4278_v20, %v4280_v26  ;;  %v4284_v30 = vsel %vm4272_vm10, %v4266_v18, %v4283_v27  ;;  %v971_v31 = vadd.s32 536870912, %v970_v24  ;;  %v4277_v44 = vsel %vm4271_vm9, %v4274_v25, %v4276_v28 }
  0xfe   : > { %v4285_v32 = vsel %vm4271_vm9, %v4282_v8, %v4284_v30  ;;  %v8829_v33 = vmul.u32.u64.low %v8771_v3, %v4281_v29  ;;  %v8830_v35 = vmul.u32.u64.high %v8771_v3, %v4281_v29, %v8829_v33  ;;  %v716_v45 = vand.u32 31, %v714_v41 }
  0xff   : > { %v8834_v37 = vmul.u32.u64.low %v8771_v3, %v4285_v32  ;;  %v8835_v39 = vmul.u32.u64.high %v8771_v3, %v4285_v32, %v8834_v37  ;;  %v972_v43 = vshrl.u32 %v971_v31, 30  ;;  %v4033_v47 = vand.u32 2139095040, %v8765_v0 }
 0x100   : > { %v4296_v49 = vadd.s32 1, %v8830_v35  ;;  %v710_v50 = vor.u32 8388608, %v8775_v4  ;;  %v4293_v51 = vmul.u32 %v8771_v3, %v4277_v44  ;;  %v717_v52 = vsub.s32 32, %v716_v45 }
 0x101   : > { %v973_v48 = vshll.u32 %v972_v43, 30  ;;  %vm4295_vm13 = vc.u32 %v8835_v39, %v8829_v33  ;;  %v4034_v2 = vshrl.u32 %v4033_v47, 23  ;;  %v966_v58 = vadd.s32 %v8805_v55, %v8802_v54 }
 0x102   : > { %v4297_v9 = vsel %vm4295_vm13, %v4296_v49, %v8830_v35  ;;  %v8852_v60 = vshll.u32 %v710_v50, 8  ;;  %v4030_v3 = vand.u32 2147483647, %v8765_v0  ;;  %v8855_v62 = vshrl.u32 %v714_v41, 5 }
 0x103   : > { %v8846_v53 = vsub.s32 %v970_v24, %v973_v48  ;;  %v4298_v57 = vadd.s32 %v4297_v9, %v4293_v51  ;;  %v720_v63 = vshrl.u32 %v8551_v10, %v717_v52  ;;  %v723_v61 = vshrl.u32 %v8552_v12, %v717_v52 }
 0x104   : > { %v726_v7 = vshrl.u32 %v8553_v14, %v717_v52  ;;  %v729_v11 = vshrl.u32 %v8554_v16, %v717_v52  ;;  %v8862_v54 = vadd.s32 4294967169, %v4034_v2  ;;  %v996_v55 = vsub.s32 4, %v972_v43 }
 0x105   : > { %v976_v59 = vsub.s32 0, %v8846_v53  ;;  %v4299_v4 = vadd.s32 536870912, %v4298_v57  ;;  %v719_v15 = vshll.u32 %v8550_v6, %v716_v45  ;;  %v722_v17 = vshll.u32 %v8551_v10, %v716_v45 }
 0x106   : > { %v725_v20 = vshll.u32 %v8552_v12, %v716_v45  ;;  %v728_v1 = vshll.u32 %v8553_v14, %v716_v45  ;;  %v732_v21 = vshrl.u32 %v8555_v23, %v717_v52  ;;  %v8880_v25 = vand.u32 8388607, %v4030_v3 }
 0x107   : > { %v7555_v5 = vmin.u32 %v976_v59, %v8846_v53  ;;  %v8864_v13 = vshrl.u32 %v4299_v4, 30  ;;  %v721_v8 = vor.u32 %v720_v63, %v719_v15  ;;  %v724_v24 = vor.u32 %v723_v61, %v722_v17 }
 0x108   : > { %v727_v40 = vor.u32 %v726_v7, %v725_v20  ;;  %v730_v27 = vor.u32 %v729_v11, %v728_v1  ;;  %v731_v28 = vshll.u32 %v8554_v16, %v716_v45  ;;  %v997_v29 = vsel %vm912_vm14, %v996_v55, %v972_v43 }
 0x109   : > { %v978_v19 = vclz %v7555_v5  ;;  %v4301_v22 = vshll.u32 %v8864_v13, 30  ;;  %v718_v31 = vshrl.u32 %v8550_v6, %v717_v52  ;;  %vm734_vm0 = vcmp.lt.s32.totalorder %v8855_v62, 1 }
 0x10a   : > { %v733_v32 = vor.u32 %v732_v21, %v731_v28  ;;  %vm735_vm2 = vcmp.lt.s32.totalorder %v8855_v62, 2  ;;  %vm736_vm3 = vcmp.lt.s32.totalorder %v8855_v62, 3  ;;  %vm4240_vm4 = vcmp.lt.s32.totalorder %v8749_v38, 0 }
 0x10b   : > { %v7556_v26 = vadd.s32 4294967294, %v978_v19  ;;  %v8885_v30 = vsub.s32 %v4298_v57, %v4301_v22  ;;  %vm737_vm5 = vcmp.lt.s32.totalorder %v8855_v62, 4  ;;  %v742_v41 = vsel %vm734_vm0, %v721_v8, %v724_v24 }
 0x10c   : > { %v739_v45 = vsel %vm737_vm5, %v727_v40, 2102212464  ;;  %v743_v47 = vsel %vm737_vm5, %v730_v27, 920167782  ;;  %v746_v51 = vsel %vm734_vm0, %v724_v24, %v727_v40  ;;  %v747_v57 = vsel %vm737_vm5, %v733_v32, 1326507024 }
 0x10d   : > { %vm7557_vm1 = vcmp.lt.s32.totalorder %v7556_v26, 0  ;;  %v4304_v37 = vsub.s32 0, %v8885_v30  ;;  %v744_v50 = vsel %vm736_vm3, %v727_v40, %v743_v47  ;;  %v999_v59 = vsel %vm8870_vm15, 0, %v997_v29 }
 0x10e   : > { %v981_v35 = vsel %vm7557_vm1, 0, %v7556_v26  ;;  %v745_v2 = vsel %vm735_vm2, %v742_v41, %v744_v50  ;;  %vm8908_vm6 = vcmp.le.f32.partialorder %v4238_v42, 0.7853982  ;;  %v738_v63 = vsel %vm734_vm0, %v718_v31, %v721_v8 }
 0x10f   : > { %v982_v43 = vsub.s32 32, %v981_v35  ;;  %v986_v44 = vsub.s32 4294967266, %v981_v35  ;;  %v983_v48 = vshll.u32 %v8846_v53, %v981_v35  ;;  %v7683_v49 = vmin.u32 %v4304_v37, %v8885_v30 }
 0x110   : > { %v4324_v7 = vsub.s32 4, %v8864_v13  ;;  %v748_v11 = vsel %vm736_vm3, %v730_v27, %v747_v57  ;;  %v8922_v15 = vmul.u32.u64.low %v8852_v60, %v745_v2  ;;  %v8923_v17 = vmul.u32.u64.high %v8852_v60, %v745_v2, %v8922_v15 }
 0x111   : > { %v984_v52 = vshrl.u32 %v966_v58, %v982_v43  ;;  %v987_v9 = vadd.s32 127, %v986_v44  ;;  %v4306_v4 = vclz %v7683_v49  ;;  %v740_v58 = vsel %vm736_vm3, %v724_v24, %v739_v45  ;;  %v7853_v43 = vpop.f32.mrf.mxu0 }
 0x112   : > { %v749_v42 = vsel %vm735_vm2, %v746_v51, %v748_v11  ;;  %v741_v20 = vsel %vm735_vm2, %v738_v63, %v740_v58  ;;  %v1003_v22 = vadd.s32 3, %v999_v59  ;;  %v4294_v8 = vadd.s32 %v8829_v33, %v8835_v39 }
 0x113   : > { %v985_v61 = vor.u32 %v984_v52, %v983_v48  ;;  %v988_v5 = vshll.u32 %v987_v9, 23  ;;  %v7684_v55 = vadd.s32 4294967294, %v4306_v4  ;;  %v4040_v24 = vadd.s32 1, %v8862_v54 }
 0x114   : > { %v8929_v1 = vmul.u32.u64.low %v8852_v60, %v749_v42  ;;  %v8930_v21 = vmul.u32.u64.high %v8852_v60, %v749_v42, %v8929_v1  ;;  %v4325_v28 = vsel %vm4240_vm4, %v4324_v7, %v8864_v13  ;;  %v757_v31 = vmul.u32 %v8852_v60, %v741_v20 }
 0x115   : > { %v989_v19 = vor.u32 4788187, %v988_v5  ;;  %vm7685_vm7 = vcmp.lt.s32.totalorder %v7684_v55, 0  ;;  %v992_v40 = vcvt.s32.f32 %v985_v61  ;;  %v760_v32 = vadd.s32 1, %v8923_v17 }
 0x116   : > { %v4309_v27 = vsel %vm7685_vm7, 0, %v7684_v55  ;;  %vm759_vm8 = vc.u32 %v8930_v21, %v8922_v15  ;;  %vm4041_vm9 = vcmp.gt.s32.totalorder %v4040_v24, 0  ;;  %v4327_v44 = vsel %vm8908_vm6, 0, %v4325_v28 }
 0x117   : > { %v990_v26 = vand.u32 2147483647, %v989_v19  ;;  %v4310_v62 = vsub.s32 32, %v4309_v27  ;;  %v4314_v29 = vsub.s32 4294967266, %v4309_v27  ;;  %v4311_v37 = vshll.u32 %v8885_v30, %v4309_v27 }
 0x118   : > { %v761_v54 = vsel %vm759_vm8, %v760_v32, %v8923_v17  ;;  %v4042_v41 = vsel %vm4041_vm9, %v4040_v24, 0  ;;  %v8949_v51 = vadd.f32 %v7853_v43, %v8743_v34  ;;  %v8954_v9 = vand.u32 3, %v1003_v22 }
 0x119   : > { %v993_v35 = vmul.f32 %v992_v40, %v990_v26  ;;  %v4312_v33 = vshrl.u32 %v4294_v8, %v4310_v62  ;;  %v4315_v39 = vadd.s32 127, %v4314_v29  ;;  %v762_v60 = vadd.s32 %v761_v54, %v757_v31 }
 0x11a   : > { %v4044_v45 = vand.u32 31, %v4042_v41  ;;  %v8956_v57 = vadd.s32 3, %v4327_v44  ;;  %v4038_v4 = vor.u32 8388608, %v8880_v25  ;;  %vm704_vm10 = vcmp.lt.s32.totalorder %v8758_v46, 0 }
 0x11b   : > { %v994_v13 = vxor.u32 2147483648, %v993_v35  ;;  %v4313_v47 = vor.u32 %v4312_v33, %v4311_v37  ;;  %v4316_v48 = vshll.u32 %v4315_v39, 23  ;;  %v763_v49 = vadd.s32 536870912, %v762_v60 }
 0x11c   : > { %v4045_v50 = vsub.s32 32, %v4044_v45  ;;  %v8962_v7 = vshrl.u32 %v4042_v41, 5  ;;  %v4047_v11 = vshll.u32 %v8550_v6, %v4044_v45  ;;  %v4050_v17 = vshll.u32 %v8551_v10, %v4044_v45 }
 0x11d   : > { %v995_v30 = vsel %vm912_vm14, %v994_v13, %v993_v35  ;;  %v4317_v2 = vor.u32 4788187, %v4316_v48  ;;  %v764_v59 = vshrl.u32 %v763_v49, 30  ;;  %v4320_v61 = vcvt.s32.f32 %v4313_v47 }
 0x11e   : > { %v998_v52 = vsel %vm8870_vm15, %v8746_v36, %v995_v30  ;;  %v4048_v63 = vshrl.u32 %v8551_v10, %v4045_v50  ;;  %v4051_v5 = vshrl.u32 %v8552_v12, %v4045_v50  ;;  %v4054_v55 = vshrl.u32 %v8553_v14, %v4045_v50 }
 0x11f   : > { %8222 = vcosq.f32 %v998_v52  ;;  %v4318_v58 = vand.u32 2147483647, %v4317_v2  ;;  %v765_v18 = vshll.u32 %v764_v59, 30  ;;  %v4056_v25 = vshll.u32 %v8553_v14, %v4044_v45 }
 0x120   : > { %8224 = vsinq.f32 %v998_v52  ;;  %v4057_v19 = vshrl.u32 %v8554_v16, %v4045_v50  ;;  %v4049_v1 = vor.u32 %v4048_v63, %v4047_v11  ;;  %v4053_v22 = vshll.u32 %v8552_v12, %v4044_v45 }
 0x121   : > { %v4321_v42 = vmul.f32 %v4320_v61, %v4318_v58  ;;  %v8969_v20 = vsub.s32 %v762_v60, %v765_v18  ;;  %v1017_v8 = vand.u32 2139095040, %v8949_v51  ;;  %v4052_v26 = vor.u32 %v4051_v5, %v4050_v17 }
 0x122   : > { %v4058_v40 = vor.u32 %v4057_v19, %v4056_v25  ;;  %v4060_v27 = vshrl.u32 %v8555_v23, %v4045_v50  ;;  %v758_v28 = vadd.s32 %v8922_v15, %v8930_v21  ;;  %v4055_v29 = vor.u32 %v4054_v55, %v4053_v22 }
 0x123   : > { %v4322_v24 = vxor.u32 2147483648, %v4321_v42  ;;  %v768_v62 = vsub.s32 0, %v8969_v20  ;;  %v4059_v31 = vshll.u32 %v8554_v16, %v4044_v45  ;;  %vm1009_vm11 = vcmp.eq.s32.totalorder %v8954_v9, 2 }
 0x124   : > { %v788_v35 = vsub.s32 4, %v764_v59  ;;  %vm4062_vm12 = vcmp.lt.s32.totalorder %v8962_v7, 1  ;;  %v8982_v37 = vshll.u32 %v4038_v4, 8  ;;  %vm1006_vm13 = vcmp.eq.s32.totalorder %v8954_v9, 0 }
 0x125   : > { %v4323_v32 = vsel %vm4240_vm4, %v4322_v24, %v4321_v42  ;;  %v7547_v21 = vmin.u32 %v768_v62, %v8969_v20  ;;  %v4061_v33 = vor.u32 %v4060_v27, %v4059_v31  ;;  %vm4065_vm14 = vcmp.lt.s32.totalorder %v8962_v7, 4 }
 0x126   : > { %v4326_v15 = vsel %vm8908_vm6, %v8749_v38, %v4323_v32  ;;  %vm1005_vm15 = vcmp.lt.s32.totalorder %v8954_v9, 2  ;;  %v4046_v39 = vshrl.u32 %v8550_v6, %v4045_v50  ;;  %v4070_v54 = vsel %vm4062_vm12, %v4049_v1, %v4052_v26 }
 0x127   : > { %8226 = vcosq.f32 %v4326_v15  ;;  %v4071_v41 = vsel %vm4065_vm14, %v4058_v40, 920167782  ;;  %vm1002_vm0 = vweird.f32 %v8746_v36  ;;  %vm8999_vm1 = vcmp.le.f32.partialorder %v702_v56, 0.7853982 }
 0x128   : > { %8228 = vsinq.f32 %v4326_v15  ;;  %v770_v43 = vclz %v7547_v21  ;;  %vm4064_vm2 = vcmp.lt.s32.totalorder %v8962_v7, 3  ;;  %v4067_v13 = vsel %vm4065_vm14, %v4055_v29, 2102212464 }
 0x129   : > { %v789_v44 = vsel %vm704_vm10, %v788_v35, %v764_v59  ;;  %vm4063_vm3 = vcmp.lt.s32.totalorder %v8962_v7, 2  ;;  %v4072_v60 = vsel %vm4064_vm2, %v4055_v29, %v4071_v41  ;;  %v4074_v45 = vsel %vm4062_vm12, %v4052_v26, %v4055_v29 }
 0x12a   : > { %v7548_v56 = vadd.s32 4294967294, %v770_v43  ;;  %v4066_v47 = vsel %vm4062_vm12, %v4046_v39, %v4049_v1  ;;  %v4073_v48 = vsel %vm4063_vm3, %v4070_v54, %v4072_v60  ;;  %v4075_v30 = vsel %vm4065_vm14, %v4061_v33, 1326507024 }
 0x12b   : > { %v4068_v50 = vsel %vm4064_vm2, %v4052_v26, %v4067_v13  ;;  %v4076_v52 = vsel %vm4064_vm2, %v4058_v40, %v4075_v30  ;;  %v9018_v2 = vmul.u32.u64.low %v8982_v37, %v4073_v48  ;;  %v9019_v59 = vmul.u32.u64.high %v8982_v37, %v4073_v48, %v9018_v2 }
 0x12c   : > { %v8223_v49 = vpop.eup %8222  ;;  %vm7549_vm4 = vcmp.lt.s32.totalorder %v7548_v56, 0  ;;  %v4077_v58 = vsel %vm4063_vm3, %v4074_v45, %v4076_v52  ;;  %v1018_v61 = vshrl.u32 %v1017_v8, 23  ;;  %v4069_v19 = vsel %vm4063_vm3, %v4066_v47, %v4068_v50 }
 0x12d   : > { %v8225_v4 = vpop.eup %8224  ;;  %v1010_v63 = vxor.u32 2147483648, %v8223_v49  ;;  %v773_v18 = vsel %vm7549_vm4, 0, %v7548_v56  ;;  %v9027_v11 = vmul.u32.u64.low %v8982_v37, %v4077_v58  ;;  %v9028_v55 = vmul.u32.u64.high %v8982_v37, %v4077_v58, %v9027_v11 }
 0x12e   : > { %v1007_v5 = vxor.u32 2147483648, %v8225_v4  ;;  %v774_v17 = vsub.s32 32, %v773_v18  ;;  %v778_v25 = vsub.s32 4294967266, %v773_v18  ;;  %v4332_v22 = vand.u32 3, %v8956_v57  ;;  %v7885_v57 = vpop.f32.mrf.mxu1 }
 0x12f   : > { %v1011_v42 = vsel %vm1009_vm11, %v1010_v63, %v8225_v4  ;;  %v4088_v8 = vadd.s32 1, %v9019_v59  ;;  %v7558_v24 = vadd.s32 4294967169, %v1018_v61  ;;  %v775_v40 = vshll.u32 %v8969_v20, %v773_v18 }
 0x130   : > { %v1008_v1 = vsel %vm1006_vm13, %v8223_v49, %v1007_v5  ;;  %v776_v27 = vshrl.u32 %v758_v28, %v774_v17  ;;  %v779_v62 = vadd.s32 127, %v778_v25  ;;  %v791_v7 = vsel %vm8999_vm1, 0, %v789_v44 }
 0x131   : > { %v1012_v26 = vsel %vm1005_vm15, %v1008_v1, %v1011_v42  ;;  %v4085_v31 = vmul.u32 %v8982_v37, %v4069_v19  ;;  %vm4087_vm5 = vc.u32 %v9028_v55, %v9018_v2  ;;  %v1024_v32 = vadd.s32 1, %v7558_v24 }
 0x132   : > { %v1013_v29 = vsel %vm1002_vm0, nan, %v1012_v26  ;;  %v777_v9 = vor.u32 %v776_v27, %v775_v40  ;;  %v780_v20 = vshll.u32 %v779_v62, 23  ;;  %v4089_v28 = vsel %vm4087_vm5, %v4088_v8, %v9019_v59 }
 0x133   : > { %7360 = vst [vmem:[%s9048_s11 + $0x10] sm:$0xff] %v1013_v29  ;;  %v4090_v36 = vadd.s32 %v4089_v28, %v4085_v31  ;;  %v1014_v35 = vand.u32 2147483647, %v8949_v51  ;;  %vm4337_vm6 = vcmp.eq.s32.totalorder %v4332_v22, 2  ;;  %vm1025_vm7 = vcmp.gt.s32.totalorder %v1024_v32, 0 }
 0x134   : > { %v8227_v15 = vpop.eup %8226  ;;  %v781_v21 = vor.u32 4788187, %v780_v20  ;;  %v9054_v37 = vadd.f32 %v7885_v57, %v8743_v34  ;;  %v795_v54 = vadd.s32 3, %v791_v7  ;;  %v1026_v43 = vsel %vm1025_vm7, %v1024_v32, 0 }
 0x135   : > { %v8229_v33 = vpop.eup %8228  ;;  %v4338_v39 = vxor.u32 2147483648, %v8227_v15  ;;  %v4091_v41 = vadd.s32 536870912, %v4090_v36  ;;  %v784_v60 = vcvt.s32.f32 %v777_v9  ;;  %v1028_v45 = vand.u32 31, %v1026_v43 }
 0x136   : > { %v4335_v13 = vxor.u32 2147483648, %v8229_v33  ;;  %v782_v44 = vand.u32 2147483647, %v781_v21  ;;  %vm4334_vm8 = vcmp.eq.s32.totalorder %v4332_v22, 0  ;;  %v1021_v48 = vand.u32 8388607, %v1014_v35 }
 0x137   : > { %v4339_v56 = vsel %vm4337_vm6, %v4338_v39, %v8229_v33  ;;  %v9056_v47 = vshrl.u32 %v4091_v41, 30  ;;  %vm4333_vm9 = vcmp.lt.s32.totalorder %v4332_v22, 2  ;;  %v1029_v50 = vsub.s32 32, %v1028_v45 }
 0x138   : > { %v4336_v30 = vsel %vm4334_vm8, %v8227_v15, %v4335_v13  ;;  %v785_v49 = vmul.f32 %v784_v60, %v782_v44  ;;  %vm4330_vm11 = vweird.f32 %v8749_v38  ;;  %v9062_v58 = vand.u32 3, %v795_v54 }
 0x139   : > { %v4340_v52 = vsel %vm4333_vm9, %v4336_v30, %v4339_v56  ;;  %v4093_v59 = vshll.u32 %v9056_v47, 30  ;;  %v1032_v61 = vshrl.u32 %v8551_v10, %v1029_v50  ;;  %v1022_v18 = vor.u32 8388608, %v1021_v48 }
 0x13a   : > { %v4341_v4 = vsel %vm4330_vm11, nan, %v4340_v52  ;;  %v786_v63 = vxor.u32 2147483648, %v785_v49  ;;  %v1035_v11 = vshrl.u32 %v8552_v12, %v1029_v50  ;;  %v4345_v42 = vand.u32 2139095040, %v9054_v37 }
 0x13b   : > { %7392 = vst [vmem:[%s9048_s11 + $0x110] sm:$0xff] %v4341_v4  ;;  %v9066_v5 = vsub.s32 %v4090_v36, %v4093_v59  ;;  %v1027_v17 = vshrl.u32 %v1026_v43, 5  ;;  %v1031_v25 = vshll.u32 %v8550_v6, %v1028_v45  ;;  %v1038_v19 = vshrl.u32 %v8553_v14, %v1029_v50 }
 0x13c   : > { %v787_v38 = vsel %vm704_vm10, %v786_v63, %v785_v49  ;;  %v1034_v8 = vshll.u32 %v8551_v10, %v1028_v45  ;;  %v1037_v24 = vshll.u32 %v8552_v12, %v1028_v45  ;;  %v1040_v40 = vshll.u32 %v8553_v14, %v1028_v45 }
 0x13d   : > { %v790_v1 = vsel %vm8999_vm1, %v8758_v46, %v787_v38  ;;  %v4096_v22 = vsub.s32 0, %v9066_v5  ;;  %v1033_v26 = vor.u32 %v1032_v61, %v1031_v25  ;;  %v1041_v27 = vshrl.u32 %v8554_v16, %v1029_v50 }
 0x13e   : > { %8230 = vcosq.f32 %v790_v1  ;;  %v1036_v29 = vor.u32 %v1035_v11, %v1034_v8  ;;  %v1039_v7 = vor.u32 %v1038_v19, %v1037_v24  ;;  %v1043_v53 = vshll.u32 %v8554_v16, %v1028_v45 }
 0x13f   : > { %8232 = vsinq.f32 %v790_v1  ;;  %v7675_v62 = vmin.u32 %v4096_v22, %v9066_v5  ;;  %v1042_v31 = vor.u32 %v1041_v27, %v1040_v40  ;;  %v1044_v57 = vshrl.u32 %v8555_v23, %v1029_v50 }
 0x140   : > { %v1062_v9 = vshll.u32 %v1022_v18, 8  ;;  %v1030_v28 = vshrl.u32 %v8550_v6, %v1029_v50  ;;  %vm1046_vm10 = vcmp.lt.s32.totalorder %v1027_v17, 1  ;;  %v4346_v32 = vshrl.u32 %v4345_v42, 23 }
 0x141   : > { %v4098_v20 = vclz %v7675_v62  ;;  %vm4032_vm12 = vcmp.lt.s32.totalorder %v8765_v0, 0  ;;  %v1045_v36 = vor.u32 %v1044_v57, %v1043_v53  ;;  %vm1047_vm13 = vcmp.lt.s32.totalorder %v1027_v17, 2 }
 0x142   : > { %vm1048_vm14 = vcmp.lt.s32.totalorder %v1027_v17, 3  ;;  %vm1049_vm15 = vcmp.lt.s32.totalorder %v1027_v17, 4  ;;  %v1054_v33 = vsel %vm1046_vm10, %v1033_v26, %v1036_v29  ;;  %v1050_v54 = vsel %vm1046_vm10, %v1030_v28, %v1033_v26 }
 0x143   : > { %v7676_v15 = vadd.s32 4294967294, %v4098_v20  ;;  %v1051_v21 = vsel %vm1049_vm15, %v1039_v7, 2102212464  ;;  %v1055_v39 = vsel %vm1049_vm15, %v1042_v31, 920167782  ;;  %v1058_v43 = vsel %vm1046_vm10, %v1036_v29, %v1039_v7 }
 0x144   : > { %v1056_v41 = vsel %vm1048_vm14, %v1039_v7, %v1055_v39  ;;  %v1059_v13 = vsel %vm1049_vm15, %v1045_v36, 1326507024  ;;  %vm9089_vm0 = vcmp.le.f32.partialorder %v4030_v3, 0.7853982  ;;  %v1052_v60 = vsel %vm1048_vm14, %v1036_v29, %v1051_v21 }
 0x145   : > { %vm7677_vm1 = vcmp.lt.s32.totalorder %v7676_v15, 0  ;;  %v1057_v45 = vsel %vm1047_vm13, %v1054_v33, %v1056_v41  ;;  %v1060_v56 = vsel %vm1048_vm14, %v1042_v31, %v1059_v13  ;;  %v4086_v52 = vadd.s32 %v9018_v2, %v9028_v55 }
 0x146   : > { %v4101_v48 = vsel %vm7677_vm1, 0, %v7676_v15  ;;  %v1061_v30 = vsel %vm1047_vm13, %v1058_v43, %v1060_v56  ;;  %v9095_v49 = vmul.u32.u64.low %v1062_v9, %v1057_v45  ;;  %v9096_v50 = vmul.u32.u64.high %v1062_v9, %v1057_v45, %v9095_v49 }
 0x147   : > { %v4102_v59 = vsub.s32 32, %v4101_v48  ;;  %v4106_v3 = vsub.s32 4294967266, %v4101_v48  ;;  %v4116_v4 = vsub.s32 4, %v9056_v47  ;;  %v4342_v18 = vand.u32 2147483647, %v9054_v37 }
 0x148   : > { %v9102_v63 = vmul.u32.u64.low %v1062_v9, %v1061_v30  ;;  %v9103_v61 = vmul.u32.u64.high %v1062_v9, %v1061_v30, %v9102_v63  ;;  %v7686_v11 = vadd.s32 4294967169, %v4346_v32  ;;  %v4103_v42 = vshll.u32 %v9066_v5, %v4101_v48  ;;  %v450_v32 = vpop.f32.mrf.mxu0 }
 0x149   : > { %v4104_v38 = vshrl.u32 %v4086_v52, %v4102_v59  ;;  %v4107_v25 = vadd.s32 127, %v4106_v3  ;;  %v1053_v19 = vsel %vm1047_vm13, %v1050_v54, %v1052_v60  ;;  %vm797_vm2 = vcmp.lt.s32.totalorder %v9062_v58, 2 }
 0x14a   : > { %vm798_vm3 = vcmp.eq.s32.totalorder %v9062_v58, 0  ;;  %v1072_v2 = vadd.s32 1, %v9096_v50  ;;  %v4352_v55 = vadd.s32 1, %v7686_v11  ;;  %vm801_vm4 = vcmp.eq.s32.totalorder %v9062_v58, 2 }
 0x14b   : > { %v8231_v1 = vpop.eup %8230  ;;  %v4105_v22 = vor.u32 %v4104_v38, %v4103_v42  ;;  %v4108_v8 = vshll.u32 %v4107_v25, 23  ;;  %v4117_v5 = vsel %vm4032_vm12, %v4116_v4, %v9056_v47  ;;  %v1069_v17 = vmul.u32 %v1062_v9, %v1053_v19 }
 0x14c   : > { %v8233_v24 = vpop.eup %8232  ;;  %v802_v26 = vxor.u32 2147483648, %v8231_v1  ;;  %vm1071_vm5 = vc.u32 %v9103_v61, %v9095_v49  ;;  %vm4353_vm6 = vcmp.gt.s32.totalorder %v4352_v55, 0  ;;  %v4349_v29 = vand.u32 8388607, %v4342_v18 }
 0x14d   : > { %v799_v40 = vxor.u32 2147483648, %v8233_v24  ;;  %v4109_v27 = vor.u32 4788187, %v4108_v8  ;;  %v1073_v62 = vsel %vm1071_vm5, %v1072_v2, %v9096_v50  ;;  %v4119_v31 = vsel %vm9089_vm0, 0, %v4117_v5 }
 0x14e   : > { %v803_v7 = vsel %vm801_vm4, %v802_v26, %v8233_v24  ;;  %v1074_v47 = vadd.s32 %v1073_v62, %v1069_v17  ;;  %v4354_v53 = vsel %vm4353_vm6, %v4352_v55, 0  ;;  %v4112_v20 = vcvt.s32.f32 %v4105_v22 }
 0x14f   : > { %v800_v57 = vsel %vm798_vm3, %v8231_v1, %v799_v40  ;;  %v4110_v9 = vand.u32 2147483647, %v4109_v27  ;;  %v4356_v28 = vand.u32 31, %v4354_v53  ;;  %vm794_vm7 = vweird.f32 %v8758_v46 }
 0x150   : > { %v804_v36 = vsel %vm797_vm2, %v800_v57, %v803_v7  ;;  %v1075_v15 = vadd.s32 536870912, %v1074_v47  ;;  %v4123_v39 = vadd.s32 3, %v4119_v31  ;;  %v4350_v43 = vor.u32 8388608, %v4349_v29 }
 0x151   : > { %v805_v21 = vsel %vm794_vm7, nan, %v804_v36  ;;  %v4113_v33 = vmul.f32 %v4112_v20, %v4110_v9  ;;  %v4357_v54 = vsub.s32 32, %v4356_v28  ;;  %v4359_v13 = vshll.u32 %v8550_v6, %v4356_v28 }
 0x152   : > { %7358 = vst [vmem:[%s9048_s11] sm:$0xff] %v805_v21  ;;  %v9128_v41 = vshrl.u32 %v1075_v15, 30  ;;  %v9132_v60 = vadd.f32 %v8743_v34, %v450_v32  ;;  %v4362_v58 = vshll.u32 %v8551_v10, %v4356_v28  ;;  %v4365_v30 = vshll.u32 %v8552_v12, %v4356_v28 }
 0x153   : > { %v4114_v45 = vxor.u32 2147483648, %v4113_v33  ;;  %v4360_v46 = vshrl.u32 %v8551_v10, %v4357_v54  ;;  %v4363_v56 = vshrl.u32 %v8552_v12, %v4357_v54  ;;  %v4366_v50 = vshrl.u32 %v8553_v14, %v4357_v54 }
 0x154   : > { %v1077_v48 = vshll.u32 %v9128_v41, 30  ;;  %v4369_v52 = vshrl.u32 %v8554_v16, %v4357_v54  ;;  %v4355_v34 = vshrl.u32 %v4354_v53, 5  ;;  %v4368_v4 = vshll.u32 %v8553_v14, %v4356_v28 }
 0x155   : > { %v4115_v59 = vsel %vm4032_vm12, %v4114_v45, %v4113_v33  ;;  %v4361_v3 = vor.u32 %v4360_v46, %v4359_v13  ;;  %v4364_v42 = vor.u32 %v4363_v56, %v4362_v58  ;;  %v4367_v38 = vor.u32 %v4366_v50, %v4365_v30 }
 0x156   : > { %v4118_v63 = vsel %vm9089_vm0, %v8765_v0, %v4115_v59  ;;  %v9147_v11 = vsub.s32 %v1074_v47, %v1077_v48  ;;  %v4370_v25 = vor.u32 %v4369_v52, %v4368_v4  ;;  %v4371_v19 = vshll.u32 %v8554_v16, %v4356_v28 }
 0x157   : > { %8234 = vcosq.f32 %v4118_v63  ;;  %v4372_v2 = vshrl.u32 %v8555_v23, %v4357_v54  ;;  %v9151_v55 = vand.u32 3, %v4123_v39  ;;  %vm1016_vm8 = vcmp.lt.s32.totalorder %v8949_v51, 0 }
 0x158   : > { %8236 = vsinq.f32 %v4118_v63  ;;  %v1080_v1 = vsub.s32 0, %v9147_v11  ;;  %vm4377_vm9 = vcmp.lt.s32.totalorder %v4355_v34, 4  ;;  %v4390_v44 = vshll.u32 %v4350_v43, 8 }
 0x159   : > { %v4373_v22 = vor.u32 %v4372_v2, %v4371_v19  ;;  %v809_v8 = vand.u32 2139095040, %v9132_v60  ;;  %v4358_v24 = vshrl.u32 %v8550_v6, %v4357_v54  ;;  %vm4374_vm11 = vcmp.lt.s32.totalorder %v4355_v34, 1 }
 0x15a   : > { %v7559_v5 = vmin.u32 %v1080_v1, %v9147_v11  ;;  %v4379_v26 = vsel %vm4377_vm9, %v4367_v38, 2102212464  ;;  %vm4375_vm10 = vcmp.lt.s32.totalorder %v4355_v34, 2  ;;  %v4382_v17 = vsel %vm4374_vm11, %v4361_v3, %v4364_v42 }
 0x15b   : > { %v4383_v40 = vsel %vm4377_vm9, %v4370_v25, 920167782  ;;  %v806_v27 = vand.u32 2147483647, %v9132_v60  ;;  %vm4376_vm12 = vcmp.lt.s32.totalorder %v4355_v34, 3  ;;  %v4378_v29 = vsel %vm4374_vm11, %v4358_v24, %v4361_v3 }
 0x15c   : > { %v1082_v62 = vclz %v7559_v5  ;;  %v4386_v7 = vsel %vm4374_vm11, %v4364_v42, %v4367_v38  ;;  %v4380_v31 = vsel %vm4376_vm12, %v4364_v42, %v4379_v26  ;;  %v4384_v47 = vsel %vm4376_vm12, %v4367_v38, %v4383_v40 }
 0x15d   : > { %v4387_v53 = vsel %vm4377_vm9, %v4373_v22, 1326507024  ;;  %v810_v57 = vshrl.u32 %v809_v8, 23  ;;  %v1100_v20 = vsub.s32 4, %v9128_v41  ;;  %v4385_v28 = vsel %vm4375_vm10, %v4382_v17, %v4384_v47 }
 0x15e   : > { %v7560_v9 = vadd.s32 4294967294, %v1082_v62  ;;  %v4388_v32 = vsel %vm4376_vm12, %v4370_v25, %v4387_v53  ;;  %v9165_v15 = vmul.u32.u64.low %v4390_v44, %v4385_v28  ;;  %v9166_v21 = vmul.u32.u64.high %v4390_v44, %v4385_v28, %v9165_v15 }
 0x15f   : > { %v4389_v36 = vsel %vm4375_vm10, %v4386_v7, %v4388_v32  ;;  %v7550_v33 = vadd.s32 4294967169, %v810_v57  ;;  %v4381_v39 = vsel %vm4375_vm10, %v4378_v29, %v4380_v31  ;;  %vm4122_vm14 = vweird.f32 %v8765_v0 }
 0x160   : > { %vm7561_vm13 = vcmp.lt.s32.totalorder %v7560_v9, 0  ;;  %v9170_v54 = vmul.u32.u64.low %v4390_v44, %v4389_v36  ;;  %v9171_v43 = vmul.u32.u64.high %v4390_v44, %v4389_v36, %v9170_v54  ;;  %vm4129_vm15 = vcmp.eq.s32.totalorder %v9151_v55, 2 }
 0x161   : > { %vm9177_vm0 = vcmp.le.f32.partialorder %v1014_v35, 0.7853982  ;;  %v1085_v45 = vsel %vm7561_vm13, 0, %v7560_v9  ;;  %v816_v46 = vadd.s32 1, %v7550_v33  ;;  %v1070_v58 = vadd.s32 %v9095_v49, %v9103_v61  ;;  %v578_v49 = vpop.f32.mrf.mxu1 }
 0x162   : > { %v1086_v56 = vsub.s32 32, %v1085_v45  ;;  %v1090_v48 = vsub.s32 4294967266, %v1085_v45  ;;  %v1101_v30 = vsel %vm1016_vm8, %v1100_v20, %v9128_v41  ;;  %v4397_v50 = vmul.u32 %v4390_v44, %v4381_v39  ;;  %v9201_v44 = vld [vmem:[%s13586_s2] ss:$0 sm:$0xff] }
 0x163   : > { %v4400_v52 = vadd.s32 1, %v9166_v21  ;;  %v813_v35 = vand.u32 8388607, %v806_v27  ;;  %vm817_vm1 = vcmp.gt.s32.totalorder %v816_v46, 0  ;;  %v1087_v34 = vshll.u32 %v9147_v11, %v1085_v45 }
 0x164   : > { %v8235_v59 = vpop.eup %8234  ;;  %v1088_v3 = vshrl.u32 %v1070_v58, %v1086_v56  ;;  %v1091_v4 = vadd.s32 127, %v1090_v48  ;;  %vm4399_vm2 = vc.u32 %v9171_v43, %v9165_v15  ;;  %v1103_v41 = vsel %vm9177_vm0, 0, %v1101_v30 }
 0x165   : > { %v8237_v61 = vpop.eup %8236  ;;  %v4130_v63 = vxor.u32 2147483648, %v8235_v59  ;;  %v4401_v42 = vsel %vm4399_vm2, %v4400_v52, %v9166_v21  ;;  %v818_v38 = vsel %vm817_vm1, %v816_v46, 0  ;;  %vm4126_vm3 = vcmp.eq.s32.totalorder %v9151_v55, 0 }
 0x166   : > { %v4127_v25 = vxor.u32 2147483648, %v8237_v61  ;;  %v1089_v19 = vor.u32 %v1088_v3, %v1087_v34  ;;  %v1092_v2 = vshll.u32 %v1091_v4, 23  ;;  %v4402_v1 = vadd.s32 %v4401_v42, %v4397_v50 }
 0x167   : > { %v4131_v11 = vsel %vm4129_vm15, %v4130_v63, %v8237_v61  ;;  %v820_v22 = vand.u32 31, %v818_v38  ;;  %v9204_v8 = vadd.f32 %v9201_v44, %v578_v49  ;;  %vm4125_vm4 = vcmp.lt.s32.totalorder %v9151_v55, 2 }
 0x168   : > { %v4128_v5 = vsel %vm4126_vm3, %v8235_v59, %v4127_v25  ;;  %v1093_v24 = vor.u32 4788187, %v1092_v2  ;;  %v4403_v26 = vadd.s32 536870912, %v4402_v1  ;;  %v9207_v40 = vadd.s32 3, %v1103_v41 }
 0x169   : > { %v4132_v17 = vsel %vm4125_vm4, %v4128_v5, %v4131_v11  ;;  %v814_v62 = vor.u32 8388608, %v813_v35  ;;  %v821_v29 = vsub.s32 32, %v820_v22  ;;  %v1096_v47 = vcvt.s32.f32 %v1089_v19 }
 0x16a   : > { %v4133_v7 = vsel %vm4122_vm14, nan, %v4132_v17  ;;  %v1094_v31 = vand.u32 2147483647, %v1093_v24  ;;  %v9211_v53 = vshrl.u32 %v4403_v26, 30  ;;  %v4137_v20 = vand.u32 2139095040, %v9204_v8 }
 0x16b   : > { %7390 = vst [vmem:[%s9048_s11 + $0x100] sm:$0xff] %v4133_v7  ;;  %v824_v57 = vshrl.u32 %v8551_v10, %v821_v29  ;;  %v827_v55 = vshrl.u32 %v8552_v12, %v821_v29  ;;  %v830_v9 = vshrl.u32 %v8553_v14, %v821_v29  ;;  %v823_v36 = vshll.u32 %v8550_v6, %v820_v22 }
 0x16c   : > { %v1097_v28 = vmul.f32 %v1096_v47, %v1094_v31  ;;  %v4405_v32 = vshll.u32 %v9211_v53, 30  ;;  %v826_v0 = vshll.u32 %v8551_v10, %v820_v22  ;;  %v819_v21 = vshrl.u32 %v818_v38, 5 }
 0x16d   : > { %v829_v33 = vshll.u32 %v8552_v12, %v820_v22  ;;  %v832_v39 = vshll.u32 %v8553_v14, %v820_v22  ;;  %v833_v54 = vshrl.u32 %v8554_v16, %v821_v29  ;;  %v825_v58 = vor.u32 %v824_v57, %v823_v36 }
 0x16e   : > { %v1098_v45 = vxor.u32 2147483648, %v1097_v28  ;;  %v9224_v46 = vsub.s32 %v4402_v1, %v4405_v32  ;;  %v828_v56 = vor.u32 %v827_v55, %v826_v0  ;;  %v835_v50 = vshll.u32 %v8554_v16, %v820_v22 }
 0x16f   : > { %v831_v48 = vor.u32 %v830_v9, %v829_v33  ;;  %v834_v30 = vor.u32 %v833_v54, %v832_v39  ;;  %v836_v52 = vshrl.u32 %v8555_v23, %v821_v29  ;;  %v854_v34 = vshll.u32 %v814_v62, 8 }
 0x170   : > { %v1099_v35 = vsel %vm1016_vm8, %v1098_v45, %v1097_v28  ;;  %v4408_v59 = vsub.s32 0, %v9224_v46  ;;  %v4134_v3 = vand.u32 2147483647, %v9204_v8  ;;  %v822_v49 = vshrl.u32 %v8550_v6, %v821_v29 }
 0x171   : > { %v1102_v4 = vsel %vm9177_vm0, %v8949_v51, %v1099_v35  ;;  %v837_v61 = vor.u32 %v836_v52, %v835_v50  ;;  %v4138_v63 = vshrl.u32 %v4137_v20, 23  ;;  %vm838_vm5 = vcmp.lt.s32.totalorder %v819_v21, 1 }
 0x172   : > { %8238 = vcosq.f32 %v1102_v4  ;;  %v7687_v41 = vmin.u32 %v4408_v59, %v9224_v46  ;;  %vm841_vm6 = vcmp.lt.s32.totalorder %v819_v21, 4  ;;  %v846_v38 = vsel %vm838_vm5, %v825_v58, %v828_v56 }
 0x173   : > { %8240 = vsinq.f32 %v1102_v4  ;;  %v843_v42 = vsel %vm841_vm6, %v831_v48, 2102212464  ;;  %v847_v25 = vsel %vm841_vm6, %v834_v30, 920167782  ;;  %vm839_vm7 = vcmp.lt.s32.totalorder %v819_v21, 2 }
 0x174   : > { %v4410_v19 = vclz %v7687_v41  ;;  %vm840_vm8 = vcmp.lt.s32.totalorder %v819_v21, 3  ;;  %v842_v2 = vsel %vm838_vm5, %v822_v49, %v825_v58  ;;  %v850_v11 = vsel %vm838_vm5, %v828_v56, %v831_v48  ;;  %v7856_v49 = vpop.f32.mrf.mxu0 }
 0x175   : > { %v844_v1 = vsel %vm840_vm8, %v828_v56, %v843_v42  ;;  %v848_v13 = vsel %vm840_vm8, %v831_v48, %v847_v25  ;;  %v851_v22 = vsel %vm841_vm6, %v837_v61, 1326507024  ;;  %v4428_v24 = vsub.s32 4, %v9211_v53 }
 0x176   : > { %v7688_v5 = vadd.s32 4294967294, %v4410_v19  ;;  %v849_v26 = vsel %vm839_vm7, %v846_v38, %v848_v13  ;;  %v852_v17 = vsel %vm840_vm8, %v834_v30, %v851_v22  ;;  %v845_v62 = vsel %vm839_vm7, %v842_v2, %v844_v1 }
 0x177   : > { %v853_v29 = vsel %vm839_vm7, %v850_v11, %v852_v17  ;;  %v9238_v7 = vmul.u32.u64.low %v854_v34, %v849_v26  ;;  %v9239_v31 = vmul.u32.u64.high %v854_v34, %v849_v26, %v9238_v7  ;;  %v7678_v55 = vadd.s32 4294967169, %v4138_v63 }
 0x178   : > { %vm7689_vm9 = vcmp.lt.s32.totalorder %v7688_v5, 0  ;;  %v9241_v47 = vmul.u32.u64.low %v854_v34, %v853_v29  ;;  %v9242_v57 = vmul.u32.u64.high %v854_v34, %v853_v29, %v9241_v47  ;;  %vm9246_vm11 = vcmp.le.f32.partialorder %v4342_v18, 0.7853982 }
 0x179   : > { %vm4344_vm10 = vcmp.lt.s32.totalorder %v9054_v37, 0  ;;  %v4398_v20 = vadd.s32 %v9165_v15, %v9171_v43  ;;  %v4413_v28 = vsel %vm7689_vm9, 0, %v7688_v5  ;;  %v4144_v21 = vadd.s32 1, %v7678_v55 }
 0x17a   : > { %v4414_v32 = vsub.s32 32, %v4413_v28  ;;  %v4418_v36 = vsub.s32 4294967266, %v4413_v28  ;;  %v4429_v0 = vsel %vm4344_vm10, %v4428_v24, %v9211_v53  ;;  %v1108_v33 = vand.u32 3, %v9207_v40 }
 0x17b   : > { %v861_v39 = vmul.u32 %v854_v34, %v845_v62  ;;  %v864_v18 = vadd.s32 1, %v9239_v31  ;;  %v4141_v54 = vand.u32 8388607, %v4134_v3  ;;  %v4415_v45 = vshll.u32 %v9224_v46, %v4413_v28 }
 0x17c   : > { %v4416_v58 = vshrl.u32 %v4398_v20, %v4414_v32  ;;  %v4419_v15 = vadd.s32 127, %v4418_v36  ;;  %vm863_vm12 = vc.u32 %v9242_v57, %v9238_v7  ;;  %v4431_v43 = vsel %vm9246_vm11, 0, %v4429_v0 }
 0x17d   : > { %v865_v53 = vsel %vm863_vm12, %v864_v18, %v9239_v31  ;;  %vm4145_vm13 = vcmp.gt.s32.totalorder %v4144_v21, 0  ;;  %vm1106_vm14 = vweird.f32 %v8949_v51  ;;  %vm1109_vm15 = vcmp.lt.s32.totalorder %v1108_v33, 2 }
 0x17e   : > { %v4417_v56 = vor.u32 %v4416_v58, %v4415_v45  ;;  %v4420_v40 = vshll.u32 %v4419_v15, 23  ;;  %v866_v48 = vadd.s32 %v865_v53, %v861_v39  ;;  %v4146_v30 = vsel %vm4145_vm13, %v4144_v21, 0 }
 0x17f   : > { %v8239_v50 = vpop.eup %8238  ;;  %vm1110_vm0 = vcmp.eq.s32.totalorder %v1108_v33, 0  ;;  %v4148_v46 = vand.u32 31, %v4146_v30  ;;  %v4142_v4 = vor.u32 8388608, %v4141_v54  ;;  %vm1113_vm1 = vcmp.eq.s32.totalorder %v1108_v33, 2 }
 0x180   : > { %v8241_v52 = vpop.eup %8240  ;;  %v1114_v35 = vxor.u32 2147483648, %v8239_v50  ;;  %v4421_v59 = vor.u32 4788187, %v4420_v40  ;;  %v867_v34 = vadd.s32 536870912, %v866_v48  ;;  %v9266_v63 = vadd.s32 3, %v4431_v43 }
 0x181   : > { %v1111_v61 = vxor.u32 2147483648, %v8241_v52  ;;  %v4149_v41 = vsub.s32 32, %v4148_v46  ;;  %v4424_v25 = vcvt.s32.f32 %v4417_v56  ;;  %v9270_v1 = vadd.s32 %v9238_v7, %v9242_v57 }
 0x182   : > { %v1115_v42 = vsel %vm1113_vm1, %v1114_v35, %v8241_v52  ;;  %v4422_v38 = vand.u32 2147483647, %v4421_v59  ;;  %v868_v19 = vshrl.u32 %v867_v34, 30  ;;  %v9274_v11 = vadd.f32 %v9201_v44, %v7856_v49 }
 0x183   : > { %v1112_v2 = vsel %vm1110_vm0, %v8239_v50, %v1111_v61  ;;  %v4152_v13 = vshrl.u32 %v8551_v10, %v4149_v41  ;;  %v9277_v26 = vshll.u32 %v4142_v4, 8  ;;  %v4151_v62 = vshll.u32 %v8550_v6, %v4148_v46 }
 0x184   : > { %v1116_v22 = vsel %vm1109_vm15, %v1112_v2, %v1115_v42  ;;  %v4425_v5 = vmul.f32 %v4424_v25, %v4422_v38  ;;  %v869_v24 = vshll.u32 %v868_v19, 30  ;;  %v4155_v29 = vshrl.u32 %v8552_v12, %v4149_v41 }
 0x185   : > { %v1117_v17 = vsel %vm1106_vm14, nan, %v1116_v22  ;;  %v4158_v7 = vshrl.u32 %v8553_v14, %v4149_v41  ;;  %v4147_v57 = vshrl.u32 %v4146_v30, 5  ;;  %v4154_v55 = vshll.u32 %v8551_v10, %v4148_v46 }
 0x186   : > { %7361 = vst [vmem:[%s9048_s11 + $0x18] sm:$0xff] %v1117_v17  ;;  %v4426_v31 = vxor.u32 2147483648, %v4425_v5  ;;  %v9285_v47 = vsub.s32 %v866_v48, %v869_v24  ;;  %v4153_v20 = vor.u32 %v4152_v13, %v4151_v62  ;;  %v4157_v28 = vshll.u32 %v8552_v12, %v4148_v46 }
 0x187   : > { %v4160_v32 = vshll.u32 %v8553_v14, %v4148_v46  ;;  %v4161_v51 = vshrl.u32 %v8554_v16, %v4149_v41  ;;  %vm808_vm2 = vcmp.lt.s32.totalorder %v9132_v60, 0  ;;  %v4163_v21 = vshll.u32 %v8554_v16, %v4148_v46 }
 0x188   : > { %v4427_v36 = vsel %vm4344_vm10, %v4426_v31, %v4425_v5  ;;  %v872_v0 = vsub.s32 0, %v9285_v47  ;;  %v4164_v33 = vshrl.u32 %v8555_v23, %v4149_v41  ;;  %v4156_v18 = vor.u32 %v4155_v29, %v4154_v55 }
 0x189   : > { %v4430_v39 = vsel %vm9246_vm11, %v9054_v37, %v4427_v36  ;;  %v4159_v54 = vor.u32 %v4158_v7, %v4157_v28  ;;  %v4162_v45 = vor.u32 %v4161_v51, %v4160_v32  ;;  %v1329_v43 = vand.u32 2139095040, %v9274_v11 }
 0x18a   : > { %8242 = vcosq.f32 %v4430_v39  ;;  %v7551_v58 = vmin.u32 %v872_v0, %v9285_v47  ;;  %v4165_v15 = vor.u32 %v4164_v33, %v4163_v21  ;;  %v892_v53 = vsub.s32 4, %v868_v19 }
 0x18b   : > { %8244 = vsinq.f32 %v4430_v39  ;;  %v4150_v56 = vshrl.u32 %v8550_v6, %v4149_v41  ;;  %vm4166_vm3 = vcmp.lt.s32.totalorder %v4147_v57, 1  ;;  %vm4167_vm4 = vcmp.lt.s32.totalorder %v4147_v57, 2 }
 0x18c   : > { %v874_v40 = vclz %v7551_v58  ;;  %vm4168_vm5 = vcmp.lt.s32.totalorder %v4147_v57, 3  ;;  %vm4169_vm6 = vcmp.lt.s32.totalorder %v4147_v57, 4  ;;  %v4174_v48 = vsel %vm4166_vm3, %v4153_v20, %v4156_v18 }
 0x18d   : > { %v4171_v9 = vsel %vm4169_vm6, %v4159_v54, 2102212464  ;;  %v4175_v30 = vsel %vm4169_vm6, %v4162_v45, 920167782  ;;  %v4178_v50 = vsel %vm4166_vm3, %v4156_v18, %v4159_v54  ;;  %v4170_v52 = vsel %vm4166_vm3, %v4150_v56, %v4153_v20  ;;  %v7888_v56 = vpop.f32.mrf.mxu1 }
 0x18e   : > { %v7552_v46 = vadd.s32 4294967294, %v874_v40  ;;  %v4176_v35 = vsel %vm4168_vm5, %v4159_v54, %v4175_v30  ;;  %v4179_v59 = vsel %vm4169_vm6, %v4165_v15, 1326507024  ;;  %v4172_v34 = vsel %vm4168_vm5, %v4156_v18, %v4171_v9 }
 0x18f   : > { %v4177_v4 = vsel %vm4167_vm4, %v4174_v48, %v4176_v35  ;;  %v4180_v49 = vsel %vm4168_vm5, %v4162_v45, %v4179_v59  ;;  %v1330_v61 = vshrl.u32 %v1329_v43, 23  ;;  %v893_v2 = vsel %vm808_vm2, %v892_v53, %v868_v19 }
 0x190   : > { %vm7553_vm7 = vcmp.lt.s32.totalorder %v7552_v46, 0  ;;  %v4181_v41 = vsel %vm4167_vm4, %v4178_v50, %v4180_v49  ;;  %v9306_v42 = vmul.u32.u64.low %v9277_v26, %v4177_v4  ;;  %v9307_v38 = vmul.u32.u64.high %v9277_v26, %v4177_v4, %v9306_v42 }
 0x191   : > { %v877_v25 = vsel %vm7553_vm7, 0, %v7552_v46  ;;  %v9313_v13 = vmul.u32.u64.low %v9277_v26, %v4181_v41  ;;  %v9314_v22 = vmul.u32.u64.high %v9277_v26, %v4181_v41, %v9313_v13  ;;  %v4173_v17 = vsel %vm4167_vm4, %v4170_v52, %v4172_v34 }
 0x192   : > { %v878_v5 = vsub.s32 32, %v877_v25  ;;  %v882_v24 = vsub.s32 4294967266, %v877_v25  ;;  %v7570_v62 = vadd.s32 4294967169, %v1330_v61  ;;  %vm9319_vm8 = vcmp.le.f32.partialorder %v806_v27, 0.7853982 }
 0x193   : > { %v879_v7 = vshll.u32 %v9285_v47, %v877_v25  ;;  %v1326_v31 = vand.u32 2147483647, %v9274_v11  ;;  %v4192_v20 = vadd.s32 1, %v9307_v38  ;;  %v4436_v57 = vand.u32 3, %v9266_v63 }
 0x194   : > { %v880_v19 = vshrl.u32 %v9270_v1, %v878_v5  ;;  %v883_v55 = vadd.s32 127, %v882_v24  ;;  %v1336_v28 = vadd.s32 1, %v7570_v62  ;;  %v895_v32 = vsel %vm9319_vm8, 0, %v893_v2 }
 0x195   : > { %v4189_v27 = vmul.u32 %v9277_v26, %v4173_v17  ;;  %vm4191_vm9 = vc.u32 %v9314_v22, %v9306_v42  ;;  %vm4434_vm10 = vweird.f32 %v9054_v37  ;;  %v899_v18 = vadd.s32 3, %v895_v32 }
 0x196   : > { %v881_v51 = vor.u32 %v880_v19, %v879_v7  ;;  %v884_v47 = vshll.u32 %v883_v55, 23  ;;  %v4193_v36 = vsel %vm4191_vm9, %v4192_v20, %v9307_v38  ;;  %vm1337_vm11 = vcmp.gt.s32.totalorder %v1336_v28, 0 }
 0x197   : > { %v8243_v1 = vpop.eup %8242  ;;  %v4194_v0 = vadd.s32 %v4193_v36, %v4189_v27  ;;  %v1338_v21 = vsel %vm1337_vm11, %v1336_v28, 0  ;;  %v1333_v26 = vand.u32 8388607, %v1326_v31  ;;  %vm4441_vm12 = vcmp.eq.s32.totalorder %v4436_v57, 2 }
 0x198   : > { %v8245_v33 = vpop.eup %8244  ;;  %v4442_v63 = vxor.u32 2147483648, %v8243_v1  ;;  %v885_v39 = vor.u32 4788187, %v884_v47  ;;  %v1340_v58 = vand.u32 31, %v1338_v21  ;;  %vm4438_vm13 = vcmp.eq.s32.totalorder %v4436_v57, 0 }
 0x199   : > { %v4439_v54 = vxor.u32 2147483648, %v8245_v33  ;;  %v4195_v45 = vadd.s32 536870912, %v4194_v0  ;;  %v888_v53 = vcvt.s32.f32 %v881_v51  ;;  %vm4437_vm14 = vcmp.lt.s32.totalorder %v4436_v57, 2 }
 0x19a   : > { %v4443_v15 = vsel %vm4441_vm12, %v4442_v63, %v8245_v33  ;;  %v886_v43 = vand.u32 2147483647, %v885_v39  ;;  %v1341_v48 = vsub.s32 32, %v1340_v58  ;;  %v9339_v46 = vand.u32 3, %v899_v18 }
 0x19b   : > { %v4440_v40 = vsel %vm4438_vm13, %v8243_v1, %v4439_v54  ;;  %v9337_v9 = vshrl.u32 %v4195_v45, 30  ;;  %v1334_v52 = vor.u32 8388608, %v1333_v26  ;;  %v1343_v34 = vshll.u32 %v8550_v6, %v1340_v58 }
 0x19c   : > { %v4444_v30 = vsel %vm4437_vm14, %v4440_v40, %v4443_v15  ;;  %v889_v50 = vmul.f32 %v888_v53, %v886_v43  ;;  %v9346_v4 = vadd.f32 %v9201_v44, %v7888_v56  ;;  %v1344_v61 = vshrl.u32 %v8551_v10, %v1341_v48 }
 0x19d   : > { %v4445_v35 = vsel %vm4434_vm10, nan, %v4444_v30  ;;  %v4197_v59 = vshll.u32 %v9337_v9, 30  ;;  %v1347_v41 = vshrl.u32 %v8552_v12, %v1341_v48  ;;  %v1350_v38 = vshrl.u32 %v8553_v14, %v1341_v48 }
 0x19e   : > { %7393 = vst [vmem:[%s9048_s11 + $0x118] sm:$0xff] %v4445_v35  ;;  %v890_v49 = vxor.u32 2147483648, %v889_v50  ;;  %v1346_v37 = vshll.u32 %v8551_v10, %v1340_v58  ;;  %v1349_v2 = vshll.u32 %v8552_v12, %v1340_v58  ;;  %v1353_v13 = vshrl.u32 %v8554_v16, %v1341_v48 }
 0x19f   : > { %v9352_v25 = vsub.s32 %v4194_v0, %v4197_v59  ;;  %v1339_v24 = vshrl.u32 %v1338_v21, 5  ;;  %v1345_v17 = vor.u32 %v1344_v61, %v1343_v34  ;;  %v1352_v62 = vshll.u32 %v8553_v14, %v1340_v58 }
 0x1a0   : > { %v891_v5 = vsel %vm808_vm2, %v890_v49, %v889_v50  ;;  %v1348_v55 = vor.u32 %v1347_v41, %v1346_v37  ;;  %v1351_v20 = vor.u32 %v1350_v38, %v1349_v2  ;;  %v1355_v57 = vshll.u32 %v8554_v16, %v1340_v58 }
 0x1a1   : > { %v894_v7 = vsel %vm9319_vm8, %v9132_v60, %v891_v5  ;;  %v4200_v19 = vsub.s32 0, %v9352_v25  ;;  %v1354_v28 = vor.u32 %v1353_v13, %v1352_v62  ;;  %v1356_v32 = vshrl.u32 %v8555_v23, %v1341_v48 }
 0x1a2   : > { %8246 = vcosq.f32 %v894_v7  ;;  %v1374_v51 = vshll.u32 %v1334_v52, 8  ;;  %v4657_v47 = vand.u32 2139095040, %v9346_v4  ;;  %v1342_v36 = vshrl.u32 %v8550_v6, %v1341_v48 }
 0x1a3   : > { %8248 = vsinq.f32 %v894_v7  ;;  %v7679_v27 = vmin.u32 %v4200_v19, %v9352_v25  ;;  %v1357_v29 = vor.u32 %v1356_v32, %v1355_v57  ;;  %vm1358_vm15 = vcmp.lt.s32.totalorder %v1339_v24, 1 }
 0x1a4   : > { %vm1359_vm0 = vcmp.lt.s32.totalorder %v1339_v24, 2  ;;  %vm1360_vm1 = vcmp.lt.s32.totalorder %v1339_v24, 3  ;;  %vm1361_vm2 = vcmp.lt.s32.totalorder %v1339_v24, 4  ;;  %v1366_v0 = vsel %vm1358_vm15, %v1345_v17, %v1348_v55 }
 0x1a5   : > { %v4202_v1 = vclz %v7679_v27  ;;  %v1363_v21 = vsel %vm1361_vm2, %v1351_v20, 2102212464  ;;  %v1367_v33 = vsel %vm1361_vm2, %v1354_v28, 920167782  ;;  %v1370_v63 = vsel %vm1358_vm15, %v1348_v55, %v1351_v20 }
 0x1a6   : > { %v1371_v39 = vsel %vm1361_vm2, %v1357_v29, 1326507024  ;;  %v4220_v26 = vsub.s32 4, %v9337_v9  ;;  %v1368_v54 = vsel %vm1360_vm1, %v1351_v20, %v1367_v33  ;;  %v1362_v58 = vsel %vm1358_vm15, %v1342_v36, %v1345_v17 }
 0x1a7   : > { %v7680_v18 = vadd.s32 4294967294, %v4202_v1  ;;  %v1372_v45 = vsel %vm1360_vm1, %v1354_v28, %v1371_v39  ;;  %v1369_v15 = vsel %vm1359_vm0, %v1366_v0, %v1368_v54  ;;  %v4658_v53 = vshrl.u32 %v4657_v47, 23 }
 0x1a8   : > { %v1373_v43 = vsel %vm1359_vm0, %v1370_v63, %v1372_v45  ;;  %v1364_v56 = vsel %vm1360_vm1, %v1348_v55, %v1363_v21  ;;  %v9378_v50 = vmul.u32.u64.low %v1374_v51, %v1369_v15  ;;  %v9379_v52 = vmul.u32.u64.high %v1374_v51, %v1369_v15, %v9378_v50 }
 0x1a9   : > { %vm7681_vm3 = vcmp.lt.s32.totalorder %v7680_v18, 0  ;;  %v9375_v40 = vmul.u32.u64.low %v1374_v51, %v1373_v43  ;;  %v9376_v48 = vmul.u32.u64.high %v1374_v51, %v1373_v43, %v9375_v40  ;;  %v7698_v35 = vadd.s32 4294967169, %v4658_v53 }
 0x1aa   : > { %v4205_v30 = vsel %vm7681_vm3, 0, %v7680_v18  ;;  %vm9384_vm4 = vcmp.le.f32.partialorder %v4134_v3, 0.7853982  ;;  %v4190_v34 = vadd.s32 %v9306_v42, %v9314_v22  ;;  %vm898_vm5 = vweird.f32 %v9132_v60 }
 0x1ab   : > { %v4206_v49 = vsub.s32 32, %v4205_v30  ;;  %v4210_v61 = vsub.s32 4294967266, %v4205_v30  ;;  %vm901_vm6 = vcmp.lt.s32.totalorder %v9339_v46, 2  ;;  %vm4136_vm7 = vcmp.lt.s32.totalorder %v9204_v8, 0 }
 0x1ac   : > { %v1365_v41 = vsel %vm1359_vm0, %v1362_v58, %v1364_v56  ;;  %v4664_v38 = vadd.s32 1, %v7698_v35  ;;  %v4207_v37 = vshll.u32 %v9352_v25, %v4205_v30  ;;  %vm1383_vm8 = vc.u32 %v9376_v48, %v9378_v50  ;;  %v463_v25 = vpop.f32.mrf.mxu0 }
 0x1ad   : > { %v4208_v3 = vshrl.u32 %v4190_v34, %v4206_v49  ;;  %v4211_v2 = vadd.s32 127, %v4210_v61  ;;  %vm902_vm9 = vcmp.eq.s32.totalorder %v9339_v46, 0  ;;  %v4221_v42 = vsel %vm4136_vm7, %v4220_v26, %v9337_v9 }
 0x1ae   : > { %v1384_v22 = vadd.s32 1, %v9379_v52  ;;  %vm4665_vm11 = vcmp.gt.s32.totalorder %v4664_v38, 0  ;;  %v1381_v17 = vmul.u32 %v1374_v51, %v1365_v41  ;;  %v4654_v20 = vand.u32 2147483647, %v9346_v4 }
 0x1af   : > { %v8247_v13 = vpop.eup %8246  ;;  %v4209_v5 = vor.u32 %v4208_v3, %v4207_v37  ;;  %v4212_v24 = vshll.u32 %v4211_v2, 23  ;;  %v4666_v62 = vsel %vm4665_vm11, %v4664_v38, 0  ;;  %vm905_vm10 = vcmp.eq.s32.totalorder %v9339_v46, 2 }
 0x1b0   : > { %v8249_v7 = vpop.eup %8248  ;;  %v906_v19 = vxor.u32 2147483648, %v8247_v13  ;;  %v1385_v55 = vsel %vm1383_vm8, %v1384_v22, %v9379_v52  ;;  %v4668_v28 = vand.u32 31, %v4666_v62  ;;  %v4223_v47 = vsel %vm9384_vm4, 0, %v4221_v42 }
 0x1b1   : > { %v903_v57 = vxor.u32 2147483648, %v8249_v7  ;;  %v4213_v9 = vor.u32 4788187, %v4212_v24  ;;  %v1386_v32 = vadd.s32 %v1385_v55, %v1381_v17  ;;  %v9408_v36 = vadd.f32 %v9201_v44, %v463_v25 }
 0x1b2   : > { %v907_v27 = vsel %vm905_vm10, %v906_v19, %v8249_v7  ;;  %v4669_v51 = vsub.s32 32, %v4668_v28  ;;  %v4216_v0 = vcvt.s32.f32 %v4209_v5  ;;  %v4661_v63 = vand.u32 8388607, %v4654_v20 }
 0x1b3   : > { %v904_v29 = vsel %vm902_vm9, %v8247_v13, %v903_v57  ;;  %v4214_v1 = vand.u32 2147483647, %v4213_v9  ;;  %v1387_v21 = vadd.s32 536870912, %v1386_v32  ;;  %v4667_v15 = vshrl.u32 %v4666_v62, 5 }
 0x1b4   : > { %v908_v33 = vsel %vm901_vm6, %v904_v29, %v907_v27  ;;  %v4672_v39 = vshrl.u32 %v8551_v10, %v4669_v51  ;;  %v4675_v18 = vshrl.u32 %v8552_v12, %v4669_v51  ;;  %v4678_v58 = vshrl.u32 %v8553_v14, %v4669_v51 }
 0x1b5   : > { %v909_v26 = vsel %vm898_vm5, nan, %v908_v33  ;;  %v4217_v54 = vmul.f32 %v4216_v0, %v4214_v1  ;;  %v1388_v45 = vshrl.u32 %v1387_v21, 30  ;;  %v4671_v43 = vshll.u32 %v8550_v6, %v4668_v28 }
 0x1b6   : > { %7359 = vst [vmem:[%s9048_s11 + $0x8] sm:$0xff] %v909_v26  ;;  %v4677_v46 = vshll.u32 %v8552_v12, %v4668_v28  ;;  %v4681_v53 = vshrl.u32 %v8554_v16, %v4669_v51  ;;  %v4674_v30 = vshll.u32 %v8551_v10, %v4668_v28  ;;  %v4680_v52 = vshll.u32 %v8553_v14, %v4668_v28 }
 0x1b7   : > { %v4218_v56 = vxor.u32 2147483648, %v4217_v54  ;;  %v1389_v40 = vshll.u32 %v1388_v45, 30  ;;  %v4673_v60 = vor.u32 %v4672_v39, %v4671_v43  ;;  %v4683_v34 = vshll.u32 %v8554_v16, %v4668_v28 }
 0x1b8   : > { %v4679_v35 = vor.u32 %v4678_v58, %v4677_v46  ;;  %v4684_v49 = vshrl.u32 %v8555_v23, %v4669_v51  ;;  %v4676_v38 = vor.u32 %v4675_v18, %v4674_v30  ;;  %v4682_v37 = vor.u32 %v4681_v53, %v4680_v52 }
 0x1b9   : > { %v4219_v61 = vsel %vm4136_vm7, %v4218_v56, %v4217_v54  ;;  %v9431_v41 = vsub.s32 %v1386_v32, %v1389_v40  ;;  %v4227_v2 = vadd.s32 3, %v4223_v47  ;;  %v4662_v42 = vor.u32 8388608, %v4661_v63 }
 0x1ba   : > { %v4222_v3 = vsel %vm9384_vm4, %v9204_v8, %v4219_v61  ;;  %v4685_v22 = vor.u32 %v4684_v49, %v4683_v34  ;;  %vm4689_vm12 = vcmp.lt.s32.totalorder %v4667_v15, 4  ;;  %v1121_v5 = vand.u32 2139095040, %v9408_v36 }
 0x1bb   : > { %8250 = vcosq.f32 %v4222_v3  ;;  %v1392_v13 = vsub.s32 0, %v9431_v41  ;;  %v4670_v24 = vshrl.u32 %v8550_v6, %v4669_v51  ;;  %vm4686_vm13 = vcmp.lt.s32.totalorder %v4667_v15, 1 }
 0x1bc   : > { %8252 = vsinq.f32 %v4222_v3  ;;  %v4691_v17 = vsel %vm4689_vm12, %v4679_v35, 2102212464  ;;  %vm4688_vm14 = vcmp.lt.s32.totalorder %v4667_v15, 3  ;;  %v4694_v25 = vsel %vm4686_vm13, %v4673_v60, %v4676_v38 }
 0x1bd   : > { %v7571_v62 = vmin.u32 %v1392_v13, %v9431_v41  ;;  %v4695_v59 = vsel %vm4689_vm12, %v4682_v37, 920167782  ;;  %v1412_v7 = vsub.s32 4, %v1388_v45  ;;  %v4698_v55 = vsel %vm4686_vm13, %v4676_v38, %v4679_v35 }
 0x1be   : > { %v4696_v19 = vsel %vm4688_vm14, %v4679_v35, %v4695_v59  ;;  %v4699_v28 = vsel %vm4689_vm12, %v4685_v22, 1326507024  ;;  %vm4687_vm15 = vcmp.lt.s32.totalorder %v4667_v15, 2  ;;  %v4690_v9 = vsel %vm4686_vm13, %v4670_v24, %v4673_v60 }
 0x1bf   : > { %v1394_v57 = vclz %v7571_v62  ;;  %v4692_v32 = vsel %vm4688_vm14, %v4676_v38, %v4691_v17  ;;  %v4697_v27 = vsel %vm4687_vm15, %v4694_v25, %v4696_v19  ;;  %v4700_v47 = vsel %vm4688_vm14, %v4682_v37, %v4699_v28  ;;  %v591_v28 = vpop.f32.mrf.mxu1 }
 0x1c0   : > { %v4702_v29 = vshll.u32 %v4662_v42, 8  ;;  %v1122_v1 = vshrl.u32 %v1121_v5, 23  ;;  %vm1328_vm0 = vcmp.lt.s32.totalorder %v9274_v11, 0  ;;  %v4701_v0 = vsel %vm4687_vm15, %v4698_v55, %v4700_v47 }
 0x1c1   : > { %v7572_v51 = vadd.s32 4294967294, %v1394_v57  ;;  %v1413_v18 = vsel %vm1328_vm0, %v1412_v7, %v1388_v45  ;;  %v4693_v26 = vsel %vm4687_vm15, %v4690_v9, %v4692_v32  ;;  %v4228_v58 = vand.u32 3, %v4227_v2 }
 0x1c2   : > { %v9441_v21 = vmul.u32.u64.low %v4702_v29, %v4701_v0  ;;  %v9442_v33 = vmul.u32.u64.high %v4702_v29, %v4701_v0, %v9441_v21  ;;  %v9444_v63 = vmul.u32.u64.low %v4702_v29, %v4697_v27  ;;  %v9445_v39 = vmul.u32.u64.high %v4702_v29, %v4697_v27, %v9444_v63 }
 0x1c3   : > { %vm7573_vm1 = vcmp.lt.s32.totalorder %v7572_v51, 0  ;;  %v7562_v54 = vadd.s32 4294967169, %v1122_v1  ;;  %vm9452_vm2 = vcmp.le.f32.partialorder %v1326_v31, 0.7853982  ;;  %v1118_v46 = vand.u32 2147483647, %v9408_v36 }
 0x1c4   : > { %v1397_v43 = vsel %vm7573_vm1, 0, %v7572_v51  ;;  %v1382_v53 = vadd.s32 %v9378_v50, %v9376_v48  ;;  %v1415_v45 = vsel %vm9452_vm2, 0, %v1413_v18  ;;  %v4709_v52 = vmul.u32 %v4702_v29, %v4693_v26 }
 0x1c5   : > { %v1398_v56 = vsub.s32 32, %v1397_v43  ;;  %v1402_v40 = vsub.s32 4294967266, %v1397_v43  ;;  %v1128_v30 = vadd.s32 1, %v7562_v54  ;;  %vm4711_vm3 = vc.u32 %v9442_v33, %v9444_v63 }
 0x1c6   : > { %v4712_v31 = vadd.s32 1, %v9445_v39  ;;  %v1399_v60 = vshll.u32 %v9431_v41, %v1397_v43  ;;  %vm4233_vm5 = vcmp.eq.s32.totalorder %v4228_v58, 2  ;;  %v1419_v22 = vadd.s32 3, %v1415_v45 }
 0x1c7   : > { %v1400_v35 = vshrl.u32 %v1382_v53, %v1398_v56  ;;  %v1403_v34 = vadd.s32 127, %v1402_v40  ;;  %vm1129_vm4 = vcmp.gt.s32.totalorder %v1128_v30, 0  ;;  %v1125_v13 = vand.u32 8388607, %v1118_v46 }
 0x1c8   : > { %v8251_v49 = vpop.eup %8250  ;;  %v4713_v48 = vsel %vm4711_vm3, %v4712_v31, %v9445_v39  ;;  %v1130_v50 = vsel %vm1129_vm4, %v1128_v30, 0  ;;  %vm4230_vm6 = vcmp.eq.s32.totalorder %v4228_v58, 0  ;;  %vm4226_vm7 = vweird.f32 %v9204_v8 }
 0x1c9   : > { %v8253_v61 = vpop.eup %8252  ;;  %v4234_v38 = vxor.u32 2147483648, %v8251_v49  ;;  %v1401_v37 = vor.u32 %v1400_v35, %v1399_v60  ;;  %v1404_v3 = vshll.u32 %v1403_v34, 23  ;;  %v4714_v2 = vadd.s32 %v4713_v48, %v4709_v52 }
 0x1ca   : > { %v4231_v42 = vxor.u32 2147483648, %v8253_v61  ;;  %v1132_v5 = vand.u32 31, %v1130_v50  ;;  %vm4229_vm8 = vcmp.lt.s32.totalorder %v4228_v58, 2  ;;  %v9471_v9 = vand.u32 3, %v1419_v22 }
 0x1cb   : > { %v4235_v41 = vsel %vm4233_vm5, %v4234_v38, %v8253_v61  ;;  %v1405_v24 = vor.u32 4788187, %v1404_v3  ;;  %v4715_v17 = vadd.s32 536870912, %v4714_v2  ;;  %v1408_v19 = vcvt.s32.f32 %v1401_v37 }
 0x1cc   : > { %v4232_v62 = vsel %vm4230_vm6, %v8251_v49, %v4231_v42  ;;  %v1133_v25 = vsub.s32 32, %v1132_v5  ;;  %v1126_v32 = vor.u32 8388608, %v1125_v13  ;;  %v1131_v1 = vshrl.u32 %v1130_v50, 5 }
 0x1cd   : > { %v4236_v59 = vsel %vm4229_vm8, %v4232_v62, %v4235_v41  ;;  %v1406_v7 = vand.u32 2147483647, %v1405_v24  ;;  %v9469_v55 = vshrl.u32 %v4715_v17, 30  ;;  %v9480_v21 = vadd.f32 %v9201_v44, %v591_v28 }
 0x1ce   : > { %v4237_v57 = vsel %vm4226_vm7, nan, %v4236_v59  ;;  %v1136_v29 = vshrl.u32 %v8551_v10, %v1133_v25  ;;  %v1139_v8 = vshrl.u32 %v8552_v12, %v1133_v25  ;;  %v1142_v51 = vshrl.u32 %v8553_v14, %v1133_v25 }
 0x1cf   : > { %7391 = vst [vmem:[%s9048_s11 + $0x108] sm:$0xff] %v4237_v57  ;;  %v1409_v27 = vmul.f32 %v1408_v19, %v1406_v7  ;;  %v4717_v47 = vshll.u32 %v9469_v55, 30  ;;  %v1145_v0 = vshrl.u32 %v8554_v16, %v1133_v25  ;;  %v1135_v26 = vshll.u32 %v8550_v6, %v1132_v5 }
 0x1d0   : > { %v1138_v54 = vshll.u32 %v8551_v10, %v1132_v5  ;;  %v1141_v58 = vshll.u32 %v8552_v12, %v1132_v5  ;;  %v1144_v43 = vshll.u32 %v8553_v14, %v1132_v5  ;;  %v1147_v53 = vshll.u32 %v8554_v16, %v1132_v5 }
 0x1d1   : > { %v1410_v39 = vxor.u32 2147483648, %v1409_v27  ;;  %v9482_v18 = vsub.s32 %v4714_v2, %v4717_v47  ;;  %v1148_v56 = vshrl.u32 %v8555_v23, %v1133_v25  ;;  %v1137_v30 = vor.u32 %v1136_v29, %v1135_v26 }
 0x1d2   : > { %v1140_v45 = vor.u32 %v1139_v8, %v1138_v54  ;;  %vm4656_vm9 = vcmp.lt.s32.totalorder %v9346_v4, 0  ;;  %v1143_v31 = vor.u32 %v1142_v51, %v1141_v58  ;;  %v1146_v60 = vor.u32 %v1145_v0, %v1144_v43 }
 0x1d3   : > { %v1411_v40 = vsel %vm1328_vm0, %v1410_v39, %v1409_v27  ;;  %v4720_v44 = vsub.s32 0, %v9482_v18  ;;  %v1149_v35 = vor.u32 %v1148_v56, %v1147_v53  ;;  %v1166_v49 = vshll.u32 %v1126_v32, 8 }
 0x1d4   : > { %v1414_v52 = vsel %vm9452_vm2, %v9274_v11, %v1411_v40  ;;  %v4449_v48 = vand.u32 2139095040, %v9480_v21  ;;  %v4740_v50 = vsub.s32 4, %v9469_v55  ;;  %v1134_v61 = vshrl.u32 %v8550_v6, %v1133_v25 }
 0x1d5   : > { %8254 = vcosq.f32 %v1414_v52  ;;  %v7699_v34 = vmin.u32 %v4720_v44, %v9482_v18  ;;  %vm1150_vm11 = vcmp.lt.s32.totalorder %v1131_v1, 1  ;;  %vm1152_vm10 = vcmp.lt.s32.totalorder %v1131_v1, 3 }
 0x1d6   : > { %8256 = vsinq.f32 %v1414_v52  ;;  %vm1153_vm12 = vcmp.lt.s32.totalorder %v1131_v1, 4  ;;  %v1158_v15 = vsel %vm1150_vm11, %v1137_v30, %v1140_v45  ;;  %v1162_v2 = vsel %vm1150_vm11, %v1140_v45, %v1143_v31 }
 0x1d7   : > { %v4722_v38 = vclz %v7699_v34  ;;  %v1155_v37 = vsel %vm1153_vm12, %v1143_v31, 2102212464  ;;  %v1159_v3 = vsel %vm1153_vm12, %v1146_v60, 920167782  ;;  %v1163_v42 = vsel %vm1153_vm12, %v1149_v35, 1326507024 }
 0x1d8   : > { %vm1151_vm13 = vcmp.lt.s32.totalorder %v1131_v1, 2  ;;  %v1160_v13 = vsel %vm1152_vm10, %v1143_v31, %v1159_v3  ;;  %v1164_v5 = vsel %vm1152_vm10, %v1146_v60, %v1163_v42  ;;  %v1154_v41 = vsel %vm1150_vm11, %v1134_v61, %v1137_v30  ;;  %v7857_v1 = vpop.f32.mrf.mxu0  ;;  %v9540_v60 = vld [vmem:[%s13586_s2] ss:$0 sm:$0xff] }
 0x1d9   : > { %v7700_v22 = vadd.s32 4294967294, %v4722_v38  ;;  %v1161_v24 = vsel %vm1151_vm13, %v1158_v15, %v1160_v13  ;;  %v1165_v17 = vsel %vm1151_vm13, %v1162_v2, %v1164_v5  ;;  %v4450_v62 = vshrl.u32 %v4449_v48, 23 }
 0x1da   : > { %v1156_v25 = vsel %vm1152_vm10, %v1140_v45, %v1155_v37  ;;  %v9506_v59 = vmul.u32.u64.low %v1166_v49, %v1165_v17  ;;  %v9507_v7 = vmul.u32.u64.high %v1166_v49, %v1165_v17, %v9506_v59  ;;  %v4710_v27 = vadd.s32 %v9444_v63, %v9442_v33 }
 0x1db   : > { %vm7701_vm14 = vcmp.lt.s32.totalorder %v7700_v22, 0  ;;  %v9509_v28 = vmul.u32.u64.low %v1166_v49, %v1161_v24  ;;  %v9510_v57 = vmul.u32.u64.high %v1166_v49, %v1161_v24, %v9509_v28  ;;  %v7690_v32 = vadd.s32 4294967169, %v4450_v62 }
 0x1dc   : > { %v4725_v19 = vsel %vm7701_vm14, 0, %v7700_v22  ;;  %v4741_v8 = vsel %vm4656_vm9, %v4740_v50, %v9469_v55  ;;  %vm1421_vm15 = vcmp.lt.s32.totalorder %v9471_v9, 2  ;;  %vm9521_vm0 = vcmp.le.f32.partialorder %v4654_v20, 0.7853982 }
 0x1dd   : > { %v4726_v47 = vsub.s32 32, %v4725_v19  ;;  %v4730_v29 = vsub.s32 4294967266, %v4725_v19  ;;  %v1157_v0 = vsel %vm1151_vm13, %v1154_v41, %v1156_v25  ;;  %v4456_v39 = vadd.s32 1, %v7690_v32 }
 0x1de   : > { %vm1418_vm1 = vweird.f32 %v9274_v11  ;;  %v4727_v33 = vshll.u32 %v9482_v18, %v4725_v19  ;;  %vm1175_vm2 = vc.u32 %v9507_v7, %v9509_v28  ;;  %v4743_v55 = vsel %vm9521_vm0, 0, %v4741_v8 }
 0x1df   : > { %v4728_v63 = vshrl.u32 %v4710_v27, %v4726_v47  ;;  %v4731_v26 = vadd.s32 127, %v4730_v29  ;;  %v1176_v20 = vadd.s32 1, %v9510_v57  ;;  %v4446_v54 = vand.u32 2147483647, %v9480_v21 }
 0x1e0   : > { %vm4457_vm3 = vcmp.gt.s32.totalorder %v4456_v39, 0  ;;  %v1173_v53 = vmul.u32 %v1166_v49, %v1157_v0  ;;  %vm1422_vm4 = vcmp.eq.s32.totalorder %v9471_v9, 0  ;;  %vm1425_vm5 = vcmp.eq.s32.totalorder %v9471_v9, 2 }
 0x1e1   : > { %v4729_v58 = vor.u32 %v4728_v63, %v4727_v33  ;;  %v4732_v43 = vshll.u32 %v4731_v26, 23  ;;  %v4458_v56 = vsel %vm4457_vm3, %v4456_v39, 0  ;;  %v1177_v18 = vsel %vm1175_vm2, %v1176_v20, %v9510_v57 }
 0x1e2   : > { %v8255_v40 = vpop.eup %8254  ;;  %v4460_v44 = vand.u32 31, %v4458_v56  ;;  %v1178_v31 = vadd.s32 %v1177_v18, %v1173_v53  ;;  %v9543_v35 = vadd.f32 %v9540_v60, %v7857_v1  ;;  %v9545_v49 = vadd.s32 3, %v4743_v55 }
 0x1e3   : > { %v8257_v30 = vpop.eup %8256  ;;  %v1426_v45 = vxor.u32 2147483648, %v8255_v40  ;;  %v4733_v52 = vor.u32 4788187, %v4732_v43  ;;  %v4453_v48 = vand.u32 8388607, %v4446_v54  ;;  %v4736_v15 = vcvt.s32.f32 %v4729_v58 }
 0x1e4   : > { %v1423_v34 = vxor.u32 2147483648, %v8257_v30  ;;  %v4461_v50 = vsub.s32 32, %v4460_v44  ;;  %v1179_v37 = vadd.s32 536870912, %v1178_v31  ;;  %v4463_v2 = vshll.u32 %v8550_v6, %v4460_v44 }
 0x1e5   : > { %v1427_v61 = vsel %vm1425_vm5, %v1426_v45, %v8257_v30  ;;  %v4734_v38 = vand.u32 2147483647, %v4733_v52  ;;  %v4454_v62 = vor.u32 8388608, %v4453_v48  ;;  %v4459_v25 = vshrl.u32 %v4458_v56, 5 }
 0x1e6   : > { %v1424_v3 = vsel %vm1422_vm4, %v8255_v40, %v1423_v34  ;;  %v4464_v42 = vshrl.u32 %v8551_v10, %v4461_v50  ;;  %v4467_v22 = vshrl.u32 %v8552_v12, %v4461_v50  ;;  %v9556_v41 = vshrl.u32 %v1179_v37, 30 }
 0x1e7   : > { %v1428_v13 = vsel %vm1421_vm15, %v1424_v3, %v1427_v61  ;;  %v4737_v5 = vmul.f32 %v4736_v15, %v4734_v38  ;;  %v4470_v24 = vshrl.u32 %v8553_v14, %v4461_v50  ;;  %v4466_v59 = vshll.u32 %v8551_v10, %v4460_v44  ;;  %v7889_v15 = vpop.f32.mrf.mxu1 }
 0x1e8   : > { %v1429_v17 = vsel %vm1418_vm1, nan, %v1428_v13  ;;  %v1181_v57 = vshll.u32 %v9556_v41, 30  ;;  %v4465_v32 = vor.u32 %v4464_v42, %v4463_v2  ;;  %v4469_v9 = vshll.u32 %v8552_v12, %v4460_v44 }
 0x1e9   : > { %7364 = vst [vmem:[%s9048_s11 + $0x30] sm:$0xff] %v1429_v17  ;;  %v4738_v19 = vxor.u32 2147483648, %v4737_v5  ;;  %v4472_v27 = vshll.u32 %v8553_v14, %v4460_v44  ;;  %v4473_v47 = vshrl.u32 %v8554_v16, %v4461_v50  ;;  %v4475_v29 = vshll.u32 %v8554_v16, %v4460_v44 }
 0x1ea   : > { %v4476_v11 = vshrl.u32 %v8555_v23, %v4461_v50  ;;  %v9571_v0 = vsub.s32 %v1178_v31, %v1181_v57  ;;  %v4468_v39 = vor.u32 %v4467_v22, %v4466_v59  ;;  %v4471_v33 = vor.u32 %v4470_v24, %v4469_v9 }
 0x1eb   : > { %v4739_v8 = vsel %vm4656_vm9, %v4738_v19, %v4737_v5  ;;  %v4474_v26 = vor.u32 %v4473_v47, %v4472_v27  ;;  %v1430_v20 = vand.u32 2147483647, %v9543_v35  ;;  %v4462_v58 = vshrl.u32 %v8550_v6, %v4461_v50 }
 0x1ec   : > { %v4742_v63 = vsel %vm9521_vm0, %v9346_v4, %v4739_v8  ;;  %v4477_v55 = vor.u32 %v4476_v11, %v4475_v29  ;;  %v1184_v1 = vsub.s32 0, %v9571_v0  ;;  %v1433_v43 = vand.u32 2139095040, %v9543_v35 }
 0x1ed   : > { %8258 = vcosq.f32 %v4742_v63  ;;  %vm1120_vm6 = vcmp.lt.s32.totalorder %v9408_v36, 0  ;;  %vm4478_vm7 = vcmp.lt.s32.totalorder %v4459_v25, 1  ;;  %vm4480_vm8 = vcmp.lt.s32.totalorder %v4459_v25, 3 }
 0x1ee   : > { %8260 = vsinq.f32 %v4742_v63  ;;  %vm4481_vm9 = vcmp.lt.s32.totalorder %v4459_v25, 4  ;;  %v7563_v51 = vmin.u32 %v1184_v1, %v9571_v0  ;;  %v4486_v56 = vsel %vm4478_vm7, %v4465_v32, %v4468_v39 }
 0x1ef   : > { %v4483_v53 = vsel %vm4481_vm9, %v4471_v33, 2102212464  ;;  %v4487_v40 = vsel %vm4481_vm9, %v4474_v26, 920167782  ;;  %v4490_v44 = vsel %vm4478_vm7, %v4468_v39, %v4471_v33  ;;  %v4491_v30 = vsel %vm4481_vm9, %v4477_v55, 1326507024 }
 0x1f0   : > { %v4488_v18 = vsel %vm4480_vm8, %v4471_v33, %v4487_v40  ;;  %v4494_v45 = vshll.u32 %v4454_v62, 8  ;;  %v1186_v52 = vclz %v7563_v51  ;;  %v1204_v31 = vsub.s32 4, %v9556_v41 }
 0x1f1   : > { %vm4479_vm11 = vcmp.lt.s32.totalorder %v4459_v25, 2  ;;  %v4482_v34 = vsel %vm4478_vm7, %v4462_v58, %v4465_v32  ;;  %v4484_v48 = vsel %vm4480_vm8, %v4468_v39, %v4483_v53  ;;  %v4492_v61 = vsel %vm4480_vm8, %v4474_v26, %v4491_v30 }
 0x1f2   : > { %v4489_v50 = vsel %vm4479_vm11, %v4486_v56, %v4488_v18  ;;  %v1434_v38 = vshrl.u32 %v1433_v43, 23  ;;  %v7564_v37 = vadd.s32 4294967294, %v1186_v52  ;;  %v4493_v3 = vsel %vm4479_vm11, %v4490_v44, %v4492_v61 }
 0x1f3   : > { %v9586_v2 = vmul.u32.u64.low %v4494_v45, %v4489_v50  ;;  %v9587_v42 = vmul.u32.u64.high %v4494_v45, %v4489_v50, %v9586_v2  ;;  %vm9591_vm10 = vcmp.le.f32.partialorder %v1118_v46, 0.7853982  ;;  %v4748_v17 = vand.u32 3, %v9545_v49 }
 0x1f4   : > { %v9595_v13 = vmul.u32.u64.low %v4494_v45, %v4493_v3  ;;  %v9596_v5 = vmul.u32.u64.high %v4494_v45, %v4493_v3, %v9595_v13  ;;  %v7574_v24 = vadd.s32 4294967169, %v1434_v38  ;;  %vm7565_vm12 = vcmp.lt.s32.totalorder %v7564_v37, 0 }
 0x1f5   : > { %v4485_v62 = vsel %vm4479_vm11, %v4482_v34, %v4484_v48  ;;  %v9600_v25 = vadd.f32 %v9540_v60, %v7889_v15  ;;  %v1174_v59 = vadd.s32 %v9509_v28, %v9507_v7  ;;  %v1189_v19 = vsel %vm7565_vm12, 0, %v7564_v37 }
 0x1f6   : > { %v9606_v46 = vand.u32 8388607, %v1430_v20  ;;  %v1440_v57 = vadd.s32 1, %v7574_v24  ;;  %vm4746_vm13 = vweird.f32 %v9346_v4  ;;  %v1190_v32 = vsub.s32 32, %v1189_v19 }
 0x1f7   : > { %v1194_v9 = vsub.s32 4294967266, %v1189_v19  ;;  %v1205_v49 = vsel %vm1120_vm6, %v1204_v31, %v9556_v41  ;;  %v4504_v27 = vadd.s32 1, %v9587_v42  ;;  %v1191_v47 = vshll.u32 %v9571_v0, %v1189_v19 }
 0x1f8   : > { %v4501_v29 = vmul.u32 %v4494_v45, %v4485_v62  ;;  %vm4503_vm14 = vc.u32 %v9596_v5, %v9586_v2  ;;  %vm1441_vm15 = vcmp.gt.s32.totalorder %v1440_v57, 0  ;;  %v1192_v7 = vshrl.u32 %v1174_v59, %v1190_v32 }
 0x1f9   : > { %v1195_v28 = vadd.s32 127, %v1194_v9  ;;  %v4505_v11 = vsel %vm4503_vm14, %v4504_v27, %v9587_v42  ;;  %v1442_v8 = vsel %vm1441_vm15, %v1440_v57, 0  ;;  %vm4749_vm0 = vcmp.lt.s32.totalorder %v4748_v17, 2 }
 0x1fa   : > { %v8259_v39 = vpop.eup %8258  ;;  %v1207_v33 = vsel %vm9591_vm10, 0, %v1205_v49  ;;  %v4506_v63 = vadd.s32 %v4505_v11, %v4501_v29  ;;  %v1444_v41 = vand.u32 31, %v1442_v8  ;;  %vm4750_vm1 = vcmp.eq.s32.totalorder %v4748_v17, 0 }
 0x1fb   : > { %v8261_v26 = vpop.eup %8260  ;;  %v4754_v55 = vxor.u32 2147483648, %v8259_v39  ;;  %v1193_v0 = vor.u32 %v1192_v7, %v1191_v47  ;;  %v1196_v1 = vshll.u32 %v1195_v28, 23  ;;  %vm4753_vm2 = vcmp.eq.s32.totalorder %v4748_v17, 2 }
 0x1fc   : > { %v4751_v58 = vxor.u32 2147483648, %v8261_v26  ;;  %v4507_v43 = vadd.s32 536870912, %v4506_v63  ;;  %v1445_v51 = vsub.s32 32, %v1444_v41  ;;  %v9618_v40 = vadd.s32 3, %v1207_v33 }
 0x1fd   : > { %v4755_v53 = vsel %vm4753_vm2, %v4754_v55, %v8261_v26  ;;  %v1197_v56 = vor.u32 4788187, %v1196_v1  ;;  %v1438_v18 = vor.u32 8388608, %v9606_v46  ;;  %v4758_v45 = vand.u32 2147483647, %v9600_v25 }
 0x1fe   : > { %v4752_v44 = vsel %vm4750_vm1, %v8259_v39, %v4751_v58  ;;  %v4508_v30 = vshrl.u32 %v4507_v43, 30  ;;  %v4761_v52 = vand.u32 2139095040, %v9600_v25  ;;  %v1200_v48 = vcvt.s32.f32 %v1193_v0 }
 0x1ff   : > { %v4756_v31 = vsel %vm4749_vm0, %v4752_v44, %v4755_v53  ;;  %v1198_v34 = vand.u32 2147483647, %v1197_v56  ;;  %v1448_v50 = vshrl.u32 %v8551_v10, %v1445_v51  ;;  %v9628_v38 = vadd.s32 %v9586_v2, %v9596_v5 }
 0x200   : > { %v4757_v61 = vsel %vm4746_vm13, nan, %v4756_v31  ;;  %v4509_v15 = vshll.u32 %v4508_v30, 30  ;;  %v1451_v37 = vshrl.u32 %v8552_v12, %v1445_v51  ;;  %v1443_v42 = vshrl.u32 %v1442_v8, 5 }
 0x201   : > { %7396 = vst [vmem:[%s9048_s11 + $0x130] sm:$0xff] %v4757_v61  ;;  %v1201_v3 = vmul.f32 %v1200_v48, %v1198_v34  ;;  %v1447_v13 = vshll.u32 %v8550_v6, %v1444_v41  ;;  %v1454_v24 = vshrl.u32 %v8553_v14, %v1445_v51  ;;  %v1450_v62 = vshll.u32 %v8551_v10, %v1444_v41 }
 0x202   : > { %v9634_v17 = vsub.s32 %v4506_v63, %v4509_v15  ;;  %v1453_v4 = vshll.u32 %v8552_v12, %v1444_v41  ;;  %v1457_v59 = vshrl.u32 %v8554_v16, %v1445_v51  ;;  %v1456_v19 = vshll.u32 %v8553_v14, %v1444_v41 }
 0x203   : > { %v1202_v2 = vxor.u32 2147483648, %v1201_v3  ;;  %v1449_v5 = vor.u32 %v1448_v50, %v1447_v13  ;;  %v1460_v46 = vshrl.u32 %v8555_v23, %v1445_v51  ;;  %vm4448_vm3 = vcmp.lt.s32.totalorder %v9480_v21, 0 }
 0x204   : > { %v4512_v57 = vsub.s32 0, %v9634_v17  ;;  %v1452_v32 = vor.u32 %v1451_v37, %v1450_v62  ;;  %v1455_v9 = vor.u32 %v1454_v24, %v1453_v4  ;;  %v1459_v49 = vshll.u32 %v8554_v16, %v1444_v41 }
 0x205   : > { %v1203_v27 = vsel %vm1120_vm6, %v1202_v2, %v1201_v3  ;;  %v1458_v47 = vor.u32 %v1457_v59, %v1456_v19  ;;  %v1478_v29 = vshll.u32 %v1438_v18, 8  ;;  %v4762_v7 = vshrl.u32 %v4761_v52, 23 }
 0x206   : > { %v1206_v28 = vsel %vm9591_vm10, %v9408_v36, %v1203_v27  ;;  %v7691_v11 = vmin.u32 %v4512_v57, %v9634_v17  ;;  %v1446_v8 = vshrl.u32 %v8550_v6, %v1445_v51  ;;  %v1461_v39 = vor.u32 %v1460_v46, %v1459_v49 }
 0x207   : > { %8262 = vcosq.f32 %v1206_v28  ;;  %v4532_v33 = vsub.s32 4, %v4508_v30  ;;  %vm1462_vm4 = vcmp.lt.s32.totalorder %v1443_v42, 1  ;;  %vm1465_vm5 = vcmp.lt.s32.totalorder %v1443_v42, 4 }
 0x208   : > { %8264 = vsinq.f32 %v1206_v28  ;;  %v4514_v63 = vclz %v7691_v11  ;;  %v1467_v41 = vsel %vm1465_vm5, %v1455_v9, 2102212464  ;;  %v1470_v26 = vsel %vm1462_vm4, %v1449_v5, %v1452_v32 }
 0x209   : > { %vm1463_vm6 = vcmp.lt.s32.totalorder %v1443_v42, 2  ;;  %vm1464_vm7 = vcmp.lt.s32.totalorder %v1443_v42, 3  ;;  %v1471_v55 = vsel %vm1465_vm5, %v1458_v47, 920167782  ;;  %v1474_v0 = vsel %vm1462_vm4, %v1452_v32, %v1455_v9 }
 0x20a   : > { %v7692_v1 = vadd.s32 4294967294, %v4514_v63  ;;  %v1466_v22 = vsel %vm1462_vm4, %v1446_v8, %v1449_v5  ;;  %v1472_v58 = vsel %vm1464_vm7, %v1455_v9, %v1471_v55  ;;  %v1475_v43 = vsel %vm1465_vm5, %v1461_v39, 1326507024 }
 0x20b   : > { %v1468_v53 = vsel %vm1464_vm7, %v1452_v32, %v1467_v41  ;;  %v1473_v51 = vsel %vm1463_vm6, %v1470_v26, %v1472_v58  ;;  %v1476_v56 = vsel %vm1464_vm7, %v1458_v47, %v1475_v43  ;;  %v7702_v18 = vadd.s32 4294967169, %v4762_v7 }
 0x20c   : > { %vm7693_vm8 = vcmp.lt.s32.totalorder %v7692_v1, 0  ;;  %v1477_v44 = vsel %vm1463_vm6, %v1474_v0, %v1476_v56  ;;  %v9653_v52 = vmul.u32.u64.low %v1478_v29, %v1473_v51  ;;  %v9654_v31 = vmul.u32.u64.high %v1478_v29, %v1473_v51, %v9653_v52 }
 0x20d   : > { %v4517_v34 = vsel %vm7693_vm8, 0, %v7692_v1  ;;  %v4533_v48 = vsel %vm4448_vm3, %v4532_v33, %v4508_v30  ;;  %v9659_v50 = vmul.u32.u64.low %v1478_v29, %v1477_v44  ;;  %v9660_v61 = vmul.u32.u64.high %v1478_v29, %v1477_v44, %v9659_v50 }
 0x20e   : > { %v4518_v15 = vsub.s32 32, %v4517_v34  ;;  %v4522_v37 = vsub.s32 4294967266, %v4517_v34  ;;  %v1469_v3 = vsel %vm1463_vm6, %v1466_v22, %v1468_v53  ;;  %v4768_v13 = vadd.s32 1, %v7702_v18 }
 0x20f   : > { %v1212_v24 = vand.u32 3, %v9618_v40  ;;  %vm9666_vm9 = vcmp.le.f32.partialorder %v4446_v54, 0.7853982  ;;  %v4519_v4 = vshll.u32 %v9634_v17, %v4517_v34  ;;  %v1488_v2 = vadd.s32 1, %v9654_v31  ;;  %v466_v34 = vpop.f32.mrf.mxu0 }
 0x210   : > { %v4520_v30 = vshrl.u32 %v9628_v38, %v4518_v15  ;;  %v4523_v59 = vadd.s32 127, %v4522_v37  ;;  %vm4769_vm11 = vcmp.gt.s32.totalorder %v4768_v13, 0  ;;  %v4535_v42 = vsel %vm9666_vm9, 0, %v4533_v48 }
 0x211   : > { %v1485_v5 = vmul.u32 %v1478_v29, %v1469_v3  ;;  %vm1487_vm10 = vc.u32 %v9660_v61, %v9653_v52  ;;  %v4770_v40 = vsel %vm4769_vm11, %v4768_v13, 0  ;;  %v4765_v17 = vand.u32 8388607, %v4758_v45 }
 0x212   : > { %v4521_v54 = vor.u32 %v4520_v30, %v4519_v4  ;;  %v4524_v19 = vshll.u32 %v4523_v59, 23  ;;  %v1489_v46 = vsel %vm1487_vm10, %v1488_v2, %v9654_v31  ;;  %vm1210_vm12 = vweird.f32 %v9408_v36 }
 0x213   : > { %v1490_v38 = vadd.s32 %v1489_v46, %v1485_v5  ;;  %v4772_v57 = vand.u32 31, %v4770_v40  ;;  %vm1213_vm13 = vcmp.lt.s32.totalorder %v1212_v24, 2  ;;  %vm1214_vm14 = vcmp.eq.s32.totalorder %v1212_v24, 0 }
 0x214   : > { %v8263_v32 = vpop.eup %8262  ;;  %vm1217_vm15 = vcmp.eq.s32.totalorder %v1212_v24, 2  ;;  %v4525_v9 = vor.u32 4788187, %v4524_v19  ;;  %v9681_v47 = vadd.s32 3, %v4535_v42  ;;  %v4528_v8 = vcvt.s32.f32 %v4521_v54 }
 0x215   : > { %v8265_v49 = vpop.eup %8264  ;;  %v1218_v27 = vxor.u32 2147483648, %v8263_v32  ;;  %v1491_v29 = vadd.s32 536870912, %v1490_v38  ;;  %v4773_v7 = vsub.s32 32, %v4772_v57  ;;  %v4766_v39 = vor.u32 8388608, %v4765_v17 }
 0x216   : > { %v1215_v28 = vxor.u32 2147483648, %v8265_v49  ;;  %v4526_v11 = vand.u32 2147483647, %v4525_v9  ;;  %v4775_v41 = vshll.u32 %v8550_v6, %v4772_v57  ;;  %v4771_v53 = vshrl.u32 %v4770_v40, 5 }
 0x217   : > { %v1219_v33 = vsel %vm1217_vm15, %v1218_v27, %v8265_v49  ;;  %v1492_v63 = vshrl.u32 %v1491_v29, 30  ;;  %v4776_v26 = vshrl.u32 %v8551_v10, %v4773_v7  ;;  %v4779_v1 = vshrl.u32 %v8552_v12, %v4773_v7 }
 0x218   : > { %v1216_v55 = vsel %vm1214_vm14, %v8263_v32, %v1215_v28  ;;  %v4529_v0 = vmul.f32 %v4528_v8, %v4526_v11  ;;  %v4782_v22 = vshrl.u32 %v8553_v14, %v4773_v7  ;;  %v4778_v51 = vshll.u32 %v8551_v10, %v4772_v57  ;;  %v594_v8 = vpop.f32.mrf.mxu1 }
 0x219   : > { %v1220_v58 = vsel %vm1213_vm13, %v1216_v55, %v1219_v33  ;;  %v1493_v43 = vshll.u32 %v1492_v63, 30  ;;  %vm1432_vm0 = vcmp.lt.s32.totalorder %v9543_v35, 0  ;;  %v4777_v44 = vor.u32 %v4776_v26, %v4775_v41 }
 0x21a   : > { %v1221_v56 = vsel %vm1210_vm12, nan, %v1220_v58  ;;  %v4530_v18 = vxor.u32 2147483648, %v4529_v0  ;;  %v4781_v31 = vshll.u32 %v8552_v12, %v4772_v57  ;;  %v4780_v50 = vor.u32 %v4779_v1, %v4778_v51 }
 0x21b   : > { %7362 = vst [vmem:[%s9048_s11 + $0x20] sm:$0xff] %v1221_v56  ;;  %v9695_v48 = vsub.s32 %v1490_v38, %v1493_v43  ;;  %v4784_v15 = vshll.u32 %v8553_v14, %v4772_v57  ;;  %v4785_v37 = vshrl.u32 %v8554_v16, %v4773_v7  ;;  %v4787_v13 = vshll.u32 %v8554_v16, %v4772_v57 }
 0x21c   : > { %v4531_v3 = vsel %vm4448_vm3, %v4530_v18, %v4529_v0  ;;  %v4783_v36 = vor.u32 %v4782_v22, %v4781_v31  ;;  %v4788_v24 = vshrl.u32 %v8555_v23, %v4773_v7  ;;  %v9708_v2 = vadd.f32 %v9540_v60, %v466_v34 }
 0x21d   : > { %v4534_v4 = vsel %vm9666_vm9, %v9480_v21, %v4531_v3  ;;  %v1496_v30 = vsub.s32 0, %v9695_v48  ;;  %v4786_v59 = vor.u32 %v4785_v37, %v4784_v15  ;;  %v4774_v42 = vshrl.u32 %v8550_v6, %v4773_v7 }
 0x21e   : > { %8266 = vcosq.f32 %v4534_v4  ;;  %v4789_v5 = vor.u32 %v4788_v24, %v4787_v13  ;;  %vm4790_vm1 = vcmp.lt.s32.totalorder %v4771_v53, 1  ;;  %v1516_v54 = vsub.s32 4, %v1492_v63 }
 0x21f   : > { %8268 = vsinq.f32 %v4534_v4  ;;  %v7575_v40 = vmin.u32 %v1496_v30, %v9695_v48  ;;  %vm4793_vm2 = vcmp.lt.s32.totalorder %v4771_v53, 4  ;;  %v4798_v46 = vsel %vm4790_vm1, %v4777_v44, %v4780_v50 }
 0x220   : > { %v4795_v19 = vsel %vm4793_vm2, %v4783_v36, 2102212464  ;;  %v4799_v62 = vsel %vm4793_vm2, %v4786_v59, 920167782  ;;  %v4806_v17 = vshll.u32 %v4766_v39, 8  ;;  %vm4792_vm3 = vcmp.lt.s32.totalorder %v4771_v53, 3 }
 0x221   : > { %v1498_v38 = vclz %v7575_v40  ;;  %v4794_v57 = vsel %vm4790_vm1, %v4774_v42, %v4777_v44  ;;  %v4802_v32 = vsel %vm4790_vm1, %v4780_v50, %v4783_v36  ;;  %vm4791_vm4 = vcmp.lt.s32.totalorder %v4771_v53, 2 }
 0x222   : > { %v4796_v9 = vsel %vm4792_vm3, %v4780_v50, %v4795_v19  ;;  %v4800_v49 = vsel %vm4792_vm3, %v4783_v36, %v4799_v62  ;;  %v4803_v27 = vsel %vm4793_vm2, %v4789_v5, 1326507024  ;;  %v1517_v7 = vsel %vm1432_vm0, %v1516_v54, %v1492_v63 }
 0x223   : > { %v7576_v29 = vadd.s32 4294967294, %v1498_v38  ;;  %v4801_v28 = vsel %vm4791_vm4, %v4798_v46, %v4800_v49  ;;  %v4804_v11 = vsel %vm4792_vm3, %v4786_v59, %v4803_v27  ;;  %v4797_v33 = vsel %vm4791_vm4, %v4794_v57, %v4796_v9 }
 0x224   : > { %v4805_v41 = vsel %vm4791_vm4, %v4802_v32, %v4804_v11  ;;  %v9714_v26 = vmul.u32.u64.low %v4806_v17, %v4801_v28  ;;  %v9715_v55 = vmul.u32.u64.high %v4806_v17, %v4801_v28, %v9714_v26  ;;  %v1225_v1 = vand.u32 2139095040, %v9708_v2 }
 0x225   : > { %vm7577_vm5 = vcmp.lt.s32.totalorder %v7576_v29, 0  ;;  %v9718_v39 = vmul.u32.u64.low %v4806_v17, %v4805_v41  ;;  %v9719_v0 = vmul.u32.u64.high %v4806_v17, %v4805_v41, %v9718_v39  ;;  %v4540_v22 = vand.u32 3, %v9681_v47 }
 0x226   : > { %vm9725_vm6 = vcmp.le.f32.partialorder %v1430_v20, 0.7853982  ;;  %v1501_v58 = vsel %vm7577_vm5, 0, %v7576_v29  ;;  %v9730_v43 = vadd.f32 %v9540_v60, %v594_v8  ;;  %v1486_v53 = vadd.s32 %v9653_v52, %v9660_v61 }
 0x227   : > { %v1502_v51 = vsub.s32 32, %v1501_v58  ;;  %v1506_v56 = vsub.s32 4294967266, %v1501_v58  ;;  %v1226_v18 = vshrl.u32 %v1225_v1, 23  ;;  %v1519_v44 = vsel %vm9725_vm6, 0, %v1517_v7 }
 0x228   : > { %v4813_v47 = vmul.u32 %v4806_v17, %v4797_v33  ;;  %v4816_v31 = vadd.s32 1, %v9715_v55  ;;  %v1222_v20 = vand.u32 2147483647, %v9708_v2  ;;  %v1503_v34 = vshll.u32 %v9695_v48, %v1501_v58 }
 0x229   : > { %v1504_v50 = vshrl.u32 %v1486_v53, %v1502_v51  ;;  %v1507_v15 = vadd.s32 127, %v1506_v56  ;;  %vm4815_vm7 = vc.u32 %v9719_v0, %v9714_v26  ;;  %vm4541_vm8 = vcmp.lt.s32.totalorder %v4540_v22, 2 }
 0x22a   : > { %v4817_v52 = vsel %vm4815_vm7, %v4816_v31, %v9715_v55  ;;  %v7566_v61 = vadd.s32 4294967169, %v1226_v18  ;;  %v4553_v37 = vand.u32 2139095040, %v9730_v43  ;;  %vm4542_vm9 = vcmp.eq.s32.totalorder %v4540_v22, 0 }
 0x22b   : > { %v8267_v3 = vpop.eup %8266  ;;  %v1505_v36 = vor.u32 %v1504_v50, %v1503_v34  ;;  %v1508_v13 = vshll.u32 %v1507_v15, 23  ;;  %v4818_v24 = vadd.s32 %v4817_v52, %v4813_v47  ;;  %vm4545_vm11 = vcmp.eq.s32.totalorder %v4540_v22, 2 }
 0x22c   : > { %v8269_v4 = vpop.eup %8268  ;;  %v4546_v30 = vxor.u32 2147483648, %v8267_v3  ;;  %v1523_v48 = vadd.s32 3, %v1519_v44  ;;  %v1232_v59 = vadd.s32 1, %v7566_v61  ;;  %v1229_v54 = vand.u32 8388607, %v1222_v20 }
 0x22d   : > { %v4543_v42 = vxor.u32 2147483648, %v8269_v4  ;;  %v1509_v5 = vor.u32 4788187, %v1508_v13  ;;  %v4819_v40 = vadd.s32 536870912, %v4818_v24  ;;  %v1512_v46 = vcvt.s32.f32 %v1505_v36 }
 0x22e   : > { %v4547_v19 = vsel %vm4545_vm11, %v4546_v30, %v8269_v4  ;;  %vm1233_vm10 = vcmp.gt.s32.totalorder %v1232_v59, 0  ;;  %v4554_v62 = vshrl.u32 %v4553_v37, 23  ;;  %vm4538_vm12 = vweird.f32 %v9480_v21 }
 0x22f   : > { %v4544_v17 = vsel %vm4542_vm9, %v8267_v3, %v4543_v42  ;;  %v1510_v38 = vand.u32 2147483647, %v1509_v5  ;;  %v4820_v57 = vshrl.u32 %v4819_v40, 30  ;;  %v1234_v32 = vsel %vm1233_vm10, %v1232_v59, 0 }
 0x230   : > { %v4548_v9 = vsel %vm4541_vm8, %v4544_v17, %v4547_v19  ;;  %v1236_v49 = vand.u32 31, %v1234_v32  ;;  %v9748_v7 = vand.u32 3, %v1523_v48  ;;  %vm4760_vm13 = vcmp.lt.s32.totalorder %v9600_v25, 0 }
 0x231   : > { %v4549_v27 = vsel %vm4538_vm12, nan, %v4548_v9  ;;  %v1513_v29 = vmul.f32 %v1512_v46, %v1510_v38  ;;  %v4821_v28 = vshll.u32 %v4820_v57, 30  ;;  %v1230_v11 = vor.u32 8388608, %v1229_v54 }
 0x232   : > { %7394 = vst [vmem:[%s9048_s11 + $0x120] sm:$0xff] %v4549_v27  ;;  %v1237_v8 = vsub.s32 32, %v1236_v49  ;;  %v4550_v33 = vand.u32 2147483647, %v9730_v43  ;;  %v7694_v41 = vadd.s32 4294967169, %v4554_v62  ;;  %v4844_v21 = vsub.s32 4, %v4820_v57 }
 0x233   : > { %v1514_v55 = vxor.u32 2147483648, %v1513_v29  ;;  %v9753_v39 = vsub.s32 %v4818_v24, %v4821_v28  ;;  %v1235_v1 = vshrl.u32 %v1234_v32, 5  ;;  %v1239_v22 = vshll.u32 %v8550_v6, %v1236_v49 }
 0x234   : > { %v1240_v58 = vshrl.u32 %v8551_v10, %v1237_v8  ;;  %v1242_v53 = vshll.u32 %v8551_v10, %v1236_v49  ;;  %v1243_v51 = vshrl.u32 %v8552_v12, %v1237_v8  ;;  %vm9763_vm14 = vcmp.le.f32.partialorder %v4758_v45, 0.7853982 }
 0x235   : > { %v1515_v56 = vsel %vm1432_vm0, %v1514_v55, %v1513_v29  ;;  %v4824_v44 = vsub.s32 0, %v9753_v39  ;;  %v1245_v47 = vshll.u32 %v8552_v12, %v1236_v49  ;;  %v1246_v31 = vshrl.u32 %v8553_v14, %v1237_v8 }
 0x236   : > { %v1518_v34 = vsel %vm9725_vm6, %v9543_v35, %v1515_v56  ;;  %v1241_v50 = vor.u32 %v1240_v58, %v1239_v22  ;;  %v1248_v15 = vshll.u32 %v8553_v14, %v1236_v49  ;;  %v1249_v52 = vshrl.u32 %v8554_v16, %v1237_v8 }
 0x237   : > { %8270 = vcosq.f32 %v1518_v34  ;;  %v7703_v45 = vmin.u32 %v4824_v44, %v9753_v39  ;;  %v1244_v61 = vor.u32 %v1243_v51, %v1242_v53  ;;  %v1247_v37 = vor.u32 %v1246_v31, %v1245_v47 }
 0x238   : > { %8272 = vsinq.f32 %v1518_v34  ;;  %v1250_v3 = vor.u32 %v1249_v52, %v1248_v15  ;;  %v1251_v36 = vshll.u32 %v8554_v16, %v1236_v49  ;;  %v1252_v13 = vshrl.u32 %v8555_v23, %v1237_v8 }
 0x239   : > { %v4814_v63 = vadd.s32 %v9714_v26, %v9719_v0  ;;  %v4826_v24 = vclz %v7703_v45  ;;  %v1270_v4 = vshll.u32 %v1230_v11, 8  ;;  %v4560_v30 = vadd.s32 1, %v7694_v41 }
 0x23a   : > { %v4845_v48 = vsel %vm4760_vm13, %v4844_v21, %v4820_v57  ;;  %v1238_v59 = vshrl.u32 %v8550_v6, %v1237_v8  ;;  %v1253_v42 = vor.u32 %v1252_v13, %v1251_v36  ;;  %vm1254_vm15 = vcmp.lt.s32.totalorder %v1235_v1, 1 }
 0x23b   : > { %v7704_v5 = vadd.s32 4294967294, %v4826_v24  ;;  %vm1256_vm0 = vcmp.lt.s32.totalorder %v1235_v1, 3  ;;  %vm1257_vm1 = vcmp.lt.s32.totalorder %v1235_v1, 4  ;;  %v1262_v40 = vsel %vm1254_vm15, %v1241_v50, %v1244_v61 }
 0x23c   : > { %v1259_v54 = vsel %vm1257_vm1, %v1247_v37, 2102212464  ;;  %v1263_v19 = vsel %vm1257_vm1, %v1250_v3, 920167782  ;;  %v1266_v46 = vsel %vm1254_vm15, %v1244_v61, %v1247_v37  ;;  %v1267_v26 = vsel %vm1257_vm1, %v1253_v42, 1326507024 }
 0x23d   : > { %vm7705_vm2 = vcmp.lt.s32.totalorder %v7704_v5, 0  ;;  %vm1255_vm3 = vcmp.lt.s32.totalorder %v1235_v1, 2  ;;  %v1264_v0 = vsel %vm1256_vm0, %v1247_v37, %v1263_v19  ;;  %v1268_v62 = vsel %vm1256_vm0, %v1250_v3, %v1267_v26 }
 0x23e   : > { %v4829_v17 = vsel %vm7705_vm2, 0, %v7704_v5  ;;  %v4847_v38 = vsel %vm9763_vm14, 0, %v4845_v48  ;;  %v1265_v57 = vsel %vm1255_vm3, %v1262_v40, %v1264_v0  ;;  %v1269_v32 = vsel %vm1255_vm3, %v1266_v46, %v1268_v62 }
 0x23f   : > { %v4830_v9 = vsub.s32 32, %v4829_v17  ;;  %v4834_v49 = vsub.s32 4294967266, %v4829_v17  ;;  %v1258_v27 = vsel %vm1254_vm15, %v1238_v59, %v1241_v50  ;;  %v1260_v29 = vsel %vm1256_vm0, %v1244_v61, %v1259_v54 }
 0x240   : > { %v9793_v28 = vmul.u32.u64.low %v1270_v4, %v1269_v32  ;;  %v9794_v11 = vmul.u32.u64.high %v1270_v4, %v1269_v32, %v9793_v28  ;;  %v9796_v8 = vmul.u32.u64.low %v1270_v4, %v1265_v57  ;;  %v9797_v41 = vmul.u32.u64.high %v1270_v4, %v1265_v57, %v9796_v8  ;;  %v7860_v32 = vpop.f32.mrf.mxu0 }
 0x241   : > { %vm1522_vm4 = vweird.f32 %v9543_v35  ;;  %v4831_v55 = vshll.u32 %v9753_v39, %v4829_v17  ;;  %v4832_v21 = vshrl.u32 %v4814_v63, %v4830_v9  ;;  %v4835_v22 = vadd.s32 127, %v4834_v49 }
 0x242   : > { %vm4561_vm5 = vcmp.gt.s32.totalorder %v4560_v30, 0  ;;  %v4851_v58 = vadd.s32 3, %v4847_v38  ;;  %v1261_v53 = vsel %vm1255_vm3, %v1258_v27, %v1260_v29  ;;  %v4557_v51 = vand.u32 8388607, %v4550_v33 }
 0x243   : > { %v4562_v56 = vsel %vm4561_vm5, %v4560_v30, 0  ;;  %vm1525_vm6 = vcmp.lt.s32.totalorder %v9748_v7, 2  ;;  %v4833_v44 = vor.u32 %v4832_v21, %v4831_v55  ;;  %v4836_v47 = vshll.u32 %v4835_v22, 23 }
 0x244   : > { %v4564_v31 = vand.u32 31, %v4562_v56  ;;  %v8271_v34 = vpop.eup %8270  ;;  %vm1526_vm7 = vcmp.eq.s32.totalorder %v9748_v7, 0  ;;  %vm1529_vm8 = vcmp.eq.s32.totalorder %v9748_v7, 2  ;;  %vm1279_vm9 = vc.u32 %v9794_v11, %v9796_v8 }
 0x245   : > { %v1280_v39 = vadd.s32 1, %v9797_v41  ;;  %v8273_v1 = vpop.eup %8272  ;;  %v1530_v50 = vxor.u32 2147483648, %v8271_v34  ;;  %v4837_v15 = vor.u32 4788187, %v4836_v47  ;;  %v1277_v52 = vmul.u32 %v1270_v4, %v1261_v53 }
 0x246   : > { %v4565_v45 = vsub.s32 32, %v4564_v31  ;;  %v1527_v61 = vxor.u32 2147483648, %v8273_v1  ;;  %v9811_v37 = vand.u32 3, %v4851_v58  ;;  %v4558_v36 = vor.u32 8388608, %v4557_v51 }
 0x247   : > { %v1281_v3 = vsel %vm1279_vm9, %v1280_v39, %v9797_v41  ;;  %v1531_v13 = vsel %vm1529_vm8, %v1530_v50, %v8273_v1  ;;  %v4838_v63 = vand.u32 2147483647, %v4837_v15  ;;  %v4840_v24 = vcvt.s32.f32 %v4833_v44 }
 0x248   : > { %v1282_v30 = vadd.s32 %v1281_v3, %v1277_v52  ;;  %v1528_v48 = vsel %vm1526_vm7, %v8271_v34, %v1527_v61  ;;  %v4563_v59 = vshrl.u32 %v4562_v56, 5  ;;  %v4568_v42 = vshrl.u32 %v8551_v10, %v4565_v45  ;;  %v7892_v3 = vpop.f32.mrf.mxu1 }
 0x249   : > { %v4571_v4 = vshrl.u32 %v8552_v12, %v4565_v45  ;;  %v1532_v5 = vsel %vm1525_vm6, %v1528_v48, %v1531_v13  ;;  %v4841_v40 = vmul.f32 %v4840_v24, %v4838_v63  ;;  %v4574_v19 = vshrl.u32 %v8553_v14, %v4565_v45 }
 0x24a   : > { %v1283_v54 = vadd.s32 536870912, %v1282_v30  ;;  %v1533_v46 = vsel %vm1522_vm4, nan, %v1532_v5  ;;  %v4567_v26 = vshll.u32 %v8550_v6, %v4564_v31  ;;  %v4570_v0 = vshll.u32 %v8551_v10, %v4564_v31 }
 0x24b   : > { %v4573_v62 = vshll.u32 %v8552_v12, %v4564_v31  ;;  %7365 = vst [vmem:[%s9048_s11 + $0x38] sm:$0xff] %v1533_v46  ;;  %v4842_v17 = vxor.u32 2147483648, %v4841_v40  ;;  %v4576_v57 = vshll.u32 %v8553_v14, %v4564_v31  ;;  %v4577_v7 = vshrl.u32 %v8554_v16, %v4565_v45 }
 0x24c   : > { %v1284_v38 = vshrl.u32 %v1283_v54, 30  ;;  %v4569_v9 = vor.u32 %v4568_v42, %v4567_v26  ;;  %v4572_v49 = vor.u32 %v4571_v4, %v4570_v0  ;;  %v4579_v27 = vshll.u32 %v8554_v16, %v4564_v31 }
 0x24d   : > { %v4580_v35 = vshrl.u32 %v8555_v23, %v4565_v45  ;;  %v4843_v29 = vsel %vm4760_vm13, %v4842_v17, %v4841_v40  ;;  %v4575_v41 = vor.u32 %v4574_v19, %v4573_v62  ;;  %v4578_v55 = vor.u32 %v4577_v7, %v4576_v57 }
 0x24e   : > { %v1285_v28 = vshll.u32 %v1284_v38, 30  ;;  %v4846_v21 = vsel %vm9763_vm14, %v9600_v25, %v4843_v29  ;;  %v4598_v58 = vshll.u32 %v4558_v36, 8  ;;  %v9837_v53 = vadd.f32 %v9540_v60, %v7860_v32 }
 0x24f   : > { %v4581_v22 = vor.u32 %v4580_v35, %v4579_v27  ;;  %8274 = vcosq.f32 %v4846_v21  ;;  %v4566_v56 = vshrl.u32 %v8550_v6, %v4565_v45  ;;  %vm4582_vm11 = vcmp.lt.s32.totalorder %v4563_v59, 1 }
 0x250   : > { %v9839_v51 = vsub.s32 %v1282_v30, %v1285_v28  ;;  %8276 = vsinq.f32 %v4846_v21  ;;  %vm4583_vm10 = vcmp.lt.s32.totalorder %v4563_v59, 2  ;;  %vm4585_vm12 = vcmp.lt.s32.totalorder %v4563_v59, 4 }
 0x251   : > { %v4590_v44 = vsel %vm4582_vm11, %v4569_v9, %v4572_v49  ;;  %vm4584_vm13 = vcmp.lt.s32.totalorder %v4563_v59, 3  ;;  %v4587_v18 = vsel %vm4585_vm12, %v4575_v41, 2102212464  ;;  %v4591_v31 = vsel %vm4585_vm12, %v4578_v55, 920167782 }
 0x252   : > { %v1288_v47 = vsub.s32 0, %v9839_v51  ;;  %v1308_v34 = vsub.s32 4, %v1284_v38  ;;  %v4592_v39 = vsel %vm4584_vm13, %v4575_v41, %v4591_v31  ;;  %v4594_v1 = vsel %vm4582_vm11, %v4572_v49, %v4575_v41 }
 0x253   : > { %v4595_v50 = vsel %vm4585_vm12, %v4581_v22, 1326507024  ;;  %v4586_v52 = vsel %vm4582_vm11, %v4566_v56, %v4569_v9  ;;  %v4593_v61 = vsel %vm4583_vm10, %v4590_v44, %v4592_v39  ;;  %v4588_v36 = vsel %vm4584_vm13, %v4572_v49, %v4587_v18 }
 0x254   : > { %v7567_v15 = vmin.u32 %v1288_v47, %v9839_v51  ;;  %v4596_v45 = vsel %vm4584_vm13, %v4578_v55, %v4595_v50  ;;  %v9846_v63 = vmul.u32.u64.low %v4598_v58, %v4593_v61  ;;  %v9847_v24 = vmul.u32.u64.high %v4598_v58, %v4593_v61, %v9846_v63  ;;  %v479_v61 = vpop.f32.mrf.mxu0 }
 0x255   : > { %v4597_v13 = vsel %vm4583_vm10, %v4594_v1, %v4596_v45  ;;  %vm1224_vm14 = vcmp.lt.s32.totalorder %v9708_v2, 0  ;;  %v9855_v4 = vadd.f32 %v9540_v60, %v7892_v3  ;;  %vm9859_vm15 = vcmp.le.f32.partialorder %v1222_v20, 0.7853982 }
 0x256   : > { %v1290_v30 = vclz %v7567_v15  ;;  %v9851_v48 = vmul.u32.u64.low %v4598_v58, %v4597_v13  ;;  %v9852_v42 = vmul.u32.u64.high %v4598_v58, %v4597_v13, %v9851_v48  ;;  %v4589_v54 = vsel %vm4583_vm10, %v4586_v52, %v4588_v36 }
 0x257   : > { %v1745_v19 = vand.u32 2139095040, %v9837_v53  ;;  %vm4853_vm0 = vcmp.lt.s32.totalorder %v9811_v37, 2  ;;  %vm4854_vm1 = vcmp.eq.s32.totalorder %v9811_v37, 0  ;;  %v1309_v46 = vsel %vm1224_vm14, %v1308_v34, %v1284_v38 }
 0x258   : > { %v7568_v40 = vadd.s32 4294967294, %v1290_v30  ;;  %v4608_v60 = vadd.s32 1, %v9847_v24  ;;  %v1742_v26 = vand.u32 2147483647, %v9837_v53  ;;  %vm4850_vm2 = vweird.f32 %v9600_v25 }
 0x259   : > { %vm4857_vm3 = vcmp.eq.s32.totalorder %v9811_v37, 2  ;;  %v1278_v20 = vadd.s32 %v9796_v8, %v9794_v11  ;;  %v1746_v59 = vshrl.u32 %v1745_v19, 23  ;;  %v4605_v62 = vmul.u32 %v4598_v58, %v4589_v54  ;;  %v9910_v54 = vld [vmem:[%s13586_s2] ss:$0 sm:$0xff] }
 0x25a   : > { %vm7569_vm4 = vcmp.lt.s32.totalorder %v7568_v40, 0  ;;  %vm4607_vm5 = vc.u32 %v9852_v42, %v9846_v63  ;;  %v5073_v17 = vand.u32 2139095040, %v9855_v4  ;;  %v1311_v7 = vsel %vm9859_vm15, 0, %v1309_v46 }
 0x25b   : > { %v1293_v0 = vsel %vm7569_vm4, 0, %v7568_v40  ;;  %v4609_v32 = vsel %vm4607_vm5, %v4608_v60, %v9847_v24  ;;  %v7586_v27 = vadd.s32 4294967169, %v1746_v59  ;;  %v1749_v11 = vand.u32 8388607, %v1742_v26 }
 0x25c   : > { %v1294_v38 = vsub.s32 32, %v1293_v0  ;;  %v1298_v57 = vsub.s32 4294967266, %v1293_v0  ;;  %v8275_v9 = vpop.eup %8274  ;;  %v4610_v49 = vadd.s32 %v4609_v32, %v4605_v62  ;;  %v5070_v8 = vand.u32 2147483647, %v9855_v4 }
 0x25d   : > { %v8277_v35 = vpop.eup %8276  ;;  %v4858_v29 = vxor.u32 2147483648, %v8275_v9  ;;  %v1295_v28 = vshll.u32 %v9839_v51, %v1293_v0  ;;  %v1752_v58 = vadd.s32 1, %v7586_v27  ;;  %v5074_v56 = vshrl.u32 %v5073_v17, 23 }
 0x25e   : > { %v1296_v41 = vshrl.u32 %v1278_v20, %v1294_v38  ;;  %v1299_v55 = vadd.s32 127, %v1298_v57  ;;  %v4855_v21 = vxor.u32 2147483648, %v8277_v35  ;;  %v4611_v22 = vadd.s32 536870912, %v4610_v49 }
 0x25f   : > { %v4859_v44 = vsel %vm4857_vm3, %v4858_v29, %v8277_v35  ;;  %v1315_v31 = vadd.s32 3, %v1311_v7  ;;  %v1750_v1 = vor.u32 8388608, %v1749_v11  ;;  %vm1753_vm6 = vcmp.gt.s32.totalorder %v1752_v58, 0 }
 0x260   : > { %v1297_v47 = vor.u32 %v1296_v41, %v1295_v28  ;;  %v1300_v18 = vshll.u32 %v1299_v55, 23  ;;  %v4856_v34 = vsel %vm4854_vm1, %v8275_v9, %v4855_v21  ;;  %v9889_v39 = vshrl.u32 %v4611_v22, 30 }
 0x261   : > { %v4860_v51 = vsel %vm4853_vm0, %v4856_v34, %v4859_v44  ;;  %v1754_v15 = vsel %vm1753_vm6, %v1752_v58, 0  ;;  %v9895_v52 = vand.u32 8388607, %v5070_v8  ;;  %v7714_v36 = vadd.s32 4294967169, %v5074_v56 }
 0x262   : > { %v1301_v50 = vor.u32 4788187, %v1300_v18  ;;  %v4861_v45 = vsel %vm4850_vm2, nan, %v4860_v51  ;;  %v4613_v3 = vshll.u32 %v9889_v39, 30  ;;  %v1304_v24 = vcvt.s32.f32 %v1297_v47 }
 0x263   : > { %7397 = vst [vmem:[%s9048_s11 + $0x138] sm:$0xff] %v4861_v45  ;;  %v1756_v30 = vand.u32 31, %v1754_v15  ;;  %v9901_v48 = vand.u32 3, %v1315_v31  ;;  %v4606_v37 = vadd.s32 %v9846_v63, %v9852_v42  ;;  %v9913_v25 = vadd.f32 %v9910_v54, %v479_v61 }
 0x264   : > { %v1302_v13 = vand.u32 2147483647, %v1301_v50  ;;  %v9905_v40 = vsub.s32 %v4610_v49, %v4613_v3  ;;  %v9915_v60 = vshll.u32 %v1750_v1, 8  ;;  %v5078_v20 = vor.u32 8388608, %v9895_v52 }
 0x265   : > { %v1757_v46 = vsub.s32 32, %v1756_v30  ;;  %v1755_v0 = vshrl.u32 %v1754_v15, 5  ;;  %v1759_v63 = vshll.u32 %v8550_v6, %v1756_v30  ;;  %v5080_v42 = vadd.s32 1, %v7714_v36 }
 0x266   : > { %v1305_v19 = vmul.f32 %v1304_v24, %v1302_v13  ;;  %v4616_v59 = vsub.s32 0, %v9905_v40  ;;  %v1762_v38 = vshll.u32 %v8551_v10, %v1756_v30  ;;  %v1765_v32 = vshll.u32 %v8552_v12, %v1756_v30 }
 0x267   : > { %v1760_v17 = vshrl.u32 %v8551_v10, %v1757_v46  ;;  %v1763_v57 = vshrl.u32 %v8552_v12, %v1757_v46  ;;  %v1766_v9 = vshrl.u32 %v8553_v14, %v1757_v46  ;;  %v1768_v49 = vshll.u32 %v8553_v14, %v1756_v30 }
 0x268   : > { %v1306_v62 = vxor.u32 2147483648, %v1305_v19  ;;  %v7695_v7 = vmin.u32 %v4616_v59, %v9905_v40  ;;  %v1769_v29 = vshrl.u32 %v8554_v16, %v1757_v46  ;;  %v4636_v55 = vsub.s32 4, %v9889_v39 }
 0x269   : > { %v1761_v11 = vor.u32 %v1760_v17, %v1759_v63  ;;  %v1764_v35 = vor.u32 %v1763_v57, %v1762_v38  ;;  %vm5081_vm7 = vcmp.gt.s32.totalorder %v5080_v42, 0  ;;  %v1767_v21 = vor.u32 %v1766_v9, %v1765_v32 }
 0x26a   : > { %v1307_v27 = vsel %vm1224_vm14, %v1306_v62, %v1305_v19  ;;  %v4618_v41 = vclz %v7695_v7  ;;  %v1770_v22 = vor.u32 %v1769_v29, %v1768_v49  ;;  %vm1774_vm8 = vcmp.lt.s32.totalorder %v1755_v0, 1 }
 0x26b   : > { %v1310_v28 = vsel %vm9859_vm15, %v9708_v2, %v1307_v27  ;;  %vm4552_vm9 = vcmp.lt.s32.totalorder %v9730_v43, 0  ;;  %v1771_v56 = vshll.u32 %v8554_v16, %v1756_v30  ;;  %v1772_v44 = vshrl.u32 %v8555_v23, %v1757_v46 }
 0x26c   : > { %8278 = vcosq.f32 %v1310_v28  ;;  %v7696_v58 = vadd.s32 4294967294, %v4618_v41  ;;  %v1758_v47 = vshrl.u32 %v8550_v6, %v1757_v46  ;;  %vm1776_vm11 = vcmp.lt.s32.totalorder %v1755_v0, 3 }
 0x26d   : > { %8280 = vsinq.f32 %v1310_v28  ;;  %vm1777_vm10 = vcmp.lt.s32.totalorder %v1755_v0, 4  ;;  %v1782_v5 = vsel %vm1774_vm8, %v1761_v11, %v1764_v35  ;;  %v1773_v18 = vor.u32 %v1772_v44, %v1771_v56 }
 0x26e   : > { %vm7697_vm12 = vcmp.lt.s32.totalorder %v7696_v58, 0  ;;  %v1779_v31 = vsel %vm1777_vm10, %v1767_v21, 2102212464  ;;  %v1783_v34 = vsel %vm1777_vm10, %v1770_v22, 920167782  ;;  %v1778_v51 = vsel %vm1774_vm8, %v1758_v47, %v1761_v11 }
 0x26f   : > { %v4621_v1 = vsel %vm7697_vm12, 0, %v7696_v58  ;;  %v1780_v50 = vsel %vm1776_vm11, %v1764_v35, %v1779_v31  ;;  %v1784_v15 = vsel %vm1776_vm11, %v1767_v21, %v1783_v34  ;;  %vm1775_vm13 = vcmp.lt.s32.totalorder %v1755_v0, 2 }
 0x270   : > { %v4622_v61 = vsub.s32 32, %v4621_v1  ;;  %v4626_v45 = vsub.s32 4294967266, %v4621_v1  ;;  %v1786_v3 = vsel %vm1774_vm8, %v1764_v35, %v1767_v21  ;;  %v4623_v36 = vshll.u32 %v9905_v40, %v4621_v1 }
 0x271   : > { %v1785_v13 = vsel %vm1775_vm13, %v1782_v5, %v1784_v15  ;;  %v1787_v24 = vsel %vm1777_vm10, %v1773_v18, 1326507024  ;;  %v5082_v30 = vsel %vm5081_vm7, %v5080_v42, 0  ;;  %v1781_v59 = vsel %vm1775_vm13, %v1778_v51, %v1780_v50 }
 0x272   : > { %v4624_v19 = vshrl.u32 %v4606_v37, %v4622_v61  ;;  %v4627_v46 = vadd.s32 127, %v4626_v45  ;;  %v1788_v63 = vsel %vm1776_vm11, %v1770_v22, %v1787_v24  ;;  %vm1318_vm14 = vcmp.eq.s32.totalorder %v9901_v48, 0 }
 0x273   : > { %v1789_v62 = vsel %vm1775_vm13, %v1786_v3, %v1788_v63  ;;  %v9951_v17 = vmul.u32.u64.low %v9915_v60, %v1785_v13  ;;  %v9952_v38 = vmul.u32.u64.high %v9915_v60, %v1785_v13, %v9951_v17  ;;  %v5084_v57 = vand.u32 31, %v5082_v30 }
 0x274   : > { %vm1317_vm15 = vcmp.lt.s32.totalorder %v9901_v48, 2  ;;  %vm9958_vm0 = vcmp.le.f32.partialorder %v4550_v33, 0.7853982  ;;  %v4625_v37 = vor.u32 %v4624_v19, %v4623_v36  ;;  %v4628_v0 = vshll.u32 %v4627_v46, 23 }
 0x275   : > { %v9963_v42 = vmul.u32.u64.low %v9915_v60, %v1789_v62  ;;  %v9964_v7 = vmul.u32.u64.high %v9915_v60, %v1789_v62, %v9963_v42  ;;  %vm1314_vm1 = vweird.f32 %v9708_v2  ;;  %vm1321_vm2 = vcmp.eq.s32.totalorder %v9901_v48, 2 }
 0x276   : > { %v4637_v32 = vsel %vm4552_vm9, %v4636_v55, %v9889_v39  ;;  %v5085_v9 = vsub.s32 32, %v5084_v57  ;;  %v9973_v33 = vshll.u32 %v5078_v20, 8  ;;  %v4629_v49 = vor.u32 4788187, %v4628_v0 }
 0x277   : > { %v1797_v27 = vmul.u32 %v9915_v60, %v1781_v59  ;;  %v9976_v11 = vshrl.u32 %v5082_v30, 5  ;;  %v5087_v35 = vshll.u32 %v8550_v6, %v5084_v57  ;;  %v1800_v29 = vadd.s32 1, %v9952_v38 }
 0x278   : > { %v5088_v28 = vshrl.u32 %v8551_v10, %v5085_v9  ;;  %v5090_v41 = vshll.u32 %v8551_v10, %v5084_v57  ;;  %v5093_v39 = vshll.u32 %v8552_v12, %v5084_v57  ;;  %v4630_v21 = vand.u32 2147483647, %v4629_v49 }
 0x279   : > { %v8279_v55 = vpop.eup %8278  ;;  %v4632_v52 = vcvt.s32.f32 %v4625_v37  ;;  %vm1799_vm3 = vc.u32 %v9964_v7, %v9951_v17  ;;  %v5091_v60 = vshrl.u32 %v8552_v12, %v5085_v9  ;;  %v5094_v56 = vshrl.u32 %v8553_v14, %v5085_v9 }
 0x27a   : > { %v8281_v20 = vpop.eup %8280  ;;  %v1322_v22 = vxor.u32 2147483648, %v8279_v55  ;;  %v1801_v58 = vsel %vm1799_vm3, %v1800_v29, %v9952_v38  ;;  %v5096_v44 = vshll.u32 %v8553_v14, %v5084_v57  ;;  %v5099_v31 = vshll.u32 %v8554_v16, %v5084_v57 }
 0x27b   : > { %v1319_v47 = vxor.u32 2147483648, %v8281_v20  ;;  %v4633_v5 = vmul.f32 %v4632_v52, %v4630_v21  ;;  %v1802_v18 = vadd.s32 %v1801_v58, %v1797_v27  ;;  %v5089_v1 = vor.u32 %v5088_v28, %v5087_v35 }
 0x27c   : > { %v1323_v34 = vsel %vm1321_vm2, %v1322_v22, %v8281_v20  ;;  %v5097_v51 = vshrl.u32 %v8554_v16, %v5085_v9  ;;  %v5100_v50 = vshrl.u32 %v8555_v23, %v5085_v9  ;;  %v5092_v3 = vor.u32 %v5091_v60, %v5090_v41 }
 0x27d   : > { %v1320_v15 = vsel %vm1318_vm14, %v8279_v55, %v1319_v47  ;;  %v4634_v61 = vxor.u32 2147483648, %v4633_v5  ;;  %v1803_v45 = vadd.s32 536870912, %v1802_v18  ;;  %v4639_v13 = vsel %vm9958_vm0, 0, %v4637_v32 }
 0x27e   : > { %v1324_v36 = vsel %vm1317_vm15, %v1320_v15, %v1323_v34  ;;  %v5095_v24 = vor.u32 %v5094_v56, %v5093_v39  ;;  %v5098_v30 = vor.u32 %v5097_v51, %v5096_v44  ;;  %v5101_v63 = vor.u32 %v5100_v50, %v5099_v31  ;;  %v607_v50 = vpop.f32.mrf.mxu1 }
 0x27f   : > { %v1325_v19 = vsel %vm1314_vm1, nan, %v1324_v36  ;;  %v4635_v46 = vsel %vm4552_vm9, %v4634_v61, %v4633_v5  ;;  %v1804_v59 = vshrl.u32 %v1803_v45, 30  ;;  %v5086_v48 = vshrl.u32 %v8550_v6, %v5085_v9 }
 0x280   : > { %7363 = vst [vmem:[%s9048_s11 + $0x28] sm:$0xff] %v1325_v19  ;;  %v4638_v62 = vsel %vm9958_vm0, %v9730_v43, %v4635_v46  ;;  %vm5102_vm4 = vcmp.lt.s32.totalorder %v9976_v11, 1  ;;  %vm5104_vm5 = vcmp.lt.s32.totalorder %v9976_v11, 3  ;;  %vm5105_vm6 = vcmp.lt.s32.totalorder %v9976_v11, 4 }
 0x281   : > { %8282 = vcosq.f32 %v4638_v62  ;;  %v1805_v38 = vshll.u32 %v1804_v59, 30  ;;  %v5110_v2 = vsel %vm5102_vm4, %v5089_v1, %v5092_v3  ;;  %v5107_v57 = vsel %vm5105_vm6, %v5095_v24, 2102212464 }
 0x282   : > { %8284 = vsinq.f32 %v4638_v62  ;;  %v5111_v37 = vsel %vm5105_vm6, %v5098_v30, 920167782  ;;  %v5114_v40 = vsel %vm5102_vm4, %v5092_v3, %v5095_v24  ;;  %vm5103_vm7 = vcmp.lt.s32.totalorder %v9976_v11, 2 }
 0x283   : > { %v10016_v0 = vsub.s32 %v1802_v18, %v1805_v38  ;;  %v5112_v42 = vsel %vm5104_vm5, %v5095_v24, %v5111_v37  ;;  %v5115_v32 = vsel %vm5105_vm6, %v5101_v63, 1326507024  ;;  %v4643_v9 = vadd.s32 3, %v4639_v13 }
 0x284   : > { %v1828_v49 = vsub.s32 4, %v1804_v59  ;;  %v5113_v27 = vsel %vm5103_vm7, %v5110_v2, %v5112_v42  ;;  %v5116_v35 = vsel %vm5104_vm5, %v5098_v30, %v5115_v32  ;;  %v5106_v28 = vsel %vm5102_vm4, %v5086_v48, %v5089_v1 }
 0x285   : > { %v1808_v29 = vsub.s32 0, %v10016_v0  ;;  %v5108_v41 = vsel %vm5104_vm5, %v5092_v3, %v5107_v57  ;;  %v5117_v39 = vsel %vm5103_vm7, %v5114_v40, %v5116_v35  ;;  %vm1744_vm8 = vcmp.lt.s32.totalorder %v9837_v53, 0 }
 0x286   : > { %v10033_v55 = vmul.u32.u64.low %v9973_v33, %v5117_v39  ;;  %v10034_v21 = vmul.u32.u64.high %v9973_v33, %v5117_v39, %v10033_v55  ;;  %v10037_v52 = vmul.u32.u64.low %v9973_v33, %v5113_v27  ;;  %v10038_v60 = vmul.u32.u64.high %v9973_v33, %v5113_v27, %v10037_v52 }
 0x287   : > { %v7587_v20 = vmin.u32 %v1808_v29, %v10016_v0  ;;  %v4644_v22 = vand.u32 3, %v4643_v9  ;;  %v1829_v58 = vsel %vm1744_vm8, %v1828_v49, %v1804_v59  ;;  %v5109_v56 = vsel %vm5103_vm7, %v5106_v28, %v5108_v41 }
 0x288   : > { %v1537_v44 = vand.u32 2139095040, %v9913_v25  ;;  %vm10049_vm9 = vcmp.le.f32.partialorder %v1742_v26, 0.7853982  ;;  %vm5127_vm11 = vc.u32 %v10034_v21, %v10037_v52  ;;  %v5128_v18 = vadd.s32 1, %v10038_v60 }
 0x289   : > { %v1810_v47 = vclz %v7587_v20  ;;  %v1831_v1 = vsel %vm10049_vm9, 0, %v1829_v58  ;;  %v5125_v11 = vmul.u32 %v9973_v33, %v5109_v56  ;;  %v1534_v51 = vand.u32 2147483647, %v9913_v25 }
 0x28a   : > { %v1538_v31 = vshrl.u32 %v1537_v44, 23  ;;  %vm4645_vm10 = vcmp.lt.s32.totalorder %v4644_v22, 2  ;;  %vm4646_vm12 = vcmp.eq.s32.totalorder %v4644_v22, 0  ;;  %v5129_v26 = vsel %vm5127_vm11, %v5128_v18, %v10038_v60 }
 0x28b   : > { %v7588_v34 = vadd.s32 4294967294, %v1810_v47  ;;  %vm4649_vm13 = vcmp.eq.s32.totalorder %v4644_v22, 2  ;;  %v1798_v61 = vadd.s32 %v9951_v17, %v9964_v7  ;;  %v5130_v45 = vadd.s32 %v5129_v26, %v5125_v11 }
 0x28c   : > { %v7578_v15 = vadd.s32 4294967169, %v1538_v31  ;;  %v1835_v13 = vadd.s32 3, %v1831_v1  ;;  %v10063_v33 = vadd.f32 %v9910_v54, %v607_v50  ;;  %v1541_v63 = vand.u32 8388607, %v1534_v51 }
 0x28d   : > { %vm7589_vm14 = vcmp.lt.s32.totalorder %v7588_v34, 0  ;;  %v5131_v17 = vadd.s32 536870912, %v5130_v45  ;;  %vm4642_vm0 = vweird.f32 %v9730_v43  ;;  %vm5072_vm1 = vcmp.lt.s32.totalorder %v9855_v4, 0 }
 0x28e   : > { %v8283_v3 = vpop.eup %8282  ;;  %v1813_v36 = vsel %vm7589_vm14, 0, %v7588_v34  ;;  %v1544_v24 = vadd.s32 1, %v7578_v15  ;;  %v4865_v32 = vand.u32 2139095040, %v10063_v33  ;;  %v10075_v41 = vand.u32 3, %v1835_v13 }
 0x28f   : > { %v8285_v30 = vpop.eup %8284  ;;  %v4650_v19 = vxor.u32 2147483648, %v8283_v3  ;;  %v1814_v46 = vsub.s32 32, %v1813_v36  ;;  %v1818_v59 = vsub.s32 4294967266, %v1813_v36  ;;  %v1815_v48 = vshll.u32 %v10016_v0, %v1813_v36 }
 0x290   : > { %v4647_v62 = vxor.u32 2147483648, %v8285_v30  ;;  %vm1545_vm15 = vcmp.gt.s32.totalorder %v1544_v24, 0  ;;  %v5132_v40 = vshrl.u32 %v5131_v17, 30  ;;  %v5126_v39 = vadd.s32 %v10037_v52, %v10034_v21 }
 0x291   : > { %v4651_v7 = vsel %vm4649_vm13, %v4650_v19, %v8285_v30  ;;  %v1816_v38 = vshrl.u32 %v1798_v61, %v1814_v46  ;;  %v1819_v2 = vadd.s32 127, %v1818_v59  ;;  %v1546_v57 = vsel %vm1545_vm15, %v1544_v24, 0 }
 0x292   : > { %v4648_v37 = vsel %vm4646_vm12, %v8283_v3, %v4647_v62  ;;  %v1548_v42 = vand.u32 31, %v1546_v57  ;;  %v5133_v35 = vshll.u32 %v5132_v40, 30  ;;  %v1542_v55 = vor.u32 8388608, %v1541_v63 }
 0x293   : > { %v4652_v9 = vsel %vm4645_vm10, %v4648_v37, %v4651_v7  ;;  %v1817_v49 = vor.u32 %v1816_v38, %v1815_v48  ;;  %v1820_v0 = vshll.u32 %v1819_v2, 23  ;;  %v5156_v20 = vsub.s32 4, %v5132_v40 }
 0x294   : > { %v4653_v27 = vsel %vm4642_vm0, nan, %v4652_v9  ;;  %v1549_v29 = vsub.s32 32, %v1548_v42  ;;  %v10078_v60 = vsub.s32 %v5130_v45, %v5133_v35  ;;  %v4866_v22 = vshrl.u32 %v4865_v32, 23 }
 0x295   : > { %7395 = vst [vmem:[%s9048_s11 + $0x128] sm:$0xff] %v4653_v27  ;;  %v1821_v28 = vor.u32 4788187, %v1820_v0  ;;  %v1824_v56 = vcvt.s32.f32 %v1817_v49  ;;  %v1551_v44 = vshll.u32 %v8550_v6, %v1548_v42  ;;  %v1554_v31 = vshll.u32 %v8551_v10, %v1548_v42 }
 0x296   : > { %v1552_v43 = vshrl.u32 %v8551_v10, %v1549_v29  ;;  %v1555_v47 = vshrl.u32 %v8552_v12, %v1549_v29  ;;  %v5136_v18 = vsub.s32 0, %v10078_v60  ;;  %v1557_v34 = vshll.u32 %v8552_v12, %v1548_v42 }
 0x297   : > { %v1822_v58 = vand.u32 2147483647, %v1821_v28  ;;  %v1558_v21 = vshrl.u32 %v8553_v14, %v1549_v29  ;;  %v1547_v1 = vshrl.u32 %v1546_v57, 5  ;;  %v1560_v11 = vshll.u32 %v8553_v14, %v1548_v42 }
 0x298   : > { %v1561_v50 = vshrl.u32 %v8554_v16, %v1549_v29  ;;  %v7715_v26 = vmin.u32 %v5136_v18, %v10078_v60  ;;  %v1553_v15 = vor.u32 %v1552_v43, %v1551_v44  ;;  %v1556_v61 = vor.u32 %v1555_v47, %v1554_v31 }
 0x299   : > { %v1825_v52 = vmul.f32 %v1824_v56, %v1822_v58  ;;  %v1559_v45 = vor.u32 %v1558_v21, %v1557_v34  ;;  %v1563_v13 = vshll.u32 %v8554_v16, %v1548_v42  ;;  %v1564_v24 = vshrl.u32 %v8555_v23, %v1549_v29 }
 0x29a   : > { %v1562_v36 = vor.u32 %v1561_v50, %v1560_v11  ;;  %vm10094_vm2 = vcmp.le.f32.partialorder %v5070_v8, 0.7853982  ;;  %v5138_v19 = vclz %v7715_v26  ;;  %v5157_v46 = vsel %vm5072_vm1, %v5156_v20, %v5132_v40  ;;  %v7861_v50 = vpop.f32.mrf.mxu0 }
 0x29b   : > { %v1826_v3 = vxor.u32 2147483648, %v1825_v52  ;;  %v1582_v59 = vshll.u32 %v1542_v55, 8  ;;  %v7706_v63 = vadd.s32 4294967169, %v4866_v22  ;;  %v1550_v48 = vshrl.u32 %v8550_v6, %v1549_v29 }
 0x29c   : > { %v1565_v17 = vor.u32 %v1564_v24, %v1563_v13  ;;  %vm1566_vm3 = vcmp.lt.s32.totalorder %v1547_v1, 1  ;;  %v7716_v7 = vadd.s32 4294967294, %v5138_v19  ;;  %vm1568_vm4 = vcmp.lt.s32.totalorder %v1547_v1, 3 }
 0x29d   : > { %v1827_v62 = vsel %vm1744_vm8, %v1826_v3, %v1825_v52  ;;  %vm1569_vm5 = vcmp.lt.s32.totalorder %v1547_v1, 4  ;;  %v1574_v2 = vsel %vm1566_vm3, %v1553_v15, %v1556_v61  ;;  %vm1567_vm7 = vcmp.lt.s32.totalorder %v1547_v1, 2 }
 0x29e   : > { %v1830_v8 = vsel %vm10049_vm9, %v9837_v53, %v1827_v62  ;;  %v1571_v38 = vsel %vm1569_vm5, %v1559_v45, 2102212464  ;;  %v1575_v57 = vsel %vm1569_vm5, %v1562_v36, 920167782  ;;  %vm7717_vm6 = vcmp.lt.s32.totalorder %v7716_v7, 0 }
 0x29f   : > { %8286 = vcosq.f32 %v1830_v8  ;;  %v1576_v37 = vsel %vm1568_vm4, %v1559_v45, %v1575_v57  ;;  %v5141_v40 = vsel %vm7717_vm6, 0, %v7716_v7  ;;  %v1570_v42 = vsel %vm1566_vm3, %v1550_v48, %v1553_v15 }
 0x2a0   : > { %8288 = vsinq.f32 %v1830_v8  ;;  %v1577_v5 = vsel %vm1567_vm7, %v1574_v2, %v1576_v37  ;;  %v1578_v32 = vsel %vm1566_vm3, %v1556_v61, %v1559_v45  ;;  %v5142_v9 = vsub.s32 32, %v5141_v40 }
 0x2a1   : > { %v5146_v49 = vsub.s32 4294967266, %v5141_v40  ;;  %v1572_v0 = vsel %vm1568_vm4, %v1556_v61, %v1571_v38  ;;  %v1579_v27 = vsel %vm1569_vm5, %v1565_v17, 1326507024  ;;  %v5143_v35 = vshll.u32 %v10078_v60, %v5141_v40 }
 0x2a2   : > { %v1580_v29 = vsel %vm1568_vm4, %v1562_v36, %v1579_v27  ;;  %v10117_v28 = vmul.u32.u64.low %v1582_v59, %v1577_v5  ;;  %v10118_v55 = vmul.u32.u64.high %v1582_v59, %v1577_v5, %v10117_v28  ;;  %v5144_v20 = vshrl.u32 %v5126_v39, %v5142_v9 }
 0x2a3   : > { %v5147_v43 = vadd.s32 127, %v5146_v49  ;;  %v1581_v22 = vsel %vm1567_vm7, %v1578_v32, %v1580_v29  ;;  %v4872_v58 = vadd.s32 1, %v7706_v63  ;;  %v5159_v56 = vsel %vm10094_vm2, 0, %v5157_v46 }
 0x2a4   : > { %v10124_v44 = vmul.u32.u64.low %v1582_v59, %v1581_v22  ;;  %v10125_v47 = vmul.u32.u64.high %v1582_v59, %v1581_v22, %v10124_v44  ;;  %v4862_v18 = vand.u32 2147483647, %v10063_v33  ;;  %v5145_v60 = vor.u32 %v5144_v20, %v5143_v35 }
 0x2a5   : > { %v5148_v31 = vshll.u32 %v5147_v43, 23  ;;  %v1573_v34 = vsel %vm1567_vm7, %v1570_v42, %v1572_v0  ;;  %vm4873_vm8 = vcmp.gt.s32.totalorder %v4872_v58, 0  ;;  %v1592_v21 = vadd.s32 1, %v10118_v55 }
 0x2a6   : > { %v4874_v39 = vsel %vm4873_vm8, %v4872_v58, 0  ;;  %vm1837_vm9 = vcmp.lt.s32.totalorder %v10075_v41, 2  ;;  %vm1838_vm11 = vcmp.eq.s32.totalorder %v10075_v41, 0  ;;  %vm1841_vm10 = vcmp.eq.s32.totalorder %v10075_v41, 2 }
 0x2a7   : > { %v5149_v52 = vor.u32 4788187, %v5148_v31  ;;  %v4876_v11 = vand.u32 31, %v4874_v39  ;;  %vm1834_vm12 = vweird.f32 %v9837_v53  ;;  %v5163_v26 = vadd.s32 3, %v5159_v56 }
 0x2a8   : > { %v1589_v15 = vmul.u32 %v1582_v59, %v1573_v34  ;;  %vm1591_vm13 = vc.u32 %v10125_v47, %v10117_v28  ;;  %v4869_v1 = vand.u32 8388607, %v4862_v18  ;;  %v5152_v45 = vcvt.s32.f32 %v5145_v60 }
 0x2a9   : > { %v5150_v61 = vand.u32 2147483647, %v5149_v52  ;;  %v1593_v3 = vsel %vm1591_vm13, %v1592_v21, %v10118_v55  ;;  %v4877_v36 = vsub.s32 32, %v4876_v11  ;;  %v10139_v24 = vshrl.u32 %v4874_v39, 5 }
 0x2aa   : > { %v1594_v13 = vadd.s32 %v1593_v3, %v1589_v15  ;;  %v4879_v19 = vshll.u32 %v8550_v6, %v4876_v11  ;;  %v10143_v46 = vadd.f32 %v9910_v54, %v7861_v50  ;;  %v4882_v48 = vshll.u32 %v8551_v10, %v4876_v11 }
 0x2ab   : > { %v5153_v63 = vmul.f32 %v5152_v45, %v5150_v61  ;;  %v4880_v62 = vshrl.u32 %v8551_v10, %v4877_v36  ;;  %v4883_v17 = vshrl.u32 %v8552_v12, %v4877_v36  ;;  %v4885_v2 = vshll.u32 %v8552_v12, %v4876_v11 }
 0x2ac   : > { %v8287_v59 = vpop.eup %8286  ;;  %v1595_v38 = vadd.s32 536870912, %v1594_v13  ;;  %v4886_v57 = vshrl.u32 %v8553_v14, %v4877_v36  ;;  %v4888_v42 = vshll.u32 %v8553_v14, %v4876_v11  ;;  %v4889_v5 = vshrl.u32 %v8554_v16, %v4877_v36 }
 0x2ad   : > { %v8289_v8 = vpop.eup %8288  ;;  %v1842_v7 = vxor.u32 2147483648, %v8287_v59  ;;  %v5154_v40 = vxor.u32 2147483648, %v5153_v63  ;;  %v4881_v49 = vor.u32 %v4880_v62, %v4879_v19  ;;  %v4884_v0 = vor.u32 %v4883_v17, %v4882_v48 }
 0x2ae   : > { %v1839_v37 = vxor.u32 2147483648, %v8289_v8  ;;  %v10154_v9 = vshrl.u32 %v1595_v38, 30  ;;  %v4891_v29 = vshll.u32 %v8554_v16, %v4876_v11  ;;  %v4892_v55 = vshrl.u32 %v8555_v23, %v4877_v36 }
 0x2af   : > { %v1843_v32 = vsel %vm1841_vm10, %v1842_v7, %v8289_v8  ;;  %v5155_v35 = vsel %vm5072_vm1, %v5154_v40, %v5153_v63  ;;  %v4887_v58 = vor.u32 %v4886_v57, %v4885_v2  ;;  %v4890_v44 = vor.u32 %v4889_v5, %v4888_v42  ;;  %v7893_v8 = vpop.f32.mrf.mxu1 }
 0x2b0   : > { %v1840_v27 = vsel %vm1838_vm11, %v8287_v59, %v1839_v37  ;;  %v5158_v43 = vsel %vm10094_vm2, %v9855_v4, %v5155_v35  ;;  %v1597_v22 = vshll.u32 %v10154_v9, 30  ;;  %v4893_v60 = vor.u32 %v4892_v55, %v4891_v29 }
 0x2b1   : > { %v1844_v20 = vsel %vm1837_vm9, %v1840_v27, %v1843_v32  ;;  %8290 = vcosq.f32 %v5158_v43  ;;  %v10173_v34 = vand.u32 3, %v5163_v26  ;;  %v4870_v41 = vor.u32 8388608, %v4869_v1 }
 0x2b2   : > { %v1845_v56 = vsel %vm1834_vm12, nan, %v1844_v20  ;;  %8292 = vsinq.f32 %v5158_v43  ;;  %v10171_v31 = vsub.s32 %v1594_v13, %v1597_v22  ;;  %vm4894_vm14 = vcmp.lt.s32.totalorder %v10139_v24, 1 }
 0x2b3   : > { %7368 = vst [vmem:[%s9048_s11 + $0x50] sm:$0xff] %v1845_v56  ;;  %v1849_v30 = vand.u32 2139095040, %v10143_v46  ;;  %vm4896_vm15 = vcmp.lt.s32.totalorder %v10139_v24, 3  ;;  %vm4897_vm0 = vcmp.lt.s32.totalorder %v10139_v24, 4  ;;  %v4902_v53 = vsel %vm4894_vm14, %v4881_v49, %v4884_v0 }
 0x2b4   : > { %v1600_v21 = vsub.s32 0, %v10171_v31  ;;  %v4878_v39 = vshrl.u32 %v8550_v6, %v4877_v36  ;;  %v4899_v52 = vsel %vm4897_vm0, %v4887_v58, 2102212464  ;;  %v4903_v11 = vsel %vm4897_vm0, %v4890_v44, 920167782 }
 0x2b5   : > { %v4907_v50 = vsel %vm4897_vm0, %v4893_v60, 1326507024  ;;  %vm4895_vm1 = vcmp.lt.s32.totalorder %v10139_v24, 2  ;;  %v4904_v15 = vsel %vm4896_vm15, %v4887_v58, %v4903_v11  ;;  %v4906_v1 = vsel %vm4894_vm14, %v4884_v0, %v4887_v58 }
 0x2b6   : > { %v7579_v26 = vmin.u32 %v1600_v21, %v10171_v31  ;;  %v4905_v61 = vsel %vm4895_vm1, %v4902_v53, %v4904_v15  ;;  %v4908_v45 = vsel %vm4896_vm15, %v4890_v44, %v4907_v50  ;;  %v4910_v3 = vshll.u32 %v4870_v41, 8 }
 0x2b7   : > { %v1850_v36 = vshrl.u32 %v1849_v30, 23  ;;  %v4898_v19 = vsel %vm4894_vm14, %v4878_v39, %v4881_v49  ;;  %v4900_v59 = vsel %vm4896_vm15, %v4884_v0, %v4899_v52  ;;  %v4909_v63 = vsel %vm4895_vm1, %v4906_v1, %v4908_v45 }
 0x2b8   : > { %v1602_v13 = vclz %v7579_v26  ;;  %v10199_v62 = vmul.u32.u64.low %v4910_v3, %v4905_v61  ;;  %v10200_v48 = vmul.u32.u64.high %v4910_v3, %v4905_v61, %v10199_v62  ;;  %v1620_v38 = vsub.s32 4, %v10154_v9 }
 0x2b9   : > { %v7590_v17 = vadd.s32 4294967169, %v1850_v36  ;;  %v10204_v2 = vmul.u32.u64.low %v4910_v3, %v4909_v63  ;;  %v10205_v57 = vmul.u32.u64.high %v4910_v3, %v4909_v63, %v10204_v2  ;;  %vm5162_vm2 = vweird.f32 %v9855_v4 }
 0x2ba   : > { %v7580_v7 = vadd.s32 4294967294, %v1602_v13  ;;  %vm5166_vm3 = vcmp.eq.s32.totalorder %v10173_v34, 0  ;;  %vm1536_vm4 = vcmp.lt.s32.totalorder %v9913_v25, 0  ;;  %v4901_v37 = vsel %vm4895_vm1, %v4898_v19, %v4900_v59 }
 0x2bb   : > { %v1856_v40 = vadd.s32 1, %v7590_v17  ;;  %vm5169_vm5 = vcmp.eq.s32.totalorder %v10173_v34, 2  ;;  %v1846_v42 = vand.u32 2147483647, %v10143_v46  ;;  %v10215_v5 = vadd.f32 %v9910_v54, %v7893_v8 }
 0x2bc   : > { %vm7581_vm6 = vcmp.lt.s32.totalorder %v7580_v7, 0  ;;  %v1590_v32 = vadd.s32 %v10117_v28, %v10125_v47  ;;  %v4920_v0 = vadd.s32 1, %v10200_v48  ;;  %v1621_v29 = vsel %vm1536_vm4, %v1620_v38, %v10154_v9 }
 0x2bd   : > { %v1605_v49 = vsel %vm7581_vm6, 0, %v7580_v7  ;;  %vm1857_vm7 = vcmp.gt.s32.totalorder %v1856_v40, 0  ;;  %v4917_v55 = vmul.u32 %v4910_v3, %v4901_v37  ;;  %vm4919_vm8 = vc.u32 %v10205_v57, %v10199_v62 }
 0x2be   : > { %v8291_v27 = vpop.eup %8290  ;;  %v1606_v35 = vsub.s32 32, %v1605_v49  ;;  %v1610_v24 = vsub.s32 4294967266, %v1605_v49  ;;  %v1607_v22 = vshll.u32 %v10171_v31, %v1605_v49  ;;  %v1858_v28 = vsel %vm1857_vm7, %v1856_v40, 0 }
 0x2bf   : > { %v8293_v20 = vpop.eup %8292  ;;  %v5170_v43 = vxor.u32 2147483648, %v8291_v27  ;;  %v4921_v44 = vsel %vm4919_vm8, %v4920_v0, %v10200_v48  ;;  %v1853_v9 = vand.u32 8388607, %v1846_v42  ;;  %v1860_v30 = vand.u32 31, %v1858_v28 }
 0x2c0   : > { %v5167_v47 = vxor.u32 2147483648, %v8293_v20  ;;  %v1608_v58 = vshrl.u32 %v1590_v32, %v1606_v35  ;;  %v1611_v56 = vadd.s32 127, %v1610_v24  ;;  %v4922_v41 = vadd.s32 %v4921_v44, %v4917_v55 }
 0x2c1   : > { %v5171_v60 = vsel %vm5169_vm5, %v5170_v43, %v8293_v20  ;;  %vm5165_vm9 = vcmp.lt.s32.totalorder %v10173_v34, 2  ;;  %vm10236_vm11 = vcmp.le.f32.partialorder %v1534_v51, 0.7853982  ;;  %v1861_v50 = vsub.s32 32, %v1860_v30 }
 0x2c2   : > { %v5168_v31 = vsel %vm5166_vm3, %v8291_v27, %v5167_v47  ;;  %v1609_v21 = vor.u32 %v1608_v58, %v1607_v22  ;;  %v1612_v53 = vshll.u32 %v1611_v56, 23  ;;  %v4923_v11 = vadd.s32 536870912, %v4922_v41 }
 0x2c3   : > { %v5172_v39 = vsel %vm5165_vm9, %v5168_v31, %v5171_v60  ;;  %v1623_v1 = vsel %vm10236_vm11, 0, %v1621_v29  ;;  %v1854_v61 = vor.u32 8388608, %v1853_v9  ;;  %v1864_v45 = vshrl.u32 %v8551_v10, %v1861_v50 }
 0x2c4   : > { %v5173_v26 = vsel %vm5162_vm2, nan, %v5172_v39  ;;  %v1613_v15 = vor.u32 4788187, %v1612_v53  ;;  %v10245_v34 = vshrl.u32 %v4923_v11, 30  ;;  %v5177_v51 = vand.u32 2139095040, %v10215_v5 }
 0x2c5   : > { %7400 = vst [vmem:[%s9048_s11 + $0x150] sm:$0xff] %v5173_v26  ;;  %v1616_v36 = vcvt.s32.f32 %v1609_v21  ;;  %v1867_v13 = vshrl.u32 %v8552_v12, %v1861_v50  ;;  %v1870_v19 = vshrl.u32 %v8553_v14, %v1861_v50  ;;  %v1859_v59 = vshrl.u32 %v1858_v28, 5 }
 0x2c6   : > { %v1614_v3 = vand.u32 2147483647, %v1613_v15  ;;  %v4925_v4 = vshll.u32 %v10245_v34, 30  ;;  %v1863_v63 = vshll.u32 %v8550_v6, %v1860_v30  ;;  %v1869_v48 = vshll.u32 %v8552_v12, %v1860_v30 }
 0x2c7   : > { %v1866_v8 = vshll.u32 %v8551_v10, %v1860_v30  ;;  %v1872_v7 = vshll.u32 %v8553_v14, %v1860_v30  ;;  %v1873_v38 = vshrl.u32 %v8554_v16, %v1861_v50  ;;  %v1876_v32 = vshrl.u32 %v8555_v23, %v1861_v50 }
 0x2c8   : > { %v1617_v17 = vmul.f32 %v1616_v36, %v1614_v3  ;;  %v10257_v2 = vsub.s32 %v4922_v41, %v4925_v4  ;;  %v1865_v37 = vor.u32 %v1864_v45, %v1863_v63  ;;  %v1871_v40 = vor.u32 %v1870_v19, %v1869_v48 }
 0x2c9   : > { %v1868_v0 = vor.u32 %v1867_v13, %v1866_v8  ;;  %v1874_v27 = vor.u32 %v1873_v38, %v1872_v7  ;;  %v1875_v35 = vshll.u32 %v8554_v16, %v1860_v30  ;;  %v1627_v24 = vadd.s32 3, %v1623_v1 }
 0x2ca   : > { %v1618_v49 = vxor.u32 2147483648, %v1617_v17  ;;  %v4928_v29 = vsub.s32 0, %v10257_v2  ;;  %v1894_v55 = vshll.u32 %v1854_v61, 8  ;;  %v5178_v20 = vshrl.u32 %v5177_v51, 23 }
 0x2cb   : > { %v1862_v22 = vshrl.u32 %v8550_v6, %v1861_v50  ;;  %v1877_v28 = vor.u32 %v1876_v32, %v1875_v35  ;;  %vm1881_vm10 = vcmp.lt.s32.totalorder %v1859_v59, 4  ;;  %vm1878_vm12 = vcmp.lt.s32.totalorder %v1859_v59, 1 }
 0x2cc   : > { %v1619_v43 = vsel %vm1536_vm4, %v1618_v49, %v1617_v17  ;;  %v7707_v58 = vmin.u32 %v4928_v29, %v10257_v2  ;;  %v1883_v56 = vsel %vm1881_vm10, %v1871_v40, 2102212464  ;;  %vm1879_vm13 = vcmp.lt.s32.totalorder %v1859_v59, 2 }
 0x2cd   : > { %v1622_v47 = vsel %vm10236_vm11, %v9913_v25, %v1619_v43  ;;  %v1886_v44 = vsel %vm1878_vm12, %v1865_v37, %v1868_v0  ;;  %v1887_v60 = vsel %vm1881_vm10, %v1874_v27, 920167782  ;;  %vm1880_vm14 = vcmp.lt.s32.totalorder %v1859_v59, 3 }
 0x2ce   : > { %8294 = vcosq.f32 %v1622_v47  ;;  %v4930_v41 = vclz %v7707_v58  ;;  %v1890_v9 = vsel %vm1878_vm12, %v1868_v0, %v1871_v40  ;;  %v1882_v30 = vsel %vm1878_vm12, %v1862_v22, %v1865_v37 }
 0x2cf   : > { %8296 = vsinq.f32 %v1622_v47  ;;  %v1884_v31 = vsel %vm1880_vm14, %v1868_v0, %v1883_v56  ;;  %v1888_v21 = vsel %vm1880_vm14, %v1871_v40, %v1887_v60  ;;  %v1891_v53 = vsel %vm1881_vm10, %v1877_v28, 1326507024 }
 0x2d0   : > { %v7708_v39 = vadd.s32 4294967294, %v4930_v41  ;;  %v4948_v52 = vsub.s32 4, %v10245_v34  ;;  %v1889_v11 = vsel %vm1879_vm13, %v1886_v44, %v1888_v21  ;;  %v1892_v50 = vsel %vm1880_vm14, %v1874_v27, %v1891_v53 }
 0x2d1   : > { %v1893_v26 = vsel %vm1879_vm13, %v1890_v9, %v1892_v50  ;;  %v10275_v15 = vmul.u32.u64.low %v1894_v55, %v1889_v11  ;;  %v10276_v1 = vmul.u32.u64.high %v1894_v55, %v1889_v11, %v10275_v15  ;;  %v7718_v61 = vadd.s32 4294967169, %v5178_v20 }
 0x2d2   : > { %vm7709_vm15 = vcmp.lt.s32.totalorder %v7708_v39, 0  ;;  %v1885_v45 = vsel %vm1879_vm13, %v1882_v30, %v1884_v31  ;;  %v10280_v51 = vmul.u32.u64.low %v1894_v55, %v1893_v26  ;;  %v10281_v3 = vmul.u32.u64.high %v1894_v55, %v1893_v26, %v10280_v51 }
 0x2d3   : > { %v1628_v36 = vand.u32 3, %v1627_v24  ;;  %vm4864_vm0 = vcmp.lt.s32.totalorder %v10063_v33, 0  ;;  %v4933_v13 = vsel %vm7709_vm15, 0, %v7708_v39  ;;  %v5184_v19 = vadd.s32 1, %v7718_v61 }
 0x2d4   : > { %v4918_v4 = vadd.s32 %v10199_v62, %v10205_v57  ;;  %v4934_v63 = vsub.s32 32, %v4933_v13  ;;  %v4938_v48 = vsub.s32 4294967266, %v4933_v13  ;;  %v5174_v17 = vand.u32 2147483647, %v10215_v5 }
 0x2d5   : > { %v4949_v59 = vsel %vm4864_vm0, %v4948_v52, %v10245_v34  ;;  %v1901_v8 = vmul.u32 %v1894_v55, %v1885_v45  ;;  %v1904_v7 = vadd.s32 1, %v10276_v1  ;;  %vm5185_vm1 = vcmp.gt.s32.totalorder %v5184_v19, 0  ;;  %v482_v55 = vpop.f32.mrf.mxu0 }
 0x2d6   : > { %v4935_v38 = vshll.u32 %v10257_v2, %v4933_v13  ;;  %v4936_v37 = vshrl.u32 %v4918_v4, %v4934_v63  ;;  %v4939_v40 = vadd.s32 127, %v4938_v48  ;;  %vm1903_vm2 = vc.u32 %v10281_v3, %v10275_v15 }
 0x2d7   : > { %vm10296_vm3 = vcmp.le.f32.partialorder %v4862_v18, 0.7853982  ;;  %v1905_v57 = vsel %vm1903_vm2, %v1904_v7, %v10276_v1  ;;  %v5186_v34 = vsel %vm5185_vm1, %v5184_v19, 0  ;;  %vm1626_vm4 = vweird.f32 %v9913_v25 }
 0x2d8   : > { %v4937_v32 = vor.u32 %v4936_v37, %v4935_v38  ;;  %v4940_v49 = vshll.u32 %v4939_v40, 23  ;;  %v4951_v0 = vsel %vm10296_vm3, 0, %v4949_v59  ;;  %v1906_v2 = vadd.s32 %v1905_v57, %v1901_v8 }
 0x2d9   : > { %v5181_v27 = vand.u32 8388607, %v5174_v17  ;;  %v5188_v35 = vand.u32 31, %v5186_v34  ;;  %vm1629_vm5 = vcmp.lt.s32.totalorder %v1628_v36, 2  ;;  %vm1630_vm6 = vcmp.eq.s32.totalorder %v1628_v36, 0 }
 0x2da   : > { %v4941_v18 = vor.u32 4788187, %v4940_v49  ;;  %v1907_v29 = vadd.s32 536870912, %v1906_v2  ;;  %vm1633_vm7 = vcmp.eq.s32.totalorder %v1628_v36, 2  ;;  %v10306_v22 = vadd.s32 3, %v4951_v0 }
 0x2db   : > { %v8295_v24 = vpop.eup %8294  ;;  %v5189_v28 = vsub.s32 32, %v5188_v35  ;;  %v4944_v56 = vcvt.s32.f32 %v4937_v32  ;;  %v5182_v41 = vor.u32 8388608, %v5181_v27  ;;  %v10312_v30 = vadd.f32 %v9910_v54, %v482_v55 }
 0x2dc   : > { %v8297_v20 = vpop.eup %8296  ;;  %v1634_v43 = vxor.u32 2147483648, %v8295_v24  ;;  %v4942_v58 = vand.u32 2147483647, %v4941_v18  ;;  %v10308_v44 = vshrl.u32 %v1907_v29, 30  ;;  %v5191_v11 = vshll.u32 %v8550_v6, %v5188_v35 }
 0x2dd   : > { %v1631_v47 = vxor.u32 2147483648, %v8297_v20  ;;  %v5192_v9 = vshrl.u32 %v8551_v10, %v5189_v28  ;;  %v5195_v39 = vshrl.u32 %v8552_v12, %v5189_v28  ;;  %v5194_v50 = vshll.u32 %v8551_v10, %v5188_v35 }
 0x2de   : > { %v1635_v60 = vsel %vm1633_vm7, %v1634_v43, %v8297_v20  ;;  %v4945_v21 = vmul.f32 %v4944_v56, %v4942_v58  ;;  %v1909_v53 = vshll.u32 %v10308_v44, 30  ;;  %v5198_v26 = vshrl.u32 %v8553_v14, %v5189_v28 }
 0x2df   : > { %v1632_v31 = vsel %vm1630_vm6, %v8295_v24, %v1631_v47  ;;  %v5197_v45 = vshll.u32 %v8552_v12, %v5188_v35  ;;  %v5187_v51 = vshrl.u32 %v5186_v34, 5  ;;  %v5193_v13 = vor.u32 %v5192_v9, %v5191_v11  ;;  %v610_v11 = vpop.f32.mrf.mxu1 }
 0x2e0   : > { %v1636_v52 = vsel %vm1629_vm5, %v1632_v31, %v1635_v60  ;;  %v4946_v54 = vxor.u32 2147483648, %v4945_v21  ;;  %v10323_v61 = vsub.s32 %v1906_v2, %v1909_v53  ;;  %v5200_v36 = vshll.u32 %v8553_v14, %v5188_v35 }
 0x2e1   : > { %v1637_v1 = vsel %vm1626_vm4, nan, %v1636_v52  ;;  %v5201_v19 = vshrl.u32 %v8554_v16, %v5189_v28  ;;  %v5196_v48 = vor.u32 %v5195_v39, %v5194_v50  ;;  %v5199_v25 = vor.u32 %v5198_v26, %v5197_v45 }
 0x2e2   : > { %7366 = vst [vmem:[%s9048_s11 + $0x40] sm:$0xff] %v1637_v1  ;;  %v4947_v4 = vsel %vm4864_vm0, %v4946_v54, %v4945_v21  ;;  %v1912_v63 = vsub.s32 0, %v10323_v61  ;;  %v5203_v7 = vshll.u32 %v8554_v16, %v5188_v35  ;;  %v5204_v38 = vshrl.u32 %v8555_v23, %v5189_v28 }
 0x2e3   : > { %v4950_v59 = vsel %vm10296_vm3, %v10063_v33, %v4947_v4  ;;  %v5202_v8 = vor.u32 %v5201_v19, %v5200_v36  ;;  %v5222_v40 = vshll.u32 %v5182_v41, 8  ;;  %v1641_v57 = vand.u32 2139095040, %v10312_v30 }
 0x2e4   : > { %8298 = vcosq.f32 %v4950_v59  ;;  %v7591_v37 = vmin.u32 %v1912_v63, %v10323_v61  ;;  %v5190_v34 = vshrl.u32 %v8550_v6, %v5189_v28  ;;  %v5205_v32 = vor.u32 %v5204_v38, %v5203_v7 }
 0x2e5   : > { %8300 = vsinq.f32 %v4950_v59  ;;  %vm5206_vm8 = vcmp.lt.s32.totalorder %v5187_v51, 1  ;;  %vm5207_vm9 = vcmp.lt.s32.totalorder %v5187_v51, 2  ;;  %vm5208_vm11 = vcmp.lt.s32.totalorder %v5187_v51, 3 }
 0x2e6   : > { %v1914_v49 = vclz %v7591_v37  ;;  %vm5209_vm10 = vcmp.lt.s32.totalorder %v5187_v51, 4  ;;  %v5214_v0 = vsel %vm5206_vm8, %v5193_v13, %v5196_v48  ;;  %v5218_v27 = vsel %vm5206_vm8, %v5196_v48, %v5199_v25 }
 0x2e7   : > { %v5211_v62 = vsel %vm5209_vm10, %v5199_v25, 2102212464  ;;  %v5215_v2 = vsel %vm5209_vm10, %v5202_v8, 920167782  ;;  %v5210_v24 = vsel %vm5206_vm8, %v5190_v34, %v5193_v13  ;;  %v5219_v29 = vsel %vm5209_vm10, %v5205_v32, 1326507024 }
 0x2e8   : > { %v7592_v35 = vadd.s32 4294967294, %v1914_v49  ;;  %v5216_v18 = vsel %vm5208_vm11, %v5199_v25, %v5215_v2  ;;  %v5212_v55 = vsel %vm5208_vm11, %v5196_v48, %v5211_v62  ;;  %v5220_v43 = vsel %vm5208_vm11, %v5202_v8, %v5219_v29 }
 0x2e9   : > { %v5217_v20 = vsel %vm5207_vm9, %v5214_v0, %v5216_v18  ;;  %v1642_v47 = vshrl.u32 %v1641_v57, 23  ;;  %v5221_v28 = vsel %vm5207_vm9, %v5218_v27, %v5220_v43  ;;  %v1902_v60 = vadd.s32 %v10275_v15, %v10281_v3 }
 0x2ea   : > { %vm7593_vm12 = vcmp.lt.s32.totalorder %v7592_v35, 0  ;;  %v10342_v58 = vmul.u32.u64.low %v5222_v40, %v5217_v20  ;;  %v10343_v56 = vmul.u32.u64.high %v5222_v40, %v5217_v20, %v10342_v58  ;;  %v5213_v39 = vsel %vm5207_vm9, %v5210_v24, %v5212_v55 }
 0x2eb   : > { %v1917_v41 = vsel %vm7593_vm12, 0, %v7592_v35  ;;  %v10348_v9 = vmul.u32.u64.low %v5222_v40, %v5221_v28  ;;  %v10349_v31 = vmul.u32.u64.high %v5222_v40, %v5221_v28, %v10348_v9  ;;  %v7582_v52 = vadd.s32 4294967169, %v1642_v47 }
 0x2ec   : > { %v1918_v21 = vsub.s32 32, %v1917_v41  ;;  %v1922_v53 = vsub.s32 4294967266, %v1917_v41  ;;  %v4956_v50 = vand.u32 3, %v10306_v22  ;;  %v1919_v26 = vshll.u32 %v10323_v61, %v1917_v41  ;;  %v10364_v22 = vld [vmem:[%s13586_s2] ss:$0 sm:$0xff] }
 0x2ed   : > { %v1932_v1 = vsub.s32 4, %v10308_v44  ;;  %v1638_v54 = vand.u32 2147483647, %v10312_v30  ;;  %vm4954_vm13 = vweird.f32 %v10063_v33  ;;  %v5232_v45 = vadd.s32 1, %v10343_v56 }
 0x2ee   : > { %v1920_v15 = vshrl.u32 %v1902_v60, %v1918_v21  ;;  %v1923_v3 = vadd.s32 127, %v1922_v53  ;;  %v1648_v13 = vadd.s32 1, %v7582_v52  ;;  %vm1848_vm14 = vcmp.lt.s32.totalorder %v10143_v46, 0 }
 0x2ef   : > { %v5229_v51 = vmul.u32 %v5222_v40, %v5213_v39  ;;  %vm5231_vm15 = vc.u32 %v10349_v31, %v10342_v58  ;;  %v10367_v61 = vadd.f32 %v10364_v22, %v610_v11  ;;  %vm4961_vm1 = vcmp.eq.s32.totalorder %v4956_v50, 2 }
 0x2f0   : > { %v1921_v36 = vor.u32 %v1920_v15, %v1919_v26  ;;  %v1924_v19 = vshll.u32 %v1923_v3, 23  ;;  %v5233_v4 = vsel %vm5231_vm15, %v5232_v45, %v10343_v56  ;;  %vm1649_vm0 = vcmp.gt.s32.totalorder %v1648_v13, 0 }
 0x2f1   : > { %v8299_v63 = vpop.eup %8298  ;;  %vm10372_vm2 = vcmp.le.f32.partialorder %v1846_v42, 0.7853982  ;;  %v5234_v25 = vadd.s32 %v5233_v4, %v5229_v51  ;;  %v1650_v59 = vsel %vm1649_vm0, %v1648_v13, 0  ;;  %v10379_v37 = vsel %vm1848_vm14, %v1932_v1, %v10308_v44 }
 0x2f2   : > { %v8301_v8 = vpop.eup %8300  ;;  %v4962_v7 = vxor.u32 2147483648, %v8299_v63  ;;  %v1925_v38 = vor.u32 4788187, %v1924_v19  ;;  %v1645_v40 = vand.u32 8388607, %v1638_v54  ;;  %v1652_v32 = vand.u32 31, %v1650_v59 }
 0x2f3   : > { %v4959_v57 = vxor.u32 2147483648, %v8301_v8  ;;  %v5235_v34 = vadd.s32 536870912, %v5234_v25  ;;  %v4969_v42 = vand.u32 2139095040, %v10367_v61  ;;  %vm4958_vm3 = vcmp.eq.s32.totalorder %v4956_v50, 0 }
 0x2f4   : > { %v4963_v49 = vsel %vm4961_vm1, %v4962_v7, %v8301_v8  ;;  %v1926_v62 = vand.u32 2147483647, %v1925_v38  ;;  %v1928_v0 = vcvt.s32.f32 %v1921_v36  ;;  %vm4957_vm4 = vcmp.lt.s32.totalorder %v4956_v50, 2 }
 0x2f5   : > { %v4960_v2 = vsel %vm4958_vm3, %v8299_v63, %v4959_v57  ;;  %v10384_v27 = vshrl.u32 %v5235_v34, 30  ;;  %v1653_v35 = vsub.s32 32, %v1652_v32  ;;  %v1935_v18 = vsel %vm10372_vm2, 0, %v10379_v37 }
 0x2f6   : > { %v4964_v44 = vsel %vm4957_vm4, %v4960_v2, %v4963_v49  ;;  %v1929_v24 = vmul.f32 %v1928_v0, %v1926_v62  ;;  %v1646_v29 = vor.u32 8388608, %v1645_v40  ;;  %v1655_v43 = vshll.u32 %v8550_v6, %v1652_v32 }
 0x2f7   : > { %v4965_v55 = vsel %vm4954_vm13, nan, %v4964_v44  ;;  %v5237_v20 = vshll.u32 %v10384_v27, 30  ;;  %v4970_v47 = vshrl.u32 %v4969_v42, 23  ;;  %v1656_v56 = vshrl.u32 %v8551_v10, %v1653_v35 }
 0x2f8   : > { %7398 = vst [vmem:[%s9048_s11 + $0x140] sm:$0xff] %v4965_v55  ;;  %v1930_v28 = vxor.u32 2147483648, %v1929_v24  ;;  %v1659_v60 = vshrl.u32 %v8552_v12, %v1653_v35  ;;  %v1662_v41 = vshrl.u32 %v8553_v14, %v1653_v35  ;;  %v1658_v21 = vshll.u32 %v8551_v10, %v1652_v32 }
 0x2f9   : > { %v10397_v9 = vsub.s32 %v5234_v25, %v5237_v20  ;;  %v1661_v33 = vshll.u32 %v8552_v12, %v1652_v32  ;;  %v1665_v53 = vshrl.u32 %v8554_v16, %v1653_v35  ;;  %v1651_v52 = vshrl.u32 %v1650_v59, 5 }
 0x2fa   : > { %v1931_v39 = vsel %vm1848_vm14, %v1930_v28, %v1929_v24  ;;  %v1657_v11 = vor.u32 %v1656_v56, %v1655_v43  ;;  %v1664_v50 = vshll.u32 %v8553_v14, %v1652_v32  ;;  %v1660_v15 = vor.u32 %v1659_v60, %v1658_v21 }
 0x2fb   : > { %v1934_v26 = vsel %vm10372_vm2, %v10143_v46, %v1931_v39  ;;  %v5240_v1 = vsub.s32 0, %v10397_v9  ;;  %v1663_v3 = vor.u32 %v1662_v41, %v1661_v33  ;;  %vm5176_vm5 = vcmp.lt.s32.totalorder %v10215_v5, 0 }
 0x2fc   : > { %8302 = vcosq.f32 %v1934_v26  ;;  %v1666_v45 = vor.u32 %v1665_v53, %v1664_v50  ;;  %v1667_v13 = vshll.u32 %v8554_v16, %v1652_v32  ;;  %v1668_v51 = vshrl.u32 %v8555_v23, %v1653_v35 }
 0x2fd   : > { %8304 = vsinq.f32 %v1934_v26  ;;  %v7719_v36 = vmin.u32 %v5240_v1, %v10397_v9  ;;  %v1686_v19 = vshll.u32 %v1646_v29, 8  ;;  %v7710_v4 = vadd.s32 4294967169, %v4970_v47 }
 0x2fe   : > { %v1654_v63 = vshrl.u32 %v8550_v6, %v1653_v35  ;;  %v1669_v48 = vor.u32 %v1668_v51, %v1667_v13  ;;  %vm1670_vm6 = vcmp.lt.s32.totalorder %v1651_v52, 1  ;;  %vm1671_vm7 = vcmp.lt.s32.totalorder %v1651_v52, 2  ;;  %v7864_v51 = vpop.f32.mrf.mxu0 }
 0x2ff   : > { %v5242_v25 = vclz %v7719_v36  ;;  %vm1672_vm8 = vcmp.lt.s32.totalorder %v1651_v52, 3  ;;  %vm1673_vm9 = vcmp.lt.s32.totalorder %v1651_v52, 4  ;;  %v1678_v59 = vsel %vm1670_vm6, %v1657_v11, %v1660_v15 }
 0x300   : > { %v1675_v8 = vsel %vm1673_vm9, %v1663_v3, 2102212464  ;;  %v1679_v7 = vsel %vm1673_vm9, %v1666_v45, 920167782  ;;  %v1682_v38 = vsel %vm1670_vm6, %v1660_v15, %v1663_v3  ;;  %v1683_v37 = vsel %vm1673_vm9, %v1669_v48, 1326507024 }
 0x301   : > { %v7720_v40 = vadd.s32 4294967294, %v5242_v25  ;;  %v5260_v57 = vsub.s32 4, %v10384_v27  ;;  %v1680_v34 = vsel %vm1672_vm8, %v1663_v3, %v1679_v7  ;;  %v1684_v32 = vsel %vm1672_vm8, %v1666_v45, %v1683_v37 }
 0x302   : > { %v1939_v42 = vadd.s32 3, %v1935_v18  ;;  %v1674_v49 = vsel %vm1670_vm6, %v1654_v63, %v1657_v11  ;;  %v1681_v62 = vsel %vm1671_vm7, %v1678_v59, %v1680_v34  ;;  %v1685_v0 = vsel %vm1671_vm7, %v1682_v38, %v1684_v32 }
 0x303   : > { %vm7721_vm11 = vcmp.lt.s32.totalorder %v7720_v40, 0  ;;  %v1676_v2 = vsel %vm1672_vm8, %v1660_v15, %v1675_v8  ;;  %v10420_v35 = vmul.u32.u64.low %v1686_v19, %v1685_v0  ;;  %v10421_v44 = vmul.u32.u64.high %v1686_v19, %v1685_v0, %v10420_v35 }
 0x304   : > { %v5245_v24 = vsel %vm7721_vm11, 0, %v7720_v40  ;;  %v10423_v29 = vmul.u32.u64.low %v1686_v19, %v1681_v62  ;;  %v10424_v55 = vmul.u32.u64.high %v1686_v19, %v1681_v62, %v10423_v29  ;;  %v4976_v20 = vadd.s32 1, %v7710_v4 }
 0x305   : > { %v5230_v18 = vadd.s32 %v10342_v58, %v10349_v31  ;;  %v5246_v43 = vsub.s32 32, %v5245_v24  ;;  %v5250_v47 = vsub.s32 4294967266, %v5245_v24  ;;  %v5261_v28 = vsel %vm5176_vm5, %v5260_v57, %v10384_v27 }
 0x306   : > { %vm1938_vm10 = vweird.f32 %v10143_v46  ;;  %v1940_v56 = vand.u32 3, %v1939_v42  ;;  %vm10435_vm12 = vcmp.le.f32.partialorder %v5174_v17, 0.7853982  ;;  %v1677_v41 = vsel %vm1671_vm7, %v1674_v49, %v1676_v2 }
 0x307   : > { %vm4977_vm13 = vcmp.gt.s32.totalorder %v4976_v20, 0  ;;  %v5247_v58 = vshll.u32 %v10397_v9, %v5245_v24  ;;  %v5248_v31 = vshrl.u32 %v5230_v18, %v5246_v43  ;;  %v5251_v21 = vadd.s32 127, %v5250_v47 }
 0x308   : > { %vm1695_vm14 = vc.u32 %v10421_v44, %v10423_v29  ;;  %v5263_v27 = vsel %vm10435_vm12, 0, %v5261_v28  ;;  %v1696_v33 = vadd.s32 1, %v10424_v55  ;;  %v4966_v17 = vand.u32 2147483647, %v10367_v61 }
 0x309   : > { %v4978_v53 = vsel %vm4977_vm13, %v4976_v20, 0  ;;  %v8303_v39 = vpop.eup %8302  ;;  %v5249_v11 = vor.u32 %v5248_v31, %v5247_v58  ;;  %v5252_v52 = vshll.u32 %v5251_v21, 23  ;;  %v1693_v50 = vmul.u32 %v1686_v19, %v1677_v41 }
 0x30a   : > { %v4980_v26 = vand.u32 31, %v4978_v53  ;;  %v8305_v1 = vpop.eup %8304  ;;  %vm1941_vm15 = vcmp.lt.s32.totalorder %v1940_v56, 2  ;;  %vm1942_vm0 = vcmp.eq.s32.totalorder %v1940_v56, 0  ;;  %v1946_v9 = vxor.u32 2147483648, %v8303_v39 }
 0x30b   : > { %v1697_v15 = vsel %vm1695_vm14, %v1696_v33, %v10424_v55  ;;  %v1943_v3 = vxor.u32 2147483648, %v8305_v1  ;;  %vm1945_vm1 = vcmp.eq.s32.totalorder %v1940_v56, 2  ;;  %v5253_v45 = vor.u32 4788187, %v5252_v52 }
 0x30c   : > { %v1698_v13 = vadd.s32 %v1697_v15, %v1693_v50  ;;  %v1947_v36 = vsel %vm1945_vm1, %v1946_v9, %v8305_v1  ;;  %v5267_v4 = vadd.s32 3, %v5263_v27  ;;  %v4973_v63 = vand.u32 8388607, %v4966_v17 }
 0x30d   : > { %v4981_v48 = vsub.s32 32, %v4980_v26  ;;  %v1944_v19 = vsel %vm1942_vm0, %v8303_v39, %v1943_v3  ;;  %v5254_v25 = vand.u32 2147483647, %v5253_v45  ;;  %v5256_v59 = vcvt.s32.f32 %v5249_v11 }
 0x30e   : > { %v1699_v8 = vadd.s32 536870912, %v1698_v13  ;;  %v1948_v7 = vsel %vm1941_vm15, %v1944_v19, %v1947_v36  ;;  %v10454_v40 = vadd.f32 %v10364_v22, %v7864_v51  ;;  %v4979_v49 = vshrl.u32 %v4978_v53, 5  ;;  %v7896_v19 = vpop.f32.mrf.mxu1 }
 0x30f   : > { %v4984_v38 = vshrl.u32 %v8551_v10, %v4981_v48  ;;  %v4987_v37 = vshrl.u32 %v8552_v12, %v4981_v48  ;;  %v1949_v57 = vsel %vm1938_vm10, nan, %v1948_v7  ;;  %v5257_v34 = vmul.f32 %v5256_v59, %v5254_v25 }
 0x310   : > { %v10458_v32 = vshrl.u32 %v1699_v8, 30  ;;  %v4990_v42 = vshrl.u32 %v8553_v14, %v4981_v48  ;;  %7369 = vst [vmem:[%s9048_s11 + $0x58] sm:$0xff] %v1949_v57  ;;  %v4983_v62 = vshll.u32 %v8550_v6, %v4980_v26  ;;  %v4986_v0 = vshll.u32 %v8551_v10, %v4980_v26 }
 0x311   : > { %v4993_v2 = vshrl.u32 %v8554_v16, %v4981_v48  ;;  %v5258_v35 = vxor.u32 2147483648, %v5257_v34  ;;  %v4989_v55 = vshll.u32 %v8552_v12, %v4980_v26  ;;  %v4992_v46 = vshll.u32 %v8553_v14, %v4980_v26 }
 0x312   : > { %v1701_v24 = vshll.u32 %v10458_v32, 30  ;;  %v4985_v20 = vor.u32 %v4984_v38, %v4983_v62  ;;  %v4988_v18 = vor.u32 %v4987_v37, %v4986_v0  ;;  %v4995_v43 = vshll.u32 %v8554_v16, %v4980_v26 }
 0x313   : > { %v4996_v47 = vshrl.u32 %v8555_v23, %v4981_v48  ;;  %v5259_v28 = vsel %vm5176_vm5, %v5258_v35, %v5257_v34  ;;  %v4991_v41 = vor.u32 %v4990_v42, %v4989_v55  ;;  %v4994_v58 = vor.u32 %v4993_v2, %v4992_v46 }
 0x314   : > { %v10472_v56 = vsub.s32 %v1698_v13, %v1701_v24  ;;  %v5262_v31 = vsel %vm10435_vm12, %v10215_v5, %v5259_v28  ;;  %v10477_v21 = vand.u32 3, %v5267_v4  ;;  %v4974_v27 = vor.u32 8388608, %v4973_v63 }
 0x315   : > { %v4997_v33 = vor.u32 %v4996_v47, %v4995_v43  ;;  %8306 = vcosq.f32 %v5262_v31  ;;  %v4982_v39 = vshrl.u32 %v8550_v6, %v4981_v48  ;;  %v2161_v11 = vand.u32 2139095040, %v10454_v40 }
 0x316   : > { %v1704_v53 = vsub.s32 0, %v10472_v56  ;;  %8308 = vsinq.f32 %v5262_v31  ;;  %vm4998_vm2 = vcmp.lt.s32.totalorder %v4979_v49, 1  ;;  %vm5000_vm3 = vcmp.lt.s32.totalorder %v4979_v49, 3 }
 0x317   : > { %vm5001_vm4 = vcmp.lt.s32.totalorder %v4979_v49, 4  ;;  %v5006_v60 = vsel %vm4998_vm2, %v4985_v20, %v4988_v18  ;;  %v5010_v9 = vsel %vm4998_vm2, %v4988_v18, %v4991_v41  ;;  %v5014_v3 = vshll.u32 %v4974_v27, 8 }
 0x318   : > { %v7583_v52 = vmin.u32 %v1704_v53, %v10472_v56  ;;  %v5003_v50 = vsel %vm5001_vm4, %v4991_v41, 2102212464  ;;  %v5007_v26 = vsel %vm5001_vm4, %v4994_v58, 920167782  ;;  %v5011_v15 = vsel %vm5001_vm4, %v4997_v33, 1326507024 }
 0x319   : > { %v5008_v1 = vsel %vm5000_vm3, %v4991_v41, %v5007_v26  ;;  %v1724_v13 = vsub.s32 4, %v10458_v32  ;;  %vm4999_vm5 = vcmp.lt.s32.totalorder %v4979_v49, 2  ;;  %v5002_v51 = vsel %vm4998_vm2, %v4982_v39, %v4985_v20 }
 0x31a   : > { %v1706_v45 = vclz %v7583_v52  ;;  %v5004_v36 = vsel %vm5000_vm3, %v4988_v18, %v5003_v50  ;;  %v5009_v4 = vsel %vm4999_vm5, %v5006_v60, %v5008_v1  ;;  %v5012_v63 = vsel %vm5000_vm3, %v4994_v58, %v5011_v15 }
 0x31b   : > { %v2162_v48 = vshrl.u32 %v2161_v11, 23  ;;  %v5013_v59 = vsel %vm4999_vm5, %v5010_v9, %v5012_v63  ;;  %v10487_v8 = vmul.u32.u64.low %v5014_v3, %v5009_v4  ;;  %v10488_v7 = vmul.u32.u64.high %v5014_v3, %v5009_v4, %v10487_v8 }
 0x31c   : > { %v7584_v25 = vadd.s32 4294967294, %v1706_v45  ;;  %vm1640_vm6 = vcmp.lt.s32.totalorder %v10312_v30, 0  ;;  %v10491_v38 = vmul.u32.u64.low %v5014_v3, %v5013_v59  ;;  %v10492_v37 = vmul.u32.u64.high %v5014_v3, %v5013_v59, %v10491_v38 }
 0x31d   : > { %v7602_v57 = vadd.s32 4294967169, %v2162_v48  ;;  %vm10496_vm7 = vcmp.le.f32.partialorder %v1638_v54, 0.7853982  ;;  %v5005_v42 = vsel %vm4999_vm5, %v5002_v51, %v5004_v36  ;;  %v10501_v49 = vadd.f32 %v10364_v22, %v7896_v19 }
 0x31e   : > { %vm7585_vm8 = vcmp.lt.s32.totalorder %v7584_v25, 0  ;;  %vm5269_vm9 = vcmp.lt.s32.totalorder %v10477_v21, 2  ;;  %v1694_v62 = vadd.s32 %v10423_v29, %v10421_v44  ;;  %v2158_v2 = vand.u32 2147483647, %v10454_v40 }
 0x31f   : > { %v1709_v0 = vsel %vm7585_vm8, 0, %v7584_v25  ;;  %v2168_v35 = vadd.s32 1, %v7602_v57  ;;  %vm5266_vm11 = vweird.f32 %v10215_v5  ;;  %v1725_v55 = vsel %vm1640_vm6, %v1724_v13, %v10458_v32 }
 0x320   : > { %v1710_v54 = vsub.s32 32, %v1709_v0  ;;  %v1714_v24 = vsub.s32 4294967266, %v1709_v0  ;;  %v5024_v46 = vadd.s32 1, %v10488_v7  ;;  %v1711_v20 = vshll.u32 %v10472_v56, %v1709_v0 }
 0x321   : > { %v5021_v18 = vmul.u32 %v5014_v3, %v5005_v42  ;;  %vm5023_vm10 = vc.u32 %v10492_v37, %v10487_v8  ;;  %vm2169_vm12 = vcmp.gt.s32.totalorder %v2168_v35, 0  ;;  %v1727_v41 = vsel %vm10496_vm7, 0, %v1725_v55 }
 0x322   : > { %v1712_v44 = vshrl.u32 %v1694_v62, %v1710_v54  ;;  %v1715_v29 = vadd.s32 127, %v1714_v24  ;;  %v5025_v43 = vsel %vm5023_vm10, %v5024_v46, %v10488_v7  ;;  %v2170_v47 = vsel %vm2169_vm12, %v2168_v35, 0  ;;  %v8307_v28 = vpop.eup %8306 }
 0x323   : > { %v5026_v58 = vadd.s32 %v5025_v43, %v5021_v18  ;;  %v2165_v32 = vand.u32 8388607, %v2158_v2  ;;  %v2172_v31 = vand.u32 31, %v2170_v47  ;;  %v8309_v27 = vpop.eup %8308  ;;  %vm5270_vm13 = vcmp.eq.s32.totalorder %v10477_v21, 0 }
 0x324   : > { %v5274_v56 = vxor.u32 2147483648, %v8307_v28  ;;  %v1713_v33 = vor.u32 %v1712_v44, %v1711_v20  ;;  %v1716_v53 = vshll.u32 %v1715_v29, 23  ;;  %v5271_v39 = vxor.u32 2147483648, %v8309_v27 }
 0x325   : > { %vm5273_vm14 = vcmp.eq.s32.totalorder %v10477_v21, 2  ;;  %v5027_v11 = vadd.s32 536870912, %v5026_v58  ;;  %v2173_v52 = vsub.s32 32, %v2172_v31  ;;  %v10521_v26 = vadd.s32 3, %v1727_v41 }
 0x326   : > { %v5275_v50 = vsel %vm5273_vm14, %v5274_v56, %v8309_v27  ;;  %v1717_v60 = vor.u32 4788187, %v1716_v53  ;;  %v5486_v1 = vand.u32 2147483647, %v10501_v49  ;;  %v5272_v9 = vsel %vm5270_vm13, %v8307_v28, %v5271_v39 }
 0x327   : > { %v5028_v15 = vshrl.u32 %v5027_v11, 30  ;;  %v2166_v3 = vor.u32 8388608, %v2165_v32  ;;  %v5489_v45 = vand.u32 2139095040, %v10501_v49  ;;  %v5276_v13 = vsel %vm5269_vm9, %v5272_v9, %v5275_v50 }
 0x328   : > { %v1718_v51 = vand.u32 2147483647, %v1717_v60  ;;  %v1720_v36 = vcvt.s32.f32 %v1713_v33  ;;  %v2176_v4 = vshrl.u32 %v8551_v10, %v2173_v52  ;;  %v5277_v63 = vsel %vm5266_vm11, nan, %v5276_v13 }
 0x329   : > { %v10531_v48 = vadd.s32 %v10487_v8, %v10492_v37  ;;  %v5029_v19 = vshll.u32 %v5028_v15, 30  ;;  %v2179_v25 = vshrl.u32 %v8552_v12, %v2173_v52  ;;  %7401 = vst [vmem:[%s9048_s11 + $0x158] sm:$0xff] %v5277_v63  ;;  %v2171_v7 = vshrl.u32 %v2170_v47, 5 }
 0x32a   : > { %v1721_v59 = vmul.f32 %v1720_v36, %v1718_v51  ;;  %v2175_v38 = vshll.u32 %v8550_v6, %v2172_v31  ;;  %v2182_v21 = vshrl.u32 %v8553_v14, %v2173_v52  ;;  %v2178_v42 = vshll.u32 %v8551_v10, %v2172_v31 }
 0x32b   : > { %v10537_v57 = vsub.s32 %v5026_v58, %v5029_v19  ;;  %v2181_v5 = vshll.u32 %v8552_v12, %v2172_v31  ;;  %v2185_v62 = vshrl.u32 %v8554_v16, %v2173_v52  ;;  %v2184_v0 = vshll.u32 %v8553_v14, %v2172_v31 }
 0x32c   : > { %v1722_v8 = vxor.u32 2147483648, %v1721_v59  ;;  %v2177_v37 = vor.u32 %v2176_v4, %v2175_v38  ;;  %v2188_v35 = vshrl.u32 %v8555_v23, %v2173_v52  ;;  %vm4968_vm15 = vcmp.lt.s32.totalorder %v10367_v61, 0 }
 0x32d   : > { %v5032_v54 = vsub.s32 0, %v10537_v57  ;;  %v2180_v24 = vor.u32 %v2179_v25, %v2178_v42  ;;  %v2183_v55 = vor.u32 %v2182_v21, %v2181_v5  ;;  %v2187_v46 = vshll.u32 %v8554_v16, %v2172_v31 }
 0x32e   : > { %v1723_v20 = vsel %vm1640_vm6, %v1722_v8, %v1721_v59  ;;  %v2186_v18 = vor.u32 %v2185_v62, %v2184_v0  ;;  %v2206_v44 = vshll.u32 %v2166_v3, 8  ;;  %v5490_v29 = vshrl.u32 %v5489_v45, 23 }
 0x32f   : > { %v1726_v43 = vsel %vm10496_vm7, %v10312_v30, %v1723_v20  ;;  %v7711_v47 = vmin.u32 %v5032_v54, %v10537_v57  ;;  %v2174_v28 = vshrl.u32 %v8550_v6, %v2173_v52  ;;  %v2189_v41 = vor.u32 %v2188_v35, %v2187_v46 }
 0x330   : > { %8310 = vcosq.f32 %v1726_v43  ;;  %v5052_v58 = vsub.s32 4, %v5028_v15  ;;  %vm2190_vm0 = vcmp.lt.s32.totalorder %v2171_v7, 1  ;;  %vm2193_vm1 = vcmp.lt.s32.totalorder %v2171_v7, 4 }
 0x331   : > { %8312 = vsinq.f32 %v1726_v43  ;;  %v5034_v32 = vclz %v7711_v47  ;;  %v2195_v31 = vsel %vm2193_vm1, %v2183_v55, 2102212464  ;;  %v2198_v27 = vsel %vm2190_vm0, %v2177_v37, %v2180_v24 }
 0x332   : > { %vm2191_vm2 = vcmp.lt.s32.totalorder %v2171_v7, 2  ;;  %vm2192_vm3 = vcmp.lt.s32.totalorder %v2171_v7, 3  ;;  %v2199_v56 = vsel %vm2193_vm1, %v2186_v18, 920167782  ;;  %v2202_v33 = vsel %vm2190_vm0, %v2180_v24, %v2183_v55 }
 0x333   : > { %v7712_v53 = vadd.s32 4294967294, %v5034_v32  ;;  %v2194_v34 = vsel %vm2190_vm0, %v2174_v28, %v2177_v37  ;;  %v2200_v39 = vsel %vm2192_vm3, %v2183_v55, %v2199_v56  ;;  %v2203_v11 = vsel %vm2193_vm1, %v2189_v41, 1326507024 }
 0x334   : > { %v2196_v50 = vsel %vm2192_vm3, %v2180_v24, %v2195_v31  ;;  %v2201_v52 = vsel %vm2191_vm2, %v2198_v27, %v2200_v39  ;;  %v2204_v60 = vsel %vm2192_vm3, %v2186_v18, %v2203_v11  ;;  %v7730_v9 = vadd.s32 4294967169, %v5490_v29 }
 0x335   : > { %vm7713_vm4 = vcmp.lt.s32.totalorder %v7712_v53, 0  ;;  %v2205_v3 = vsel %vm2191_vm2, %v2202_v33, %v2204_v60  ;;  %v10556_v45 = vmul.u32.u64.low %v2206_v44, %v2201_v52  ;;  %v10557_v13 = vmul.u32.u64.high %v2206_v44, %v2201_v52, %v10556_v45 }
 0x336   : > { %v5037_v51 = vsel %vm7713_vm4, 0, %v7712_v53  ;;  %v5053_v36 = vsel %vm4968_vm15, %v5052_v58, %v5028_v15  ;;  %v10562_v4 = vmul.u32.u64.low %v2206_v44, %v2205_v3  ;;  %v10563_v63 = vmul.u32.u64.high %v2206_v44, %v2205_v3, %v10562_v4 }
 0x337   : > { %v5038_v19 = vsub.s32 32, %v5037_v51  ;;  %v5042_v25 = vsub.s32 4294967266, %v5037_v51  ;;  %v2197_v59 = vsel %vm2191_vm2, %v2194_v34, %v2196_v50  ;;  %v5496_v38 = vadd.s32 1, %v7730_v9 }
 0x338   : > { %v1732_v21 = vand.u32 3, %v10521_v26  ;;  %vm10569_vm5 = vcmp.le.f32.partialorder %v4966_v17, 0.7853982  ;;  %v5039_v5 = vshll.u32 %v10537_v57, %v5037_v51  ;;  %v2216_v8 = vadd.s32 1, %v10557_v13  ;;  %v495_v51 = vpop.f32.mrf.mxu0 }
 0x339   : > { %v5040_v15 = vshrl.u32 %v10531_v48, %v5038_v19  ;;  %v5043_v62 = vadd.s32 127, %v5042_v25  ;;  %vm5497_vm6 = vcmp.gt.s32.totalorder %v5496_v38, 0  ;;  %v5055_v7 = vsel %vm10569_vm5, 0, %v5053_v36 }
 0x33a   : > { %v2213_v37 = vmul.u32 %v2206_v44, %v2197_v59  ;;  %vm2215_vm7 = vc.u32 %v10563_v63, %v10556_v45  ;;  %v5498_v26 = vsel %vm5497_vm6, %v5496_v38, 0  ;;  %v5493_v57 = vand.u32 8388607, %v5486_v1 }
 0x33b   : > { %v5041_v17 = vor.u32 %v5040_v15, %v5039_v5  ;;  %v5044_v0 = vshll.u32 %v5043_v62, 23  ;;  %v2217_v35 = vsel %vm2215_vm7, %v2216_v8, %v10557_v13  ;;  %vm1730_vm8 = vweird.f32 %v10312_v30 }
 0x33c   : > { %v2218_v48 = vadd.s32 %v2217_v35, %v2213_v37  ;;  %v5500_v54 = vand.u32 31, %v5498_v26  ;;  %vm1733_vm9 = vcmp.lt.s32.totalorder %v1732_v21, 2  ;;  %vm1734_vm11 = vcmp.eq.s32.totalorder %v1732_v21, 0 }
 0x33d   : > { %v8311_v24 = vpop.eup %8310  ;;  %vm1737_vm10 = vcmp.eq.s32.totalorder %v1732_v21, 2  ;;  %v5045_v55 = vor.u32 4788187, %v5044_v0  ;;  %v10584_v18 = vadd.s32 3, %v5055_v7  ;;  %v5048_v28 = vcvt.s32.f32 %v5041_v17 }
 0x33e   : > { %v8313_v46 = vpop.eup %8312  ;;  %v1738_v20 = vxor.u32 2147483648, %v8311_v24  ;;  %v2219_v44 = vadd.s32 536870912, %v2218_v48  ;;  %v5501_v29 = vsub.s32 32, %v5500_v54  ;;  %v5494_v41 = vor.u32 8388608, %v5493_v57 }
 0x33f   : > { %v1735_v43 = vxor.u32 2147483648, %v8313_v46  ;;  %v5046_v47 = vand.u32 2147483647, %v5045_v55  ;;  %v5503_v31 = vshll.u32 %v8550_v6, %v5500_v54  ;;  %v5499_v50 = vshrl.u32 %v5498_v26, 5 }
 0x340   : > { %v1739_v58 = vsel %vm1737_vm10, %v1738_v20, %v8313_v46  ;;  %v2220_v32 = vshrl.u32 %v2219_v44, 30  ;;  %v5504_v27 = vshrl.u32 %v8551_v10, %v5501_v29  ;;  %v5507_v53 = vshrl.u32 %v8552_v12, %v5501_v29 }
 0x341   : > { %v1736_v56 = vsel %vm1734_vm11, %v8311_v24, %v1735_v43  ;;  %v5049_v33 = vmul.f32 %v5048_v28, %v5046_v47  ;;  %v5510_v34 = vshrl.u32 %v8553_v14, %v5501_v29  ;;  %v5506_v52 = vshll.u32 %v8551_v10, %v5500_v54  ;;  %v623_v28 = vpop.f32.mrf.mxu1 }
 0x342   : > { %v1740_v39 = vsel %vm1733_vm9, %v1736_v56, %v1739_v58  ;;  %v2221_v11 = vshll.u32 %v2220_v32, 30  ;;  %vm2160_vm12 = vcmp.lt.s32.totalorder %v10454_v40, 0  ;;  %v5505_v3 = vor.u32 %v5504_v27, %v5503_v31 }
 0x343   : > { %v1741_v60 = vsel %vm1730_vm8, nan, %v1740_v39  ;;  %v5050_v9 = vxor.u32 2147483648, %v5049_v33  ;;  %v5509_v13 = vshll.u32 %v8552_v12, %v5500_v54  ;;  %v5508_v4 = vor.u32 %v5507_v53, %v5506_v52 }
 0x344   : > { %7367 = vst [vmem:[%s9048_s11 + $0x48] sm:$0xff] %v1741_v60  ;;  %v10598_v36 = vsub.s32 %v2218_v48, %v2221_v11  ;;  %v5512_v19 = vshll.u32 %v8553_v14, %v5500_v54  ;;  %v5513_v25 = vshrl.u32 %v8554_v16, %v5501_v29  ;;  %v5515_v38 = vshll.u32 %v8554_v16, %v5500_v54 }
 0x345   : > { %v5051_v59 = vsel %vm4968_vm15, %v5050_v9, %v5049_v33  ;;  %v5511_v30 = vor.u32 %v5510_v34, %v5509_v13  ;;  %v5516_v21 = vshrl.u32 %v8555_v23, %v5501_v29  ;;  %v10611_v8 = vadd.f32 %v10364_v22, %v495_v51 }
 0x346   : > { %v5054_v5 = vsel %vm10569_vm5, %v10367_v61, %v5051_v59  ;;  %v2224_v15 = vsub.s32 0, %v10598_v36  ;;  %v5514_v62 = vor.u32 %v5513_v25, %v5512_v19  ;;  %v5502_v7 = vshrl.u32 %v8550_v6, %v5501_v29 }
 0x347   : > { %8314 = vcosq.f32 %v5054_v5  ;;  %v5517_v37 = vor.u32 %v5516_v21, %v5515_v38  ;;  %vm5518_vm13 = vcmp.lt.s32.totalorder %v5499_v50, 1  ;;  %v2244_v17 = vsub.s32 4, %v2220_v32 }
 0x348   : > { %8316 = vsinq.f32 %v5054_v5  ;;  %v7603_v26 = vmin.u32 %v2224_v15, %v10598_v36  ;;  %vm5521_vm14 = vcmp.lt.s32.totalorder %v5499_v50, 4  ;;  %v5526_v35 = vsel %vm5518_vm13, %v5505_v3, %v5508_v4 }
 0x349   : > { %v5523_v0 = vsel %vm5521_vm14, %v5511_v30, 2102212464  ;;  %v5527_v42 = vsel %vm5521_vm14, %v5514_v62, 920167782  ;;  %v5534_v57 = vshll.u32 %v5494_v41, 8  ;;  %vm5520_vm15 = vcmp.lt.s32.totalorder %v5499_v50, 3 }
 0x34a   : > { %v2226_v48 = vclz %v7603_v26  ;;  %v5522_v54 = vsel %vm5518_vm13, %v5502_v7, %v5505_v3  ;;  %v5530_v24 = vsel %vm5518_vm13, %v5508_v4, %v5511_v30  ;;  %vm5519_vm0 = vcmp.lt.s32.totalorder %v5499_v50, 2 }
 0x34b   : > { %v5524_v55 = vsel %vm5520_vm15, %v5508_v4, %v5523_v0  ;;  %v5528_v46 = vsel %vm5520_vm15, %v5511_v30, %v5527_v42  ;;  %v5531_v20 = vsel %vm5521_vm14, %v5517_v37, 1326507024  ;;  %v2245_v29 = vsel %vm2160_vm12, %v2244_v17, %v2220_v32 }
 0x34c   : > { %v7604_v44 = vadd.s32 4294967294, %v2226_v48  ;;  %v5529_v43 = vsel %vm5519_vm0, %v5526_v35, %v5528_v46  ;;  %v5532_v47 = vsel %vm5520_vm15, %v5514_v62, %v5531_v20  ;;  %v5525_v58 = vsel %vm5519_vm0, %v5522_v54, %v5524_v55 }
 0x34d   : > { %v5533_v31 = vsel %vm5519_vm0, %v5530_v24, %v5532_v47  ;;  %v10617_v27 = vmul.u32.u64.low %v5534_v57, %v5529_v43  ;;  %v10618_v56 = vmul.u32.u64.high %v5534_v57, %v5529_v43, %v10617_v27  ;;  %v1953_v53 = vand.u32 2139095040, %v10611_v8 }
 0x34e   : > { %vm7605_vm1 = vcmp.lt.s32.totalorder %v7604_v44, 0  ;;  %v10621_v41 = vmul.u32.u64.low %v5534_v57, %v5533_v31  ;;  %v10622_v33 = vmul.u32.u64.high %v5534_v57, %v5533_v31, %v10621_v41  ;;  %v5060_v34 = vand.u32 3, %v10584_v18 }
 0x34f   : > { %vm10628_vm2 = vcmp.le.f32.partialorder %v2158_v2, 0.7853982  ;;  %v2229_v39 = vsel %vm7605_vm1, 0, %v7604_v44  ;;  %v10633_v11 = vadd.f32 %v10364_v22, %v623_v28  ;;  %v2214_v50 = vadd.s32 %v10556_v45, %v10563_v63 }
 0x350   : > { %v2230_v52 = vsub.s32 32, %v2229_v39  ;;  %v2234_v60 = vsub.s32 4294967266, %v2229_v39  ;;  %v1954_v9 = vshrl.u32 %v1953_v53, 23  ;;  %v2247_v3 = vsel %vm10628_vm2, 0, %v2245_v29 }
 0x351   : > { %v5541_v18 = vmul.u32 %v5534_v57, %v5525_v58  ;;  %v5544_v13 = vadd.s32 1, %v10618_v56  ;;  %v1950_v2 = vand.u32 2147483647, %v10611_v8  ;;  %v2231_v51 = vshll.u32 %v10598_v36, %v2229_v39 }
 0x352   : > { %v2232_v4 = vshrl.u32 %v2214_v50, %v2230_v52  ;;  %v2235_v19 = vadd.s32 127, %v2234_v60  ;;  %vm5543_vm3 = vc.u32 %v10622_v33, %v10617_v27  ;;  %vm5061_vm4 = vcmp.lt.s32.totalorder %v5060_v34, 2 }
 0x353   : > { %v5545_v22 = vsel %vm5543_vm3, %v5544_v13, %v10618_v56  ;;  %v7594_v45 = vadd.s32 4294967169, %v1954_v9  ;;  %v5281_v63 = vand.u32 2139095040, %v10633_v11  ;;  %vm5062_vm5 = vcmp.eq.s32.totalorder %v5060_v34, 0 }
 0x354   : > { %v8315_v25 = vpop.eup %8314  ;;  %v2233_v59 = vor.u32 %v2232_v4, %v2231_v51  ;;  %v2236_v30 = vshll.u32 %v2235_v19, 23  ;;  %v5546_v38 = vadd.s32 %v5545_v22, %v5541_v18  ;;  %vm5065_vm6 = vcmp.eq.s32.totalorder %v5060_v34, 2 }
 0x355   : > { %v8317_v21 = vpop.eup %8316  ;;  %v5066_v5 = vxor.u32 2147483648, %v8315_v25  ;;  %v2251_v36 = vadd.s32 3, %v2247_v3  ;;  %v1960_v15 = vadd.s32 1, %v7594_v45  ;;  %v1957_v26 = vand.u32 8388607, %v1950_v2 }
 0x356   : > { %v5063_v62 = vxor.u32 2147483648, %v8317_v21  ;;  %v2237_v7 = vor.u32 4788187, %v2236_v30  ;;  %v5547_v37 = vadd.s32 536870912, %v5546_v38  ;;  %v2240_v0 = vcvt.s32.f32 %v2233_v59 }
 0x357   : > { %v5067_v17 = vsel %vm5065_vm6, %v5066_v5, %v8317_v21  ;;  %vm1961_vm7 = vcmp.gt.s32.totalorder %v1960_v15, 0  ;;  %v5282_v35 = vshrl.u32 %v5281_v63, 23  ;;  %vm5058_vm8 = vweird.f32 %v10367_v61 }
 0x358   : > { %v5064_v42 = vsel %vm5062_vm5, %v8315_v25, %v5063_v62  ;;  %v2238_v57 = vand.u32 2147483647, %v2237_v7  ;;  %v5548_v48 = vshrl.u32 %v5547_v37, 30  ;;  %v1962_v54 = vsel %vm1961_vm7, %v1960_v15, 0 }
 0x359   : > { %v5068_v24 = vsel %vm5061_vm4, %v5064_v42, %v5067_v17  ;;  %v1964_v55 = vand.u32 31, %v1962_v54  ;;  %v10651_v44 = vand.u32 3, %v2251_v36  ;;  %vm5488_vm9 = vcmp.lt.s32.totalorder %v10501_v49, 0 }
 0x35a   : > { %v5069_v46 = vsel %vm5058_vm8, nan, %v5068_v24  ;;  %v2241_v20 = vmul.f32 %v2240_v0, %v2238_v57  ;;  %v5549_v29 = vshll.u32 %v5548_v48, 30  ;;  %v1958_v43 = vor.u32 8388608, %v1957_v26 }
 0x35b   : > { %7399 = vst [vmem:[%s9048_s11 + $0x148] sm:$0xff] %v5069_v46  ;;  %v1965_v47 = vsub.s32 32, %v1964_v55  ;;  %v5278_v28 = vand.u32 2147483647, %v10633_v11  ;;  %v7722_v58 = vadd.s32 4294967169, %v5282_v35  ;;  %v5572_v61 = vsub.s32 4, %v5548_v48 }
 0x35c   : > { %v2242_v31 = vxor.u32 2147483648, %v2241_v20  ;;  %v10656_v56 = vsub.s32 %v5546_v38, %v5549_v29  ;;  %v1963_v41 = vshrl.u32 %v1962_v54, 5  ;;  %v1967_v53 = vshll.u32 %v8550_v6, %v1964_v55 }
 0x35d   : > { %v1968_v34 = vshrl.u32 %v8551_v10, %v1965_v47  ;;  %v1970_v39 = vshll.u32 %v8551_v10, %v1964_v55  ;;  %v1971_v50 = vshrl.u32 %v8552_v12, %v1965_v47  ;;  %vm10666_vm11 = vcmp.le.f32.partialorder %v5486_v1, 0.7853982 }
 0x35e   : > { %v2243_v52 = vsel %vm2160_vm12, %v2242_v31, %v2241_v20  ;;  %v5552_v9 = vsub.s32 0, %v10656_v56  ;;  %v1973_v3 = vshll.u32 %v8552_v12, %v1964_v55  ;;  %v1974_v18 = vshrl.u32 %v8553_v14, %v1965_v47 }
 0x35f   : > { %v2246_v13 = vsel %vm10628_vm2, %v10454_v40, %v2243_v52  ;;  %v1969_v51 = vor.u32 %v1968_v34, %v1967_v53  ;;  %v1976_v4 = vshll.u32 %v8553_v14, %v1964_v55  ;;  %v1977_v19 = vshrl.u32 %v8554_v16, %v1965_v47 }
 0x360   : > { %8318 = vcosq.f32 %v2246_v13  ;;  %v7731_v1 = vmin.u32 %v5552_v9, %v10656_v56  ;;  %v1972_v22 = vor.u32 %v1971_v50, %v1970_v39  ;;  %v1975_v45 = vor.u32 %v1974_v18, %v1973_v3 }
 0x361   : > { %8320 = vsinq.f32 %v2246_v13  ;;  %v1978_v63 = vor.u32 %v1977_v19, %v1976_v4  ;;  %v1979_v25 = vshll.u32 %v8554_v16, %v1964_v55  ;;  %v1980_v59 = vshrl.u32 %v8555_v23, %v1965_v47 }
 0x362   : > { %v5542_v32 = vadd.s32 %v10617_v27, %v10622_v33  ;;  %v5554_v30 = vclz %v7731_v1  ;;  %v1998_v38 = vshll.u32 %v1958_v43, 8  ;;  %v5288_v21 = vadd.s32 1, %v7722_v58 }
 0x363   : > { %v5573_v5 = vsel %vm5488_vm9, %v5572_v61, %v5548_v48  ;;  %v1966_v36 = vshrl.u32 %v8550_v6, %v1965_v47  ;;  %v1981_v15 = vor.u32 %v1980_v59, %v1979_v25  ;;  %vm1982_vm10 = vcmp.lt.s32.totalorder %v1963_v41, 1 }
 0x364   : > { %v7732_v62 = vadd.s32 4294967294, %v5554_v30  ;;  %vm1984_vm12 = vcmp.lt.s32.totalorder %v1963_v41, 3  ;;  %vm1985_vm13 = vcmp.lt.s32.totalorder %v1963_v41, 4  ;;  %v1990_v7 = vsel %vm1982_vm10, %v1969_v51, %v1972_v22 }
 0x365   : > { %v1987_v37 = vsel %vm1985_vm13, %v1975_v45, 2102212464  ;;  %v1991_v26 = vsel %vm1985_vm13, %v1978_v63, 920167782  ;;  %v1994_v17 = vsel %vm1982_vm10, %v1972_v22, %v1975_v45  ;;  %v1995_v27 = vsel %vm1985_vm13, %v1981_v15, 1326507024 }
 0x366   : > { %vm7733_vm14 = vcmp.lt.s32.totalorder %v7732_v62, 0  ;;  %vm1983_vm15 = vcmp.lt.s32.totalorder %v1963_v41, 2  ;;  %v1992_v33 = vsel %vm1984_vm12, %v1975_v45, %v1991_v26  ;;  %v1996_v0 = vsel %vm1984_vm12, %v1978_v63, %v1995_v27 }
 0x367   : > { %v5557_v35 = vsel %vm7733_vm14, 0, %v7732_v62  ;;  %v5575_v42 = vsel %vm10666_vm11, 0, %v5573_v5  ;;  %v1993_v57 = vsel %vm1983_vm15, %v1990_v7, %v1992_v33  ;;  %v1997_v48 = vsel %vm1983_vm15, %v1994_v17, %v1996_v0 }
 0x368   : > { %v5558_v54 = vsub.s32 32, %v5557_v35  ;;  %v5562_v24 = vsub.s32 4294967266, %v5557_v35  ;;  %v1986_v55 = vsel %vm1982_vm10, %v1966_v36, %v1969_v51  ;;  %v1988_v46 = vsel %vm1984_vm12, %v1972_v22, %v1987_v37 }
 0x369   : > { %v10696_v20 = vmul.u32.u64.low %v1998_v38, %v1997_v48  ;;  %v10697_v29 = vmul.u32.u64.high %v1998_v38, %v1997_v48, %v10696_v20  ;;  %v10699_v43 = vmul.u32.u64.low %v1998_v38, %v1993_v57  ;;  %v10700_v47 = vmul.u32.u64.high %v1998_v38, %v1993_v57, %v10699_v43  ;;  %v7865_v57 = vpop.f32.mrf.mxu0 }
 0x36a   : > { %vm2250_vm0 = vweird.f32 %v10454_v40  ;;  %v5559_v58 = vshll.u32 %v10656_v56, %v5557_v35  ;;  %v5560_v31 = vshrl.u32 %v5542_v32, %v5558_v54  ;;  %v5563_v61 = vadd.s32 127, %v5562_v24 }
 0x36b   : > { %vm5289_vm1 = vcmp.gt.s32.totalorder %v5288_v21, 0  ;;  %v5579_v53 = vadd.s32 3, %v5575_v42  ;;  %v1989_v34 = vsel %vm1983_vm15, %v1986_v55, %v1988_v46  ;;  %v5285_v39 = vand.u32 8388607, %v5278_v28 }
 0x36c   : > { %v5290_v50 = vsel %vm5289_vm1, %v5288_v21, 0  ;;  %vm2253_vm2 = vcmp.lt.s32.totalorder %v10651_v44, 2  ;;  %v5561_v52 = vor.u32 %v5560_v31, %v5559_v58  ;;  %v5564_v9 = vshll.u32 %v5563_v61, 23 }
 0x36d   : > { %v5292_v3 = vand.u32 31, %v5290_v50  ;;  %v8319_v18 = vpop.eup %8318  ;;  %vm2254_vm3 = vcmp.eq.s32.totalorder %v10651_v44, 0  ;;  %vm2257_vm4 = vcmp.eq.s32.totalorder %v10651_v44, 2  ;;  %vm2007_vm5 = vc.u32 %v10697_v29, %v10699_v43 }
 0x36e   : > { %v2008_v56 = vadd.s32 1, %v10700_v47  ;;  %v8321_v41 = vpop.eup %8320  ;;  %v2258_v13 = vxor.u32 2147483648, %v8319_v18  ;;  %v5565_v51 = vor.u32 4788187, %v5564_v9  ;;  %v2005_v4 = vmul.u32 %v1998_v38, %v1989_v34 }
 0x36f   : > { %v5293_v19 = vsub.s32 32, %v5292_v3  ;;  %v2255_v1 = vxor.u32 2147483648, %v8321_v41  ;;  %v10714_v22 = vand.u32 3, %v5579_v53  ;;  %v5286_v63 = vor.u32 8388608, %v5285_v39  ;;  %v10744_v53 = vld [vmem:[%s13586_s2] ss:$0 sm:$0xff] }
 0x370   : > { %v2009_v45 = vsel %vm2007_vm5, %v2008_v56, %v10700_v47  ;;  %v2259_v25 = vsel %vm2257_vm4, %v2258_v13, %v8321_v41  ;;  %v5566_v59 = vand.u32 2147483647, %v5565_v51  ;;  %v5568_v32 = vcvt.s32.f32 %v5561_v52 }
 0x371   : > { %v2010_v30 = vadd.s32 %v2009_v45, %v2005_v4  ;;  %v2256_v21 = vsel %vm2254_vm3, %v8319_v18, %v2255_v1  ;;  %v10719_v5 = vshrl.u32 %v5290_v50, 5  ;;  %v5296_v36 = vshrl.u32 %v8551_v10, %v5293_v19  ;;  %v7897_v45 = vpop.f32.mrf.mxu1 }
 0x372   : > { %v5299_v38 = vshrl.u32 %v8552_v12, %v5293_v19  ;;  %v2260_v15 = vsel %vm2253_vm2, %v2256_v21, %v2259_v25  ;;  %v5569_v62 = vmul.f32 %v5568_v32, %v5566_v59  ;;  %v5302_v37 = vshrl.u32 %v8553_v14, %v5293_v19 }
 0x373   : > { %v2011_v7 = vadd.s32 536870912, %v2010_v30  ;;  %v2261_v26 = vsel %vm2250_vm0, nan, %v2260_v15  ;;  %v5295_v17 = vshll.u32 %v8550_v6, %v5292_v3  ;;  %v5298_v27 = vshll.u32 %v8551_v10, %v5292_v3 }
 0x374   : > { %v5301_v33 = vshll.u32 %v8552_v12, %v5292_v3  ;;  %7372 = vst [vmem:[%s9048_s11 + $0x70] sm:$0xff] %v2261_v26  ;;  %v5570_v0 = vxor.u32 2147483648, %v5569_v62  ;;  %v5304_v42 = vshll.u32 %v8553_v14, %v5292_v3  ;;  %v5305_v44 = vshrl.u32 %v8554_v16, %v5293_v19 }
 0x375   : > { %v2012_v35 = vshrl.u32 %v2011_v7, 30  ;;  %v5297_v48 = vor.u32 %v5296_v36, %v5295_v17  ;;  %v5300_v54 = vor.u32 %v5299_v38, %v5298_v27  ;;  %v5307_v24 = vshll.u32 %v8554_v16, %v5292_v3 }
 0x376   : > { %v5308_v40 = vshrl.u32 %v8555_v23, %v5293_v19  ;;  %v5571_v55 = vsel %vm5488_vm9, %v5570_v0, %v5569_v62  ;;  %v5303_v20 = vor.u32 %v5302_v37, %v5301_v33  ;;  %v5306_v47 = vor.u32 %v5305_v44, %v5304_v42 }
 0x377   : > { %v2013_v46 = vshll.u32 %v2012_v35, 30  ;;  %v5574_v58 = vsel %vm10666_vm11, %v10501_v49, %v5571_v55  ;;  %v5326_v61 = vshll.u32 %v5286_v63, 8  ;;  %v10747_v34 = vadd.f32 %v10744_v53, %v7865_v57 }
 0x378   : > { %v5309_v31 = vor.u32 %v5308_v40, %v5307_v24  ;;  %8322 = vcosq.f32 %v5574_v58  ;;  %v5294_v50 = vshrl.u32 %v8550_v6, %v5293_v19  ;;  %vm5310_vm6 = vcmp.lt.s32.totalorder %v10719_v5, 1 }
 0x379   : > { %v10749_v39 = vsub.s32 %v2010_v30, %v2013_v46  ;;  %8324 = vsinq.f32 %v5574_v58  ;;  %vm5311_vm7 = vcmp.lt.s32.totalorder %v10719_v5, 2  ;;  %vm5313_vm8 = vcmp.lt.s32.totalorder %v10719_v5, 4 }
 0x37a   : > { %v5318_v60 = vsel %vm5310_vm6, %v5297_v48, %v5300_v54  ;;  %vm5312_vm9 = vcmp.lt.s32.totalorder %v10719_v5, 3  ;;  %v5315_v9 = vsel %vm5313_vm8, %v5303_v20, 2102212464  ;;  %v5319_v3 = vsel %vm5313_vm8, %v5306_v47, 920167782 }
 0x37b   : > { %v2016_v52 = vsub.s32 0, %v10749_v39  ;;  %v2036_v18 = vsub.s32 4, %v2012_v35  ;;  %v5320_v56 = vsel %vm5312_vm9, %v5303_v20, %v5319_v3  ;;  %v5322_v41 = vsel %vm5310_vm6, %v5300_v54, %v5303_v20 }
 0x37c   : > { %v5323_v13 = vsel %vm5313_vm8, %v5309_v31, 1326507024  ;;  %v5314_v4 = vsel %vm5310_vm6, %v5294_v50, %v5297_v48  ;;  %v5321_v19 = vsel %vm5311_vm7, %v5318_v60, %v5320_v56  ;;  %v5316_v63 = vsel %vm5312_vm9, %v5300_v54, %v5315_v9 }
 0x37d   : > { %v7595_v51 = vmin.u32 %v2016_v52, %v10749_v39  ;;  %v5324_v1 = vsel %vm5312_vm9, %v5306_v47, %v5323_v13  ;;  %v10762_v59 = vmul.u32.u64.low %v5326_v61, %v5321_v19  ;;  %v10763_v32 = vmul.u32.u64.high %v5326_v61, %v5321_v19, %v10762_v59 }
 0x37e   : > { %v5325_v25 = vsel %vm5311_vm7, %v5322_v41, %v5324_v1  ;;  %vm1952_vm11 = vcmp.lt.s32.totalorder %v10611_v8, 0  ;;  %v10771_v38 = vadd.f32 %v10744_v53, %v7897_v45  ;;  %vm10775_vm10 = vcmp.le.f32.partialorder %v1950_v2, 0.7853982  ;;  %v498_v1 = vpop.f32.mrf.mxu0 }
 0x37f   : > { %v2018_v30 = vclz %v7595_v51  ;;  %v10767_v21 = vmul.u32.u64.low %v5326_v61, %v5325_v25  ;;  %v10768_v36 = vmul.u32.u64.high %v5326_v61, %v5325_v25, %v10767_v21  ;;  %v5317_v7 = vsel %vm5311_vm7, %v5314_v4, %v5316_v63 }
 0x380   : > { %v2265_v37 = vand.u32 2139095040, %v10747_v34  ;;  %vm5581_vm12 = vcmp.lt.s32.totalorder %v10714_v22, 2  ;;  %vm5582_vm13 = vcmp.eq.s32.totalorder %v10714_v22, 0  ;;  %v2037_v26 = vsel %vm1952_vm11, %v2036_v18, %v2012_v35 }
 0x381   : > { %v7596_v62 = vadd.s32 4294967294, %v2018_v30  ;;  %v5336_v17 = vadd.s32 1, %v10763_v32  ;;  %v2262_v2 = vand.u32 2147483647, %v10747_v34  ;;  %vm5578_vm14 = vweird.f32 %v10501_v49 }
 0x382   : > { %vm5585_vm15 = vcmp.eq.s32.totalorder %v10714_v22, 2  ;;  %v2006_v5 = vadd.s32 %v10699_v43, %v10697_v29  ;;  %v2266_v27 = vshrl.u32 %v2265_v37, 23  ;;  %v5333_v0 = vmul.u32 %v5326_v61, %v5317_v7 }
 0x383   : > { %vm7597_vm0 = vcmp.lt.s32.totalorder %v7596_v62, 0  ;;  %vm5335_vm1 = vc.u32 %v10768_v36, %v10762_v59  ;;  %v5593_v35 = vand.u32 2139095040, %v10771_v38  ;;  %v2039_v57 = vsel %vm10775_vm10, 0, %v2037_v26 }
 0x384   : > { %v2021_v33 = vsel %vm7597_vm0, 0, %v7596_v62  ;;  %v5337_v48 = vsel %vm5335_vm1, %v5336_v17, %v10763_v32  ;;  %v7606_v40 = vadd.s32 4294967169, %v2266_v27  ;;  %v2269_v29 = vand.u32 8388607, %v2262_v2 }
 0x385   : > { %v2022_v42 = vsub.s32 32, %v2021_v33  ;;  %v2026_v44 = vsub.s32 4294967266, %v2021_v33  ;;  %v8323_v54 = vpop.eup %8322  ;;  %v5338_v24 = vadd.s32 %v5337_v48, %v5333_v0  ;;  %v5590_v43 = vand.u32 2147483647, %v10771_v38 }
 0x386   : > { %v8325_v55 = vpop.eup %8324  ;;  %v5586_v46 = vxor.u32 2147483648, %v8323_v54  ;;  %v2023_v20 = vshll.u32 %v10749_v39, %v2021_v33  ;;  %v2272_v50 = vadd.s32 1, %v7606_v40  ;;  %v5594_v60 = vshrl.u32 %v5593_v35, 23 }
 0x387   : > { %v2024_v47 = vshrl.u32 %v2006_v5, %v2022_v42  ;;  %v2027_v58 = vadd.s32 127, %v2026_v44  ;;  %v5583_v31 = vxor.u32 2147483648, %v8325_v55  ;;  %v5339_v61 = vadd.s32 536870912, %v5338_v24 }
 0x388   : > { %v5587_v52 = vsel %vm5585_vm15, %v5586_v46, %v8325_v55  ;;  %v2043_v18 = vadd.s32 3, %v2039_v57  ;;  %v2270_v13 = vor.u32 8388608, %v2269_v29  ;;  %vm2273_vm2 = vcmp.gt.s32.totalorder %v2272_v50, 0 }
 0x389   : > { %v2025_v9 = vor.u32 %v2024_v47, %v2023_v20  ;;  %v2028_v3 = vshll.u32 %v2027_v58, 23  ;;  %v5584_v56 = vsel %vm5582_vm13, %v8323_v54, %v5583_v31  ;;  %v10806_v41 = vshrl.u32 %v5339_v61, 30 }
 0x38a   : > { %v5588_v39 = vsel %vm5581_vm12, %v5584_v56, %v5587_v52  ;;  %v2274_v4 = vsel %vm2273_vm2, %v2272_v50, 0  ;;  %v10812_v19 = vand.u32 8388607, %v5590_v43  ;;  %v7734_v25 = vadd.s32 4294967169, %v5594_v60 }
 0x38b   : > { %v2029_v51 = vor.u32 4788187, %v2028_v3  ;;  %v5589_v45 = vsel %vm5578_vm14, nan, %v5588_v39  ;;  %v5341_v63 = vshll.u32 %v10806_v41, 30  ;;  %v2032_v30 = vcvt.s32.f32 %v2025_v9 }
 0x38c   : > { %7404 = vst [vmem:[%s9048_s11 + $0x170] sm:$0xff] %v5589_v45  ;;  %v2276_v21 = vand.u32 31, %v2274_v4  ;;  %v10818_v62 = vand.u32 3, %v2043_v18  ;;  %v5334_v22 = vadd.s32 %v10762_v59, %v10768_v36  ;;  %v10825_v37 = vadd.f32 %v10744_v53, %v498_v1 }
 0x38d   : > { %v2030_v32 = vand.u32 2147483647, %v2029_v51  ;;  %v10822_v7 = vsub.s32 %v5338_v24, %v5341_v63  ;;  %v10827_v17 = vshll.u32 %v2270_v13, 8  ;;  %v5598_v5 = vor.u32 8388608, %v10812_v19 }
 0x38e   : > { %v2277_v49 = vsub.s32 32, %v2276_v21  ;;  %v2275_v33 = vshrl.u32 %v2274_v4, 5  ;;  %v2279_v0 = vshll.u32 %v8550_v6, %v2276_v21  ;;  %v5600_v35 = vadd.s32 1, %v7734_v25 }
 0x38f   : > { %v2033_v26 = vmul.f32 %v2032_v30, %v2030_v32  ;;  %v5344_v27 = vsub.s32 0, %v10822_v7  ;;  %v2282_v36 = vshll.u32 %v8551_v10, %v2276_v21  ;;  %v2285_v48 = vshll.u32 %v8552_v12, %v2276_v21 }
 0x390   : > { %v2280_v59 = vshrl.u32 %v8551_v10, %v2277_v49  ;;  %v2283_v44 = vshrl.u32 %v8552_v12, %v2277_v49  ;;  %v2286_v54 = vshrl.u32 %v8553_v14, %v2277_v49  ;;  %v2288_v24 = vshll.u32 %v8553_v14, %v2276_v21 }
 0x391   : > { %v2034_v42 = vxor.u32 2147483648, %v2033_v26  ;;  %v7723_v57 = vmin.u32 %v5344_v27, %v10822_v7  ;;  %v2289_v46 = vshrl.u32 %v8554_v16, %v2277_v49  ;;  %v5364_v58 = vsub.s32 4, %v10806_v41 }
 0x392   : > { %v2281_v29 = vor.u32 %v2280_v59, %v2279_v0  ;;  %v2284_v55 = vor.u32 %v2283_v44, %v2282_v36  ;;  %vm5601_vm3 = vcmp.gt.s32.totalorder %v5600_v35, 0  ;;  %v2287_v31 = vor.u32 %v2286_v54, %v2285_v48 }
 0x393   : > { %v2035_v40 = vsel %vm1952_vm11, %v2034_v42, %v2033_v26  ;;  %v5346_v47 = vclz %v7723_v57  ;;  %v2290_v61 = vor.u32 %v2289_v46, %v2288_v24  ;;  %vm2294_vm4 = vcmp.lt.s32.totalorder %v2275_v33, 1 }
 0x394   : > { %v2038_v20 = vsel %vm10775_vm10, %v10611_v8, %v2035_v40  ;;  %vm5280_vm5 = vcmp.lt.s32.totalorder %v10633_v11, 0  ;;  %v2291_v60 = vshll.u32 %v8554_v16, %v2276_v21  ;;  %v2292_v52 = vshrl.u32 %v8555_v23, %v2277_v49 }
 0x395   : > { %8326 = vcosq.f32 %v2038_v20  ;;  %v7724_v50 = vadd.s32 4294967294, %v5346_v47  ;;  %v2278_v9 = vshrl.u32 %v8550_v6, %v2277_v49  ;;  %vm2296_vm6 = vcmp.lt.s32.totalorder %v2275_v33, 3 }
 0x396   : > { %8328 = vsinq.f32 %v2038_v20  ;;  %vm2297_vm7 = vcmp.lt.s32.totalorder %v2275_v33, 4  ;;  %v2302_v15 = vsel %vm2294_vm4, %v2281_v29, %v2284_v55  ;;  %v2293_v3 = vor.u32 %v2292_v52, %v2291_v60 }
 0x397   : > { %vm7725_vm8 = vcmp.lt.s32.totalorder %v7724_v50, 0  ;;  %v2299_v18 = vsel %vm2297_vm7, %v2287_v31, 2102212464  ;;  %v2303_v56 = vsel %vm2297_vm7, %v2290_v61, 920167782  ;;  %v2298_v39 = vsel %vm2294_vm4, %v2278_v9, %v2281_v29 }
 0x398   : > { %v5349_v13 = vsel %vm7725_vm8, 0, %v7724_v50  ;;  %v2300_v51 = vsel %vm2296_vm6, %v2284_v55, %v2299_v18  ;;  %v2304_v4 = vsel %vm2296_vm6, %v2287_v31, %v2303_v56  ;;  %vm2295_vm9 = vcmp.lt.s32.totalorder %v2275_v33, 2 }
 0x399   : > { %v5350_v1 = vsub.s32 32, %v5349_v13  ;;  %v5354_v45 = vsub.s32 4294967266, %v5349_v13  ;;  %v2306_v63 = vsel %vm2294_vm4, %v2284_v55, %v2287_v31  ;;  %v5351_v25 = vshll.u32 %v10822_v7, %v5349_v13 }
 0x39a   : > { %v2305_v32 = vsel %vm2295_vm9, %v2302_v15, %v2304_v4  ;;  %v2307_v30 = vsel %vm2297_vm7, %v2293_v3, 1326507024  ;;  %v5602_v21 = vsel %vm5601_vm3, %v5600_v35, 0  ;;  %v2301_v27 = vsel %vm2295_vm9, %v2298_v39, %v2300_v51 }
 0x39b   : > { %v5352_v26 = vshrl.u32 %v5334_v22, %v5350_v1  ;;  %v5355_v49 = vadd.s32 127, %v5354_v45  ;;  %v2308_v0 = vsel %vm2296_vm6, %v2290_v61, %v2307_v30  ;;  %vm2046_vm11 = vcmp.eq.s32.totalorder %v10818_v62, 0 }
 0x39c   : > { %v2309_v42 = vsel %vm2295_vm9, %v2306_v63, %v2308_v0  ;;  %v10863_v59 = vmul.u32.u64.low %v10827_v17, %v2305_v32  ;;  %v10864_v36 = vmul.u32.u64.high %v10827_v17, %v2305_v32, %v10863_v59  ;;  %v5604_v44 = vand.u32 31, %v5602_v21 }
 0x39d   : > { %vm2045_vm10 = vcmp.lt.s32.totalorder %v10818_v62, 2  ;;  %vm10870_vm12 = vcmp.le.f32.partialorder %v5278_v28, 0.7853982  ;;  %v5353_v22 = vor.u32 %v5352_v26, %v5351_v25  ;;  %v5356_v33 = vshll.u32 %v5355_v49, 23 }
 0x39e   : > { %v10875_v35 = vmul.u32.u64.low %v10827_v17, %v2309_v42  ;;  %v10876_v57 = vmul.u32.u64.high %v10827_v17, %v2309_v42, %v10875_v35  ;;  %vm2042_vm13 = vweird.f32 %v10611_v8  ;;  %vm2049_vm14 = vcmp.eq.s32.totalorder %v10818_v62, 2 }
 0x39f   : > { %v5365_v48 = vsel %vm5280_vm5, %v5364_v58, %v10806_v41  ;;  %v5605_v54 = vsub.s32 32, %v5604_v44  ;;  %v10885_v28 = vshll.u32 %v5598_v5, 8  ;;  %v5357_v24 = vor.u32 4788187, %v5356_v33 }
 0x3a0   : > { %v2317_v40 = vmul.u32 %v10827_v17, %v2301_v27  ;;  %v10888_v29 = vshrl.u32 %v5602_v21, 5  ;;  %v5607_v55 = vshll.u32 %v8550_v6, %v5604_v44  ;;  %v2320_v46 = vadd.s32 1, %v10864_v36 }
 0x3a1   : > { %v5608_v20 = vshrl.u32 %v8551_v10, %v5605_v54  ;;  %v5610_v47 = vshll.u32 %v8551_v10, %v5604_v44  ;;  %v5613_v41 = vshll.u32 %v8552_v12, %v5604_v44  ;;  %v5358_v31 = vand.u32 2147483647, %v5357_v24 }
 0x3a2   : > { %v8327_v58 = vpop.eup %8326  ;;  %v5360_v19 = vcvt.s32.f32 %v5353_v22  ;;  %vm2319_vm15 = vc.u32 %v10876_v57, %v10863_v59  ;;  %v5611_v17 = vshrl.u32 %v8552_v12, %v5605_v54  ;;  %v5614_v60 = vshrl.u32 %v8553_v14, %v5605_v54 }
 0x3a3   : > { %v8329_v5 = vpop.eup %8328  ;;  %v2050_v61 = vxor.u32 2147483648, %v8327_v58  ;;  %v2321_v50 = vsel %vm2319_vm15, %v2320_v46, %v10864_v36  ;;  %v5616_v52 = vshll.u32 %v8553_v14, %v5604_v44  ;;  %v5619_v18 = vshll.u32 %v8554_v16, %v5604_v44 }
 0x3a4   : > { %v2047_v9 = vxor.u32 2147483648, %v8329_v5  ;;  %v5361_v15 = vmul.f32 %v5360_v19, %v5358_v31  ;;  %v2322_v3 = vadd.s32 %v2321_v50, %v2317_v40  ;;  %v5609_v13 = vor.u32 %v5608_v20, %v5607_v55 }
 0x3a5   : > { %v2051_v56 = vsel %vm2049_vm14, %v2050_v61, %v8329_v5  ;;  %v5617_v39 = vshrl.u32 %v8554_v16, %v5605_v54  ;;  %v5620_v51 = vshrl.u32 %v8555_v23, %v5605_v54  ;;  %v5612_v63 = vor.u32 %v5611_v17, %v5610_v47 }
 0x3a6   : > { %v2048_v4 = vsel %vm2046_vm11, %v8327_v58, %v2047_v9  ;;  %v5362_v1 = vxor.u32 2147483648, %v5361_v15  ;;  %v2323_v45 = vadd.s32 536870912, %v2322_v3  ;;  %v5367_v32 = vsel %vm10870_vm12, 0, %v5365_v48 }
 0x3a7   : > { %v2052_v25 = vsel %vm2045_vm10, %v2048_v4, %v2051_v56  ;;  %v5615_v30 = vor.u32 %v5614_v60, %v5613_v41  ;;  %v5618_v21 = vor.u32 %v5617_v39, %v5616_v52  ;;  %v5621_v0 = vor.u32 %v5620_v51, %v5619_v18  ;;  %v626_v51 = vpop.f32.mrf.mxu1 }
 0x3a8   : > { %v2053_v26 = vsel %vm2042_vm13, nan, %v2052_v25  ;;  %v5363_v49 = vsel %vm5280_vm5, %v5362_v1, %v5361_v15  ;;  %v2324_v27 = vshrl.u32 %v2323_v45, 30  ;;  %v5606_v62 = vshrl.u32 %v8550_v6, %v5605_v54 }
 0x3a9   : > { %7370 = vst [vmem:[%s9048_s11 + $0x60] sm:$0xff] %v2053_v26  ;;  %v5366_v42 = vsel %vm10870_vm12, %v10633_v11, %v5363_v49  ;;  %vm5622_vm0 = vcmp.lt.s32.totalorder %v10888_v29, 1  ;;  %vm5624_vm1 = vcmp.lt.s32.totalorder %v10888_v29, 3  ;;  %vm5625_vm2 = vcmp.lt.s32.totalorder %v10888_v29, 4 }
 0x3aa   : > { %8330 = vcosq.f32 %v5366_v42  ;;  %v2325_v36 = vshll.u32 %v2324_v27, 30  ;;  %v5630_v8 = vsel %vm5622_vm0, %v5609_v13, %v5612_v63  ;;  %v5627_v44 = vsel %vm5625_vm2, %v5615_v30, 2102212464 }
 0x3ab   : > { %8332 = vsinq.f32 %v5366_v42  ;;  %v5631_v22 = vsel %vm5625_vm2, %v5618_v21, 920167782  ;;  %v5634_v7 = vsel %vm5622_vm0, %v5612_v63, %v5615_v30  ;;  %vm5623_vm3 = vcmp.lt.s32.totalorder %v10888_v29, 2 }
 0x3ac   : > { %v10928_v33 = vsub.s32 %v2322_v3, %v2325_v36  ;;  %v5632_v35 = vsel %vm5624_vm1, %v5615_v30, %v5631_v22  ;;  %v5635_v48 = vsel %vm5625_vm2, %v5621_v0, 1326507024  ;;  %v5371_v54 = vadd.s32 3, %v5367_v32 }
 0x3ad   : > { %v2348_v24 = vsub.s32 4, %v2324_v27  ;;  %v5633_v40 = vsel %vm5623_vm3, %v5630_v8, %v5632_v35  ;;  %v5636_v55 = vsel %vm5624_vm1, %v5618_v21, %v5635_v48  ;;  %v5626_v20 = vsel %vm5622_vm0, %v5606_v62, %v5609_v13 }
 0x3ae   : > { %v2328_v46 = vsub.s32 0, %v10928_v33  ;;  %v5628_v47 = vsel %vm5624_vm1, %v5612_v63, %v5627_v44  ;;  %v5637_v41 = vsel %vm5623_vm3, %v5634_v7, %v5636_v55  ;;  %vm2264_vm4 = vcmp.lt.s32.totalorder %v10747_v34, 0 }
 0x3af   : > { %v10945_v58 = vmul.u32.u64.low %v10885_v28, %v5637_v41  ;;  %v10946_v31 = vmul.u32.u64.high %v10885_v28, %v5637_v41, %v10945_v58  ;;  %v10949_v19 = vmul.u32.u64.low %v10885_v28, %v5633_v40  ;;  %v10950_v17 = vmul.u32.u64.high %v10885_v28, %v5633_v40, %v10949_v19 }
 0x3b0   : > { %v7607_v5 = vmin.u32 %v2328_v46, %v10928_v33  ;;  %v5372_v61 = vand.u32 3, %v5371_v54  ;;  %v2349_v50 = vsel %vm2264_vm4, %v2348_v24, %v2324_v27  ;;  %v5629_v60 = vsel %vm5623_vm3, %v5626_v20, %v5628_v47 }
 0x3b1   : > { %v2057_v52 = vand.u32 2139095040, %v10825_v37  ;;  %vm10961_vm5 = vcmp.le.f32.partialorder %v2262_v2, 0.7853982  ;;  %vm5647_vm6 = vc.u32 %v10946_v31, %v10949_v19  ;;  %v5648_v3 = vadd.s32 1, %v10950_v17 }
 0x3b2   : > { %v2330_v9 = vclz %v7607_v5  ;;  %v2351_v13 = vsel %vm10961_vm5, 0, %v2349_v50  ;;  %v5645_v29 = vmul.u32 %v10885_v28, %v5629_v60  ;;  %v2054_v39 = vand.u32 2147483647, %v10825_v37 }
 0x3b3   : > { %v2058_v18 = vshrl.u32 %v2057_v52, 23  ;;  %vm5373_vm7 = vcmp.lt.s32.totalorder %v5372_v61, 2  ;;  %vm5374_vm8 = vcmp.eq.s32.totalorder %v5372_v61, 0  ;;  %v5649_v2 = vsel %vm5647_vm6, %v5648_v3, %v10950_v17 }
 0x3b4   : > { %v7608_v56 = vadd.s32 4294967294, %v2330_v9  ;;  %vm5377_vm9 = vcmp.eq.s32.totalorder %v5372_v61, 2  ;;  %v2318_v1 = vadd.s32 %v10863_v59, %v10876_v57  ;;  %v5650_v45 = vadd.s32 %v5649_v2, %v5645_v29 }
 0x3b5   : > { %v7598_v4 = vadd.s32 4294967169, %v2058_v18  ;;  %v2355_v32 = vadd.s32 3, %v2351_v13  ;;  %v10975_v28 = vadd.f32 %v10744_v53, %v626_v51  ;;  %v2061_v0 = vand.u32 8388607, %v2054_v39 }
 0x3b6   : > { %vm7609_vm11 = vcmp.lt.s32.totalorder %v7608_v56, 0  ;;  %v5651_v59 = vadd.s32 536870912, %v5650_v45  ;;  %vm5370_vm12 = vweird.f32 %v10633_v11  ;;  %vm5592_vm13 = vcmp.lt.s32.totalorder %v10771_v38, 0 }
 0x3b7   : > { %v8331_v63 = vpop.eup %8330  ;;  %v2333_v25 = vsel %vm7609_vm11, 0, %v7608_v56  ;;  %v2064_v30 = vadd.s32 1, %v7598_v4  ;;  %v5385_v48 = vand.u32 2139095040, %v10975_v28  ;;  %v10987_v47 = vand.u32 3, %v2355_v32 }
 0x3b8   : > { %v8333_v21 = vpop.eup %8332  ;;  %v5378_v26 = vxor.u32 2147483648, %v8331_v63  ;;  %v2334_v49 = vsub.s32 32, %v2333_v25  ;;  %v2338_v27 = vsub.s32 4294967266, %v2333_v25  ;;  %v2335_v62 = vshll.u32 %v10928_v33, %v2333_v25 }
 0x3b9   : > { %v5375_v42 = vxor.u32 2147483648, %v8333_v21  ;;  %vm2065_vm10 = vcmp.gt.s32.totalorder %v2064_v30, 0  ;;  %v5652_v7 = vshrl.u32 %v5651_v59, 30  ;;  %v5646_v41 = vadd.s32 %v10949_v19, %v10946_v31 }
 0x3ba   : > { %v5379_v57 = vsel %vm5377_vm9, %v5378_v26, %v8333_v21  ;;  %v2336_v36 = vshrl.u32 %v2318_v1, %v2334_v49  ;;  %v2339_v8 = vadd.s32 127, %v2338_v27  ;;  %v2066_v44 = vsel %vm2065_vm10, %v2064_v30, 0 }
 0x3bb   : > { %v5376_v22 = vsel %vm5374_vm8, %v8331_v63, %v5375_v42  ;;  %v2068_v35 = vand.u32 31, %v2066_v44  ;;  %v5653_v55 = vshll.u32 %v5652_v7, 30  ;;  %v2062_v58 = vor.u32 8388608, %v2061_v0 }
 0x3bc   : > { %v5380_v54 = vsel %vm5373_vm7, %v5376_v22, %v5379_v57  ;;  %v2337_v24 = vor.u32 %v2336_v36, %v2335_v62  ;;  %v2340_v33 = vshll.u32 %v2339_v8, 23  ;;  %v5676_v5 = vsub.s32 4, %v5652_v7 }
 0x3bd   : > { %v5381_v40 = vsel %vm5370_vm12, nan, %v5380_v54  ;;  %v2069_v46 = vsub.s32 32, %v2068_v35  ;;  %v10990_v17 = vsub.s32 %v5650_v45, %v5653_v55  ;;  %v5386_v61 = vshrl.u32 %v5385_v48, 23 }
 0x3be   : > { %7402 = vst [vmem:[%s9048_s11 + $0x160] sm:$0xff] %v5381_v40  ;;  %v2341_v20 = vor.u32 4788187, %v2340_v33  ;;  %v2344_v60 = vcvt.s32.f32 %v2337_v24  ;;  %v2071_v52 = vshll.u32 %v8550_v6, %v2068_v35  ;;  %v2074_v18 = vshll.u32 %v8551_v10, %v2068_v35 }
 0x3bf   : > { %v2072_v11 = vshrl.u32 %v8551_v10, %v2069_v46  ;;  %v2075_v9 = vshrl.u32 %v8552_v12, %v2069_v46  ;;  %v5656_v3 = vsub.s32 0, %v10990_v17  ;;  %v2077_v56 = vshll.u32 %v8552_v12, %v2068_v35 }
 0x3c0   : > { %v2342_v50 = vand.u32 2147483647, %v2341_v20  ;;  %v2078_v31 = vshrl.u32 %v8553_v14, %v2069_v46  ;;  %v2067_v13 = vshrl.u32 %v2066_v44, 5  ;;  %v2080_v29 = vshll.u32 %v8553_v14, %v2068_v35 }
 0x3c1   : > { %v2081_v51 = vshrl.u32 %v8554_v16, %v2069_v46  ;;  %v7735_v2 = vmin.u32 %v5656_v3, %v10990_v17  ;;  %v2073_v4 = vor.u32 %v2072_v11, %v2071_v52  ;;  %v2076_v1 = vor.u32 %v2075_v9, %v2074_v18 }
 0x3c2   : > { %v2345_v19 = vmul.f32 %v2344_v60, %v2342_v50  ;;  %v2079_v45 = vor.u32 %v2078_v31, %v2077_v56  ;;  %v2083_v32 = vshll.u32 %v8554_v16, %v2068_v35  ;;  %v2084_v30 = vshrl.u32 %v8555_v23, %v2069_v46 }
 0x3c3   : > { %v2082_v25 = vor.u32 %v2081_v51, %v2080_v29  ;;  %vm11006_vm14 = vcmp.le.f32.partialorder %v5590_v43, 0.7853982  ;;  %v5658_v26 = vclz %v7735_v2  ;;  %v5677_v49 = vsel %vm5592_vm13, %v5676_v5, %v5652_v7  ;;  %v7868_v51 = vpop.f32.mrf.mxu0 }
 0x3c4   : > { %v2346_v63 = vxor.u32 2147483648, %v2345_v19  ;;  %v2102_v27 = vshll.u32 %v2062_v58, 8  ;;  %v7726_v0 = vadd.s32 4294967169, %v5386_v61  ;;  %v2070_v62 = vshrl.u32 %v8550_v6, %v2069_v46 }
 0x3c5   : > { %v2085_v59 = vor.u32 %v2084_v30, %v2083_v32  ;;  %vm2086_vm15 = vcmp.lt.s32.totalorder %v2067_v13, 1  ;;  %v7736_v57 = vadd.s32 4294967294, %v5658_v26  ;;  %vm2088_vm0 = vcmp.lt.s32.totalorder %v2067_v13, 3 }
 0x3c6   : > { %v2347_v42 = vsel %vm2264_vm4, %v2346_v63, %v2345_v19  ;;  %vm2089_vm1 = vcmp.lt.s32.totalorder %v2067_v13, 4  ;;  %v2094_v8 = vsel %vm2086_vm15, %v2073_v4, %v2076_v1  ;;  %vm2087_vm3 = vcmp.lt.s32.totalorder %v2067_v13, 2 }
 0x3c7   : > { %v2350_v43 = vsel %vm10961_vm5, %v10747_v34, %v2347_v42  ;;  %v2091_v36 = vsel %vm2089_vm1, %v2079_v45, 2102212464  ;;  %v2095_v44 = vsel %vm2089_vm1, %v2082_v25, 920167782  ;;  %vm7737_vm2 = vcmp.lt.s32.totalorder %v7736_v57, 0 }
 0x3c8   : > { %8334 = vcosq.f32 %v2350_v43  ;;  %v2096_v22 = vsel %vm2088_vm0, %v2079_v45, %v2095_v44  ;;  %v5661_v7 = vsel %vm7737_vm2, 0, %v7736_v57  ;;  %v2090_v35 = vsel %vm2086_vm15, %v2070_v62, %v2073_v4 }
 0x3c9   : > { %8336 = vsinq.f32 %v2350_v43  ;;  %v2097_v15 = vsel %vm2087_vm3, %v2094_v8, %v2096_v22  ;;  %v2098_v48 = vsel %vm2086_vm15, %v2076_v1, %v2079_v45  ;;  %v5662_v54 = vsub.s32 32, %v5661_v7 }
 0x3ca   : > { %v5666_v24 = vsub.s32 4294967266, %v5661_v7  ;;  %v2092_v33 = vsel %vm2088_vm0, %v2076_v1, %v2091_v36  ;;  %v2099_v40 = vsel %vm2089_vm1, %v2085_v59, 1326507024  ;;  %v5663_v55 = vshll.u32 %v10990_v17, %v5661_v7 }
 0x3cb   : > { %v2100_v46 = vsel %vm2088_vm0, %v2082_v25, %v2099_v40  ;;  %v11029_v20 = vmul.u32.u64.low %v2102_v27, %v2097_v15  ;;  %v11030_v58 = vmul.u32.u64.high %v2102_v27, %v2097_v15, %v11029_v20  ;;  %v5664_v5 = vshrl.u32 %v5646_v41, %v5662_v54 }
 0x3cc   : > { %v5667_v11 = vadd.s32 127, %v5666_v24  ;;  %v2101_v61 = vsel %vm2087_vm3, %v2098_v48, %v2100_v46  ;;  %v5392_v50 = vadd.s32 1, %v7726_v0  ;;  %v5679_v60 = vsel %vm11006_vm14, 0, %v5677_v49 }
 0x3cd   : > { %v11036_v52 = vmul.u32.u64.low %v2102_v27, %v2101_v61  ;;  %v11037_v9 = vmul.u32.u64.high %v2102_v27, %v2101_v61, %v11036_v52  ;;  %v5382_v3 = vand.u32 2147483647, %v10975_v28  ;;  %v5665_v17 = vor.u32 %v5664_v5, %v5663_v55 }
 0x3ce   : > { %v5668_v18 = vshll.u32 %v5667_v11, 23  ;;  %v2093_v56 = vsel %vm2087_vm3, %v2090_v35, %v2092_v33  ;;  %vm5393_vm4 = vcmp.gt.s32.totalorder %v5392_v50, 0  ;;  %v2112_v31 = vadd.s32 1, %v11030_v58 }
 0x3cf   : > { %v5394_v41 = vsel %vm5393_vm4, %v5392_v50, 0  ;;  %vm2357_vm5 = vcmp.lt.s32.totalorder %v10987_v47, 2  ;;  %vm2358_vm6 = vcmp.eq.s32.totalorder %v10987_v47, 0  ;;  %vm2361_vm7 = vcmp.eq.s32.totalorder %v10987_v47, 2 }
 0x3d0   : > { %v5669_v19 = vor.u32 4788187, %v5668_v18  ;;  %v5396_v29 = vand.u32 31, %v5394_v41  ;;  %vm2354_vm8 = vweird.f32 %v10747_v34  ;;  %v5683_v2 = vadd.s32 3, %v5679_v60 }
 0x3d1   : > { %v2109_v4 = vmul.u32 %v2102_v27, %v2093_v56  ;;  %vm2111_vm9 = vc.u32 %v11037_v9, %v11029_v20  ;;  %v5389_v13 = vand.u32 8388607, %v5382_v3  ;;  %v5672_v45 = vcvt.s32.f32 %v5665_v17 }
 0x3d2   : > { %v5670_v1 = vand.u32 2147483647, %v5669_v19  ;;  %v2113_v63 = vsel %vm2111_vm9, %v2112_v31, %v11030_v58  ;;  %v5397_v25 = vsub.s32 32, %v5396_v29  ;;  %v11051_v30 = vshrl.u32 %v5394_v41, 5 }
 0x3d3   : > { %v2114_v32 = vadd.s32 %v2113_v63, %v2109_v4  ;;  %v5399_v26 = vshll.u32 %v8550_v6, %v5396_v29  ;;  %v11055_v49 = vadd.f32 %v10744_v53, %v7868_v51  ;;  %v5402_v62 = vshll.u32 %v8551_v10, %v5396_v29 }
 0x3d4   : > { %v5673_v0 = vmul.f32 %v5672_v45, %v5670_v1  ;;  %v5400_v42 = vshrl.u32 %v8551_v10, %v5397_v25  ;;  %v5403_v59 = vshrl.u32 %v8552_v12, %v5397_v25  ;;  %v5405_v8 = vshll.u32 %v8552_v12, %v5396_v29 }
 0x3d5   : > { %v8335_v27 = vpop.eup %8334  ;;  %v2115_v36 = vadd.s32 536870912, %v2114_v32  ;;  %v5406_v44 = vshrl.u32 %v8553_v14, %v5397_v25  ;;  %v5408_v35 = vshll.u32 %v8553_v14, %v5396_v29  ;;  %v5409_v15 = vshrl.u32 %v8554_v16, %v5397_v25 }
 0x3d6   : > { %v8337_v43 = vpop.eup %8336  ;;  %v2362_v57 = vxor.u32 2147483648, %v8335_v27  ;;  %v5674_v7 = vxor.u32 2147483648, %v5673_v0  ;;  %v5401_v24 = vor.u32 %v5400_v42, %v5399_v26  ;;  %v5404_v33 = vor.u32 %v5403_v59, %v5402_v62 }
 0x3d7   : > { %v2359_v22 = vxor.u32 2147483648, %v8337_v43  ;;  %v11066_v54 = vshrl.u32 %v2115_v36, 30  ;;  %v5411_v46 = vshll.u32 %v8554_v16, %v5396_v29  ;;  %v5412_v58 = vshrl.u32 %v8555_v23, %v5397_v25 }
 0x3d8   : > { %v2363_v48 = vsel %vm2361_vm7, %v2362_v57, %v8337_v43  ;;  %v5675_v55 = vsel %vm5592_vm13, %v5674_v7, %v5673_v0  ;;  %v5407_v50 = vor.u32 %v5406_v44, %v5405_v8  ;;  %v5410_v52 = vor.u32 %v5409_v15, %v5408_v35  ;;  %v7900_v43 = vpop.f32.mrf.mxu1 }
 0x3d9   : > { %v2360_v40 = vsel %vm2358_vm6, %v8335_v27, %v2359_v22  ;;  %v5678_v11 = vsel %vm11006_vm14, %v10771_v38, %v5675_v55  ;;  %v2117_v61 = vshll.u32 %v11066_v54, 30  ;;  %v5413_v17 = vor.u32 %v5412_v58, %v5411_v46 }
 0x3da   : > { %v2364_v5 = vsel %vm2357_vm5, %v2360_v40, %v2363_v48  ;;  %8338 = vcosq.f32 %v5678_v11  ;;  %v11085_v56 = vand.u32 3, %v5683_v2  ;;  %v5390_v47 = vor.u32 8388608, %v5389_v13 }
 0x3db   : > { %v2365_v60 = vsel %vm2354_vm8, nan, %v2364_v5  ;;  %8340 = vsinq.f32 %v5678_v11  ;;  %v11083_v18 = vsub.s32 %v2114_v32, %v2117_v61  ;;  %vm5414_vm11 = vcmp.lt.s32.totalorder %v11051_v30, 1 }
 0x3dc   : > { %7373 = vst [vmem:[%s9048_s11 + $0x78] sm:$0xff] %v2365_v60  ;;  %v2577_v21 = vand.u32 2139095040, %v11055_v49  ;;  %vm5416_vm10 = vcmp.lt.s32.totalorder %v11051_v30, 3  ;;  %vm5417_vm12 = vcmp.lt.s32.totalorder %v11051_v30, 4  ;;  %v5422_v34 = vsel %vm5414_vm11, %v5401_v24, %v5404_v33 }
 0x3dd   : > { %v2120_v31 = vsub.s32 0, %v11083_v18  ;;  %v5398_v41 = vshrl.u32 %v8550_v6, %v5397_v25  ;;  %v5419_v19 = vsel %vm5417_vm12, %v5407_v50, 2102212464  ;;  %v5423_v29 = vsel %vm5417_vm12, %v5410_v52, 920167782 }
 0x3de   : > { %v5427_v51 = vsel %vm5417_vm12, %v5413_v17, 1326507024  ;;  %vm5415_vm13 = vcmp.lt.s32.totalorder %v11051_v30, 2  ;;  %v5424_v4 = vsel %vm5416_vm10, %v5407_v50, %v5423_v29  ;;  %v5426_v13 = vsel %vm5414_vm11, %v5404_v33, %v5407_v50 }
 0x3df   : > { %v7599_v2 = vmin.u32 %v2120_v31, %v11083_v18  ;;  %v5425_v1 = vsel %vm5415_vm13, %v5422_v34, %v5424_v4  ;;  %v5428_v45 = vsel %vm5416_vm10, %v5410_v52, %v5427_v51  ;;  %v5430_v63 = vshll.u32 %v5390_v47, 8 }
 0x3e0   : > { %v2578_v25 = vshrl.u32 %v2577_v21, 23  ;;  %v5418_v26 = vsel %vm5414_vm11, %v5398_v41, %v5401_v24  ;;  %v5420_v27 = vsel %vm5416_vm10, %v5404_v33, %v5419_v19  ;;  %v5429_v0 = vsel %vm5415_vm13, %v5426_v13, %v5428_v45 }
 0x3e1   : > { %v2122_v32 = vclz %v7599_v2  ;;  %v11111_v42 = vmul.u32.u64.low %v5430_v63, %v5425_v1  ;;  %v11112_v62 = vmul.u32.u64.high %v5430_v63, %v5425_v1, %v11111_v42  ;;  %v2140_v36 = vsub.s32 4, %v11066_v54 }
 0x3e2   : > { %v7618_v59 = vadd.s32 4294967169, %v2578_v25  ;;  %v11116_v8 = vmul.u32.u64.low %v5430_v63, %v5429_v0  ;;  %v11117_v44 = vmul.u32.u64.high %v5430_v63, %v5429_v0, %v11116_v8  ;;  %vm5682_vm14 = vweird.f32 %v10771_v38 }
 0x3e3   : > { %v7600_v57 = vadd.s32 4294967294, %v2122_v32  ;;  %vm5686_vm15 = vcmp.eq.s32.totalorder %v11085_v56, 0  ;;  %vm2056_vm0 = vcmp.lt.s32.totalorder %v10825_v37, 0  ;;  %v5421_v22 = vsel %vm5415_vm13, %v5418_v26, %v5420_v27 }
 0x3e4   : > { %v2584_v7 = vadd.s32 1, %v7618_v59  ;;  %vm5689_vm1 = vcmp.eq.s32.totalorder %v11085_v56, 2  ;;  %v2574_v35 = vand.u32 2147483647, %v11055_v49  ;;  %v11127_v15 = vadd.f32 %v10744_v53, %v7900_v43 }
 0x3e5   : > { %vm7601_vm2 = vcmp.lt.s32.totalorder %v7600_v57, 0  ;;  %v2110_v48 = vadd.s32 %v11029_v20, %v11037_v9  ;;  %v5440_v33 = vadd.s32 1, %v11112_v62  ;;  %v2141_v46 = vsel %vm2056_vm0, %v2140_v36, %v11066_v54 }
 0x3e6   : > { %v2125_v24 = vsel %vm7601_vm2, 0, %v7600_v57  ;;  %vm2585_vm3 = vcmp.gt.s32.totalorder %v2584_v7, 0  ;;  %v5437_v58 = vmul.u32 %v5430_v63, %v5421_v22  ;;  %vm5439_vm4 = vc.u32 %v11117_v44, %v11111_v42 }
 0x3e7   : > { %v8339_v40 = vpop.eup %8338  ;;  %v2126_v55 = vsub.s32 32, %v2125_v24  ;;  %v2130_v30 = vsub.s32 4294967266, %v2125_v24  ;;  %v2127_v53 = vshll.u32 %v11083_v18, %v2125_v24  ;;  %v2586_v20 = vsel %vm2585_vm3, %v2584_v7, 0 }
 0x3e8   : > { %v8341_v5 = vpop.eup %8340  ;;  %v5690_v11 = vxor.u32 2147483648, %v8339_v40  ;;  %v5441_v60 = vsel %vm5439_vm4, %v5440_v33, %v11112_v62  ;;  %v2581_v54 = vand.u32 8388607, %v2574_v35  ;;  %v2588_v47 = vand.u32 31, %v2586_v20 }
 0x3e9   : > { %v5687_v9 = vxor.u32 2147483648, %v8341_v5  ;;  %v2128_v61 = vshrl.u32 %v2110_v48, %v2126_v55  ;;  %v2131_v50 = vadd.s32 127, %v2130_v30  ;;  %v5442_v17 = vadd.s32 %v5441_v60, %v5437_v58 }
 0x3ea   : > { %v5691_v52 = vsel %vm5689_vm1, %v5690_v11, %v8341_v5  ;;  %vm5685_vm5 = vcmp.lt.s32.totalorder %v11085_v56, 2  ;;  %vm11148_vm6 = vcmp.le.f32.partialorder %v2054_v39, 0.7853982  ;;  %v2589_v29 = vsub.s32 32, %v2588_v47 }
 0x3eb   : > { %v5688_v18 = vsel %vm5686_vm15, %v8339_v40, %v5687_v9  ;;  %v2129_v21 = vor.u32 %v2128_v61, %v2127_v53  ;;  %v2132_v31 = vshll.u32 %v2131_v50, 23  ;;  %v5443_v19 = vadd.s32 536870912, %v5442_v17 }
 0x3ec   : > { %v5692_v34 = vsel %vm5685_vm5, %v5688_v18, %v5691_v52  ;;  %v2143_v4 = vsel %vm11148_vm6, 0, %v2141_v46  ;;  %v2582_v13 = vor.u32 8388608, %v2581_v54  ;;  %v2592_v1 = vshrl.u32 %v8551_v10, %v2589_v29 }
 0x3ed   : > { %v5693_v51 = vsel %vm5682_vm14, nan, %v5692_v34  ;;  %v2133_v2 = vor.u32 4788187, %v2132_v31  ;;  %v11157_v56 = vshrl.u32 %v5443_v19, 30  ;;  %v5905_v39 = vand.u32 2139095040, %v11127_v15 }
 0x3ee   : > { %7405 = vst [vmem:[%s9048_s11 + $0x178] sm:$0xff] %v5693_v51  ;;  %v2136_v63 = vcvt.s32.f32 %v2129_v21  ;;  %v2595_v25 = vshrl.u32 %v8552_v12, %v2589_v29  ;;  %v2598_v32 = vshrl.u32 %v8553_v14, %v2589_v29  ;;  %v2587_v26 = vshrl.u32 %v2586_v20, 5 }
 0x3ef   : > { %v2134_v45 = vand.u32 2147483647, %v2133_v2  ;;  %v5445_v38 = vshll.u32 %v11157_v56, 30  ;;  %v2591_v27 = vshll.u32 %v8550_v6, %v2588_v47  ;;  %v2597_v0 = vshll.u32 %v8552_v12, %v2588_v47 }
 0x3f0   : > { %v2594_v59 = vshll.u32 %v8551_v10, %v2588_v47  ;;  %v2600_v43 = vshll.u32 %v8553_v14, %v2588_v47  ;;  %v2601_v57 = vshrl.u32 %v8554_v16, %v2589_v29  ;;  %v2604_v7 = vshrl.u32 %v8555_v23, %v2589_v29 }
 0x3f1   : > { %v2137_v62 = vmul.f32 %v2136_v63, %v2134_v45  ;;  %v11169_v36 = vsub.s32 %v5442_v17, %v5445_v38  ;;  %v2593_v8 = vor.u32 %v2592_v1, %v2591_v27  ;;  %v2599_v22 = vor.u32 %v2598_v32, %v2597_v0 }
 0x3f2   : > { %v2596_v24 = vor.u32 %v2595_v25, %v2594_v59  ;;  %v2602_v33 = vor.u32 %v2601_v57, %v2600_v43  ;;  %v2603_v40 = vshll.u32 %v8554_v16, %v2588_v47  ;;  %v2147_v55 = vadd.s32 3, %v2143_v4 }
 0x3f3   : > { %v2138_v48 = vxor.u32 2147483648, %v2137_v62  ;;  %v5448_v30 = vsub.s32 0, %v11169_v36  ;;  %v2622_v46 = vshll.u32 %v2582_v13, 8  ;;  %v5906_v58 = vshrl.u32 %v5905_v39, 23 }
 0x3f4   : > { %v2590_v11 = vshrl.u32 %v8550_v6, %v2589_v29  ;;  %v2605_v53 = vor.u32 %v2604_v7, %v2603_v40  ;;  %vm2609_vm7 = vcmp.lt.s32.totalorder %v2587_v26, 4  ;;  %vm2606_vm8 = vcmp.lt.s32.totalorder %v2587_v26, 1 }
 0x3f5   : > { %v2139_v5 = vsel %vm2056_vm0, %v2138_v48, %v2137_v62  ;;  %v7727_v9 = vmin.u32 %v5448_v30, %v11169_v36  ;;  %v2611_v61 = vsel %vm2609_vm7, %v2599_v22, 2102212464  ;;  %vm2607_vm9 = vcmp.lt.s32.totalorder %v2587_v26, 2  ;;  %v511_v30 = vpop.f32.mrf.mxu0 }
 0x3f6   : > { %v2142_v20 = vsel %vm11148_vm6, %v10825_v37, %v2139_v5  ;;  %v2614_v50 = vsel %vm2606_vm8, %v2593_v8, %v2596_v24  ;;  %v2615_v60 = vsel %vm2609_vm7, %v2602_v33, 920167782  ;;  %vm2608_vm11 = vcmp.lt.s32.totalorder %v2587_v26, 3 }
 0x3f7   : > { %8342 = vcosq.f32 %v2142_v20  ;;  %v5450_v52 = vclz %v7727_v9  ;;  %v2618_v17 = vsel %vm2606_vm8, %v2596_v24, %v2599_v22  ;;  %v2610_v54 = vsel %vm2606_vm8, %v2590_v11, %v2593_v8 }
 0x3f8   : > { %8344 = vsinq.f32 %v2142_v20  ;;  %v2612_v47 = vsel %vm2608_vm11, %v2596_v24, %v2611_v61  ;;  %v2616_v18 = vsel %vm2608_vm11, %v2599_v22, %v2615_v60  ;;  %v2619_v21 = vsel %vm2609_vm7, %v2605_v53, 1326507024 }
 0x3f9   : > { %v7728_v31 = vadd.s32 4294967294, %v5450_v52  ;;  %v5468_v34 = vsub.s32 4, %v11157_v56  ;;  %v2617_v41 = vsel %vm2607_vm9, %v2614_v50, %v2616_v18  ;;  %v2620_v19 = vsel %vm2608_vm11, %v2602_v33, %v2619_v21 }
 0x3fa   : > { %v2621_v29 = vsel %vm2607_vm9, %v2618_v17, %v2620_v19  ;;  %v11187_v51 = vmul.u32.u64.low %v2622_v46, %v2617_v41  ;;  %v11188_v2 = vmul.u32.u64.high %v2622_v46, %v2617_v41, %v11187_v51  ;;  %v7746_v4 = vadd.s32 4294967169, %v5906_v58  ;;  %v11226_v17 = vld [vmem:[%s13586_s2] ss:$0 sm:$0xff] }
 0x3fb   : > { %vm7729_vm10 = vcmp.lt.s32.totalorder %v7728_v31, 0  ;;  %v2613_v13 = vsel %vm2607_vm9, %v2610_v54, %v2612_v47  ;;  %v11192_v1 = vmul.u32.u64.low %v2622_v46, %v2621_v29  ;;  %v11193_v39 = vmul.u32.u64.high %v2622_v46, %v2621_v29, %v11192_v1 }
 0x3fc   : > { %v2148_v45 = vand.u32 3, %v2147_v55  ;;  %vm5384_vm12 = vcmp.lt.s32.totalorder %v10975_v28, 0  ;;  %v5453_v63 = vsel %vm7729_vm10, 0, %v7728_v31  ;;  %v5912_v25 = vadd.s32 1, %v7746_v4 }
 0x3fd   : > { %v5438_v32 = vadd.s32 %v11111_v42, %v11117_v44  ;;  %v5454_v38 = vsub.s32 32, %v5453_v63  ;;  %v5458_v27 = vsub.s32 4294967266, %v5453_v63  ;;  %v5902_v0 = vand.u32 2147483647, %v11127_v15 }
 0x3fe   : > { %v5469_v26 = vsel %vm5384_vm12, %v5468_v34, %v11157_v56  ;;  %v2629_v62 = vmul.u32 %v2622_v46, %v2613_v13  ;;  %v2632_v59 = vadd.s32 1, %v11188_v2  ;;  %vm5913_vm13 = vcmp.gt.s32.totalorder %v5912_v25, 0 }
 0x3ff   : > { %v5455_v43 = vshll.u32 %v11169_v36, %v5453_v63  ;;  %v5456_v57 = vshrl.u32 %v5438_v32, %v5454_v38  ;;  %v5459_v8 = vadd.s32 127, %v5458_v27  ;;  %vm2631_vm14 = vc.u32 %v11193_v39, %v11187_v51 }
 0x400   : > { %vm11208_vm15 = vcmp.le.f32.partialorder %v5382_v3, 0.7853982  ;;  %v2633_v44 = vsel %vm2631_vm14, %v2632_v59, %v11188_v2  ;;  %v5914_v56 = vsel %vm5913_vm13, %v5912_v25, 0  ;;  %vm2146_vm0 = vweird.f32 %v10825_v37 }
 0x401   : > { %v5457_v22 = vor.u32 %v5456_v57, %v5455_v43  ;;  %v5460_v7 = vshll.u32 %v5459_v8, 23  ;;  %v5471_v48 = vsel %vm11208_vm15, 0, %v5469_v26  ;;  %v2634_v36 = vadd.s32 %v2633_v44, %v2629_v62 }
 0x402   : > { %v5909_v24 = vand.u32 8388607, %v5902_v0  ;;  %v5916_v33 = vand.u32 31, %v5914_v56  ;;  %vm2149_vm1 = vcmp.lt.s32.totalorder %v2148_v45, 2  ;;  %vm2150_vm2 = vcmp.eq.s32.totalorder %v2148_v45, 0 }
 0x403   : > { %v5461_v3 = vor.u32 4788187, %v5460_v7  ;;  %v2635_v55 = vadd.s32 536870912, %v2634_v36  ;;  %vm2153_vm3 = vcmp.eq.s32.totalorder %v2148_v45, 2  ;;  %v11218_v5 = vadd.s32 3, %v5471_v48 }
 0x404   : > { %v8343_v40 = vpop.eup %8342  ;;  %v5917_v11 = vsub.s32 32, %v5916_v33  ;;  %v5464_v9 = vcvt.s32.f32 %v5457_v22  ;;  %v5910_v60 = vor.u32 8388608, %v5909_v24  ;;  %v11229_v54 = vadd.f32 %v11226_v17, %v511_v30 }
 0x405   : > { %v8345_v46 = vpop.eup %8344  ;;  %v2154_v58 = vxor.u32 2147483648, %v8343_v40  ;;  %v5462_v20 = vand.u32 2147483647, %v5461_v3  ;;  %v11220_v61 = vshrl.u32 %v2635_v55, 30  ;;  %v5919_v41 = vshll.u32 %v8550_v6, %v5916_v33 }
 0x406   : > { %v2151_v53 = vxor.u32 2147483648, %v8345_v46  ;;  %v5920_v52 = vshrl.u32 %v8551_v10, %v5917_v11  ;;  %v5923_v31 = vshrl.u32 %v8552_v12, %v5917_v11  ;;  %v5922_v19 = vshll.u32 %v8551_v10, %v5916_v33 }
 0x407   : > { %v2155_v50 = vsel %vm2153_vm3, %v2154_v58, %v8345_v46  ;;  %v5465_v18 = vmul.f32 %v5464_v9, %v5462_v20  ;;  %v2637_v21 = vshll.u32 %v11220_v61, 30  ;;  %v5926_v29 = vshrl.u32 %v8553_v14, %v5917_v11 }
 0x408   : > { %v2152_v47 = vsel %vm2150_vm2, %v8343_v40, %v2151_v53  ;;  %v5925_v1 = vshll.u32 %v8552_v12, %v5916_v33  ;;  %v5915_v63 = vshrl.u32 %v5914_v56, 5  ;;  %v5921_v25 = vor.u32 %v5920_v52, %v5919_v41 }
 0x409   : > { %v2156_v34 = vsel %vm2149_vm1, %v2152_v47, %v2155_v50  ;;  %v5466_v4 = vxor.u32 2147483648, %v5465_v18  ;;  %v11240_v13 = vsub.s32 %v2634_v36, %v2637_v21  ;;  %v5928_v45 = vshll.u32 %v8553_v14, %v5916_v33 }
 0x40a   : > { %v2157_v2 = vsel %vm2146_vm0, nan, %v2156_v34  ;;  %v5929_v32 = vshrl.u32 %v8554_v16, %v5917_v11  ;;  %v5924_v26 = vor.u32 %v5923_v31, %v5922_v19  ;;  %v5927_v37 = vor.u32 %v5926_v29, %v5925_v1  ;;  %v639_v19 = vpop.f32.mrf.mxu1 }
 0x40b   : > { %7371 = vst [vmem:[%s9048_s11 + $0x68] sm:$0xff] %v2157_v2  ;;  %v5467_v38 = vsel %vm5384_vm12, %v5466_v4, %v5465_v18  ;;  %v2640_v27 = vsub.s32 0, %v11240_v13  ;;  %v5931_v43 = vshll.u32 %v8554_v16, %v5916_v33  ;;  %v5932_v57 = vshrl.u32 %v8555_v23, %v5917_v11 }
 0x40c   : > { %v5470_v62 = vsel %vm11208_vm15, %v10975_v28, %v5467_v38  ;;  %v5930_v59 = vor.u32 %v5929_v32, %v5928_v45  ;;  %v5950_v44 = vshll.u32 %v5910_v60, 8  ;;  %v2369_v56 = vand.u32 2139095040, %v11229_v54 }
 0x40d   : > { %8346 = vcosq.f32 %v5470_v62  ;;  %v7619_v8 = vmin.u32 %v2640_v27, %v11240_v13  ;;  %v5918_v22 = vshrl.u32 %v8550_v6, %v5917_v11  ;;  %v5933_v7 = vor.u32 %v5932_v57, %v5931_v43 }
 0x40e   : > { %8348 = vsinq.f32 %v5470_v62  ;;  %vm5934_vm4 = vcmp.lt.s32.totalorder %v5915_v63, 1  ;;  %vm5935_vm5 = vcmp.lt.s32.totalorder %v5915_v63, 2  ;;  %vm5936_vm6 = vcmp.lt.s32.totalorder %v5915_v63, 3 }
 0x40f   : > { %v2642_v48 = vclz %v7619_v8  ;;  %vm5937_vm7 = vcmp.lt.s32.totalorder %v5915_v63, 4  ;;  %v5942_v36 = vsel %vm5934_vm4, %v5921_v25, %v5924_v26  ;;  %v5946_v33 = vsel %vm5934_vm4, %v5924_v26, %v5927_v37 }
 0x410   : > { %v5939_v42 = vsel %vm5937_vm7, %v5927_v37, 2102212464  ;;  %v5943_v24 = vsel %vm5937_vm7, %v5930_v59, 920167782  ;;  %v5938_v3 = vsel %vm5934_vm4, %v5918_v22, %v5921_v25  ;;  %v5947_v30 = vsel %vm5937_vm7, %v5933_v7, 1326507024 }
 0x411   : > { %v7620_v40 = vadd.s32 4294967294, %v2642_v48  ;;  %v5944_v55 = vsel %vm5936_vm6, %v5927_v37, %v5943_v24  ;;  %v5940_v46 = vsel %vm5936_vm6, %v5924_v26, %v5939_v42  ;;  %v5948_v53 = vsel %vm5936_vm6, %v5930_v59, %v5947_v30 }
 0x412   : > { %v5945_v58 = vsel %vm5935_vm5, %v5942_v36, %v5944_v55  ;;  %v2370_v20 = vshrl.u32 %v2369_v56, 23  ;;  %v5949_v11 = vsel %vm5935_vm5, %v5946_v33, %v5948_v53  ;;  %v2630_v60 = vadd.s32 %v11187_v51, %v11193_v39 }
 0x413   : > { %vm7621_vm8 = vcmp.lt.s32.totalorder %v7620_v40, 0  ;;  %v11259_v9 = vmul.u32.u64.low %v5950_v44, %v5945_v58  ;;  %v11260_v50 = vmul.u32.u64.high %v5950_v44, %v5945_v58, %v11259_v9  ;;  %v5941_v34 = vsel %vm5935_vm5, %v5938_v3, %v5940_v46 }
 0x414   : > { %v2645_v52 = vsel %vm7621_vm8, 0, %v7620_v40  ;;  %v11265_v47 = vmul.u32.u64.low %v5950_v44, %v5949_v11  ;;  %v11266_v18 = vmul.u32.u64.high %v5950_v44, %v5949_v11, %v11265_v47  ;;  %v7610_v41 = vadd.s32 4294967169, %v2370_v20 }
 0x415   : > { %v2646_v21 = vsub.s32 32, %v2645_v52  ;;  %v2650_v31 = vsub.s32 4294967266, %v2645_v52  ;;  %v5476_v29 = vand.u32 3, %v11218_v5  ;;  %v2647_v2 = vshll.u32 %v11240_v13, %v2645_v52 }
 0x416   : > { %v2660_v4 = vsub.s32 4, %v11220_v61  ;;  %v2366_v1 = vand.u32 2147483647, %v11229_v54  ;;  %vm5474_vm9 = vweird.f32 %v10975_v28  ;;  %v5960_v25 = vadd.s32 1, %v11260_v50 }
 0x417   : > { %v2648_v51 = vshrl.u32 %v2630_v60, %v2646_v21  ;;  %v2651_v39 = vadd.s32 127, %v2650_v31  ;;  %v2376_v45 = vadd.s32 1, %v7610_v41  ;;  %vm2576_vm11 = vcmp.lt.s32.totalorder %v11055_v49, 0 }
 0x418   : > { %v5957_v63 = vmul.u32 %v5950_v44, %v5941_v34  ;;  %vm5959_vm10 = vc.u32 %v11266_v18, %v11259_v9  ;;  %v11279_v5 = vadd.f32 %v11226_v17, %v639_v19  ;;  %vm5481_vm13 = vcmp.eq.s32.totalorder %v5476_v29, 2 }
 0x419   : > { %v2649_v13 = vor.u32 %v2648_v51, %v2647_v2  ;;  %v2652_v32 = vshll.u32 %v2651_v39, 23  ;;  %v5961_v38 = vsel %vm5959_vm10, %v5960_v25, %v11260_v50  ;;  %vm2377_vm12 = vcmp.gt.s32.totalorder %v2376_v45, 0 }
 0x41a   : > { %v8347_v27 = vpop.eup %8346  ;;  %vm11284_vm14 = vcmp.le.f32.partialorder %v2574_v35, 0.7853982  ;;  %v5962_v37 = vadd.s32 %v5961_v38, %v5957_v63  ;;  %v2378_v62 = vsel %vm2377_vm12, %v2376_v45, 0  ;;  %v11291_v8 = vsel %vm2576_vm11, %v2660_v4, %v11220_v61 }
 0x41b   : > { %v8349_v59 = vpop.eup %8348  ;;  %v5482_v43 = vxor.u32 2147483648, %v8347_v27  ;;  %v2653_v57 = vor.u32 4788187, %v2652_v32  ;;  %v2373_v44 = vand.u32 8388607, %v2366_v1  ;;  %v2380_v7 = vand.u32 31, %v2378_v62 }
 0x41c   : > { %v5479_v56 = vxor.u32 2147483648, %v8349_v59  ;;  %v5963_v22 = vadd.s32 536870912, %v5962_v37  ;;  %v5697_v35 = vand.u32 2139095040, %v11279_v5  ;;  %vm5478_vm15 = vcmp.eq.s32.totalorder %v5476_v29, 0 }
 0x41d   : > { %v5483_v48 = vsel %vm5481_vm13, %v5482_v43, %v8349_v59  ;;  %v2654_v42 = vand.u32 2147483647, %v2653_v57  ;;  %v2656_v36 = vcvt.s32.f32 %v2649_v13  ;;  %vm5477_vm0 = vcmp.lt.s32.totalorder %v5476_v29, 2 }
 0x41e   : > { %v5480_v24 = vsel %vm5478_vm15, %v8347_v27, %v5479_v56  ;;  %v11296_v33 = vshrl.u32 %v5963_v22, 30  ;;  %v2381_v40 = vsub.s32 32, %v2380_v7  ;;  %v2663_v55 = vsel %vm11284_vm14, 0, %v11291_v8 }
 0x41f   : > { %v5484_v61 = vsel %vm5477_vm0, %v5480_v24, %v5483_v48  ;;  %v2657_v3 = vmul.f32 %v2656_v36, %v2654_v42  ;;  %v2374_v30 = vor.u32 8388608, %v2373_v44  ;;  %v2383_v53 = vshll.u32 %v8550_v6, %v2380_v7 }
 0x420   : > { %v5485_v46 = vsel %vm5474_vm9, nan, %v5484_v61  ;;  %v5965_v58 = vshll.u32 %v11296_v33, 30  ;;  %v5698_v20 = vshrl.u32 %v5697_v35, 23  ;;  %v2384_v50 = vshrl.u32 %v8551_v10, %v2381_v40 }
 0x421   : > { %7403 = vst [vmem:[%s9048_s11 + $0x168] sm:$0xff] %v5485_v46  ;;  %v2658_v11 = vxor.u32 2147483648, %v2657_v3  ;;  %v2387_v60 = vshrl.u32 %v8552_v12, %v2381_v40  ;;  %v2390_v52 = vshrl.u32 %v8553_v14, %v2381_v40  ;;  %v2386_v21 = vshll.u32 %v8551_v10, %v2380_v7 }
 0x422   : > { %v11309_v47 = vsub.s32 %v5962_v37, %v5965_v58  ;;  %v2389_v28 = vshll.u32 %v8552_v12, %v2380_v7  ;;  %v2393_v31 = vshrl.u32 %v8554_v16, %v2381_v40  ;;  %v2379_v41 = vshrl.u32 %v2378_v62, 5 }
 0x423   : > { %v2659_v34 = vsel %vm2576_vm11, %v2658_v11, %v2657_v3  ;;  %v2385_v19 = vor.u32 %v2384_v50, %v2383_v53  ;;  %v2392_v29 = vshll.u32 %v8553_v14, %v2380_v7  ;;  %v2388_v51 = vor.u32 %v2387_v60, %v2386_v21 }
 0x424   : > { %v2662_v2 = vsel %vm11284_vm14, %v11055_v49, %v2659_v34  ;;  %v5968_v4 = vsub.s32 0, %v11309_v47  ;;  %v2391_v39 = vor.u32 %v2390_v52, %v2389_v28  ;;  %vm5904_vm1 = vcmp.lt.s32.totalorder %v11127_v15, 0 }
 0x425   : > { %8350 = vcosq.f32 %v2662_v2  ;;  %v2394_v25 = vor.u32 %v2393_v31, %v2392_v29  ;;  %v2395_v45 = vshll.u32 %v8554_v16, %v2380_v7  ;;  %v2396_v63 = vshrl.u32 %v8555_v23, %v2381_v40 }
 0x426   : > { %8352 = vsinq.f32 %v2662_v2  ;;  %v7747_v13 = vmin.u32 %v5968_v4, %v11309_v47  ;;  %v2414_v32 = vshll.u32 %v2374_v30, 8  ;;  %v7738_v38 = vadd.s32 4294967169, %v5698_v20 }
 0x427   : > { %v2382_v27 = vshrl.u32 %v8550_v6, %v2381_v40  ;;  %v2397_v26 = vor.u32 %v2396_v63, %v2395_v45  ;;  %vm2398_vm2 = vcmp.lt.s32.totalorder %v2379_v41, 1  ;;  %vm2399_vm3 = vcmp.lt.s32.totalorder %v2379_v41, 2  ;;  %v7869_v63 = vpop.f32.mrf.mxu0 }
 0x428   : > { %v5970_v37 = vclz %v7747_v13  ;;  %vm2400_vm4 = vcmp.lt.s32.totalorder %v2379_v41, 3  ;;  %vm2401_vm5 = vcmp.lt.s32.totalorder %v2379_v41, 4  ;;  %v2406_v62 = vsel %vm2398_vm2, %v2385_v19, %v2388_v51 }
 0x429   : > { %v2403_v59 = vsel %vm2401_vm5, %v2391_v39, 2102212464  ;;  %v2407_v43 = vsel %vm2401_vm5, %v2394_v25, 920167782  ;;  %v2410_v57 = vsel %vm2398_vm2, %v2388_v51, %v2391_v39  ;;  %v2411_v8 = vsel %vm2401_vm5, %v2397_v26, 1326507024 }
 0x42a   : > { %v7748_v44 = vadd.s32 4294967294, %v5970_v37  ;;  %v5988_v56 = vsub.s32 4, %v11296_v33  ;;  %v2408_v22 = vsel %vm2400_vm4, %v2391_v39, %v2407_v43  ;;  %v2412_v7 = vsel %vm2400_vm4, %v2394_v25, %v2411_v8 }
 0x42b   : > { %v2667_v35 = vadd.s32 3, %v2663_v55  ;;  %v2402_v48 = vsel %vm2398_vm2, %v2382_v27, %v2385_v19  ;;  %v2409_v42 = vsel %vm2399_vm3, %v2406_v62, %v2408_v22  ;;  %v2413_v36 = vsel %vm2399_vm3, %v2410_v57, %v2412_v7 }
 0x42c   : > { %vm7749_vm6 = vcmp.lt.s32.totalorder %v7748_v44, 0  ;;  %v2404_v24 = vsel %vm2400_vm4, %v2388_v51, %v2403_v59  ;;  %v11332_v40 = vmul.u32.u64.low %v2414_v32, %v2413_v36  ;;  %v11333_v61 = vmul.u32.u64.high %v2414_v32, %v2413_v36, %v11332_v40 }
 0x42d   : > { %v5973_v3 = vsel %vm7749_vm6, 0, %v7748_v44  ;;  %v11335_v30 = vmul.u32.u64.low %v2414_v32, %v2409_v42  ;;  %v11336_v46 = vmul.u32.u64.high %v2414_v32, %v2409_v42, %v11335_v30  ;;  %v5704_v58 = vadd.s32 1, %v7738_v38 }
 0x42e   : > { %v5958_v55 = vadd.s32 %v11259_v9, %v11266_v18  ;;  %v5974_v53 = vsub.s32 32, %v5973_v3  ;;  %v5978_v20 = vsub.s32 4294967266, %v5973_v3  ;;  %v5989_v11 = vsel %vm5904_vm1, %v5988_v56, %v11296_v33 }
 0x42f   : > { %vm2666_vm7 = vweird.f32 %v11055_v49  ;;  %v2668_v50 = vand.u32 3, %v2667_v35  ;;  %vm11347_vm8 = vcmp.le.f32.partialorder %v5902_v0, 0.7853982  ;;  %v2405_v52 = vsel %vm2399_vm3, %v2402_v48, %v2404_v24 }
 0x430   : > { %vm5705_vm9 = vcmp.gt.s32.totalorder %v5704_v58, 0  ;;  %v5975_v9 = vshll.u32 %v11309_v47, %v5973_v3  ;;  %v5976_v18 = vshrl.u32 %v5958_v55, %v5974_v53  ;;  %v5979_v21 = vadd.s32 127, %v5978_v20 }
 0x431   : > { %vm2423_vm11 = vc.u32 %v11333_v61, %v11335_v30  ;;  %v5991_v33 = vsel %vm11347_vm8, 0, %v5989_v11  ;;  %v2424_v28 = vadd.s32 1, %v11336_v46  ;;  %v5694_v0 = vand.u32 2147483647, %v11279_v5 }
 0x432   : > { %v5706_v31 = vsel %vm5705_vm9, %v5704_v58, 0  ;;  %v8351_v34 = vpop.eup %8350  ;;  %v5977_v19 = vor.u32 %v5976_v18, %v5975_v9  ;;  %v5980_v41 = vshll.u32 %v5979_v21, 23  ;;  %v2421_v29 = vmul.u32 %v2414_v32, %v2405_v52 }
 0x433   : > { %v5708_v2 = vand.u32 31, %v5706_v31  ;;  %v8353_v4 = vpop.eup %8352  ;;  %vm2669_vm10 = vcmp.lt.s32.totalorder %v2668_v50, 2  ;;  %vm2670_vm12 = vcmp.eq.s32.totalorder %v2668_v50, 0  ;;  %v2674_v47 = vxor.u32 2147483648, %v8351_v34 }
 0x434   : > { %v2425_v51 = vsel %vm2423_vm11, %v2424_v28, %v11336_v46  ;;  %v2671_v39 = vxor.u32 2147483648, %v8353_v4  ;;  %vm2673_vm13 = vcmp.eq.s32.totalorder %v2668_v50, 2  ;;  %v5981_v25 = vor.u32 4788187, %v5980_v41 }
 0x435   : > { %v2426_v45 = vadd.s32 %v2425_v51, %v2421_v29  ;;  %v2675_v13 = vsel %vm2673_vm13, %v2674_v47, %v8353_v4  ;;  %v5995_v38 = vadd.s32 3, %v5991_v33  ;;  %v5701_v27 = vand.u32 8388607, %v5694_v0 }
 0x436   : > { %v5709_v26 = vsub.s32 32, %v5708_v2  ;;  %v2672_v32 = vsel %vm2670_vm12, %v8351_v34, %v2671_v39  ;;  %v5982_v37 = vand.u32 2147483647, %v5981_v25  ;;  %v5984_v62 = vcvt.s32.f32 %v5977_v19 }
 0x437   : > { %v2427_v59 = vadd.s32 536870912, %v2426_v45  ;;  %v2676_v43 = vsel %vm2669_vm10, %v2672_v32, %v2675_v13  ;;  %v11366_v44 = vadd.f32 %v11226_v17, %v7869_v63  ;;  %v5707_v48 = vshrl.u32 %v5706_v31, 5  ;;  %v7901_v32 = vpop.f32.mrf.mxu1 }
 0x438   : > { %v5712_v57 = vshrl.u32 %v8551_v10, %v5709_v26  ;;  %v5715_v8 = vshrl.u32 %v8552_v12, %v5709_v26  ;;  %v2677_v56 = vsel %vm2666_vm7, nan, %v2676_v43  ;;  %v5985_v22 = vmul.f32 %v5984_v62, %v5982_v37 }
 0x439   : > { %v11370_v7 = vshrl.u32 %v2427_v59, 30  ;;  %v5718_v35 = vshrl.u32 %v8553_v14, %v5709_v26  ;;  %7376 = vst [vmem:[%s9048_s11 + $0x90] sm:$0xff] %v2677_v56  ;;  %v5711_v42 = vshll.u32 %v8550_v6, %v5708_v2  ;;  %v5714_v36 = vshll.u32 %v8551_v10, %v5708_v2 }
 0x43a   : > { %v5721_v24 = vshrl.u32 %v8554_v16, %v5709_v26  ;;  %v5986_v40 = vxor.u32 2147483648, %v5985_v22  ;;  %v5717_v46 = vshll.u32 %v8552_v12, %v5708_v2  ;;  %v5720_v49 = vshll.u32 %v8553_v14, %v5708_v2 }
 0x43b   : > { %v2429_v3 = vshll.u32 %v11370_v7, 30  ;;  %v5713_v58 = vor.u32 %v5712_v57, %v5711_v42  ;;  %v5716_v55 = vor.u32 %v5715_v8, %v5714_v36  ;;  %v5723_v53 = vshll.u32 %v8554_v16, %v5708_v2 }
 0x43c   : > { %v5724_v20 = vshrl.u32 %v8555_v23, %v5709_v26  ;;  %v5987_v11 = vsel %vm5904_vm1, %v5986_v40, %v5985_v22  ;;  %v5719_v52 = vor.u32 %v5718_v35, %v5717_v46  ;;  %v5722_v9 = vor.u32 %v5721_v24, %v5720_v49 }
 0x43d   : > { %v11384_v50 = vsub.s32 %v2426_v45, %v2429_v3  ;;  %v5990_v18 = vsel %vm11347_vm8, %v11127_v15, %v5987_v11  ;;  %v11389_v21 = vand.u32 3, %v5995_v38  ;;  %v5702_v33 = vor.u32 8388608, %v5701_v27 }
 0x43e   : > { %v5725_v28 = vor.u32 %v5724_v20, %v5723_v53  ;;  %8354 = vcosq.f32 %v5990_v18  ;;  %v5710_v34 = vshrl.u32 %v8550_v6, %v5709_v26  ;;  %v2681_v19 = vand.u32 2139095040, %v11366_v44 }
 0x43f   : > { %v2432_v31 = vsub.s32 0, %v11384_v50  ;;  %8356 = vsinq.f32 %v5990_v18  ;;  %vm5726_vm14 = vcmp.lt.s32.totalorder %v5707_v48, 1  ;;  %vm5728_vm15 = vcmp.lt.s32.totalorder %v5707_v48, 3 }
 0x440   : > { %vm5729_vm0 = vcmp.lt.s32.totalorder %v5707_v48, 4  ;;  %v5734_v60 = vsel %vm5726_vm14, %v5713_v58, %v5716_v55  ;;  %v5738_v47 = vsel %vm5726_vm14, %v5716_v55, %v5719_v52  ;;  %v5742_v39 = vshll.u32 %v5702_v33, 8 }
 0x441   : > { %v7611_v41 = vmin.u32 %v2432_v31, %v11384_v50  ;;  %v5731_v29 = vsel %vm5729_vm0, %v5719_v52, 2102212464  ;;  %v5735_v2 = vsel %vm5729_vm0, %v5722_v9, 920167782  ;;  %v5739_v51 = vsel %vm5729_vm0, %v5725_v28, 1326507024 }
 0x442   : > { %v5736_v4 = vsel %vm5728_vm15, %v5719_v52, %v5735_v2  ;;  %v2452_v45 = vsub.s32 4, %v11370_v7  ;;  %vm5727_vm1 = vcmp.lt.s32.totalorder %v5707_v48, 2  ;;  %v5730_v63 = vsel %vm5726_vm14, %v5710_v34, %v5713_v58 }
 0x443   : > { %v2434_v25 = vclz %v7611_v41  ;;  %v5732_v13 = vsel %vm5728_vm15, %v5716_v55, %v5731_v29  ;;  %v5737_v38 = vsel %vm5727_vm1, %v5734_v60, %v5736_v4  ;;  %v5740_v27 = vsel %vm5728_vm15, %v5722_v9, %v5739_v51 }
 0x444   : > { %v2682_v26 = vshrl.u32 %v2681_v19, 23  ;;  %v5741_v62 = vsel %vm5727_vm1, %v5738_v47, %v5740_v27  ;;  %v11399_v59 = vmul.u32.u64.low %v5742_v39, %v5737_v38  ;;  %v11400_v43 = vmul.u32.u64.high %v5742_v39, %v5737_v38, %v11399_v59 }
 0x445   : > { %v7612_v37 = vadd.s32 4294967294, %v2434_v25  ;;  %vm2368_vm2 = vcmp.lt.s32.totalorder %v11229_v54, 0  ;;  %v11403_v57 = vmul.u32.u64.low %v5742_v39, %v5741_v62  ;;  %v11404_v8 = vmul.u32.u64.high %v5742_v39, %v5741_v62, %v11403_v57 }
 0x446   : > { %v7622_v56 = vadd.s32 4294967169, %v2682_v26  ;;  %vm11408_vm3 = vcmp.le.f32.partialorder %v2366_v1, 0.7853982  ;;  %v5733_v35 = vsel %vm5727_vm1, %v5730_v63, %v5732_v13  ;;  %v11413_v48 = vadd.f32 %v11226_v17, %v7901_v32 }
 0x447   : > { %vm7613_vm4 = vcmp.lt.s32.totalorder %v7612_v37, 0  ;;  %vm5997_vm5 = vcmp.lt.s32.totalorder %v11389_v21, 2  ;;  %v2422_v42 = vadd.s32 %v11335_v30, %v11333_v61  ;;  %v2678_v24 = vand.u32 2147483647, %v11366_v44 }
 0x448   : > { %v2437_v36 = vsel %vm7613_vm4, 0, %v7612_v37  ;;  %v2688_v40 = vadd.s32 1, %v7622_v56  ;;  %vm5994_vm6 = vweird.f32 %v11127_v15  ;;  %v2453_v46 = vsel %vm2368_vm2, %v2452_v45, %v11370_v7 }
 0x449   : > { %v2438_v1 = vsub.s32 32, %v2437_v36  ;;  %v2442_v3 = vsub.s32 4294967266, %v2437_v36  ;;  %v5752_v49 = vadd.s32 1, %v11400_v43  ;;  %v2439_v58 = vshll.u32 %v11384_v50, %v2437_v36 }
 0x44a   : > { %v5749_v55 = vmul.u32 %v5742_v39, %v5733_v35  ;;  %vm5751_vm7 = vc.u32 %v11404_v8, %v11399_v59  ;;  %vm2689_vm8 = vcmp.gt.s32.totalorder %v2688_v40, 0  ;;  %v2455_v52 = vsel %vm11408_vm3, 0, %v2453_v46 }
 0x44b   : > { %v2440_v61 = vshrl.u32 %v2422_v42, %v2438_v1  ;;  %v2443_v30 = vadd.s32 127, %v2442_v3  ;;  %v5753_v53 = vsel %vm5751_vm7, %v5752_v49, %v11400_v43  ;;  %v2690_v20 = vsel %vm2689_vm8, %v2688_v40, 0  ;;  %v8355_v11 = vpop.eup %8354 }
 0x44c   : > { %v5754_v9 = vadd.s32 %v5753_v53, %v5749_v55  ;;  %v2685_v7 = vand.u32 8388607, %v2678_v24  ;;  %v2692_v18 = vand.u32 31, %v2690_v20  ;;  %v8357_v33 = vpop.eup %8356  ;;  %vm5998_vm9 = vcmp.eq.s32.totalorder %v11389_v21, 0 }
 0x44d   : > { %v6002_v50 = vxor.u32 2147483648, %v8355_v11  ;;  %v2441_v28 = vor.u32 %v2440_v61, %v2439_v58  ;;  %v2444_v31 = vshll.u32 %v2443_v30, 23  ;;  %v5999_v34 = vxor.u32 2147483648, %v8357_v33 }
 0x44e   : > { %vm6001_vm11 = vcmp.eq.s32.totalorder %v11389_v21, 2  ;;  %v5755_v19 = vadd.s32 536870912, %v5754_v9  ;;  %v2693_v41 = vsub.s32 32, %v2692_v18  ;;  %v11433_v2 = vadd.s32 3, %v2455_v52 }
 0x44f   : > { %v6003_v29 = vsel %vm6001_vm11, %v6002_v50, %v8357_v33  ;;  %v2445_v60 = vor.u32 4788187, %v2444_v31  ;;  %v6006_v4 = vand.u32 2147483647, %v11413_v48  ;;  %v6000_v47 = vsel %vm5998_vm9, %v8355_v11, %v5999_v34 }
 0x450   : > { %v5756_v51 = vshrl.u32 %v5755_v19, 30  ;;  %v2686_v39 = vor.u32 8388608, %v2685_v7  ;;  %v6009_v25 = vand.u32 2139095040, %v11413_v48  ;;  %v6004_v45 = vsel %vm5997_vm5, %v6000_v47, %v6003_v29 }
 0x451   : > { %v2446_v63 = vand.u32 2147483647, %v2445_v60  ;;  %v2448_v13 = vcvt.s32.f32 %v2441_v28  ;;  %v2696_v38 = vshrl.u32 %v8551_v10, %v2693_v41  ;;  %v6005_v27 = vsel %vm5994_vm6, nan, %v6004_v45 }
 0x452   : > { %v11443_v26 = vadd.s32 %v11399_v59, %v11404_v8  ;;  %v5757_v32 = vshll.u32 %v5756_v51, 30  ;;  %v2699_v37 = vshrl.u32 %v8552_v12, %v2693_v41  ;;  %7408 = vst [vmem:[%s9048_s11 + $0x190] sm:$0xff] %v6005_v27  ;;  %v2691_v43 = vshrl.u32 %v2690_v20, 5 }
 0x453   : > { %v2449_v62 = vmul.f32 %v2448_v13, %v2446_v63  ;;  %v2695_v57 = vshll.u32 %v8550_v6, %v2692_v18  ;;  %v2702_v21 = vshrl.u32 %v8553_v14, %v2693_v41  ;;  %v2698_v35 = vshll.u32 %v8551_v10, %v2692_v18 }
 0x454   : > { %v11449_v56 = vsub.s32 %v5754_v9, %v5757_v32  ;;  %v2701_v15 = vshll.u32 %v8552_v12, %v2692_v18  ;;  %v2705_v42 = vshrl.u32 %v8554_v16, %v2693_v41  ;;  %v2704_v36 = vshll.u32 %v8553_v14, %v2692_v18 }
 0x455   : > { %v2450_v59 = vxor.u32 2147483648, %v2449_v62  ;;  %v2697_v8 = vor.u32 %v2696_v38, %v2695_v57  ;;  %v2708_v40 = vshrl.u32 %v8555_v23, %v2693_v41  ;;  %vm5696_vm10 = vcmp.lt.s32.totalorder %v11279_v5, 0 }
 0x456   : > { %v5760_v1 = vsub.s32 0, %v11449_v56  ;;  %v2700_v3 = vor.u32 %v2699_v37, %v2698_v35  ;;  %v2703_v46 = vor.u32 %v2702_v21, %v2701_v15  ;;  %v2707_v49 = vshll.u32 %v8554_v16, %v2692_v18 }
 0x457   : > { %v2451_v58 = vsel %vm2368_vm2, %v2450_v59, %v2449_v62  ;;  %v2706_v55 = vor.u32 %v2705_v42, %v2704_v36  ;;  %v2726_v61 = vshll.u32 %v2686_v39, 8  ;;  %v6010_v30 = vshrl.u32 %v6009_v25, 23 }
 0x458   : > { %v2454_v53 = vsel %vm11408_vm3, %v11229_v54, %v2451_v58  ;;  %v7739_v20 = vmin.u32 %v5760_v1, %v11449_v56  ;;  %v2694_v11 = vshrl.u32 %v8550_v6, %v2693_v41  ;;  %v2709_v52 = vor.u32 %v2708_v40, %v2707_v49 }
 0x459   : > { %8358 = vcosq.f32 %v2454_v53  ;;  %v5780_v9 = vsub.s32 4, %v5756_v51  ;;  %vm2710_vm12 = vcmp.lt.s32.totalorder %v2691_v43, 1  ;;  %vm2713_vm13 = vcmp.lt.s32.totalorder %v2691_v43, 4 }
 0x45a   : > { %8360 = vsinq.f32 %v2454_v53  ;;  %v5762_v7 = vclz %v7739_v20  ;;  %v2715_v18 = vsel %vm2713_vm13, %v2703_v46, 2102212464  ;;  %v2718_v33 = vsel %vm2710_vm12, %v2697_v8, %v2700_v3 }
 0x45b   : > { %vm2711_vm14 = vcmp.lt.s32.totalorder %v2691_v43, 2  ;;  %vm2712_vm15 = vcmp.lt.s32.totalorder %v2691_v43, 3  ;;  %v2719_v50 = vsel %vm2713_vm13, %v2706_v55, 920167782  ;;  %v2722_v28 = vsel %vm2710_vm12, %v2700_v3, %v2703_v46 }
 0x45c   : > { %v7740_v31 = vadd.s32 4294967294, %v5762_v7  ;;  %v2714_v22 = vsel %vm2710_vm12, %v2694_v11, %v2697_v8  ;;  %v2720_v34 = vsel %vm2712_vm15, %v2703_v46, %v2719_v50  ;;  %v2723_v19 = vsel %vm2713_vm13, %v2709_v52, 1326507024 }
 0x45d   : > { %v2716_v29 = vsel %vm2712_vm15, %v2700_v3, %v2715_v18  ;;  %v2721_v41 = vsel %vm2711_vm14, %v2718_v33, %v2720_v34  ;;  %v2724_v60 = vsel %vm2712_vm15, %v2706_v55, %v2723_v19  ;;  %v7750_v47 = vadd.s32 4294967169, %v6010_v30 }
 0x45e   : > { %vm7741_vm0 = vcmp.lt.s32.totalorder %v7740_v31, 0  ;;  %v2725_v39 = vsel %vm2711_vm14, %v2722_v28, %v2724_v60  ;;  %v11468_v25 = vmul.u32.u64.low %v2726_v61, %v2721_v41  ;;  %v11469_v45 = vmul.u32.u64.high %v2726_v61, %v2721_v41, %v11468_v25 }
 0x45f   : > { %v5765_v63 = vsel %vm7741_vm0, 0, %v7740_v31  ;;  %v5781_v13 = vsel %vm5696_vm10, %v5780_v9, %v5756_v51  ;;  %v11474_v38 = vmul.u32.u64.low %v2726_v61, %v2725_v39  ;;  %v11475_v27 = vmul.u32.u64.high %v2726_v61, %v2725_v39, %v11474_v38 }
 0x460   : > { %v5766_v32 = vsub.s32 32, %v5765_v63  ;;  %v5770_v37 = vsub.s32 4294967266, %v5765_v63  ;;  %v2717_v62 = vsel %vm2711_vm14, %v2714_v22, %v2716_v29  ;;  %v6016_v57 = vadd.s32 1, %v7750_v47 }
 0x461   : > { %v2460_v21 = vand.u32 3, %v11433_v2  ;;  %vm11481_vm1 = vcmp.le.f32.partialorder %v5694_v0, 0.7853982  ;;  %v5767_v15 = vshll.u32 %v11449_v56, %v5765_v63  ;;  %v2736_v59 = vadd.s32 1, %v11469_v45  ;;  %v514_v63 = vpop.f32.mrf.mxu0 }
 0x462   : > { %v5768_v51 = vshrl.u32 %v11443_v26, %v5766_v32  ;;  %v5771_v42 = vadd.s32 127, %v5770_v37  ;;  %vm6017_vm2 = vcmp.gt.s32.totalorder %v6016_v57, 0  ;;  %v5783_v43 = vsel %vm11481_vm1, 0, %v5781_v13 }
 0x463   : > { %v2733_v8 = vmul.u32 %v2726_v61, %v2717_v62  ;;  %vm2735_vm3 = vc.u32 %v11475_v27, %v11468_v25  ;;  %v6018_v2 = vsel %vm6017_vm2, %v6016_v57, 0  ;;  %v6013_v56 = vand.u32 8388607, %v6006_v4 }
 0x464   : > { %v5769_v0 = vor.u32 %v5768_v51, %v5767_v15  ;;  %v5772_v36 = vshll.u32 %v5771_v42, 23  ;;  %v2737_v40 = vsel %vm2735_vm3, %v2736_v59, %v11469_v45  ;;  %vm2458_vm4 = vweird.f32 %v11229_v54 }
 0x465   : > { %v2738_v26 = vadd.s32 %v2737_v40, %v2733_v8  ;;  %v6020_v1 = vand.u32 31, %v6018_v2  ;;  %vm2461_vm5 = vcmp.lt.s32.totalorder %v2460_v21, 2  ;;  %vm2462_vm6 = vcmp.eq.s32.totalorder %v2460_v21, 0 }
 0x466   : > { %v8359_v3 = vpop.eup %8358  ;;  %vm2465_vm7 = vcmp.eq.s32.totalorder %v2460_v21, 2  ;;  %v5773_v46 = vor.u32 4788187, %v5772_v36  ;;  %v11496_v55 = vadd.s32 3, %v5783_v43  ;;  %v5776_v11 = vcvt.s32.f32 %v5769_v0 }
 0x467   : > { %v8361_v49 = vpop.eup %8360  ;;  %v2466_v58 = vxor.u32 2147483648, %v8359_v3  ;;  %v2739_v61 = vadd.s32 536870912, %v2738_v26  ;;  %v6021_v30 = vsub.s32 32, %v6020_v1  ;;  %v6014_v52 = vor.u32 8388608, %v6013_v56 }
 0x468   : > { %v2463_v53 = vxor.u32 2147483648, %v8361_v49  ;;  %v5774_v20 = vand.u32 2147483647, %v5773_v46  ;;  %v6023_v18 = vshll.u32 %v8550_v6, %v6020_v1  ;;  %v6019_v29 = vshrl.u32 %v6018_v2, 5 }
 0x469   : > { %v2467_v9 = vsel %vm2465_vm7, %v2466_v58, %v8361_v49  ;;  %v2740_v7 = vshrl.u32 %v2739_v61, 30  ;;  %v6024_v33 = vshrl.u32 %v8551_v10, %v6021_v30  ;;  %v6027_v31 = vshrl.u32 %v8552_v12, %v6021_v30 }
 0x46a   : > { %v2464_v50 = vsel %vm2462_vm6, %v8359_v3, %v2463_v53  ;;  %v5777_v28 = vmul.f32 %v5776_v11, %v5774_v20  ;;  %v6030_v22 = vshrl.u32 %v8553_v14, %v6021_v30  ;;  %v6026_v41 = vshll.u32 %v8551_v10, %v6020_v1  ;;  %v642_v11 = vpop.f32.mrf.mxu1 }
 0x46b   : > { %v2468_v34 = vsel %vm2461_vm5, %v2464_v50, %v2467_v9  ;;  %v2741_v19 = vshll.u32 %v2740_v7, 30  ;;  %vm2680_vm8 = vcmp.lt.s32.totalorder %v11366_v44, 0  ;;  %v6025_v39 = vor.u32 %v6024_v33, %v6023_v18 }
 0x46c   : > { %v2469_v60 = vsel %vm2458_vm4, nan, %v2468_v34  ;;  %v5778_v47 = vxor.u32 2147483648, %v5777_v28  ;;  %v6029_v45 = vshll.u32 %v8552_v12, %v6020_v1  ;;  %v6028_v38 = vor.u32 %v6027_v31, %v6026_v41 }
 0x46d   : > { %7374 = vst [vmem:[%s9048_s11 + $0x80] sm:$0xff] %v2469_v60  ;;  %v11510_v13 = vsub.s32 %v2738_v26, %v2741_v19  ;;  %v6032_v32 = vshll.u32 %v8553_v14, %v6020_v1  ;;  %v6033_v37 = vshrl.u32 %v8554_v16, %v6021_v30  ;;  %v6035_v57 = vshll.u32 %v8554_v16, %v6020_v1 }
 0x46e   : > { %v5779_v62 = vsel %vm5696_vm10, %v5778_v47, %v5777_v28  ;;  %v6031_v54 = vor.u32 %v6030_v22, %v6029_v45  ;;  %v6036_v21 = vshrl.u32 %v8555_v23, %v6021_v30  ;;  %v11523_v59 = vadd.f32 %v11226_v17, %v514_v63 }
 0x46f   : > { %v5782_v15 = vsel %vm11481_vm1, %v11279_v5, %v5779_v62  ;;  %v2744_v51 = vsub.s32 0, %v11510_v13  ;;  %v6034_v42 = vor.u32 %v6033_v37, %v6032_v32  ;;  %v6022_v43 = vshrl.u32 %v8550_v6, %v6021_v30 }
 0x470   : > { %8362 = vcosq.f32 %v5782_v15  ;;  %v6037_v8 = vor.u32 %v6036_v21, %v6035_v57  ;;  %vm6038_vm9 = vcmp.lt.s32.totalorder %v6019_v29, 1  ;;  %v2764_v0 = vsub.s32 4, %v2740_v7 }
 0x471   : > { %8364 = vsinq.f32 %v5782_v15  ;;  %v7623_v2 = vmin.u32 %v2744_v51, %v11510_v13  ;;  %vm6041_vm11 = vcmp.lt.s32.totalorder %v6019_v29, 4  ;;  %v6046_v40 = vsel %vm6038_vm9, %v6025_v39, %v6028_v38 }
 0x472   : > { %v6043_v36 = vsel %vm6041_vm11, %v6031_v54, 2102212464  ;;  %v6047_v35 = vsel %vm6041_vm11, %v6034_v42, 920167782  ;;  %v6054_v56 = vshll.u32 %v6014_v52, 8  ;;  %vm6040_vm10 = vcmp.lt.s32.totalorder %v6019_v29, 3 }
 0x473   : > { %v2746_v26 = vclz %v7623_v2  ;;  %v6042_v1 = vsel %vm6038_vm9, %v6022_v43, %v6025_v39  ;;  %v6050_v3 = vsel %vm6038_vm9, %v6028_v38, %v6031_v54  ;;  %vm6039_vm12 = vcmp.lt.s32.totalorder %v6019_v29, 2 }
 0x474   : > { %v6044_v46 = vsel %vm6040_vm10, %v6028_v38, %v6043_v36  ;;  %v6048_v49 = vsel %vm6040_vm10, %v6031_v54, %v6047_v35  ;;  %v6051_v58 = vsel %vm6041_vm11, %v6037_v8, 1326507024  ;;  %v2765_v30 = vsel %vm2680_vm8, %v2764_v0, %v2740_v7 }
 0x475   : > { %v7624_v61 = vadd.s32 4294967294, %v2746_v26  ;;  %v6049_v53 = vsel %vm6039_vm12, %v6046_v40, %v6048_v49  ;;  %v6052_v20 = vsel %vm6040_vm10, %v6034_v42, %v6051_v58  ;;  %v6045_v9 = vsel %vm6039_vm12, %v6042_v1, %v6044_v46 }
 0x476   : > { %v6053_v18 = vsel %vm6039_vm12, %v6050_v3, %v6052_v20  ;;  %v11529_v33 = vmul.u32.u64.low %v6054_v56, %v6049_v53  ;;  %v11530_v50 = vmul.u32.u64.high %v6054_v56, %v6049_v53, %v11529_v33  ;;  %v2473_v31 = vand.u32 2139095040, %v11523_v59 }
 0x477   : > { %vm7625_vm13 = vcmp.lt.s32.totalorder %v7624_v61, 0  ;;  %v11533_v52 = vmul.u32.u64.low %v6054_v56, %v6053_v18  ;;  %v11534_v28 = vmul.u32.u64.high %v6054_v56, %v6053_v18, %v11533_v52  ;;  %v5788_v22 = vand.u32 3, %v11496_v55 }
 0x478   : > { %vm11540_vm14 = vcmp.le.f32.partialorder %v2678_v24, 0.7853982  ;;  %v2749_v34 = vsel %vm7625_vm13, 0, %v7624_v61  ;;  %v11545_v19 = vadd.f32 %v11226_v17, %v642_v11  ;;  %v2734_v29 = vadd.s32 %v11468_v25, %v11475_v27 }
 0x479   : > { %v2750_v41 = vsub.s32 32, %v2749_v34  ;;  %v2754_v60 = vsub.s32 4294967266, %v2749_v34  ;;  %v2474_v47 = vshrl.u32 %v2473_v31, 23  ;;  %v2767_v39 = vsel %vm11540_vm14, 0, %v2765_v30 }
 0x47a   : > { %v6061_v55 = vmul.u32 %v6054_v56, %v6045_v9  ;;  %v6064_v45 = vadd.s32 1, %v11530_v50  ;;  %v2470_v24 = vand.u32 2147483647, %v11523_v59  ;;  %v2751_v63 = vshll.u32 %v11510_v13, %v2749_v34 }
 0x47b   : > { %v2752_v38 = vshrl.u32 %v2734_v29, %v2750_v41  ;;  %v2755_v32 = vadd.s32 127, %v2754_v60  ;;  %vm6063_vm15 = vc.u32 %v11534_v28, %v11529_v33  ;;  %vm5789_vm0 = vcmp.lt.s32.totalorder %v5788_v22, 2 }
 0x47c   : > { %v6065_v17 = vsel %vm6063_vm15, %v6064_v45, %v11530_v50  ;;  %v7614_v25 = vadd.s32 4294967169, %v2474_v47  ;;  %v5801_v27 = vand.u32 2139095040, %v11545_v19  ;;  %vm5790_vm1 = vcmp.eq.s32.totalorder %v5788_v22, 0 }
 0x47d   : > { %v8363_v37 = vpop.eup %8362  ;;  %v2753_v62 = vor.u32 %v2752_v38, %v2751_v63  ;;  %v2756_v54 = vshll.u32 %v2755_v32, 23  ;;  %v6066_v57 = vadd.s32 %v6065_v17, %v6061_v55  ;;  %vm5793_vm2 = vcmp.eq.s32.totalorder %v5788_v22, 2 }
 0x47e   : > { %v8365_v21 = vpop.eup %8364  ;;  %v5794_v15 = vxor.u32 2147483648, %v8363_v37  ;;  %v2771_v13 = vadd.s32 3, %v2767_v39  ;;  %v2480_v51 = vadd.s32 1, %v7614_v25  ;;  %v2477_v2 = vand.u32 8388607, %v2470_v24 }
 0x47f   : > { %v5791_v42 = vxor.u32 2147483648, %v8365_v21  ;;  %v2757_v43 = vor.u32 4788187, %v2756_v54  ;;  %v6067_v8 = vadd.s32 536870912, %v6066_v57  ;;  %v2760_v36 = vcvt.s32.f32 %v2753_v62 }
 0x480   : > { %v5795_v0 = vsel %vm5793_vm2, %v5794_v15, %v8365_v21  ;;  %vm2481_vm3 = vcmp.gt.s32.totalorder %v2480_v51, 0  ;;  %v5802_v40 = vshrl.u32 %v5801_v27, 23  ;;  %vm5786_vm4 = vweird.f32 %v11279_v5 }
 0x481   : > { %v5792_v35 = vsel %vm5790_vm1, %v8363_v37, %v5791_v42  ;;  %v2758_v56 = vand.u32 2147483647, %v2757_v43  ;;  %v6068_v26 = vshrl.u32 %v6067_v8, 30  ;;  %v2482_v1 = vsel %vm2481_vm3, %v2480_v51, 0 }
 0x482   : > { %v5796_v3 = vsel %vm5789_vm0, %v5792_v35, %v5795_v0  ;;  %v2484_v46 = vand.u32 31, %v2482_v1  ;;  %v11563_v61 = vand.u32 3, %v2771_v13  ;;  %vm6008_vm5 = vcmp.lt.s32.totalorder %v11413_v48, 0 }
 0x483   : > { %v5797_v49 = vsel %vm5786_vm4, nan, %v5796_v3  ;;  %v2761_v58 = vmul.f32 %v2760_v36, %v2758_v56  ;;  %v6069_v30 = vshll.u32 %v6068_v26, 30  ;;  %v2478_v53 = vor.u32 8388608, %v2477_v2 }
 0x484   : > { %7406 = vst [vmem:[%s9048_s11 + $0x180] sm:$0xff] %v5797_v49  ;;  %v2485_v20 = vsub.s32 32, %v2484_v46  ;;  %v5798_v11 = vand.u32 2147483647, %v11545_v19  ;;  %v7742_v9 = vadd.s32 4294967169, %v5802_v40  ;;  %v6092_v5 = vsub.s32 4, %v6068_v26 }
 0x485   : > { %v2762_v18 = vxor.u32 2147483648, %v2761_v58  ;;  %v11568_v50 = vsub.s32 %v6066_v57, %v6069_v30  ;;  %v2483_v52 = vshrl.u32 %v2482_v1, 5  ;;  %v2487_v31 = vshll.u32 %v8550_v6, %v2484_v46 }
 0x486   : > { %v2488_v22 = vshrl.u32 %v8551_v10, %v2485_v20  ;;  %v2490_v34 = vshll.u32 %v8551_v10, %v2484_v46  ;;  %v2491_v29 = vshrl.u32 %v8552_v12, %v2485_v20  ;;  %vm11578_vm6 = vcmp.le.f32.partialorder %v6006_v4, 0.7853982 }
 0x487   : > { %v2763_v41 = vsel %vm2680_vm8, %v2762_v18, %v2761_v58  ;;  %v6072_v47 = vsub.s32 0, %v11568_v50  ;;  %v2493_v39 = vshll.u32 %v8552_v12, %v2484_v46  ;;  %v2494_v55 = vshrl.u32 %v8553_v14, %v2485_v20 }
 0x488   : > { %v2766_v45 = vsel %vm11540_vm14, %v11366_v44, %v2763_v41  ;;  %v2489_v63 = vor.u32 %v2488_v22, %v2487_v31  ;;  %v2496_v38 = vshll.u32 %v8553_v14, %v2484_v46  ;;  %v2497_v32 = vshrl.u32 %v8554_v16, %v2485_v20 }
 0x489   : > { %8366 = vcosq.f32 %v2766_v45  ;;  %v7751_v4 = vmin.u32 %v6072_v47, %v11568_v50  ;;  %v2492_v17 = vor.u32 %v2491_v29, %v2490_v34  ;;  %v2495_v25 = vor.u32 %v2494_v55, %v2493_v39 }
 0x48a   : > { %8368 = vsinq.f32 %v2766_v45  ;;  %v2498_v27 = vor.u32 %v2497_v32, %v2496_v38  ;;  %v2499_v37 = vshll.u32 %v8554_v16, %v2484_v46  ;;  %v2500_v62 = vshrl.u32 %v8555_v23, %v2485_v20 }
 0x48b   : > { %v6062_v7 = vadd.s32 %v11529_v33, %v11534_v28  ;;  %v6074_v54 = vclz %v7751_v4  ;;  %v2518_v57 = vshll.u32 %v2478_v53, 8  ;;  %v5808_v21 = vadd.s32 1, %v7742_v9 }
 0x48c   : > { %v6093_v15 = vsel %vm6008_vm5, %v6092_v5, %v6068_v26  ;;  %v2486_v13 = vshrl.u32 %v8550_v6, %v2485_v20  ;;  %v2501_v51 = vor.u32 %v2500_v62, %v2499_v37  ;;  %vm2502_vm7 = vcmp.lt.s32.totalorder %v2483_v52, 1 }
 0x48d   : > { %v7752_v42 = vadd.s32 4294967294, %v6074_v54  ;;  %vm2504_vm8 = vcmp.lt.s32.totalorder %v2483_v52, 3  ;;  %vm2505_vm9 = vcmp.lt.s32.totalorder %v2483_v52, 4  ;;  %v2510_v43 = vsel %vm2502_vm7, %v2489_v63, %v2492_v17 }
 0x48e   : > { %v2507_v8 = vsel %vm2505_vm9, %v2495_v25, 2102212464  ;;  %v2511_v2 = vsel %vm2505_vm9, %v2498_v27, 920167782  ;;  %v2514_v0 = vsel %vm2502_vm7, %v2492_v17, %v2495_v25  ;;  %v2515_v33 = vsel %vm2505_vm9, %v2501_v51, 1326507024 }
 0x48f   : > { %vm7753_vm11 = vcmp.lt.s32.totalorder %v7752_v42, 0  ;;  %vm2503_vm10 = vcmp.lt.s32.totalorder %v2483_v52, 2  ;;  %v2512_v28 = vsel %vm2504_vm8, %v2495_v25, %v2511_v2  ;;  %v2516_v36 = vsel %vm2504_vm8, %v2498_v27, %v2515_v33 }
 0x490   : > { %v6077_v40 = vsel %vm7753_vm11, 0, %v7752_v42  ;;  %v6095_v35 = vsel %vm11578_vm6, 0, %v6093_v15  ;;  %v2513_v56 = vsel %vm2503_vm10, %v2510_v43, %v2512_v28  ;;  %v2517_v26 = vsel %vm2503_vm10, %v2514_v0, %v2516_v36 }
 0x491   : > { %v6078_v1 = vsub.s32 32, %v6077_v40  ;;  %v6082_v3 = vsub.s32 4294967266, %v6077_v40  ;;  %v2506_v46 = vsel %vm2502_vm7, %v2486_v13, %v2489_v63  ;;  %v2508_v49 = vsel %vm2504_vm8, %v2492_v17, %v2507_v8 }
 0x492   : > { %v11608_v58 = vmul.u32.u64.low %v2518_v57, %v2517_v26  ;;  %v11609_v30 = vmul.u32.u64.high %v2518_v57, %v2517_v26, %v11608_v58  ;;  %v11611_v53 = vmul.u32.u64.low %v2518_v57, %v2513_v56  ;;  %v11612_v20 = vmul.u32.u64.high %v2518_v57, %v2513_v56, %v11611_v53  ;;  %v7872_v56 = vpop.f32.mrf.mxu0 }
 0x493   : > { %vm2770_vm12 = vweird.f32 %v11366_v44  ;;  %v6079_v9 = vshll.u32 %v11568_v50, %v6077_v40  ;;  %v6080_v18 = vshrl.u32 %v6062_v7, %v6078_v1  ;;  %v6083_v5 = vadd.s32 127, %v6082_v3 }
 0x494   : > { %vm5809_vm13 = vcmp.gt.s32.totalorder %v5808_v21, 0  ;;  %v6099_v31 = vadd.s32 3, %v6095_v35  ;;  %v2509_v22 = vsel %vm2503_vm10, %v2506_v46, %v2508_v49  ;;  %v5805_v34 = vand.u32 8388607, %v5798_v11 }
 0x495   : > { %v5810_v29 = vsel %vm5809_vm13, %v5808_v21, 0  ;;  %vm2773_vm14 = vcmp.lt.s32.totalorder %v11563_v61, 2  ;;  %v6081_v41 = vor.u32 %v6080_v18, %v6079_v9  ;;  %v6084_v47 = vshll.u32 %v6083_v5, 23 }
 0x496   : > { %v5812_v39 = vand.u32 31, %v5810_v29  ;;  %v8367_v55 = vpop.eup %8366  ;;  %vm2774_vm15 = vcmp.eq.s32.totalorder %v11563_v61, 0  ;;  %vm2777_vm0 = vcmp.eq.s32.totalorder %v11563_v61, 2  ;;  %vm2527_vm1 = vc.u32 %v11609_v30, %v11611_v53 }
 0x497   : > { %v2528_v50 = vadd.s32 1, %v11612_v20  ;;  %v8369_v52 = vpop.eup %8368  ;;  %v2778_v45 = vxor.u32 2147483648, %v8367_v55  ;;  %v6085_v63 = vor.u32 4788187, %v6084_v47  ;;  %v2525_v38 = vmul.u32 %v2518_v57, %v2509_v22 }
 0x498   : > { %v5813_v32 = vsub.s32 32, %v5812_v39  ;;  %v2775_v4 = vxor.u32 2147483648, %v8369_v52  ;;  %v11626_v17 = vand.u32 3, %v6099_v31  ;;  %v5806_v27 = vor.u32 8388608, %v5805_v34  ;;  %v11656_v31 = vld [vmem:[%s13586_s2] ss:$0 sm:$0xff] }
 0x499   : > { %v2529_v25 = vsel %vm2527_vm1, %v2528_v50, %v11612_v20  ;;  %v2779_v37 = vsel %vm2777_vm0, %v2778_v45, %v8369_v52  ;;  %v6086_v62 = vand.u32 2147483647, %v6085_v63  ;;  %v6088_v7 = vcvt.s32.f32 %v6081_v41 }
 0x49a   : > { %v2530_v54 = vadd.s32 %v2529_v25, %v2525_v38  ;;  %v2776_v21 = vsel %vm2774_vm15, %v8367_v55, %v2775_v4  ;;  %v11631_v15 = vshrl.u32 %v5810_v29, 5  ;;  %v5816_v13 = vshrl.u32 %v8551_v10, %v5813_v32  ;;  %v7904_v25 = vpop.f32.mrf.mxu1 }
 0x49b   : > { %v5819_v57 = vshrl.u32 %v8552_v12, %v5813_v32  ;;  %v2780_v51 = vsel %vm2773_vm14, %v2776_v21, %v2779_v37  ;;  %v6089_v42 = vmul.f32 %v6088_v7, %v6086_v62  ;;  %v5822_v8 = vshrl.u32 %v8553_v14, %v5813_v32 }
 0x49c   : > { %v2531_v43 = vadd.s32 536870912, %v2530_v54  ;;  %v2781_v2 = vsel %vm2770_vm12, nan, %v2780_v51  ;;  %v5815_v0 = vshll.u32 %v8550_v6, %v5812_v39  ;;  %v5818_v33 = vshll.u32 %v8551_v10, %v5812_v39 }
 0x49d   : > { %v5821_v28 = vshll.u32 %v8552_v12, %v5812_v39  ;;  %7377 = vst [vmem:[%s9048_s11 + $0x98] sm:$0xff] %v2781_v2  ;;  %v6090_v36 = vxor.u32 2147483648, %v6089_v42  ;;  %v5824_v35 = vshll.u32 %v8553_v14, %v5812_v39  ;;  %v5825_v61 = vshrl.u32 %v8554_v16, %v5813_v32 }
 0x49e   : > { %v2532_v40 = vshrl.u32 %v2531_v43, 30  ;;  %v5817_v26 = vor.u32 %v5816_v13, %v5815_v0  ;;  %v5820_v1 = vor.u32 %v5819_v57, %v5818_v33  ;;  %v5827_v3 = vshll.u32 %v8554_v16, %v5812_v39 }
 0x49f   : > { %v5828_v44 = vshrl.u32 %v8555_v23, %v5813_v32  ;;  %v6091_v46 = vsel %vm6008_vm5, %v6090_v36, %v6089_v42  ;;  %v5823_v58 = vor.u32 %v5822_v8, %v5821_v28  ;;  %v5826_v20 = vor.u32 %v5825_v61, %v5824_v35 }
 0x4a0   : > { %v2533_v49 = vshll.u32 %v2532_v40, 30  ;;  %v6094_v9 = vsel %vm11578_vm6, %v11413_v48, %v6091_v46  ;;  %v5846_v5 = vshll.u32 %v5806_v27, 8  ;;  %v11659_v22 = vadd.f32 %v11656_v31, %v7872_v56 }
 0x4a1   : > { %v5829_v18 = vor.u32 %v5828_v44, %v5827_v3  ;;  %8370 = vcosq.f32 %v6094_v9  ;;  %v5814_v29 = vshrl.u32 %v8550_v6, %v5813_v32  ;;  %vm5830_vm2 = vcmp.lt.s32.totalorder %v11631_v15, 1 }
 0x4a2   : > { %v11661_v34 = vsub.s32 %v2530_v54, %v2533_v49  ;;  %8372 = vsinq.f32 %v6094_v9  ;;  %vm5831_vm3 = vcmp.lt.s32.totalorder %v11631_v15, 2  ;;  %vm5833_vm4 = vcmp.lt.s32.totalorder %v11631_v15, 4 }
 0x4a3   : > { %v5838_v60 = vsel %vm5830_vm2, %v5817_v26, %v5820_v1  ;;  %vm5832_vm5 = vcmp.lt.s32.totalorder %v11631_v15, 3  ;;  %v5835_v47 = vsel %vm5833_vm4, %v5823_v58, 2102212464  ;;  %v5839_v39 = vsel %vm5833_vm4, %v5826_v20, 920167782 }
 0x4a4   : > { %v2536_v41 = vsub.s32 0, %v11661_v34  ;;  %v2556_v55 = vsub.s32 4, %v2532_v40  ;;  %v5840_v50 = vsel %vm5832_vm5, %v5823_v58, %v5839_v39  ;;  %v5842_v52 = vsel %vm5830_vm2, %v5820_v1, %v5823_v58 }
 0x4a5   : > { %v5843_v45 = vsel %vm5833_vm4, %v5829_v18, 1326507024  ;;  %v5834_v38 = vsel %vm5830_vm2, %v5814_v29, %v5817_v26  ;;  %v5841_v32 = vsel %vm5831_vm3, %v5838_v60, %v5840_v50  ;;  %v5836_v27 = vsel %vm5832_vm5, %v5820_v1, %v5835_v47 }
 0x4a6   : > { %v7615_v63 = vmin.u32 %v2536_v41, %v11661_v34  ;;  %v5844_v4 = vsel %vm5832_vm5, %v5826_v20, %v5843_v45  ;;  %v11674_v62 = vmul.u32.u64.low %v5846_v5, %v5841_v32  ;;  %v11675_v7 = vmul.u32.u64.high %v5846_v5, %v5841_v32, %v11674_v62 }
 0x4a7   : > { %v5845_v37 = vsel %vm5831_vm3, %v5842_v52, %v5844_v4  ;;  %vm2472_vm6 = vcmp.lt.s32.totalorder %v11523_v59, 0  ;;  %v11683_v57 = vadd.f32 %v11656_v31, %v7904_v25  ;;  %vm11687_vm7 = vcmp.le.f32.partialorder %v2470_v24, 0.7853982  ;;  %v527_v4 = vpop.f32.mrf.mxu0 }
 0x4a8   : > { %v2538_v54 = vclz %v7615_v63  ;;  %v11679_v21 = vmul.u32.u64.low %v5846_v5, %v5845_v37  ;;  %v11680_v13 = vmul.u32.u64.high %v5846_v5, %v5845_v37, %v11679_v21  ;;  %v5837_v43 = vsel %vm5831_vm3, %v5834_v38, %v5836_v27 }
 0x4a9   : > { %v2993_v8 = vand.u32 2139095040, %v11659_v22  ;;  %vm6101_vm8 = vcmp.lt.s32.totalorder %v11626_v17, 2  ;;  %vm6102_vm9 = vcmp.eq.s32.totalorder %v11626_v17, 0  ;;  %v2557_v2 = vsel %vm2472_vm6, %v2556_v55, %v2532_v40 }
 0x4aa   : > { %v7616_v42 = vadd.s32 4294967294, %v2538_v54  ;;  %v5856_v0 = vadd.s32 1, %v11675_v7  ;;  %v2990_v24 = vand.u32 2147483647, %v11659_v22  ;;  %vm6098_vm11 = vweird.f32 %v11413_v48 }
 0x4ab   : > { %vm6105_vm10 = vcmp.eq.s32.totalorder %v11626_v17, 2  ;;  %v2526_v15 = vadd.s32 %v11611_v53, %v11609_v30  ;;  %v2994_v33 = vshrl.u32 %v2993_v8, 23  ;;  %v5853_v36 = vmul.u32 %v5846_v5, %v5837_v43 }
 0x4ac   : > { %vm7617_vm12 = vcmp.lt.s32.totalorder %v7616_v42, 0  ;;  %vm5855_vm13 = vc.u32 %v11680_v13, %v11674_v62  ;;  %v6321_v40 = vand.u32 2139095040, %v11683_v57  ;;  %v2559_v56 = vsel %vm11687_vm7, 0, %v2557_v2 }
 0x4ad   : > { %v2541_v28 = vsel %vm7617_vm12, 0, %v7616_v42  ;;  %v5857_v26 = vsel %vm5855_vm13, %v5856_v0, %v11675_v7  ;;  %v7634_v44 = vadd.s32 4294967169, %v2994_v33  ;;  %v2997_v30 = vand.u32 8388607, %v2990_v24 }
 0x4ae   : > { %v2542_v35 = vsub.s32 32, %v2541_v28  ;;  %v2546_v61 = vsub.s32 4294967266, %v2541_v28  ;;  %v8371_v1 = vpop.eup %8370  ;;  %v5858_v3 = vadd.s32 %v5857_v26, %v5853_v36  ;;  %v6318_v53 = vand.u32 2147483647, %v11683_v57 }
 0x4af   : > { %v8373_v46 = vpop.eup %8372  ;;  %v6106_v49 = vxor.u32 2147483648, %v8371_v1  ;;  %v2543_v58 = vshll.u32 %v11661_v34, %v2541_v28  ;;  %v3000_v29 = vadd.s32 1, %v7634_v44  ;;  %v6322_v60 = vshrl.u32 %v6321_v40, 23 }
 0x4b0   : > { %v2544_v20 = vshrl.u32 %v2526_v15, %v2542_v35  ;;  %v2547_v9 = vadd.s32 127, %v2546_v61  ;;  %v6103_v18 = vxor.u32 2147483648, %v8373_v46  ;;  %v5859_v5 = vadd.s32 536870912, %v5858_v3 }
 0x4b1   : > { %v6107_v41 = vsel %vm6105_vm10, %v6106_v49, %v8373_v46  ;;  %v2563_v55 = vadd.s32 3, %v2559_v56  ;;  %v2998_v45 = vor.u32 8388608, %v2997_v30  ;;  %vm3001_vm14 = vcmp.gt.s32.totalorder %v3000_v29, 0 }
 0x4b2   : > { %v2545_v47 = vor.u32 %v2544_v20, %v2543_v58  ;;  %v2548_v39 = vshll.u32 %v2547_v9, 23  ;;  %v6104_v50 = vsel %vm6102_vm9, %v8371_v1, %v6103_v18  ;;  %v11718_v52 = vshrl.u32 %v5859_v5, 30 }
 0x4b3   : > { %v6108_v34 = vsel %vm6101_vm8, %v6104_v50, %v6107_v41  ;;  %v3002_v38 = vsel %vm3001_vm14, %v3000_v29, 0  ;;  %v11724_v32 = vand.u32 8388607, %v6318_v53  ;;  %v7762_v37 = vadd.s32 4294967169, %v6322_v60 }
 0x4b4   : > { %v2549_v63 = vor.u32 4788187, %v2548_v39  ;;  %v6109_v25 = vsel %vm6098_vm11, nan, %v6108_v34  ;;  %v5861_v27 = vshll.u32 %v11718_v52, 30  ;;  %v2552_v54 = vcvt.s32.f32 %v2545_v47 }
 0x4b5   : > { %7409 = vst [vmem:[%s9048_s11 + $0x198] sm:$0xff] %v6109_v25  ;;  %v3004_v21 = vand.u32 31, %v3002_v38  ;;  %v11730_v42 = vand.u32 3, %v2563_v55  ;;  %v5854_v17 = vadd.s32 %v11674_v62, %v11680_v13  ;;  %v11737_v8 = vadd.f32 %v11656_v31, %v527_v4 }
 0x4b6   : > { %v2550_v7 = vand.u32 2147483647, %v2549_v63  ;;  %v11734_v43 = vsub.s32 %v5858_v3, %v5861_v27  ;;  %v11739_v0 = vshll.u32 %v2998_v45, 8  ;;  %v6326_v15 = vor.u32 8388608, %v11724_v32 }
 0x4b7   : > { %v3005_v48 = vsub.s32 32, %v3004_v21  ;;  %v3003_v28 = vshrl.u32 %v3002_v38, 5  ;;  %v3007_v36 = vshll.u32 %v8550_v6, %v3004_v21  ;;  %v6328_v40 = vadd.s32 1, %v7762_v37 }
 0x4b8   : > { %v2553_v2 = vmul.f32 %v2552_v54, %v2550_v7  ;;  %v5864_v33 = vsub.s32 0, %v11734_v43  ;;  %v3010_v13 = vshll.u32 %v8551_v10, %v3004_v21  ;;  %v3013_v26 = vshll.u32 %v8552_v12, %v3004_v21 }
 0x4b9   : > { %v3008_v62 = vshrl.u32 %v8551_v10, %v3005_v48  ;;  %v3011_v61 = vshrl.u32 %v8552_v12, %v3005_v48  ;;  %v3014_v1 = vshrl.u32 %v8553_v14, %v3005_v48  ;;  %v3016_v3 = vshll.u32 %v8553_v14, %v3004_v21 }
 0x4ba   : > { %v2554_v35 = vxor.u32 2147483648, %v2553_v2  ;;  %v7743_v56 = vmin.u32 %v5864_v33, %v11734_v43  ;;  %v3017_v49 = vshrl.u32 %v8554_v16, %v3005_v48  ;;  %v5884_v9 = vsub.s32 4, %v11718_v52 }
 0x4bb   : > { %v3009_v30 = vor.u32 %v3008_v62, %v3007_v36  ;;  %v3012_v46 = vor.u32 %v3011_v61, %v3010_v13  ;;  %vm6329_vm15 = vcmp.gt.s32.totalorder %v6328_v40, 0  ;;  %v3015_v18 = vor.u32 %v3014_v1, %v3013_v26 }
 0x4bc   : > { %v2555_v44 = vsel %vm2472_vm6, %v2554_v35, %v2553_v2  ;;  %v5866_v20 = vclz %v7743_v56  ;;  %v3018_v5 = vor.u32 %v3017_v49, %v3016_v3  ;;  %vm3022_vm0 = vcmp.lt.s32.totalorder %v3003_v28, 1 }
 0x4bd   : > { %v2558_v58 = vsel %vm11687_vm7, %v11523_v59, %v2555_v44  ;;  %vm5800_vm1 = vcmp.lt.s32.totalorder %v11545_v19, 0  ;;  %v3019_v60 = vshll.u32 %v8554_v16, %v3004_v21  ;;  %v3020_v41 = vshrl.u32 %v8555_v23, %v3005_v48 }
 0x4be   : > { %8374 = vcosq.f32 %v2558_v58  ;;  %v7744_v29 = vadd.s32 4294967294, %v5866_v20  ;;  %v3006_v47 = vshrl.u32 %v8550_v6, %v3005_v48  ;;  %vm3024_vm2 = vcmp.lt.s32.totalorder %v3003_v28, 3 }
 0x4bf   : > { %8376 = vsinq.f32 %v2558_v58  ;;  %vm3025_vm3 = vcmp.lt.s32.totalorder %v3003_v28, 4  ;;  %v3030_v51 = vsel %vm3022_vm0, %v3009_v30, %v3012_v46  ;;  %v3021_v39 = vor.u32 %v3020_v41, %v3019_v60 }
 0x4c0   : > { %vm7745_vm4 = vcmp.lt.s32.totalorder %v7744_v29, 0  ;;  %v3027_v55 = vsel %vm3025_vm3, %v3015_v18, 2102212464  ;;  %v3031_v50 = vsel %vm3025_vm3, %v3018_v5, 920167782  ;;  %v3026_v34 = vsel %vm3022_vm0, %v3006_v47, %v3009_v30 }
 0x4c1   : > { %v5869_v45 = vsel %vm7745_vm4, 0, %v7744_v29  ;;  %v3028_v63 = vsel %vm3024_vm2, %v3012_v46, %v3027_v55  ;;  %v3032_v38 = vsel %vm3024_vm2, %v3015_v18, %v3031_v50  ;;  %vm3023_vm5 = vcmp.lt.s32.totalorder %v3003_v28, 2 }
 0x4c2   : > { %v5870_v4 = vsub.s32 32, %v5869_v45  ;;  %v5874_v25 = vsub.s32 4294967266, %v5869_v45  ;;  %v3034_v27 = vsel %vm3022_vm0, %v3012_v46, %v3015_v18  ;;  %v5871_v37 = vshll.u32 %v11734_v43, %v5869_v45 }
 0x4c3   : > { %v3033_v7 = vsel %vm3023_vm5, %v3030_v51, %v3032_v38  ;;  %v3035_v54 = vsel %vm3025_vm3, %v3021_v39, 1326507024  ;;  %v6330_v21 = vsel %vm6329_vm15, %v6328_v40, 0  ;;  %v3029_v33 = vsel %vm3023_vm5, %v3026_v34, %v3028_v63 }
 0x4c4   : > { %v5872_v2 = vshrl.u32 %v5854_v17, %v5870_v4  ;;  %v5875_v48 = vadd.s32 127, %v5874_v25  ;;  %v3036_v36 = vsel %vm3024_vm2, %v3018_v5, %v3035_v54  ;;  %vm2566_vm6 = vcmp.eq.s32.totalorder %v11730_v42, 0 }
 0x4c5   : > { %v3037_v35 = vsel %vm3023_vm5, %v3034_v27, %v3036_v36  ;;  %v11775_v62 = vmul.u32.u64.low %v11739_v0, %v3033_v7  ;;  %v11776_v13 = vmul.u32.u64.high %v11739_v0, %v3033_v7, %v11775_v62  ;;  %v6332_v61 = vand.u32 31, %v6330_v21 }
 0x4c6   : > { %vm2565_vm7 = vcmp.lt.s32.totalorder %v11730_v42, 2  ;;  %vm11782_vm8 = vcmp.le.f32.partialorder %v5798_v11, 0.7853982  ;;  %v5873_v17 = vor.u32 %v5872_v2, %v5871_v37  ;;  %v5876_v28 = vshll.u32 %v5875_v48, 23 }
 0x4c7   : > { %v11787_v40 = vmul.u32.u64.low %v11739_v0, %v3037_v35  ;;  %v11788_v56 = vmul.u32.u64.high %v11739_v0, %v3037_v35, %v11787_v40  ;;  %vm2562_vm9 = vweird.f32 %v11523_v59  ;;  %vm2569_vm11 = vcmp.eq.s32.totalorder %v11730_v42, 2 }
 0x4c8   : > { %v5885_v26 = vsel %vm5800_vm1, %v5884_v9, %v11718_v52  ;;  %v6333_v1 = vsub.s32 32, %v6332_v61  ;;  %v11797_v11 = vshll.u32 %v6326_v15, 8  ;;  %v5877_v3 = vor.u32 4788187, %v5876_v28 }
 0x4c9   : > { %v3045_v44 = vmul.u32 %v11739_v0, %v3029_v33  ;;  %v11800_v30 = vshrl.u32 %v6330_v21, 5  ;;  %v6335_v46 = vshll.u32 %v8550_v6, %v6332_v61  ;;  %v3048_v49 = vadd.s32 1, %v11776_v13 }
 0x4ca   : > { %v6336_v58 = vshrl.u32 %v8551_v10, %v6333_v1  ;;  %v6338_v20 = vshll.u32 %v8551_v10, %v6332_v61  ;;  %v6341_v52 = vshll.u32 %v8552_v12, %v6332_v61  ;;  %v5878_v18 = vand.u32 2147483647, %v5877_v3 }
 0x4cb   : > { %v8375_v9 = vpop.eup %8374  ;;  %v5880_v32 = vcvt.s32.f32 %v5873_v17  ;;  %vm3047_vm10 = vc.u32 %v11788_v56, %v11775_v62  ;;  %v6339_v0 = vshrl.u32 %v8552_v12, %v6333_v1  ;;  %v6342_v60 = vshrl.u32 %v8553_v14, %v6333_v1 }
 0x4cc   : > { %v8377_v15 = vpop.eup %8376  ;;  %v2570_v5 = vxor.u32 2147483648, %v8375_v9  ;;  %v3049_v29 = vsel %vm3047_vm10, %v3048_v49, %v11776_v13  ;;  %v6344_v41 = vshll.u32 %v8553_v14, %v6332_v61  ;;  %v6347_v55 = vshll.u32 %v8554_v16, %v6332_v61 }
 0x4cd   : > { %v2567_v47 = vxor.u32 2147483648, %v8377_v15  ;;  %v5881_v51 = vmul.f32 %v5880_v32, %v5878_v18  ;;  %v3050_v39 = vadd.s32 %v3049_v29, %v3045_v44  ;;  %v6337_v45 = vor.u32 %v6336_v58, %v6335_v46 }
 0x4ce   : > { %v2571_v50 = vsel %vm2569_vm11, %v2570_v5, %v8377_v15  ;;  %v6345_v34 = vshrl.u32 %v8554_v16, %v6333_v1  ;;  %v6348_v63 = vshrl.u32 %v8555_v23, %v6333_v1  ;;  %v6340_v27 = vor.u32 %v6339_v0, %v6338_v20 }
 0x4cf   : > { %v2568_v38 = vsel %vm2566_vm6, %v8375_v9, %v2567_v47  ;;  %v5882_v4 = vxor.u32 2147483648, %v5881_v51  ;;  %v3051_v25 = vadd.s32 536870912, %v3050_v39  ;;  %v5887_v7 = vsel %vm11782_vm8, 0, %v5885_v26 }
 0x4d0   : > { %v2572_v37 = vsel %vm2565_vm7, %v2568_v38, %v2571_v50  ;;  %v6343_v54 = vor.u32 %v6342_v60, %v6341_v52  ;;  %v6346_v21 = vor.u32 %v6345_v34, %v6344_v41  ;;  %v6349_v36 = vor.u32 %v6348_v63, %v6347_v55  ;;  %v655_v63 = vpop.f32.mrf.mxu1 }
 0x4d1   : > { %v2573_v2 = vsel %vm2562_vm9, nan, %v2572_v37  ;;  %v5883_v48 = vsel %vm5800_vm1, %v5882_v4, %v5881_v51  ;;  %v3052_v33 = vshrl.u32 %v3051_v25, 30  ;;  %v6334_v42 = vshrl.u32 %v8550_v6, %v6333_v1 }
 0x4d2   : > { %7375 = vst [vmem:[%s9048_s11 + $0x88] sm:$0xff] %v2573_v2  ;;  %v5886_v35 = vsel %vm11782_vm8, %v11545_v19, %v5883_v48  ;;  %vm6350_vm12 = vcmp.lt.s32.totalorder %v11800_v30, 1  ;;  %vm6352_vm13 = vcmp.lt.s32.totalorder %v11800_v30, 3  ;;  %vm6353_vm14 = vcmp.lt.s32.totalorder %v11800_v30, 4 }
 0x4d3   : > { %8378 = vcosq.f32 %v5886_v35  ;;  %v3053_v13 = vshll.u32 %v3052_v33, 30  ;;  %v6358_v59 = vsel %vm6350_vm12, %v6337_v45, %v6340_v27  ;;  %v6355_v61 = vsel %vm6353_vm14, %v6343_v54, 2102212464 }
 0x4d4   : > { %8380 = vsinq.f32 %v5886_v35  ;;  %v6359_v17 = vsel %vm6353_vm14, %v6346_v21, 920167782  ;;  %v6362_v43 = vsel %vm6350_vm12, %v6340_v27, %v6343_v54  ;;  %vm6351_vm15 = vcmp.lt.s32.totalorder %v11800_v30, 2 }
 0x4d5   : > { %v11840_v28 = vsub.s32 %v3050_v39, %v3053_v13  ;;  %v6360_v40 = vsel %vm6352_vm13, %v6343_v54, %v6359_v17  ;;  %v6363_v26 = vsel %vm6353_vm14, %v6349_v36, 1326507024  ;;  %v5891_v1 = vadd.s32 3, %v5887_v7 }
 0x4d6   : > { %v3076_v3 = vsub.s32 4, %v3052_v33  ;;  %v6361_v44 = vsel %vm6351_vm15, %v6358_v59, %v6360_v40  ;;  %v6364_v46 = vsel %vm6352_vm13, %v6346_v21, %v6363_v26  ;;  %v6354_v58 = vsel %vm6350_vm12, %v6334_v42, %v6337_v45 }
 0x4d7   : > { %v3056_v49 = vsub.s32 0, %v11840_v28  ;;  %v6356_v20 = vsel %vm6352_vm13, %v6340_v27, %v6355_v61  ;;  %v6365_v52 = vsel %vm6351_vm15, %v6362_v43, %v6364_v46  ;;  %vm2992_vm0 = vcmp.lt.s32.totalorder %v11659_v22, 0 }
 0x4d8   : > { %v11857_v9 = vmul.u32.u64.low %v11797_v11, %v6365_v52  ;;  %v11858_v18 = vmul.u32.u64.high %v11797_v11, %v6365_v52, %v11857_v9  ;;  %v11861_v32 = vmul.u32.u64.low %v11797_v11, %v6361_v44  ;;  %v11862_v0 = vmul.u32.u64.high %v11797_v11, %v6361_v44, %v11861_v32 }
 0x4d9   : > { %v7635_v15 = vmin.u32 %v3056_v49, %v11840_v28  ;;  %v5892_v5 = vand.u32 3, %v5891_v1  ;;  %v3077_v29 = vsel %vm2992_vm0, %v3076_v3, %v3052_v33  ;;  %v6357_v60 = vsel %vm6351_vm15, %v6354_v58, %v6356_v20 }
 0x4da   : > { %v2785_v41 = vand.u32 2139095040, %v11737_v8  ;;  %vm11873_vm1 = vcmp.le.f32.partialorder %v2990_v24, 0.7853982  ;;  %vm6375_vm2 = vc.u32 %v11858_v18, %v11861_v32  ;;  %v6376_v39 = vadd.s32 1, %v11862_v0 }
 0x4db   : > { %v3058_v47 = vclz %v7635_v15  ;;  %v3079_v45 = vsel %vm11873_vm1, 0, %v3077_v29  ;;  %v6373_v30 = vmul.u32 %v11797_v11, %v6357_v60  ;;  %v2782_v34 = vand.u32 2147483647, %v11737_v8 }
 0x4dc   : > { %v2786_v55 = vshrl.u32 %v2785_v41, 23  ;;  %vm5893_vm3 = vcmp.lt.s32.totalorder %v5892_v5, 2  ;;  %vm5894_vm4 = vcmp.eq.s32.totalorder %v5892_v5, 0  ;;  %v6377_v24 = vsel %vm6375_vm2, %v6376_v39, %v11862_v0 }
 0x4dd   : > { %v7636_v50 = vadd.s32 4294967294, %v3058_v47  ;;  %vm5897_vm5 = vcmp.eq.s32.totalorder %v5892_v5, 2  ;;  %v3046_v4 = vadd.s32 %v11775_v62, %v11788_v56  ;;  %v6378_v25 = vadd.s32 %v6377_v24, %v6373_v30 }
 0x4de   : > { %v7626_v38 = vadd.s32 4294967169, %v2786_v55  ;;  %v3083_v7 = vadd.s32 3, %v3079_v45  ;;  %v11887_v11 = vadd.f32 %v11656_v31, %v655_v63  ;;  %v2789_v36 = vand.u32 8388607, %v2782_v34 }
 0x4df   : > { %vm7637_vm6 = vcmp.lt.s32.totalorder %v7636_v50, 0  ;;  %v6379_v62 = vadd.s32 536870912, %v6378_v25  ;;  %vm5890_vm8 = vweird.f32 %v11545_v19  ;;  %vm6320_vm9 = vcmp.lt.s32.totalorder %v11683_v57, 0 }
 0x4e0   : > { %v8379_v27 = vpop.eup %8378  ;;  %v3061_v37 = vsel %vm7637_vm6, 0, %v7636_v50  ;;  %v2792_v54 = vadd.s32 1, %v7626_v38  ;;  %v6113_v26 = vand.u32 2139095040, %v11887_v11  ;;  %v11899_v20 = vand.u32 3, %v3083_v7 }
 0x4e1   : > { %v8381_v21 = vpop.eup %8380  ;;  %v5898_v2 = vxor.u32 2147483648, %v8379_v27  ;;  %v3062_v48 = vsub.s32 32, %v3061_v37  ;;  %v3066_v33 = vsub.s32 4294967266, %v3061_v37  ;;  %v3063_v42 = vshll.u32 %v11840_v28, %v3061_v37 }
 0x4e2   : > { %v5895_v35 = vxor.u32 2147483648, %v8381_v21  ;;  %vm2793_vm7 = vcmp.gt.s32.totalorder %v2792_v54, 0  ;;  %v6380_v43 = vshrl.u32 %v6379_v62, 30  ;;  %v6374_v52 = vadd.s32 %v11861_v32, %v11858_v18 }
 0x4e3   : > { %v5899_v56 = vsel %vm5897_vm5, %v5898_v2, %v8381_v21  ;;  %v3064_v13 = vshrl.u32 %v3046_v4, %v3062_v48  ;;  %v3067_v59 = vadd.s32 127, %v3066_v33  ;;  %v2794_v61 = vsel %vm2793_vm7, %v2792_v54, 0 }
 0x4e4   : > { %v5896_v17 = vsel %vm5894_vm4, %v8379_v27, %v5895_v35  ;;  %v2796_v40 = vand.u32 31, %v2794_v61  ;;  %v6381_v46 = vshll.u32 %v6380_v43, 30  ;;  %v2790_v9 = vor.u32 8388608, %v2789_v36 }
 0x4e5   : > { %v5900_v1 = vsel %vm5893_vm3, %v5896_v17, %v5899_v56  ;;  %v3065_v3 = vor.u32 %v3064_v13, %v3063_v42  ;;  %v3068_v28 = vshll.u32 %v3067_v59, 23  ;;  %v6404_v15 = vsub.s32 4, %v6380_v43 }
 0x4e6   : > { %v5901_v44 = vsel %vm5890_vm8, nan, %v5900_v1  ;;  %v2797_v49 = vsub.s32 32, %v2796_v40  ;;  %v11902_v0 = vsub.s32 %v6378_v25, %v6381_v46  ;;  %v6114_v5 = vshrl.u32 %v6113_v26, 23 }
 0x4e7   : > { %7407 = vst [vmem:[%s9048_s11 + $0x188] sm:$0xff] %v5901_v44  ;;  %v3069_v58 = vor.u32 4788187, %v3068_v28  ;;  %v3072_v60 = vcvt.s32.f32 %v3065_v3  ;;  %v2799_v41 = vshll.u32 %v8550_v6, %v2796_v40  ;;  %v2802_v55 = vshll.u32 %v8551_v10, %v2796_v40 }
 0x4e8   : > { %v2800_v19 = vshrl.u32 %v8551_v10, %v2797_v49  ;;  %v2803_v47 = vshrl.u32 %v8552_v12, %v2797_v49  ;;  %v6384_v39 = vsub.s32 0, %v11902_v0  ;;  %v2805_v50 = vshll.u32 %v8552_v12, %v2796_v40 }
 0x4e9   : > { %v3070_v29 = vand.u32 2147483647, %v3069_v58  ;;  %v2806_v18 = vshrl.u32 %v8553_v14, %v2797_v49  ;;  %v2795_v45 = vshrl.u32 %v2794_v61, 5  ;;  %v2808_v30 = vshll.u32 %v8553_v14, %v2796_v40 }
 0x4ea   : > { %v2809_v63 = vshrl.u32 %v8554_v16, %v2797_v49  ;;  %v7763_v24 = vmin.u32 %v6384_v39, %v11902_v0  ;;  %v2801_v38 = vor.u32 %v2800_v19, %v2799_v41  ;;  %v2804_v4 = vor.u32 %v2803_v47, %v2802_v55 }
 0x4eb   : > { %v3073_v32 = vmul.f32 %v3072_v60, %v3070_v29  ;;  %v2807_v25 = vor.u32 %v2806_v18, %v2805_v50  ;;  %v2811_v7 = vshll.u32 %v8554_v16, %v2796_v40  ;;  %v2812_v54 = vshrl.u32 %v8555_v23, %v2797_v49 }
 0x4ec   : > { %v2810_v37 = vor.u32 %v2809_v63, %v2808_v30  ;;  %vm11918_vm11 = vcmp.le.f32.partialorder %v6318_v53, 0.7853982  ;;  %v6386_v2 = vclz %v7763_v24  ;;  %v6405_v48 = vsel %vm6320_vm9, %v6404_v15, %v6380_v43  ;;  %v7873_v63 = vpop.f32.mrf.mxu0 }
 0x4ed   : > { %v3074_v27 = vxor.u32 2147483648, %v3073_v32  ;;  %v2830_v33 = vshll.u32 %v2790_v9, 8  ;;  %v7754_v36 = vadd.s32 4294967169, %v6114_v5  ;;  %v2798_v42 = vshrl.u32 %v8550_v6, %v2797_v49 }
 0x4ee   : > { %v2813_v62 = vor.u32 %v2812_v54, %v2811_v7  ;;  %vm2814_vm10 = vcmp.lt.s32.totalorder %v2795_v45, 1  ;;  %v7764_v56 = vadd.s32 4294967294, %v6386_v2  ;;  %vm2816_vm12 = vcmp.lt.s32.totalorder %v2795_v45, 3 }
 0x4ef   : > { %v3075_v35 = vsel %vm2992_vm0, %v3074_v27, %v3073_v32  ;;  %vm2817_vm13 = vcmp.lt.s32.totalorder %v2795_v45, 4  ;;  %v2822_v59 = vsel %vm2814_vm10, %v2801_v38, %v2804_v4  ;;  %vm2815_vm15 = vcmp.lt.s32.totalorder %v2795_v45, 2 }
 0x4f0   : > { %v3078_v53 = vsel %vm11873_vm1, %v11659_v22, %v3075_v35  ;;  %v2819_v13 = vsel %vm2817_vm13, %v2807_v25, 2102212464  ;;  %v2823_v61 = vsel %vm2817_vm13, %v2810_v37, 920167782  ;;  %vm7765_vm14 = vcmp.lt.s32.totalorder %v7764_v56, 0 }
 0x4f1   : > { %8382 = vcosq.f32 %v3078_v53  ;;  %v2824_v17 = vsel %vm2816_vm12, %v2807_v25, %v2823_v61  ;;  %v6389_v43 = vsel %vm7765_vm14, 0, %v7764_v56  ;;  %v2818_v40 = vsel %vm2814_vm10, %v2798_v42, %v2801_v38 }
 0x4f2   : > { %8384 = vsinq.f32 %v3078_v53  ;;  %v2825_v51 = vsel %vm2815_vm15, %v2822_v59, %v2824_v17  ;;  %v2826_v26 = vsel %vm2814_vm10, %v2804_v4, %v2807_v25  ;;  %v6390_v1 = vsub.s32 32, %v6389_v43 }
 0x4f3   : > { %v6394_v3 = vsub.s32 4294967266, %v6389_v43  ;;  %v2820_v28 = vsel %vm2816_vm12, %v2804_v4, %v2819_v13  ;;  %v2827_v44 = vsel %vm2817_vm13, %v2813_v62, 1326507024  ;;  %v6391_v46 = vshll.u32 %v11902_v0, %v6389_v43 }
 0x4f4   : > { %v2828_v49 = vsel %vm2816_vm12, %v2810_v37, %v2827_v44  ;;  %v11941_v58 = vmul.u32.u64.low %v2830_v33, %v2825_v51  ;;  %v11942_v9 = vmul.u32.u64.high %v2830_v33, %v2825_v51, %v11941_v58  ;;  %v6392_v15 = vshrl.u32 %v6374_v52, %v6390_v1 }
 0x4f5   : > { %v6395_v19 = vadd.s32 127, %v6394_v3  ;;  %v2829_v5 = vsel %vm2815_vm15, %v2826_v26, %v2828_v49  ;;  %v6120_v29 = vadd.s32 1, %v7754_v36  ;;  %v6407_v60 = vsel %vm11918_vm11, 0, %v6405_v48 }
 0x4f6   : > { %v11948_v41 = vmul.u32.u64.low %v2830_v33, %v2829_v5  ;;  %v11949_v47 = vmul.u32.u64.high %v2830_v33, %v2829_v5, %v11948_v41  ;;  %v6110_v39 = vand.u32 2147483647, %v11887_v11  ;;  %v6393_v0 = vor.u32 %v6392_v15, %v6391_v46 }
 0x4f7   : > { %v6396_v55 = vshll.u32 %v6395_v19, 23  ;;  %v2821_v50 = vsel %vm2815_vm15, %v2818_v40, %v2820_v28  ;;  %vm6121_vm0 = vcmp.gt.s32.totalorder %v6120_v29, 0  ;;  %v2840_v18 = vadd.s32 1, %v11942_v9 }
 0x4f8   : > { %v6122_v52 = vsel %vm6121_vm0, %v6120_v29, 0  ;;  %vm3085_vm1 = vcmp.lt.s32.totalorder %v11899_v20, 2  ;;  %vm3086_vm2 = vcmp.eq.s32.totalorder %v11899_v20, 0  ;;  %vm3089_vm3 = vcmp.eq.s32.totalorder %v11899_v20, 2 }
 0x4f9   : > { %v6397_v32 = vor.u32 4788187, %v6396_v55  ;;  %v6124_v30 = vand.u32 31, %v6122_v52  ;;  %vm3082_vm4 = vweird.f32 %v11659_v22  ;;  %v6411_v24 = vadd.s32 3, %v6407_v60 }
 0x4fa   : > { %v2837_v38 = vmul.u32 %v2830_v33, %v2821_v50  ;;  %vm2839_vm5 = vc.u32 %v11949_v47, %v11941_v58  ;;  %v6117_v45 = vand.u32 8388607, %v6110_v39  ;;  %v6400_v25 = vcvt.s32.f32 %v6393_v0 }
 0x4fb   : > { %v6398_v4 = vand.u32 2147483647, %v6397_v32  ;;  %v2841_v27 = vsel %vm2839_vm5, %v2840_v18, %v11942_v9  ;;  %v6125_v37 = vsub.s32 32, %v6124_v30  ;;  %v11963_v54 = vshrl.u32 %v6122_v52, 5 }
 0x4fc   : > { %v2842_v7 = vadd.s32 %v2841_v27, %v2837_v38  ;;  %v6127_v2 = vshll.u32 %v8550_v6, %v6124_v30  ;;  %v11967_v48 = vadd.f32 %v11656_v31, %v7873_v63  ;;  %v6130_v42 = vshll.u32 %v8551_v10, %v6124_v30 }
 0x4fd   : > { %v6401_v36 = vmul.f32 %v6400_v25, %v6398_v4  ;;  %v6128_v35 = vshrl.u32 %v8551_v10, %v6125_v37  ;;  %v6131_v62 = vshrl.u32 %v8552_v12, %v6125_v37  ;;  %v6133_v59 = vshll.u32 %v8552_v12, %v6124_v30 }
 0x4fe   : > { %v8383_v33 = vpop.eup %8382  ;;  %v2843_v13 = vadd.s32 536870912, %v2842_v7  ;;  %v6134_v61 = vshrl.u32 %v8553_v14, %v6125_v37  ;;  %v6136_v40 = vshll.u32 %v8553_v14, %v6124_v30  ;;  %v6137_v51 = vshrl.u32 %v8554_v16, %v6125_v37 }
 0x4ff   : > { %v8385_v53 = vpop.eup %8384  ;;  %v3090_v56 = vxor.u32 2147483648, %v8383_v33  ;;  %v6402_v43 = vxor.u32 2147483648, %v6401_v36  ;;  %v6129_v3 = vor.u32 %v6128_v35, %v6127_v2  ;;  %v6132_v28 = vor.u32 %v6131_v62, %v6130_v42 }
 0x500   : > { %v3087_v17 = vxor.u32 2147483648, %v8385_v53  ;;  %v11978_v1 = vshrl.u32 %v2843_v13, 30  ;;  %v6139_v49 = vshll.u32 %v8554_v16, %v6124_v30  ;;  %v6140_v9 = vshrl.u32 %v8555_v23, %v6125_v37 }
 0x501   : > { %v3091_v26 = vsel %vm3089_vm3, %v3090_v56, %v8385_v53  ;;  %v6403_v46 = vsel %vm6320_vm9, %v6402_v43, %v6401_v36  ;;  %v6135_v29 = vor.u32 %v6134_v61, %v6133_v59  ;;  %v6138_v41 = vor.u32 %v6137_v51, %v6136_v40  ;;  %v7905_v53 = vpop.f32.mrf.mxu1 }
 0x502   : > { %v3088_v44 = vsel %vm3086_vm2, %v8383_v33, %v3087_v17  ;;  %v6406_v19 = vsel %vm11918_vm11, %v11683_v57, %v6403_v46  ;;  %v2845_v5 = vshll.u32 %v11978_v1, 30  ;;  %v6141_v0 = vor.u32 %v6140_v9, %v6139_v49 }
 0x503   : > { %v3092_v15 = vsel %vm3085_vm1, %v3088_v44, %v3091_v26  ;;  %8386 = vcosq.f32 %v6406_v19  ;;  %v11997_v50 = vand.u32 3, %v6411_v24  ;;  %v6118_v20 = vor.u32 8388608, %v6117_v45 }
 0x504   : > { %v3093_v60 = vsel %vm3082_vm4, nan, %v3092_v15  ;;  %8388 = vsinq.f32 %v6406_v19  ;;  %v11995_v55 = vsub.s32 %v2842_v7, %v2845_v5  ;;  %vm6142_vm6 = vcmp.lt.s32.totalorder %v11963_v54, 1 }
 0x505   : > { %7380 = vst [vmem:[%s9048_s11 + $0xb0] sm:$0xff] %v3093_v60  ;;  %v3097_v21 = vand.u32 2139095040, %v11967_v48  ;;  %vm6144_vm7 = vcmp.lt.s32.totalorder %v11963_v54, 3  ;;  %vm6145_vm8 = vcmp.lt.s32.totalorder %v11963_v54, 4  ;;  %v6150_v22 = vsel %vm6142_vm6, %v6129_v3, %v6132_v28 }
 0x506   : > { %v2848_v18 = vsub.s32 0, %v11995_v55  ;;  %v6126_v52 = vshrl.u32 %v8550_v6, %v6125_v37  ;;  %v6147_v32 = vsel %vm6145_vm8, %v6135_v29, 2102212464  ;;  %v6151_v30 = vsel %vm6145_vm8, %v6138_v41, 920167782 }
 0x507   : > { %v6155_v63 = vsel %vm6145_vm8, %v6141_v0, 1326507024  ;;  %vm6143_vm9 = vcmp.lt.s32.totalorder %v11963_v54, 2  ;;  %v6152_v38 = vsel %vm6144_vm7, %v6135_v29, %v6151_v30  ;;  %v6154_v45 = vsel %vm6142_vm6, %v6132_v28, %v6135_v29 }
 0x508   : > { %v7627_v24 = vmin.u32 %v2848_v18, %v11995_v55  ;;  %v6153_v4 = vsel %vm6143_vm9, %v6150_v22, %v6152_v38  ;;  %v6156_v25 = vsel %vm6144_vm7, %v6138_v41, %v6155_v63  ;;  %v6158_v27 = vshll.u32 %v6118_v20, 8 }
 0x509   : > { %v3098_v37 = vshrl.u32 %v3097_v21, 23  ;;  %v6146_v2 = vsel %vm6142_vm6, %v6126_v52, %v6129_v3  ;;  %v6148_v33 = vsel %vm6144_vm7, %v6132_v28, %v6147_v32  ;;  %v6157_v36 = vsel %vm6143_vm9, %v6154_v45, %v6156_v25 }
 0x50a   : > { %v2850_v7 = vclz %v7627_v24  ;;  %v12023_v35 = vmul.u32.u64.low %v6158_v27, %v6153_v4  ;;  %v12024_v42 = vmul.u32.u64.high %v6158_v27, %v6153_v4, %v12023_v35  ;;  %v2868_v13 = vsub.s32 4, %v11978_v1 }
 0x50b   : > { %v7638_v62 = vadd.s32 4294967169, %v3098_v37  ;;  %v12028_v59 = vmul.u32.u64.low %v6158_v27, %v6157_v36  ;;  %v12029_v61 = vmul.u32.u64.high %v6158_v27, %v6157_v36, %v12028_v59  ;;  %vm6410_vm11 = vweird.f32 %v11683_v57 }
 0x50c   : > { %v7628_v56 = vadd.s32 4294967294, %v2850_v7  ;;  %vm6414_vm10 = vcmp.eq.s32.totalorder %v11997_v50, 0  ;;  %vm2784_vm12 = vcmp.lt.s32.totalorder %v11737_v8, 0  ;;  %v6149_v17 = vsel %vm6143_vm9, %v6146_v2, %v6148_v33 }
 0x50d   : > { %v3104_v43 = vadd.s32 1, %v7638_v62  ;;  %vm6417_vm13 = vcmp.eq.s32.totalorder %v11997_v50, 2  ;;  %v3094_v40 = vand.u32 2147483647, %v11967_v48  ;;  %v12039_v51 = vadd.f32 %v11656_v31, %v7905_v53 }
 0x50e   : > { %vm7629_vm14 = vcmp.lt.s32.totalorder %v7628_v56, 0  ;;  %v2838_v26 = vadd.s32 %v11941_v58, %v11949_v47  ;;  %v6168_v28 = vadd.s32 1, %v12024_v42  ;;  %v2869_v49 = vsel %vm2784_vm12, %v2868_v13, %v11978_v1 }
 0x50f   : > { %v2853_v3 = vsel %vm7629_vm14, 0, %v7628_v56  ;;  %vm3105_vm15 = vcmp.gt.s32.totalorder %v3104_v43, 0  ;;  %v6165_v9 = vmul.u32 %v6158_v27, %v6149_v17  ;;  %vm6167_vm0 = vc.u32 %v12029_v61, %v12023_v35 }
 0x510   : > { %v8387_v44 = vpop.eup %8386  ;;  %v2854_v46 = vsub.s32 32, %v2853_v3  ;;  %v2858_v54 = vsub.s32 4294967266, %v2853_v3  ;;  %v2855_v31 = vshll.u32 %v11995_v55, %v2853_v3  ;;  %v3106_v58 = vsel %vm3105_vm15, %v3104_v43, 0 }
 0x511   : > { %v8389_v15 = vpop.eup %8388  ;;  %v6418_v19 = vxor.u32 2147483648, %v8387_v44  ;;  %v6169_v60 = vsel %vm6167_vm0, %v6168_v28, %v12024_v42  ;;  %v3101_v1 = vand.u32 8388607, %v3094_v40  ;;  %v3108_v20 = vand.u32 31, %v3106_v58 }
 0x512   : > { %v6415_v47 = vxor.u32 2147483648, %v8389_v15  ;;  %v2856_v5 = vshrl.u32 %v2838_v26, %v2854_v46  ;;  %v2859_v29 = vadd.s32 127, %v2858_v54  ;;  %v6170_v0 = vadd.s32 %v6169_v60, %v6165_v9 }
 0x513   : > { %v6419_v41 = vsel %vm6417_vm13, %v6418_v19, %v8389_v15  ;;  %vm6413_vm1 = vcmp.lt.s32.totalorder %v11997_v50, 2  ;;  %vm12060_vm2 = vcmp.le.f32.partialorder %v2782_v34, 0.7853982  ;;  %v3109_v30 = vsub.s32 32, %v3108_v20 }
 0x514   : > { %v6416_v55 = vsel %vm6414_vm10, %v8387_v44, %v6415_v47  ;;  %v2857_v21 = vor.u32 %v2856_v5, %v2855_v31  ;;  %v2860_v18 = vshll.u32 %v2859_v29, 23  ;;  %v6171_v32 = vadd.s32 536870912, %v6170_v0 }
 0x515   : > { %v6420_v22 = vsel %vm6413_vm1, %v6416_v55, %v6419_v41  ;;  %v2871_v38 = vsel %vm12060_vm2, 0, %v2869_v49  ;;  %v3102_v45 = vor.u32 8388608, %v3101_v1  ;;  %v3112_v4 = vshrl.u32 %v8551_v10, %v3109_v30 }
 0x516   : > { %v6421_v63 = vsel %vm6410_vm11, nan, %v6420_v22  ;;  %v2861_v24 = vor.u32 4788187, %v2860_v18  ;;  %v12069_v50 = vshrl.u32 %v6171_v32, 30  ;;  %v6425_v34 = vand.u32 2139095040, %v12039_v51 }
 0x517   : > { %7412 = vst [vmem:[%s9048_s11 + $0x1b0] sm:$0xff] %v6421_v63  ;;  %v2864_v27 = vcvt.s32.f32 %v2857_v21  ;;  %v3115_v37 = vshrl.u32 %v8552_v12, %v3109_v30  ;;  %v3118_v7 = vshrl.u32 %v8553_v14, %v3109_v30  ;;  %v3107_v2 = vshrl.u32 %v3106_v58, 5 }
 0x518   : > { %v2862_v25 = vand.u32 2147483647, %v2861_v24  ;;  %v6173_v57 = vshll.u32 %v12069_v50, 30  ;;  %v3111_v33 = vshll.u32 %v8550_v6, %v3108_v20  ;;  %v3117_v36 = vshll.u32 %v8552_v12, %v3108_v20 }
 0x519   : > { %v3114_v62 = vshll.u32 %v8551_v10, %v3108_v20  ;;  %v3120_v53 = vshll.u32 %v8553_v14, %v3108_v20  ;;  %v3121_v56 = vshrl.u32 %v8554_v16, %v3109_v30  ;;  %v3124_v43 = vshrl.u32 %v8555_v23, %v3109_v30 }
 0x51a   : > { %v2865_v42 = vmul.f32 %v2864_v27, %v2862_v25  ;;  %v12081_v13 = vsub.s32 %v6170_v0, %v6173_v57  ;;  %v3113_v59 = vor.u32 %v3112_v4, %v3111_v33  ;;  %v3119_v17 = vor.u32 %v3118_v7, %v3117_v36 }
 0x51b   : > { %v3116_v3 = vor.u32 %v3115_v37, %v3114_v62  ;;  %v3122_v28 = vor.u32 %v3121_v56, %v3120_v53  ;;  %v3123_v44 = vshll.u32 %v8554_v16, %v3108_v20  ;;  %v2875_v46 = vadd.s32 3, %v2871_v38 }
 0x51c   : > { %v2866_v26 = vxor.u32 2147483648, %v2865_v42  ;;  %v6176_v54 = vsub.s32 0, %v12081_v13  ;;  %v3142_v49 = vshll.u32 %v3102_v45, 8  ;;  %v6426_v9 = vshrl.u32 %v6425_v34, 23 }
 0x51d   : > { %v3110_v19 = vshrl.u32 %v8550_v6, %v3109_v30  ;;  %v3125_v31 = vor.u32 %v3124_v43, %v3123_v44  ;;  %vm3129_vm3 = vcmp.lt.s32.totalorder %v3107_v2, 4  ;;  %vm3126_vm4 = vcmp.lt.s32.totalorder %v3107_v2, 1 }
 0x51e   : > { %v2867_v15 = vsel %vm2784_vm12, %v2866_v26, %v2865_v42  ;;  %v7755_v47 = vmin.u32 %v6176_v54, %v12081_v13  ;;  %v3131_v5 = vsel %vm3129_vm3, %v3119_v17, 2102212464  ;;  %vm3127_vm5 = vcmp.lt.s32.totalorder %v3107_v2, 2  ;;  %v530_v54 = vpop.f32.mrf.mxu0 }
 0x51f   : > { %v2870_v58 = vsel %vm12060_vm2, %v11737_v8, %v2867_v15  ;;  %v3134_v29 = vsel %vm3126_vm4, %v3113_v59, %v3116_v3  ;;  %v3135_v60 = vsel %vm3129_vm3, %v3122_v28, 920167782  ;;  %vm3128_vm6 = vcmp.lt.s32.totalorder %v3107_v2, 3 }
 0x520   : > { %8390 = vcosq.f32 %v2870_v58  ;;  %v6178_v41 = vclz %v7755_v47  ;;  %v3138_v0 = vsel %vm3126_vm4, %v3116_v3, %v3119_v17  ;;  %v3130_v1 = vsel %vm3126_vm4, %v3110_v19, %v3113_v59 }
 0x521   : > { %8392 = vsinq.f32 %v2870_v58  ;;  %v3132_v20 = vsel %vm3128_vm6, %v3116_v3, %v3131_v5  ;;  %v3136_v55 = vsel %vm3128_vm6, %v3119_v17, %v3135_v60  ;;  %v3139_v21 = vsel %vm3129_vm3, %v3125_v31, 1326507024 }
 0x522   : > { %v7756_v18 = vadd.s32 4294967294, %v6178_v41  ;;  %v6196_v22 = vsub.s32 4, %v12069_v50  ;;  %v3137_v52 = vsel %vm3127_vm5, %v3134_v29, %v3136_v55  ;;  %v3140_v32 = vsel %vm3128_vm6, %v3122_v28, %v3139_v21 }
 0x523   : > { %v3141_v30 = vsel %vm3127_vm5, %v3138_v0, %v3140_v32  ;;  %v12099_v63 = vmul.u32.u64.low %v3142_v49, %v3137_v52  ;;  %v12100_v24 = vmul.u32.u64.high %v3142_v49, %v3137_v52, %v12099_v63  ;;  %v7766_v38 = vadd.s32 4294967169, %v6426_v9  ;;  %v12138_v0 = vld [vmem:[%s13586_s2] ss:$0 sm:$0xff] }
 0x524   : > { %vm7757_vm7 = vcmp.lt.s32.totalorder %v7756_v18, 0  ;;  %v3133_v45 = vsel %vm3127_vm5, %v3130_v1, %v3132_v20  ;;  %v12104_v4 = vmul.u32.u64.low %v3142_v49, %v3141_v30  ;;  %v12105_v34 = vmul.u32.u64.high %v3142_v49, %v3141_v30, %v12104_v4 }
 0x525   : > { %v2876_v25 = vand.u32 3, %v2875_v46  ;;  %vm6112_vm8 = vcmp.lt.s32.totalorder %v11887_v11, 0  ;;  %v6181_v27 = vsel %vm7757_vm7, 0, %v7756_v18  ;;  %v6432_v37 = vadd.s32 1, %v7766_v38 }
 0x526   : > { %v6166_v7 = vadd.s32 %v12023_v35, %v12029_v61  ;;  %v6182_v57 = vsub.s32 32, %v6181_v27  ;;  %v6186_v33 = vsub.s32 4294967266, %v6181_v27  ;;  %v6422_v36 = vand.u32 2147483647, %v12039_v51 }
 0x527   : > { %v6197_v2 = vsel %vm6112_vm8, %v6196_v22, %v12069_v50  ;;  %v3149_v42 = vmul.u32 %v3142_v49, %v3133_v45  ;;  %v3152_v62 = vadd.s32 1, %v12100_v24  ;;  %vm6433_vm9 = vcmp.gt.s32.totalorder %v6432_v37, 0 }
 0x528   : > { %v6183_v53 = vshll.u32 %v12081_v13, %v6181_v27  ;;  %v6184_v56 = vshrl.u32 %v6166_v7, %v6182_v57  ;;  %v6187_v59 = vadd.s32 127, %v6186_v33  ;;  %vm3151_vm11 = vc.u32 %v12105_v34, %v12099_v63 }
 0x529   : > { %vm12120_vm10 = vcmp.le.f32.partialorder %v6110_v39, 0.7853982  ;;  %v3153_v61 = vsel %vm3151_vm11, %v3152_v62, %v12100_v24  ;;  %v6434_v50 = vsel %vm6433_vm9, %v6432_v37, 0  ;;  %vm2874_vm12 = vweird.f32 %v11737_v8 }
 0x52a   : > { %v6185_v17 = vor.u32 %v6184_v56, %v6183_v53  ;;  %v6188_v43 = vshll.u32 %v6187_v59, 23  ;;  %v6199_v26 = vsel %vm12120_vm10, 0, %v6197_v2  ;;  %v3154_v13 = vadd.s32 %v3153_v61, %v3149_v42 }
 0x52b   : > { %v6429_v3 = vand.u32 8388607, %v6422_v36  ;;  %v6436_v28 = vand.u32 31, %v6434_v50  ;;  %vm2877_vm13 = vcmp.lt.s32.totalorder %v2876_v25, 2  ;;  %vm2878_vm14 = vcmp.eq.s32.totalorder %v2876_v25, 0 }
 0x52c   : > { %v6189_v39 = vor.u32 4788187, %v6188_v43  ;;  %v3155_v46 = vadd.s32 536870912, %v3154_v13  ;;  %vm2881_vm15 = vcmp.eq.s32.totalorder %v2876_v25, 2  ;;  %v12130_v15 = vadd.s32 3, %v6199_v26 }
 0x52d   : > { %v8391_v44 = vpop.eup %8390  ;;  %v6437_v19 = vsub.s32 32, %v6436_v28  ;;  %v6192_v47 = vcvt.s32.f32 %v6185_v17  ;;  %v6430_v60 = vor.u32 8388608, %v6429_v3  ;;  %v12141_v1 = vadd.f32 %v12138_v0, %v530_v54 }
 0x52e   : > { %v8393_v49 = vpop.eup %8392  ;;  %v2882_v9 = vxor.u32 2147483648, %v8391_v44  ;;  %v6190_v58 = vand.u32 2147483647, %v6189_v39  ;;  %v12132_v5 = vshrl.u32 %v3155_v46, 30  ;;  %v6439_v52 = vshll.u32 %v8550_v6, %v6436_v28 }
 0x52f   : > { %v2879_v31 = vxor.u32 2147483648, %v8393_v49  ;;  %v6440_v41 = vshrl.u32 %v8551_v10, %v6437_v19  ;;  %v6443_v18 = vshrl.u32 %v8552_v12, %v6437_v19  ;;  %v6442_v32 = vshll.u32 %v8551_v10, %v6436_v28 }
 0x530   : > { %v2883_v29 = vsel %vm2881_vm15, %v2882_v9, %v8393_v49  ;;  %v6193_v55 = vmul.f32 %v6192_v47, %v6190_v58  ;;  %v3157_v21 = vshll.u32 %v12132_v5, 30  ;;  %v6446_v30 = vshrl.u32 %v8553_v14, %v6437_v19 }
 0x531   : > { %v2880_v20 = vsel %vm2878_vm14, %v8391_v44, %v2879_v31  ;;  %v6445_v4 = vshll.u32 %v8552_v12, %v6436_v28  ;;  %v6435_v27 = vshrl.u32 %v6434_v50, 5  ;;  %v6441_v37 = vor.u32 %v6440_v41, %v6439_v52 }
 0x532   : > { %v2884_v22 = vsel %vm2877_vm13, %v2880_v20, %v2883_v29  ;;  %v6194_v38 = vxor.u32 2147483648, %v6193_v55  ;;  %v12152_v45 = vsub.s32 %v3154_v13, %v3157_v21  ;;  %v6448_v25 = vshll.u32 %v8553_v14, %v6436_v28 }
 0x533   : > { %v2885_v24 = vsel %vm2874_vm12, nan, %v2884_v22  ;;  %v6449_v7 = vshrl.u32 %v8554_v16, %v6437_v19  ;;  %v6444_v2 = vor.u32 %v6443_v18, %v6442_v32  ;;  %v6447_v8 = vor.u32 %v6446_v30, %v6445_v4  ;;  %v658_v32 = vpop.f32.mrf.mxu1 }
 0x534   : > { %7378 = vst [vmem:[%s9048_s11 + $0xa0] sm:$0xff] %v2885_v24  ;;  %v6195_v57 = vsel %vm6112_vm8, %v6194_v38, %v6193_v55  ;;  %v3160_v33 = vsub.s32 0, %v12152_v45  ;;  %v6451_v53 = vshll.u32 %v8554_v16, %v6436_v28  ;;  %v6452_v56 = vshrl.u32 %v8555_v23, %v6437_v19 }
 0x535   : > { %v6198_v42 = vsel %vm12120_vm10, %v11887_v11, %v6195_v57  ;;  %v6450_v62 = vor.u32 %v6449_v7, %v6448_v25  ;;  %v6470_v61 = vshll.u32 %v6430_v60, 8  ;;  %v2889_v50 = vand.u32 2139095040, %v12141_v1 }
 0x536   : > { %8394 = vcosq.f32 %v6198_v42  ;;  %v7639_v59 = vmin.u32 %v3160_v33, %v12152_v45  ;;  %v6438_v17 = vshrl.u32 %v8550_v6, %v6437_v19  ;;  %v6453_v43 = vor.u32 %v6452_v56, %v6451_v53 }
 0x537   : > { %8396 = vsinq.f32 %v6198_v42  ;;  %vm6454_vm0 = vcmp.lt.s32.totalorder %v6435_v27, 1  ;;  %vm6455_vm1 = vcmp.lt.s32.totalorder %v6435_v27, 2  ;;  %vm6456_vm2 = vcmp.lt.s32.totalorder %v6435_v27, 3 }
 0x538   : > { %v3162_v26 = vclz %v7639_v59  ;;  %vm6457_vm3 = vcmp.lt.s32.totalorder %v6435_v27, 4  ;;  %v6462_v13 = vsel %vm6454_vm0, %v6441_v37, %v6444_v2  ;;  %v6466_v28 = vsel %vm6454_vm0, %v6444_v2, %v6447_v8 }
 0x539   : > { %v6459_v35 = vsel %vm6457_vm3, %v6447_v8, 2102212464  ;;  %v6463_v3 = vsel %vm6457_vm3, %v6450_v62, 920167782  ;;  %v6458_v39 = vsel %vm6454_vm0, %v6438_v17, %v6441_v37  ;;  %v6467_v54 = vsel %vm6457_vm3, %v6453_v43, 1326507024 }
 0x53a   : > { %v7640_v44 = vadd.s32 4294967294, %v3162_v26  ;;  %v6464_v46 = vsel %vm6456_vm2, %v6447_v8, %v6463_v3  ;;  %v6460_v49 = vsel %vm6456_vm2, %v6444_v2, %v6459_v35  ;;  %v6468_v31 = vsel %vm6456_vm2, %v6450_v62, %v6467_v54 }
 0x53b   : > { %v6465_v9 = vsel %vm6455_vm1, %v6462_v13, %v6464_v46  ;;  %v2890_v58 = vshrl.u32 %v2889_v50, 23  ;;  %v6469_v19 = vsel %vm6455_vm1, %v6466_v28, %v6468_v31  ;;  %v3150_v60 = vadd.s32 %v12099_v63, %v12105_v34 }
 0x53c   : > { %vm7641_vm4 = vcmp.lt.s32.totalorder %v7640_v44, 0  ;;  %v12171_v47 = vmul.u32.u64.low %v6470_v61, %v6465_v9  ;;  %v12172_v29 = vmul.u32.u64.high %v6470_v61, %v6465_v9, %v12171_v47  ;;  %v6461_v22 = vsel %vm6455_vm1, %v6458_v39, %v6460_v49 }
 0x53d   : > { %v3165_v41 = vsel %vm7641_vm4, 0, %v7640_v44  ;;  %v12177_v20 = vmul.u32.u64.low %v6470_v61, %v6469_v19  ;;  %v12178_v55 = vmul.u32.u64.high %v6470_v61, %v6469_v19, %v12177_v20  ;;  %v7630_v52 = vadd.s32 4294967169, %v2890_v58 }
 0x53e   : > { %v3166_v21 = vsub.s32 32, %v3165_v41  ;;  %v3170_v18 = vsub.s32 4294967266, %v3165_v41  ;;  %v6204_v30 = vand.u32 3, %v12130_v15  ;;  %v3167_v24 = vshll.u32 %v12152_v45, %v3165_v41 }
 0x53f   : > { %v3180_v38 = vsub.s32 4, %v12132_v5  ;;  %v2886_v4 = vand.u32 2147483647, %v12141_v1  ;;  %vm6202_vm5 = vweird.f32 %v11887_v11  ;;  %v6480_v37 = vadd.s32 1, %v12172_v29 }
 0x540   : > { %v3168_v63 = vshrl.u32 %v3150_v60, %v3166_v21  ;;  %v3171_v34 = vadd.s32 127, %v3170_v18  ;;  %v2896_v25 = vadd.s32 1, %v7630_v52  ;;  %vm3096_vm6 = vcmp.lt.s32.totalorder %v11967_v48, 0 }
 0x541   : > { %v6477_v27 = vmul.u32 %v6470_v61, %v6461_v22  ;;  %vm6479_vm7 = vc.u32 %v12178_v55, %v12171_v47  ;;  %v12191_v15 = vadd.f32 %v12138_v0, %v658_v32  ;;  %vm6209_vm9 = vcmp.eq.s32.totalorder %v6204_v30, 2 }
 0x542   : > { %v3169_v45 = vor.u32 %v3168_v63, %v3167_v24  ;;  %v3172_v7 = vshll.u32 %v3171_v34, 23  ;;  %v6481_v57 = vsel %vm6479_vm7, %v6480_v37, %v12172_v29  ;;  %vm2897_vm8 = vcmp.gt.s32.totalorder %v2896_v25, 0 }
 0x543   : > { %v8395_v33 = vpop.eup %8394  ;;  %vm12196_vm11 = vcmp.le.f32.partialorder %v3094_v40, 0.7853982  ;;  %v6482_v8 = vadd.s32 %v6481_v57, %v6477_v27  ;;  %v2898_v42 = vsel %vm2897_vm8, %v2896_v25, 0  ;;  %v12203_v59 = vsel %vm3096_vm6, %v3180_v38, %v12132_v5 }
 0x544   : > { %v8397_v62 = vpop.eup %8396  ;;  %v6210_v53 = vxor.u32 2147483648, %v8395_v33  ;;  %v3173_v56 = vor.u32 4788187, %v3172_v7  ;;  %v2893_v61 = vand.u32 8388607, %v2886_v4  ;;  %v2900_v43 = vand.u32 31, %v2898_v42 }
 0x545   : > { %v6207_v50 = vxor.u32 2147483648, %v8397_v62  ;;  %v6483_v17 = vadd.s32 536870912, %v6482_v8  ;;  %v6217_v40 = vand.u32 2139095040, %v12191_v15  ;;  %vm6206_vm10 = vcmp.eq.s32.totalorder %v6204_v30, 0 }
 0x546   : > { %v6211_v26 = vsel %vm6209_vm9, %v6210_v53, %v8397_v62  ;;  %v3174_v35 = vand.u32 2147483647, %v3173_v56  ;;  %v3176_v13 = vcvt.s32.f32 %v3169_v45  ;;  %vm6205_vm12 = vcmp.lt.s32.totalorder %v6204_v30, 2 }
 0x547   : > { %v6208_v3 = vsel %vm6206_vm10, %v8395_v33, %v6207_v50  ;;  %v12208_v28 = vshrl.u32 %v6483_v17, 30  ;;  %v2901_v44 = vsub.s32 32, %v2900_v43  ;;  %v3183_v46 = vsel %vm12196_vm11, 0, %v12203_v59 }
 0x548   : > { %v6212_v5 = vsel %vm6205_vm12, %v6208_v3, %v6211_v26  ;;  %v3177_v39 = vmul.f32 %v3176_v13, %v3174_v35  ;;  %v2894_v54 = vor.u32 8388608, %v2893_v61  ;;  %v2903_v31 = vshll.u32 %v8550_v6, %v2900_v43 }
 0x549   : > { %v6213_v49 = vsel %vm6202_vm5, nan, %v6212_v5  ;;  %v6485_v9 = vshll.u32 %v12208_v28, 30  ;;  %v6218_v58 = vshrl.u32 %v6217_v40, 23  ;;  %v2904_v29 = vshrl.u32 %v8551_v10, %v2901_v44 }
 0x54a   : > { %7410 = vst [vmem:[%s9048_s11 + $0x1a0] sm:$0xff] %v6213_v49  ;;  %v3178_v19 = vxor.u32 2147483648, %v3177_v39  ;;  %v2907_v60 = vshrl.u32 %v8552_v12, %v2901_v44  ;;  %v2910_v41 = vshrl.u32 %v8553_v14, %v2901_v44  ;;  %v2906_v21 = vshll.u32 %v8551_v10, %v2900_v43 }
 0x54b   : > { %v12221_v20 = vsub.s32 %v6482_v8, %v6485_v9  ;;  %v2909_v11 = vshll.u32 %v8552_v12, %v2900_v43  ;;  %v2913_v18 = vshrl.u32 %v8554_v16, %v2901_v44  ;;  %v2899_v52 = vshrl.u32 %v2898_v42, 5 }
 0x54c   : > { %v3179_v22 = vsel %vm3096_vm6, %v3178_v19, %v3177_v39  ;;  %v2905_v32 = vor.u32 %v2904_v29, %v2903_v31  ;;  %v2912_v30 = vshll.u32 %v8553_v14, %v2900_v43  ;;  %v2908_v63 = vor.u32 %v2907_v60, %v2906_v21 }
 0x54d   : > { %v3182_v24 = vsel %vm12196_vm11, %v11967_v48, %v3179_v22  ;;  %v6488_v38 = vsub.s32 0, %v12221_v20  ;;  %v2911_v34 = vor.u32 %v2910_v41, %v2909_v11  ;;  %vm6424_vm13 = vcmp.lt.s32.totalorder %v12039_v51, 0 }
 0x54e   : > { %8398 = vcosq.f32 %v3182_v24  ;;  %v2914_v37 = vor.u32 %v2913_v18, %v2912_v30  ;;  %v2915_v25 = vshll.u32 %v8554_v16, %v2900_v43  ;;  %v2916_v27 = vshrl.u32 %v8555_v23, %v2901_v44 }
 0x54f   : > { %8400 = vsinq.f32 %v3182_v24  ;;  %v7767_v45 = vmin.u32 %v6488_v38, %v12221_v20  ;;  %v2934_v7 = vshll.u32 %v2894_v54, 8  ;;  %v7758_v57 = vadd.s32 4294967169, %v6218_v58 }
 0x550   : > { %v2902_v33 = vshrl.u32 %v8550_v6, %v2901_v44  ;;  %v2917_v2 = vor.u32 %v2916_v27, %v2915_v25  ;;  %vm2918_vm14 = vcmp.lt.s32.totalorder %v2899_v52, 1  ;;  %vm2919_vm15 = vcmp.lt.s32.totalorder %v2899_v52, 2  ;;  %v7876_v27 = vpop.f32.mrf.mxu0 }
 0x551   : > { %v6490_v8 = vclz %v7767_v45  ;;  %vm2920_vm0 = vcmp.lt.s32.totalorder %v2899_v52, 3  ;;  %vm2921_vm1 = vcmp.lt.s32.totalorder %v2899_v52, 4  ;;  %v2926_v42 = vsel %vm2918_vm14, %v2905_v32, %v2908_v63 }
 0x552   : > { %v2923_v62 = vsel %vm2921_vm1, %v2911_v34, 2102212464  ;;  %v2927_v53 = vsel %vm2921_vm1, %v2914_v37, 920167782  ;;  %v2930_v56 = vsel %vm2918_vm14, %v2908_v63, %v2911_v34  ;;  %v2931_v59 = vsel %vm2921_vm1, %v2917_v2, 1326507024 }
 0x553   : > { %v7768_v61 = vadd.s32 4294967294, %v6490_v8  ;;  %v6508_v50 = vsub.s32 4, %v12208_v28  ;;  %v2928_v17 = vsel %vm2920_vm0, %v2911_v34, %v2927_v53  ;;  %v2932_v43 = vsel %vm2920_vm0, %v2914_v37, %v2931_v59 }
 0x554   : > { %v3187_v40 = vadd.s32 3, %v3183_v46  ;;  %v2922_v26 = vsel %vm2918_vm14, %v2902_v33, %v2905_v32  ;;  %v2929_v35 = vsel %vm2919_vm15, %v2926_v42, %v2928_v17  ;;  %v2933_v13 = vsel %vm2919_vm15, %v2930_v56, %v2932_v43 }
 0x555   : > { %vm7769_vm2 = vcmp.lt.s32.totalorder %v7768_v61, 0  ;;  %v2924_v3 = vsel %vm2920_vm0, %v2908_v63, %v2923_v62  ;;  %v12244_v44 = vmul.u32.u64.low %v2934_v7, %v2933_v13  ;;  %v12245_v5 = vmul.u32.u64.high %v2934_v7, %v2933_v13, %v12244_v44 }
 0x556   : > { %v6493_v39 = vsel %vm7769_vm2, 0, %v7768_v61  ;;  %v12247_v54 = vmul.u32.u64.low %v2934_v7, %v2929_v35  ;;  %v12248_v49 = vmul.u32.u64.high %v2934_v7, %v2929_v35, %v12247_v54  ;;  %v6224_v9 = vadd.s32 1, %v7758_v57 }
 0x557   : > { %v6478_v46 = vadd.s32 %v12171_v47, %v12178_v55  ;;  %v6494_v31 = vsub.s32 32, %v6493_v39  ;;  %v6498_v58 = vsub.s32 4294967266, %v6493_v39  ;;  %v6509_v19 = vsel %vm6424_vm13, %v6508_v50, %v12208_v28 }
 0x558   : > { %vm3186_vm3 = vweird.f32 %v11967_v48  ;;  %v3188_v29 = vand.u32 3, %v3187_v40  ;;  %vm12259_vm4 = vcmp.le.f32.partialorder %v6422_v36, 0.7853982  ;;  %v2925_v41 = vsel %vm2919_vm15, %v2922_v26, %v2924_v3 }
 0x559   : > { %vm6225_vm5 = vcmp.gt.s32.totalorder %v6224_v9, 0  ;;  %v6495_v47 = vshll.u32 %v12221_v20, %v6493_v39  ;;  %v6496_v55 = vshrl.u32 %v6478_v46, %v6494_v31  ;;  %v6499_v21 = vadd.s32 127, %v6498_v58 }
 0x55a   : > { %vm2943_vm6 = vc.u32 %v12245_v5, %v12247_v54  ;;  %v6511_v28 = vsel %vm12259_vm4, 0, %v6509_v19  ;;  %v2944_v11 = vadd.s32 1, %v12248_v49  ;;  %v6214_v36 = vand.u32 2147483647, %v12191_v15 }
 0x55b   : > { %v6226_v18 = vsel %vm6225_vm5, %v6224_v9, 0  ;;  %v8399_v22 = vpop.eup %8398  ;;  %v6497_v32 = vor.u32 %v6496_v55, %v6495_v47  ;;  %v6500_v52 = vshll.u32 %v6499_v21, 23  ;;  %v2941_v30 = vmul.u32 %v2934_v7, %v2925_v41 }
 0x55c   : > { %v6228_v24 = vand.u32 31, %v6226_v18  ;;  %v8401_v38 = vpop.eup %8400  ;;  %vm3189_vm7 = vcmp.lt.s32.totalorder %v3188_v29, 2  ;;  %vm3190_vm8 = vcmp.eq.s32.totalorder %v3188_v29, 0  ;;  %v3194_v20 = vxor.u32 2147483648, %v8399_v22 }
 0x55d   : > { %v2945_v63 = vsel %vm2943_vm6, %v2944_v11, %v12248_v49  ;;  %v3191_v34 = vxor.u32 2147483648, %v8401_v38  ;;  %vm3193_vm9 = vcmp.eq.s32.totalorder %v3188_v29, 2  ;;  %v6501_v37 = vor.u32 4788187, %v6500_v52 }
 0x55e   : > { %v2946_v25 = vadd.s32 %v2945_v63, %v2941_v30  ;;  %v3195_v45 = vsel %vm3193_vm9, %v3194_v20, %v8401_v38  ;;  %v6515_v57 = vadd.s32 3, %v6511_v28  ;;  %v6221_v33 = vand.u32 8388607, %v6214_v36 }
 0x55f   : > { %v6229_v2 = vsub.s32 32, %v6228_v24  ;;  %v3192_v7 = vsel %vm3190_vm8, %v8399_v22, %v3191_v34  ;;  %v6502_v8 = vand.u32 2147483647, %v6501_v37  ;;  %v6504_v42 = vcvt.s32.f32 %v6497_v32 }
 0x560   : > { %v2947_v62 = vadd.s32 536870912, %v2946_v25  ;;  %v3196_v53 = vsel %vm3189_vm7, %v3192_v7, %v3195_v45  ;;  %v12278_v61 = vadd.f32 %v12138_v0, %v7876_v27  ;;  %v6227_v26 = vshrl.u32 %v6226_v18, 5  ;;  %v7908_v7 = vpop.f32.mrf.mxu1 }
 0x561   : > { %v6232_v56 = vshrl.u32 %v8551_v10, %v6229_v2  ;;  %v6235_v59 = vshrl.u32 %v8552_v12, %v6229_v2  ;;  %v3197_v50 = vsel %vm3186_vm3, nan, %v3196_v53  ;;  %v6505_v17 = vmul.f32 %v6504_v42, %v6502_v8 }
 0x562   : > { %v12282_v43 = vshrl.u32 %v2947_v62, 30  ;;  %v6238_v40 = vshrl.u32 %v8553_v14, %v6229_v2  ;;  %7381 = vst [vmem:[%s9048_s11 + $0xb8] sm:$0xff] %v3197_v50  ;;  %v6231_v35 = vshll.u32 %v8550_v6, %v6228_v24  ;;  %v6234_v13 = vshll.u32 %v8551_v10, %v6228_v24 }
 0x563   : > { %v6241_v3 = vshrl.u32 %v8554_v16, %v6229_v2  ;;  %v6506_v44 = vxor.u32 2147483648, %v6505_v17  ;;  %v6237_v49 = vshll.u32 %v8552_v12, %v6228_v24  ;;  %v6240_v48 = vshll.u32 %v8553_v14, %v6228_v24 }
 0x564   : > { %v2949_v39 = vshll.u32 %v12282_v43, 30  ;;  %v6233_v9 = vor.u32 %v6232_v56, %v6231_v35  ;;  %v6236_v46 = vor.u32 %v6235_v59, %v6234_v13  ;;  %v6243_v31 = vshll.u32 %v8554_v16, %v6228_v24 }
 0x565   : > { %v6244_v58 = vshrl.u32 %v8555_v23, %v6229_v2  ;;  %v6507_v19 = vsel %vm6424_vm13, %v6506_v44, %v6505_v17  ;;  %v6239_v41 = vor.u32 %v6238_v40, %v6237_v49  ;;  %v6242_v47 = vor.u32 %v6241_v3, %v6240_v48 }
 0x566   : > { %v12296_v29 = vsub.s32 %v2946_v25, %v2949_v39  ;;  %v6510_v55 = vsel %vm12259_vm4, %v12039_v51, %v6507_v19  ;;  %v12301_v21 = vand.u32 3, %v6515_v57  ;;  %v6222_v28 = vor.u32 8388608, %v6221_v33 }
 0x567   : > { %v6245_v11 = vor.u32 %v6244_v58, %v6243_v31  ;;  %8402 = vcosq.f32 %v6510_v55  ;;  %v6230_v22 = vshrl.u32 %v8550_v6, %v6229_v2  ;;  %v3409_v32 = vand.u32 2139095040, %v12278_v61 }
 0x568   : > { %v2952_v18 = vsub.s32 0, %v12296_v29  ;;  %8404 = vsinq.f32 %v6510_v55  ;;  %vm6246_vm11 = vcmp.lt.s32.totalorder %v6227_v26, 1  ;;  %vm6248_vm10 = vcmp.lt.s32.totalorder %v6227_v26, 3 }
 0x569   : > { %vm6249_vm12 = vcmp.lt.s32.totalorder %v6227_v26, 4  ;;  %v6254_v60 = vsel %vm6246_vm11, %v6233_v9, %v6236_v46  ;;  %v6258_v20 = vsel %vm6246_vm11, %v6236_v46, %v6239_v41  ;;  %v6262_v34 = vshll.u32 %v6222_v28, 8 }
 0x56a   : > { %v7631_v52 = vmin.u32 %v2952_v18, %v12296_v29  ;;  %v6251_v30 = vsel %vm6249_vm12, %v6239_v41, 2102212464  ;;  %v6255_v24 = vsel %vm6249_vm12, %v6242_v47, 920167782  ;;  %v6259_v63 = vsel %vm6249_vm12, %v6245_v11, 1326507024 }
 0x56b   : > { %v6256_v38 = vsel %vm6248_vm10, %v6239_v41, %v6255_v24  ;;  %v2972_v25 = vsub.s32 4, %v12282_v43  ;;  %vm6247_vm13 = vcmp.lt.s32.totalorder %v6227_v26, 2  ;;  %v6250_v27 = vsel %vm6246_vm11, %v6230_v22, %v6233_v9 }
 0x56c   : > { %v2954_v37 = vclz %v7631_v52  ;;  %v6252_v45 = vsel %vm6248_vm10, %v6236_v46, %v6251_v30  ;;  %v6257_v57 = vsel %vm6247_vm13, %v6254_v60, %v6256_v38  ;;  %v6260_v33 = vsel %vm6248_vm10, %v6242_v47, %v6259_v63 }
 0x56d   : > { %v3410_v2 = vshrl.u32 %v3409_v32, 23  ;;  %v6261_v42 = vsel %vm6247_vm13, %v6258_v20, %v6260_v33  ;;  %v12311_v62 = vmul.u32.u64.low %v6262_v34, %v6257_v57  ;;  %v12312_v53 = vmul.u32.u64.high %v6262_v34, %v6257_v57, %v12311_v62 }
 0x56e   : > { %v7632_v8 = vadd.s32 4294967294, %v2954_v37  ;;  %vm2888_vm14 = vcmp.lt.s32.totalorder %v12141_v1, 0  ;;  %v12315_v56 = vmul.u32.u64.low %v6262_v34, %v6261_v42  ;;  %v12316_v59 = vmul.u32.u64.high %v6262_v34, %v6261_v42, %v12315_v56 }
 0x56f   : > { %v7650_v50 = vadd.s32 4294967169, %v3410_v2  ;;  %vm12320_vm15 = vcmp.le.f32.partialorder %v2886_v4, 0.7853982  ;;  %v6253_v40 = vsel %vm6247_vm13, %v6250_v27, %v6252_v45  ;;  %v12325_v26 = vadd.f32 %v12138_v0, %v7908_v7 }
 0x570   : > { %vm7633_vm0 = vcmp.lt.s32.totalorder %v7632_v8, 0  ;;  %vm6517_vm1 = vcmp.lt.s32.totalorder %v12301_v21, 2  ;;  %v2942_v35 = vadd.s32 %v12247_v54, %v12245_v5  ;;  %v3406_v3 = vand.u32 2147483647, %v12278_v61 }
 0x571   : > { %v2957_v13 = vsel %vm7633_vm0, 0, %v7632_v8  ;;  %v3416_v44 = vadd.s32 1, %v7650_v50  ;;  %vm6514_vm2 = vweird.f32 %v12039_v51  ;;  %v2973_v49 = vsel %vm2888_vm14, %v2972_v25, %v12282_v43 }
 0x572   : > { %v2958_v4 = vsub.s32 32, %v2957_v13  ;;  %v2962_v39 = vsub.s32 4294967266, %v2957_v13  ;;  %v6272_v48 = vadd.s32 1, %v12312_v53  ;;  %v2959_v9 = vshll.u32 %v12296_v29, %v2957_v13 }
 0x573   : > { %v6269_v46 = vmul.u32 %v6262_v34, %v6253_v40  ;;  %vm6271_vm3 = vc.u32 %v12316_v59, %v12311_v62  ;;  %vm3417_vm4 = vcmp.gt.s32.totalorder %v3416_v44, 0  ;;  %v2975_v41 = vsel %vm12320_vm15, 0, %v2973_v49 }
 0x574   : > { %v2960_v5 = vshrl.u32 %v2942_v35, %v2958_v4  ;;  %v2963_v54 = vadd.s32 127, %v2962_v39  ;;  %v6273_v31 = vsel %vm6271_vm3, %v6272_v48, %v12312_v53  ;;  %v3418_v58 = vsel %vm3417_vm4, %v3416_v44, 0  ;;  %v8403_v19 = vpop.eup %8402 }
 0x575   : > { %v6274_v47 = vadd.s32 %v6273_v31, %v6269_v46  ;;  %v3413_v43 = vand.u32 8388607, %v3406_v3  ;;  %v3420_v55 = vand.u32 31, %v3418_v58  ;;  %v8405_v28 = vpop.eup %8404  ;;  %vm6518_vm5 = vcmp.eq.s32.totalorder %v12301_v21, 0 }
 0x576   : > { %v6522_v29 = vxor.u32 2147483648, %v8403_v19  ;;  %v2961_v11 = vor.u32 %v2960_v5, %v2959_v9  ;;  %v2964_v18 = vshll.u32 %v2963_v54, 23  ;;  %v6519_v22 = vxor.u32 2147483648, %v8405_v28 }
 0x577   : > { %vm6521_vm6 = vcmp.eq.s32.totalorder %v12301_v21, 2  ;;  %v6275_v32 = vadd.s32 536870912, %v6274_v47  ;;  %v3421_v52 = vsub.s32 32, %v3420_v55  ;;  %v12345_v24 = vadd.s32 3, %v2975_v41 }
 0x578   : > { %v6523_v30 = vsel %vm6521_vm6, %v6522_v29, %v8405_v28  ;;  %v2965_v60 = vor.u32 4788187, %v2964_v18  ;;  %v6734_v38 = vand.u32 2147483647, %v12325_v26  ;;  %v6520_v20 = vsel %vm6518_vm5, %v8403_v19, %v6519_v22 }
 0x579   : > { %v6276_v63 = vshrl.u32 %v6275_v32, 30  ;;  %v3414_v34 = vor.u32 8388608, %v3413_v43  ;;  %v6737_v37 = vand.u32 2139095040, %v12325_v26  ;;  %v6524_v25 = vsel %vm6517_vm1, %v6520_v20, %v6523_v30 }
 0x57a   : > { %v2966_v27 = vand.u32 2147483647, %v2965_v60  ;;  %v2968_v45 = vcvt.s32.f32 %v2961_v11  ;;  %v3424_v57 = vshrl.u32 %v8551_v10, %v3421_v52  ;;  %v6525_v33 = vsel %vm6514_vm2, nan, %v6524_v25 }
 0x57b   : > { %v12355_v2 = vadd.s32 %v12311_v62, %v12316_v59  ;;  %v6277_v7 = vshll.u32 %v6276_v63, 30  ;;  %v3427_v8 = vshrl.u32 %v8552_v12, %v3421_v52  ;;  %7413 = vst [vmem:[%s9048_s11 + $0x1b8] sm:$0xff] %v6525_v33  ;;  %v3419_v53 = vshrl.u32 %v3418_v58, 5 }
 0x57c   : > { %v2969_v42 = vmul.f32 %v2968_v45, %v2966_v27  ;;  %v3423_v56 = vshll.u32 %v8550_v6, %v3420_v55  ;;  %v3430_v21 = vshrl.u32 %v8553_v14, %v3421_v52  ;;  %v3426_v40 = vshll.u32 %v8551_v10, %v3420_v55 }
 0x57d   : > { %v12361_v50 = vsub.s32 %v6274_v47, %v6277_v7  ;;  %v3429_v51 = vshll.u32 %v8552_v12, %v3420_v55  ;;  %v3433_v35 = vshrl.u32 %v8554_v16, %v3421_v52  ;;  %v3432_v13 = vshll.u32 %v8553_v14, %v3420_v55 }
 0x57e   : > { %v2970_v62 = vxor.u32 2147483648, %v2969_v42  ;;  %v3425_v59 = vor.u32 %v3424_v57, %v3423_v56  ;;  %v3436_v44 = vshrl.u32 %v8555_v23, %v3421_v52  ;;  %vm6216_vm7 = vcmp.lt.s32.totalorder %v12191_v15, 0 }
 0x57f   : > { %v6280_v4 = vsub.s32 0, %v12361_v50  ;;  %v3428_v39 = vor.u32 %v3427_v8, %v3426_v40  ;;  %v3431_v49 = vor.u32 %v3430_v21, %v3429_v51  ;;  %v3435_v48 = vshll.u32 %v8554_v16, %v3420_v55 }
 0x580   : > { %v2971_v9 = vsel %vm2888_vm14, %v2970_v62, %v2969_v42  ;;  %v3434_v46 = vor.u32 %v3433_v35, %v3432_v13  ;;  %v3454_v5 = vshll.u32 %v3414_v34, 8  ;;  %v6738_v54 = vshrl.u32 %v6737_v37, 23 }
 0x581   : > { %v2974_v31 = vsel %vm12320_vm15, %v12141_v1, %v2971_v9  ;;  %v7759_v58 = vmin.u32 %v6280_v4, %v12361_v50  ;;  %v3422_v19 = vshrl.u32 %v8550_v6, %v3421_v52  ;;  %v3437_v41 = vor.u32 %v3436_v44, %v3435_v48 }
 0x582   : > { %8406 = vcosq.f32 %v2974_v31  ;;  %v6300_v47 = vsub.s32 4, %v6276_v63  ;;  %vm3438_vm8 = vcmp.lt.s32.totalorder %v3419_v53, 1  ;;  %vm3441_vm9 = vcmp.lt.s32.totalorder %v3419_v53, 4 }
 0x583   : > { %8408 = vsinq.f32 %v2974_v31  ;;  %v6282_v43 = vclz %v7759_v58  ;;  %v3443_v55 = vsel %vm3441_vm9, %v3431_v49, 2102212464  ;;  %v3446_v28 = vsel %vm3438_vm8, %v3425_v59, %v3428_v39 }
 0x584   : > { %vm3439_vm11 = vcmp.lt.s32.totalorder %v3419_v53, 2  ;;  %vm3440_vm10 = vcmp.lt.s32.totalorder %v3419_v53, 3  ;;  %v3447_v29 = vsel %vm3441_vm9, %v3434_v46, 920167782  ;;  %v3450_v11 = vsel %vm3438_vm8, %v3428_v39, %v3431_v49 }
 0x585   : > { %v7760_v18 = vadd.s32 4294967294, %v6282_v43  ;;  %v3442_v17 = vsel %vm3438_vm8, %v3422_v19, %v3425_v59  ;;  %v3448_v22 = vsel %vm3440_vm10, %v3431_v49, %v3447_v29  ;;  %v3451_v32 = vsel %vm3441_vm9, %v3437_v41, 1326507024 }
 0x586   : > { %v3444_v30 = vsel %vm3440_vm10, %v3428_v39, %v3443_v55  ;;  %v3449_v52 = vsel %vm3439_vm11, %v3446_v28, %v3448_v22  ;;  %v3452_v60 = vsel %vm3440_vm10, %v3434_v46, %v3451_v32  ;;  %v7778_v20 = vadd.s32 4294967169, %v6738_v54 }
 0x587   : > { %vm7761_vm12 = vcmp.lt.s32.totalorder %v7760_v18, 0  ;;  %v3453_v34 = vsel %vm3439_vm11, %v3450_v11, %v3452_v60  ;;  %v12380_v37 = vmul.u32.u64.low %v3454_v5, %v3449_v52  ;;  %v12381_v25 = vmul.u32.u64.high %v3454_v5, %v3449_v52, %v12380_v37 }
 0x588   : > { %v6285_v27 = vsel %vm7761_vm12, 0, %v7760_v18  ;;  %v6301_v45 = vsel %vm6216_vm7, %v6300_v47, %v6276_v63  ;;  %v12386_v57 = vmul.u32.u64.low %v3454_v5, %v3453_v34  ;;  %v12387_v33 = vmul.u32.u64.high %v3454_v5, %v3453_v34, %v12386_v57 }
 0x589   : > { %v6286_v7 = vsub.s32 32, %v6285_v27  ;;  %v6290_v8 = vsub.s32 4294967266, %v6285_v27  ;;  %v3445_v42 = vsel %vm3439_vm11, %v3442_v17, %v3444_v30  ;;  %v6744_v56 = vadd.s32 1, %v7778_v20 }
 0x58a   : > { %v2980_v21 = vand.u32 3, %v12345_v24  ;;  %vm12393_vm13 = vcmp.le.f32.partialorder %v6214_v36, 0.7853982  ;;  %v6287_v51 = vshll.u32 %v12361_v50, %v6285_v27  ;;  %v3464_v62 = vadd.s32 1, %v12381_v25  ;;  %v543_v27 = vpop.f32.mrf.mxu0 }
 0x58b   : > { %v6288_v63 = vshrl.u32 %v12355_v2, %v6286_v7  ;;  %v6291_v35 = vadd.s32 127, %v6290_v8  ;;  %vm6745_vm14 = vcmp.gt.s32.totalorder %v6744_v56, 0  ;;  %v6303_v53 = vsel %vm12393_vm13, 0, %v6301_v45 }
 0x58c   : > { %v3461_v59 = vmul.u32 %v3454_v5, %v3445_v42  ;;  %vm3463_vm15 = vc.u32 %v12387_v33, %v12380_v37  ;;  %v6746_v24 = vsel %vm6745_vm14, %v6744_v56, 0  ;;  %v6741_v50 = vand.u32 8388607, %v6734_v38 }
 0x58d   : > { %v6289_v36 = vor.u32 %v6288_v63, %v6287_v51  ;;  %v6292_v13 = vshll.u32 %v6291_v35, 23  ;;  %v3465_v44 = vsel %vm3463_vm15, %v3464_v62, %v12381_v25  ;;  %vm2978_vm0 = vweird.f32 %v12141_v1 }
 0x58e   : > { %v3466_v2 = vadd.s32 %v3465_v44, %v3461_v59  ;;  %v6748_v4 = vand.u32 31, %v6746_v24  ;;  %vm2981_vm1 = vcmp.lt.s32.totalorder %v2980_v21, 2  ;;  %vm2982_vm2 = vcmp.eq.s32.totalorder %v2980_v21, 0 }
 0x58f   : > { %v8407_v39 = vpop.eup %8406  ;;  %vm2985_vm3 = vcmp.eq.s32.totalorder %v2980_v21, 2  ;;  %v6293_v49 = vor.u32 4788187, %v6292_v13  ;;  %v12408_v46 = vadd.s32 3, %v6303_v53  ;;  %v6296_v19 = vcvt.s32.f32 %v6289_v36 }
 0x590   : > { %v8409_v48 = vpop.eup %8408  ;;  %v2986_v9 = vxor.u32 2147483648, %v8407_v39  ;;  %v3467_v5 = vadd.s32 536870912, %v3466_v2  ;;  %v6749_v54 = vsub.s32 32, %v6748_v4  ;;  %v6742_v41 = vor.u32 8388608, %v6741_v50 }
 0x591   : > { %v2983_v31 = vxor.u32 2147483648, %v8409_v48  ;;  %v6294_v58 = vand.u32 2147483647, %v6293_v49  ;;  %v6751_v55 = vshll.u32 %v8550_v6, %v6748_v4  ;;  %v6747_v30 = vshrl.u32 %v6746_v24, 5 }
 0x592   : > { %v2987_v47 = vsel %vm2985_vm3, %v2986_v9, %v8409_v48  ;;  %v3468_v43 = vshrl.u32 %v3467_v5, 30  ;;  %v6752_v28 = vshrl.u32 %v8551_v10, %v6749_v54  ;;  %v6755_v18 = vshrl.u32 %v8552_v12, %v6749_v54 }
 0x593   : > { %v2984_v29 = vsel %vm2982_vm2, %v8407_v39, %v2983_v31  ;;  %v6297_v11 = vmul.f32 %v6296_v19, %v6294_v58  ;;  %v6758_v17 = vshrl.u32 %v8553_v14, %v6749_v54  ;;  %v6754_v52 = vshll.u32 %v8551_v10, %v6748_v4  ;;  %v671_v19 = vpop.f32.mrf.mxu1 }
 0x594   : > { %v2988_v22 = vsel %vm2981_vm1, %v2984_v29, %v2987_v47  ;;  %v3469_v32 = vshll.u32 %v3468_v43, 30  ;;  %vm3408_vm4 = vcmp.lt.s32.totalorder %v12278_v61, 0  ;;  %v6753_v34 = vor.u32 %v6752_v28, %v6751_v55 }
 0x595   : > { %v2989_v60 = vsel %vm2978_vm0, nan, %v2988_v22  ;;  %v6298_v20 = vxor.u32 2147483648, %v6297_v11  ;;  %v6757_v25 = vshll.u32 %v8552_v12, %v6748_v4  ;;  %v6756_v57 = vor.u32 %v6755_v18, %v6754_v52 }
 0x596   : > { %7379 = vst [vmem:[%s9048_s11 + $0xa8] sm:$0xff] %v2989_v60  ;;  %v12422_v45 = vsub.s32 %v3466_v2, %v3469_v32  ;;  %v6760_v7 = vshll.u32 %v8553_v14, %v6748_v4  ;;  %v6761_v8 = vshrl.u32 %v8554_v16, %v6749_v54  ;;  %v6763_v56 = vshll.u32 %v8554_v16, %v6748_v4 }
 0x597   : > { %v6299_v42 = vsel %vm6216_vm7, %v6298_v20, %v6297_v11  ;;  %v6759_v1 = vor.u32 %v6758_v17, %v6757_v25  ;;  %v6764_v21 = vshrl.u32 %v8555_v23, %v6749_v54  ;;  %v12435_v62 = vadd.f32 %v12138_v0, %v543_v27 }
 0x598   : > { %v6302_v51 = vsel %vm12393_vm13, %v12191_v15, %v6299_v42  ;;  %v3472_v63 = vsub.s32 0, %v12422_v45  ;;  %v6762_v35 = vor.u32 %v6761_v8, %v6760_v7  ;;  %v6750_v53 = vshrl.u32 %v8550_v6, %v6749_v54 }
 0x599   : > { %8410 = vcosq.f32 %v6302_v51  ;;  %v6765_v59 = vor.u32 %v6764_v21, %v6763_v56  ;;  %vm6766_vm5 = vcmp.lt.s32.totalorder %v6747_v30, 1  ;;  %v3492_v36 = vsub.s32 4, %v3468_v43 }
 0x59a   : > { %8412 = vsinq.f32 %v6302_v51  ;;  %v7651_v24 = vmin.u32 %v3472_v63, %v12422_v45  ;;  %vm6769_vm6 = vcmp.lt.s32.totalorder %v6747_v30, 4  ;;  %v6774_v44 = vsel %vm6766_vm5, %v6753_v34, %v6756_v57 }
 0x59b   : > { %v6771_v13 = vsel %vm6769_vm6, %v6759_v1, 2102212464  ;;  %v6775_v40 = vsel %vm6769_vm6, %v6762_v35, 920167782  ;;  %v6782_v50 = vshll.u32 %v6742_v41, 8  ;;  %vm6768_vm7 = vcmp.lt.s32.totalorder %v6747_v30, 3 }
 0x59c   : > { %v3474_v2 = vclz %v7651_v24  ;;  %v6770_v4 = vsel %vm6766_vm5, %v6750_v53, %v6753_v34  ;;  %v6778_v39 = vsel %vm6766_vm5, %v6756_v57, %v6759_v1  ;;  %vm6767_vm8 = vcmp.lt.s32.totalorder %v6747_v30, 2 }
 0x59d   : > { %v6772_v49 = vsel %vm6768_vm7, %v6756_v57, %v6771_v13  ;;  %v6776_v48 = vsel %vm6768_vm7, %v6759_v1, %v6775_v40  ;;  %v6779_v9 = vsel %vm6769_vm6, %v6765_v59, 1326507024  ;;  %v3493_v54 = vsel %vm3408_vm4, %v3492_v36, %v3468_v43 }
 0x59e   : > { %v7652_v5 = vadd.s32 4294967294, %v3474_v2  ;;  %v6777_v31 = vsel %vm6767_vm8, %v6774_v44, %v6776_v48  ;;  %v6780_v58 = vsel %vm6768_vm7, %v6762_v35, %v6779_v9  ;;  %v6773_v47 = vsel %vm6767_vm8, %v6770_v4, %v6772_v49 }
 0x59f   : > { %v6781_v55 = vsel %vm6767_vm8, %v6778_v39, %v6780_v58  ;;  %v12441_v28 = vmul.u32.u64.low %v6782_v50, %v6777_v31  ;;  %v12442_v29 = vmul.u32.u64.high %v6782_v50, %v6777_v31, %v12441_v28  ;;  %v3201_v18 = vand.u32 2139095040, %v12435_v62 }
 0x5a0   : > { %vm7653_vm9 = vcmp.lt.s32.totalorder %v7652_v5, 0  ;;  %v12445_v41 = vmul.u32.u64.low %v6782_v50, %v6781_v55  ;;  %v12446_v11 = vmul.u32.u64.high %v6782_v50, %v6781_v55, %v12445_v41  ;;  %v6308_v17 = vand.u32 3, %v12408_v46 }
 0x5a1   : > { %vm12452_vm11 = vcmp.le.f32.partialorder %v3406_v3, 0.7853982  ;;  %v3477_v22 = vsel %vm7653_vm9, 0, %v7652_v5  ;;  %v12457_v32 = vadd.f32 %v12138_v0, %v671_v19  ;;  %v3462_v30 = vadd.s32 %v12380_v37, %v12387_v33 }
 0x5a2   : > { %v3478_v52 = vsub.s32 32, %v3477_v22  ;;  %v3482_v60 = vsub.s32 4294967266, %v3477_v22  ;;  %v3202_v20 = vshrl.u32 %v3201_v18, 23  ;;  %v3495_v34 = vsel %vm12452_vm11, 0, %v3493_v54 }
 0x5a3   : > { %v6789_v46 = vmul.u32 %v6782_v50, %v6773_v47  ;;  %v6792_v25 = vadd.s32 1, %v12442_v29  ;;  %v3198_v3 = vand.u32 2147483647, %v12435_v62  ;;  %v3479_v27 = vshll.u32 %v12422_v45, %v3477_v22 }
 0x5a4   : > { %v3480_v57 = vshrl.u32 %v3462_v30, %v3478_v52  ;;  %v3483_v7 = vadd.s32 127, %v3482_v60  ;;  %vm6791_vm10 = vc.u32 %v12446_v11, %v12441_v28  ;;  %vm6309_vm12 = vcmp.lt.s32.totalorder %v6308_v17, 2 }
 0x5a5   : > { %v6793_v0 = vsel %vm6791_vm10, %v6792_v25, %v12442_v29  ;;  %v7642_v37 = vadd.s32 4294967169, %v3202_v20  ;;  %v6529_v33 = vand.u32 2139095040, %v12457_v32  ;;  %vm6310_vm13 = vcmp.eq.s32.totalorder %v6308_v17, 0 }
 0x5a6   : > { %v8411_v8 = vpop.eup %8410  ;;  %v3481_v42 = vor.u32 %v3480_v57, %v3479_v27  ;;  %v3484_v1 = vshll.u32 %v3483_v7, 23  ;;  %v6794_v56 = vadd.s32 %v6793_v0, %v6789_v46  ;;  %vm6313_vm14 = vcmp.eq.s32.totalorder %v6308_v17, 2 }
 0x5a7   : > { %v8413_v21 = vpop.eup %8412  ;;  %v6314_v51 = vxor.u32 2147483648, %v8411_v8  ;;  %v3499_v45 = vadd.s32 3, %v3495_v34  ;;  %v3208_v63 = vadd.s32 1, %v7642_v37  ;;  %v3205_v24 = vand.u32 8388607, %v3198_v3 }
 0x5a8   : > { %v6311_v35 = vxor.u32 2147483648, %v8413_v21  ;;  %v3485_v53 = vor.u32 4788187, %v3484_v1  ;;  %v6795_v59 = vadd.s32 536870912, %v6794_v56  ;;  %v3488_v13 = vcvt.s32.f32 %v3481_v42 }
 0x5a9   : > { %v6315_v36 = vsel %vm6313_vm14, %v6314_v51, %v8413_v21  ;;  %vm3209_vm15 = vcmp.gt.s32.totalorder %v3208_v63, 0  ;;  %v6530_v44 = vshrl.u32 %v6529_v33, 23  ;;  %vm6306_vm0 = vweird.f32 %v12191_v15 }
 0x5aa   : > { %v6312_v40 = vsel %vm6310_vm13, %v8411_v8, %v6311_v35  ;;  %v3486_v50 = vand.u32 2147483647, %v3485_v53  ;;  %v6796_v2 = vshrl.u32 %v6795_v59, 30  ;;  %v3210_v4 = vsel %vm3209_vm15, %v3208_v63, 0 }
 0x5ab   : > { %v6316_v39 = vsel %vm6309_vm12, %v6312_v40, %v6315_v36  ;;  %v3212_v49 = vand.u32 31, %v3210_v4  ;;  %v12475_v5 = vand.u32 3, %v3499_v45  ;;  %vm6736_vm1 = vcmp.lt.s32.totalorder %v12325_v26, 0 }
 0x5ac   : > { %v6317_v48 = vsel %vm6306_vm0, nan, %v6316_v39  ;;  %v3489_v9 = vmul.f32 %v3488_v13, %v3486_v50  ;;  %v6797_v54 = vshll.u32 %v6796_v2, 30  ;;  %v3206_v31 = vor.u32 8388608, %v3205_v24 }
 0x5ad   : > { %7411 = vst [vmem:[%s9048_s11 + $0x1a8] sm:$0xff] %v6317_v48  ;;  %v3213_v58 = vsub.s32 32, %v3212_v49  ;;  %v6526_v19 = vand.u32 2147483647, %v12457_v32  ;;  %v7770_v47 = vadd.s32 4294967169, %v6530_v44  ;;  %v6820_v15 = vsub.s32 4, %v6796_v2 }
 0x5ae   : > { %v3490_v55 = vxor.u32 2147483648, %v3489_v9  ;;  %v12480_v29 = vsub.s32 %v6794_v56, %v6797_v54  ;;  %v3211_v41 = vshrl.u32 %v3210_v4, 5  ;;  %v3215_v18 = vshll.u32 %v8550_v6, %v3212_v49 }
 0x5af   : > { %v3216_v17 = vshrl.u32 %v8551_v10, %v3213_v58  ;;  %v3218_v22 = vshll.u32 %v8551_v10, %v3212_v49  ;;  %v3219_v30 = vshrl.u32 %v8552_v12, %v3213_v58  ;;  %vm12490_vm2 = vcmp.le.f32.partialorder %v6734_v38, 0.7853982 }
 0x5b0   : > { %v3491_v52 = vsel %vm3408_vm4, %v3490_v55, %v3489_v9  ;;  %v6800_v20 = vsub.s32 0, %v12480_v29  ;;  %v3221_v34 = vshll.u32 %v8552_v12, %v3212_v49  ;;  %v3222_v46 = vshrl.u32 %v8553_v14, %v3213_v58 }
 0x5b1   : > { %v3494_v25 = vsel %vm12452_vm11, %v12278_v61, %v3491_v52  ;;  %v3217_v27 = vor.u32 %v3216_v17, %v3215_v18  ;;  %v3224_v57 = vshll.u32 %v8553_v14, %v3212_v49  ;;  %v3225_v7 = vshrl.u32 %v8554_v16, %v3213_v58 }
 0x5b2   : > { %8414 = vcosq.f32 %v3494_v25  ;;  %v7779_v38 = vmin.u32 %v6800_v20, %v12480_v29  ;;  %v3220_v0 = vor.u32 %v3219_v30, %v3218_v22  ;;  %v3223_v37 = vor.u32 %v3222_v46, %v3221_v34 }
 0x5b3   : > { %8416 = vsinq.f32 %v3494_v25  ;;  %v3226_v33 = vor.u32 %v3225_v7, %v3224_v57  ;;  %v3227_v8 = vshll.u32 %v8554_v16, %v3212_v49  ;;  %v3228_v42 = vshrl.u32 %v8555_v23, %v3213_v58 }
 0x5b4   : > { %v6790_v43 = vadd.s32 %v12441_v28, %v12446_v11  ;;  %v6802_v1 = vclz %v7779_v38  ;;  %v3246_v56 = vshll.u32 %v3206_v31, 8  ;;  %v6536_v21 = vadd.s32 1, %v7770_v47 }
 0x5b5   : > { %v6821_v51 = vsel %vm6736_vm1, %v6820_v15, %v6796_v2  ;;  %v3214_v45 = vshrl.u32 %v8550_v6, %v3213_v58  ;;  %v3229_v63 = vor.u32 %v3228_v42, %v3227_v8  ;;  %vm3230_vm3 = vcmp.lt.s32.totalorder %v3211_v41, 1 }
 0x5b6   : > { %v7780_v35 = vadd.s32 4294967294, %v6802_v1  ;;  %vm3232_vm4 = vcmp.lt.s32.totalorder %v3211_v41, 3  ;;  %vm3233_vm5 = vcmp.lt.s32.totalorder %v3211_v41, 4  ;;  %v3238_v53 = vsel %vm3230_vm3, %v3217_v27, %v3220_v0 }
 0x5b7   : > { %v3235_v59 = vsel %vm3233_vm5, %v3223_v37, 2102212464  ;;  %v3239_v24 = vsel %vm3233_vm5, %v3226_v33, 920167782  ;;  %v3242_v36 = vsel %vm3230_vm3, %v3220_v0, %v3223_v37  ;;  %v3243_v28 = vsel %vm3233_vm5, %v3229_v63, 1326507024 }
 0x5b8   : > { %vm7781_vm6 = vcmp.lt.s32.totalorder %v7780_v35, 0  ;;  %vm3231_vm7 = vcmp.lt.s32.totalorder %v3211_v41, 2  ;;  %v3240_v11 = vsel %vm3232_vm4, %v3223_v37, %v3239_v24  ;;  %v3244_v13 = vsel %vm3232_vm4, %v3226_v33, %v3243_v28 }
 0x5b9   : > { %v6805_v44 = vsel %vm7781_vm6, 0, %v7780_v35  ;;  %v6823_v40 = vsel %vm12490_vm2, 0, %v6821_v51  ;;  %v3241_v50 = vsel %vm3231_vm7, %v3238_v53, %v3240_v11  ;;  %v3245_v2 = vsel %vm3231_vm7, %v3242_v36, %v3244_v13 }
 0x5ba   : > { %v6806_v4 = vsub.s32 32, %v6805_v44  ;;  %v6810_v39 = vsub.s32 4294967266, %v6805_v44  ;;  %v3234_v49 = vsel %vm3230_vm3, %v3214_v45, %v3217_v27  ;;  %v3236_v48 = vsel %vm3232_vm4, %v3220_v0, %v3235_v59 }
 0x5bb   : > { %v12520_v9 = vmul.u32.u64.low %v3246_v56, %v3245_v2  ;;  %v12521_v54 = vmul.u32.u64.high %v3246_v56, %v3245_v2, %v12520_v9  ;;  %v12523_v31 = vmul.u32.u64.low %v3246_v56, %v3241_v50  ;;  %v12524_v58 = vmul.u32.u64.high %v3246_v56, %v3241_v50, %v12523_v31  ;;  %v7877_v50 = vpop.f32.mrf.mxu0 }
 0x5bc   : > { %vm3498_vm8 = vweird.f32 %v12278_v61  ;;  %v6807_v47 = vshll.u32 %v12480_v29, %v6805_v44  ;;  %v6808_v55 = vshrl.u32 %v6790_v43, %v6806_v4  ;;  %v6811_v15 = vadd.s32 127, %v6810_v39 }
 0x5bd   : > { %vm6537_vm9 = vcmp.gt.s32.totalorder %v6536_v21, 0  ;;  %v6827_v18 = vadd.s32 3, %v6823_v40  ;;  %v3237_v17 = vsel %vm3231_vm7, %v3234_v49, %v3236_v48  ;;  %v6533_v22 = vand.u32 8388607, %v6526_v19 }
 0x5be   : > { %v6538_v30 = vsel %vm6537_vm9, %v6536_v21, 0  ;;  %vm3501_vm11 = vcmp.lt.s32.totalorder %v12475_v5, 2  ;;  %v6809_v52 = vor.u32 %v6808_v55, %v6807_v47  ;;  %v6812_v20 = vshll.u32 %v6811_v15, 23 }
 0x5bf   : > { %v6540_v34 = vand.u32 31, %v6538_v30  ;;  %v8415_v46 = vpop.eup %8414  ;;  %vm3502_vm10 = vcmp.eq.s32.totalorder %v12475_v5, 0  ;;  %vm3505_vm12 = vcmp.eq.s32.totalorder %v12475_v5, 2  ;;  %vm3255_vm13 = vc.u32 %v12521_v54, %v12523_v31 }
 0x5c0   : > { %v3256_v29 = vadd.s32 1, %v12524_v58  ;;  %v8417_v41 = vpop.eup %8416  ;;  %v3506_v25 = vxor.u32 2147483648, %v8415_v46  ;;  %v6813_v27 = vor.u32 4788187, %v6812_v20  ;;  %v3253_v57 = vmul.u32 %v3246_v56, %v3237_v17 }
 0x5c1   : > { %v6541_v7 = vsub.s32 32, %v6540_v34  ;;  %v3503_v38 = vxor.u32 2147483648, %v8417_v41  ;;  %v12538_v0 = vand.u32 3, %v6827_v18  ;;  %v6534_v33 = vor.u32 8388608, %v6533_v22  ;;  %v12568_v18 = vld [vmem:[%s13586_s2] ss:$0 sm:$0xff] }
 0x5c2   : > { %v3257_v37 = vsel %vm3255_vm13, %v3256_v29, %v12524_v58  ;;  %v3507_v8 = vsel %vm3505_vm12, %v3506_v25, %v8417_v41  ;;  %v6814_v42 = vand.u32 2147483647, %v6813_v27  ;;  %v6816_v43 = vcvt.s32.f32 %v6809_v52 }
 0x5c3   : > { %v3258_v1 = vadd.s32 %v3257_v37, %v3253_v57  ;;  %v3504_v21 = vsel %vm3502_vm10, %v8415_v46, %v3503_v38  ;;  %v12543_v51 = vshrl.u32 %v6538_v30, 5  ;;  %v6544_v45 = vshrl.u32 %v8551_v10, %v6541_v7  ;;  %v7909_v37 = vpop.f32.mrf.mxu1 }
 0x5c4   : > { %v6547_v56 = vshrl.u32 %v8552_v12, %v6541_v7  ;;  %v3508_v63 = vsel %vm3501_vm11, %v3504_v21, %v3507_v8  ;;  %v6817_v35 = vmul.f32 %v6816_v43, %v6814_v42  ;;  %v6550_v59 = vshrl.u32 %v8553_v14, %v6541_v7 }
 0x5c5   : > { %v3259_v53 = vadd.s32 536870912, %v3258_v1  ;;  %v3509_v24 = vsel %vm3498_vm8, nan, %v3508_v63  ;;  %v6543_v36 = vshll.u32 %v8550_v6, %v6540_v34  ;;  %v6546_v28 = vshll.u32 %v8551_v10, %v6540_v34 }
 0x5c6   : > { %v6549_v11 = vshll.u32 %v8552_v12, %v6540_v34  ;;  %7384 = vst [vmem:[%s9048_s11 + $0xd0] sm:$0xff] %v3509_v24  ;;  %v6818_v13 = vxor.u32 2147483648, %v6817_v35  ;;  %v6552_v40 = vshll.u32 %v8553_v14, %v6540_v34  ;;  %v6553_v5 = vshrl.u32 %v8554_v16, %v6541_v7 }
 0x5c7   : > { %v3260_v44 = vshrl.u32 %v3259_v53, 30  ;;  %v6545_v2 = vor.u32 %v6544_v45, %v6543_v36  ;;  %v6548_v4 = vor.u32 %v6547_v56, %v6546_v28  ;;  %v6555_v39 = vshll.u32 %v8554_v16, %v6540_v34 }
 0x5c8   : > { %v6556_v61 = vshrl.u32 %v8555_v23, %v6541_v7  ;;  %v6819_v49 = vsel %vm6736_vm1, %v6818_v13, %v6817_v35  ;;  %v6551_v9 = vor.u32 %v6550_v59, %v6549_v11  ;;  %v6554_v58 = vor.u32 %v6553_v5, %v6552_v40 }
 0x5c9   : > { %v3261_v48 = vshll.u32 %v3260_v44, 30  ;;  %v6822_v47 = vsel %vm12490_vm2, %v12325_v26, %v6819_v49  ;;  %v6574_v15 = vshll.u32 %v6534_v33, 8  ;;  %v12571_v17 = vadd.f32 %v12568_v18, %v7877_v50 }
 0x5ca   : > { %v6557_v55 = vor.u32 %v6556_v61, %v6555_v39  ;;  %8418 = vcosq.f32 %v6822_v47  ;;  %v6542_v30 = vshrl.u32 %v8550_v6, %v6541_v7  ;;  %vm6558_vm14 = vcmp.lt.s32.totalorder %v12543_v51, 1 }
 0x5cb   : > { %v12573_v22 = vsub.s32 %v3258_v1, %v3261_v48  ;;  %8420 = vsinq.f32 %v6822_v47  ;;  %vm6559_vm15 = vcmp.lt.s32.totalorder %v12543_v51, 2  ;;  %vm6561_vm0 = vcmp.lt.s32.totalorder %v12543_v51, 4 }
 0x5cc   : > { %v6566_v60 = vsel %vm6558_vm14, %v6545_v2, %v6548_v4  ;;  %vm6560_vm1 = vcmp.lt.s32.totalorder %v12543_v51, 3  ;;  %v6563_v20 = vsel %vm6561_vm0, %v6551_v9, 2102212464  ;;  %v6567_v34 = vsel %vm6561_vm0, %v6554_v58, 920167782 }
 0x5cd   : > { %v3264_v52 = vsub.s32 0, %v12573_v22  ;;  %v3284_v46 = vsub.s32 4, %v3260_v44  ;;  %v6568_v29 = vsel %vm6560_vm1, %v6551_v9, %v6567_v34  ;;  %v6570_v41 = vsel %vm6558_vm14, %v6548_v4, %v6551_v9 }
 0x5ce   : > { %v6571_v25 = vsel %vm6561_vm0, %v6557_v55, 1326507024  ;;  %v6562_v57 = vsel %vm6558_vm14, %v6542_v30, %v6545_v2  ;;  %v6569_v7 = vsel %vm6559_vm15, %v6566_v60, %v6568_v29  ;;  %v6564_v33 = vsel %vm6560_vm1, %v6548_v4, %v6563_v20 }
 0x5cf   : > { %v7643_v27 = vmin.u32 %v3264_v52, %v12573_v22  ;;  %v6572_v38 = vsel %vm6560_vm1, %v6554_v58, %v6571_v25  ;;  %v12586_v42 = vmul.u32.u64.low %v6574_v15, %v6569_v7  ;;  %v12587_v43 = vmul.u32.u64.high %v6574_v15, %v6569_v7, %v12586_v42 }
 0x5d0   : > { %v6573_v8 = vsel %vm6559_vm15, %v6570_v41, %v6572_v38  ;;  %vm3200_vm2 = vcmp.lt.s32.totalorder %v12435_v62, 0  ;;  %v12595_v56 = vadd.f32 %v12568_v18, %v7909_v37  ;;  %vm12599_vm3 = vcmp.le.f32.partialorder %v3198_v3, 0.7853982  ;;  %v546_v38 = vpop.f32.mrf.mxu0 }
 0x5d1   : > { %v3266_v1 = vclz %v7643_v27  ;;  %v12591_v21 = vmul.u32.u64.low %v6574_v15, %v6573_v8  ;;  %v12592_v45 = vmul.u32.u64.high %v6574_v15, %v6573_v8, %v12591_v21  ;;  %v6565_v53 = vsel %vm6559_vm15, %v6562_v57, %v6564_v33 }
 0x5d2   : > { %v3513_v59 = vand.u32 2139095040, %v12571_v17  ;;  %vm6829_vm4 = vcmp.lt.s32.totalorder %v12538_v0, 2  ;;  %vm6830_vm5 = vcmp.eq.s32.totalorder %v12538_v0, 0  ;;  %v3285_v24 = vsel %vm3200_vm2, %v3284_v46, %v3260_v44 }
 0x5d3   : > { %v7644_v35 = vadd.s32 4294967294, %v3266_v1  ;;  %v6584_v36 = vadd.s32 1, %v12587_v43  ;;  %v3510_v3 = vand.u32 2147483647, %v12571_v17  ;;  %vm6826_vm6 = vweird.f32 %v12325_v26 }
 0x5d4   : > { %vm6833_vm7 = vcmp.eq.s32.totalorder %v12538_v0, 2  ;;  %v3254_v51 = vadd.s32 %v12523_v31, %v12521_v54  ;;  %v3514_v28 = vshrl.u32 %v3513_v59, 23  ;;  %v6581_v13 = vmul.u32 %v6574_v15, %v6565_v53 }
 0x5d5   : > { %vm7645_vm8 = vcmp.lt.s32.totalorder %v7644_v35, 0  ;;  %vm6583_vm9 = vc.u32 %v12592_v45, %v12586_v42  ;;  %v6841_v44 = vand.u32 2139095040, %v12595_v56  ;;  %v3287_v50 = vsel %vm12599_vm3, 0, %v3285_v24 }
 0x5d6   : > { %v3269_v11 = vsel %vm7645_vm8, 0, %v7644_v35  ;;  %v6585_v2 = vsel %vm6583_vm9, %v6584_v36, %v12587_v43  ;;  %v7654_v61 = vadd.s32 4294967169, %v3514_v28  ;;  %v3517_v54 = vand.u32 8388607, %v3510_v3 }
 0x5d7   : > { %v3270_v40 = vsub.s32 32, %v3269_v11  ;;  %v3274_v5 = vsub.s32 4294967266, %v3269_v11  ;;  %v8419_v4 = vpop.eup %8418  ;;  %v6586_v39 = vadd.s32 %v6585_v2, %v6581_v13  ;;  %v6838_v31 = vand.u32 2147483647, %v12595_v56 }
 0x5d8   : > { %v8421_v49 = vpop.eup %8420  ;;  %v6834_v48 = vxor.u32 2147483648, %v8419_v4  ;;  %v3271_v9 = vshll.u32 %v12573_v22, %v3269_v11  ;;  %v3520_v30 = vadd.s32 1, %v7654_v61  ;;  %v6842_v60 = vshrl.u32 %v6841_v44, 23 }
 0x5d9   : > { %v3272_v58 = vshrl.u32 %v3254_v51, %v3270_v40  ;;  %v3275_v47 = vadd.s32 127, %v3274_v5  ;;  %v6831_v55 = vxor.u32 2147483648, %v8421_v49  ;;  %v6587_v15 = vadd.s32 536870912, %v6586_v39 }
 0x5da   : > { %v6835_v52 = vsel %vm6833_vm7, %v6834_v48, %v8421_v49  ;;  %v3291_v46 = vadd.s32 3, %v3287_v50  ;;  %v3518_v25 = vor.u32 8388608, %v3517_v54  ;;  %vm3521_vm11 = vcmp.gt.s32.totalorder %v3520_v30, 0 }
 0x5db   : > { %v3273_v20 = vor.u32 %v3272_v58, %v3271_v9  ;;  %v3276_v34 = vshll.u32 %v3275_v47, 23  ;;  %v6832_v29 = vsel %vm6830_vm5, %v8419_v4, %v6831_v55  ;;  %v12630_v41 = vshrl.u32 %v6587_v15, 30 }
 0x5dc   : > { %v6836_v22 = vsel %vm6829_vm4, %v6832_v29, %v6835_v52  ;;  %v3522_v57 = vsel %vm3521_vm11, %v3520_v30, 0  ;;  %v12636_v7 = vand.u32 8388607, %v6838_v31  ;;  %v7782_v8 = vadd.s32 4294967169, %v6842_v60 }
 0x5dd   : > { %v3277_v27 = vor.u32 4788187, %v3276_v34  ;;  %v6837_v37 = vsel %vm6826_vm6, nan, %v6836_v22  ;;  %v6589_v33 = vshll.u32 %v12630_v41, 30  ;;  %v3280_v1 = vcvt.s32.f32 %v3273_v20 }
 0x5de   : > { %7416 = vst [vmem:[%s9048_s11 + $0x1d0] sm:$0xff] %v6837_v37  ;;  %v3524_v21 = vand.u32 31, %v3522_v57  ;;  %v12642_v35 = vand.u32 3, %v3291_v46  ;;  %v6582_v0 = vadd.s32 %v12586_v42, %v12592_v45  ;;  %v12649_v59 = vadd.f32 %v12568_v18, %v546_v38 }
 0x5df   : > { %v3278_v43 = vand.u32 2147483647, %v3277_v27  ;;  %v12646_v53 = vsub.s32 %v6586_v39, %v6589_v33  ;;  %v12651_v36 = vshll.u32 %v3518_v25, 8  ;;  %v6846_v51 = vor.u32 8388608, %v12636_v7 }
 0x5e0   : > { %v3525_v26 = vsub.s32 32, %v3524_v21  ;;  %v3523_v11 = vshrl.u32 %v3522_v57, 5  ;;  %v3527_v13 = vshll.u32 %v8550_v6, %v3524_v21  ;;  %v6848_v44 = vadd.s32 1, %v7782_v8 }
 0x5e1   : > { %v3281_v24 = vmul.f32 %v3280_v1, %v3278_v43  ;;  %v6592_v28 = vsub.s32 0, %v12646_v53  ;;  %v3530_v45 = vshll.u32 %v8551_v10, %v3524_v21  ;;  %v3533_v2 = vshll.u32 %v8552_v12, %v3524_v21 }
 0x5e2   : > { %v3528_v42 = vshrl.u32 %v8551_v10, %v3525_v26  ;;  %v3531_v5 = vshrl.u32 %v8552_v12, %v3525_v26  ;;  %v3534_v4 = vshrl.u32 %v8553_v14, %v3525_v26  ;;  %v3536_v39 = vshll.u32 %v8553_v14, %v3524_v21 }
 0x5e3   : > { %v3282_v40 = vxor.u32 2147483648, %v3281_v24  ;;  %v7771_v50 = vmin.u32 %v6592_v28, %v12646_v53  ;;  %v3537_v48 = vshrl.u32 %v8554_v16, %v3525_v26  ;;  %v6612_v47 = vsub.s32 4, %v12630_v41 }
 0x5e4   : > { %v3529_v54 = vor.u32 %v3528_v42, %v3527_v13  ;;  %v3532_v49 = vor.u32 %v3531_v5, %v3530_v45  ;;  %vm6849_vm10 = vcmp.gt.s32.totalorder %v6848_v44, 0  ;;  %v3535_v55 = vor.u32 %v3534_v4, %v3533_v2 }
 0x5e5   : > { %v3283_v61 = vsel %vm3200_vm2, %v3282_v40, %v3281_v24  ;;  %v6594_v58 = vclz %v7771_v50  ;;  %v3538_v15 = vor.u32 %v3537_v48, %v3536_v39  ;;  %vm3542_vm12 = vcmp.lt.s32.totalorder %v3523_v11, 1 }
 0x5e6   : > { %v3286_v9 = vsel %vm12599_vm3, %v12435_v62, %v3283_v61  ;;  %vm6528_vm13 = vcmp.lt.s32.totalorder %v12457_v32, 0  ;;  %v3539_v60 = vshll.u32 %v8554_v16, %v3524_v21  ;;  %v3540_v52 = vshrl.u32 %v8555_v23, %v3525_v26 }
 0x5e7   : > { %8422 = vcosq.f32 %v3286_v9  ;;  %v7772_v30 = vadd.s32 4294967294, %v6594_v58  ;;  %v3526_v20 = vshrl.u32 %v8550_v6, %v3525_v26  ;;  %vm3544_vm14 = vcmp.lt.s32.totalorder %v3523_v11, 3 }
 0x5e8   : > { %8424 = vsinq.f32 %v3286_v9  ;;  %vm3545_vm15 = vcmp.lt.s32.totalorder %v3523_v11, 4  ;;  %v3550_v63 = vsel %vm3542_vm12, %v3529_v54, %v3532_v49  ;;  %v3541_v34 = vor.u32 %v3540_v52, %v3539_v60 }
 0x5e9   : > { %vm7773_vm0 = vcmp.lt.s32.totalorder %v7772_v30, 0  ;;  %v3547_v46 = vsel %vm3545_vm15, %v3535_v55, 2102212464  ;;  %v3551_v29 = vsel %vm3545_vm15, %v3538_v15, 920167782  ;;  %v3546_v22 = vsel %vm3542_vm12, %v3526_v20, %v3529_v54 }
 0x5ea   : > { %v6597_v25 = vsel %vm7773_vm0, 0, %v7772_v30  ;;  %v3548_v27 = vsel %vm3544_vm14, %v3532_v49, %v3547_v46  ;;  %v3552_v57 = vsel %vm3544_vm14, %v3535_v55, %v3551_v29  ;;  %vm3543_vm1 = vcmp.lt.s32.totalorder %v3523_v11, 2 }
 0x5eb   : > { %v6598_v38 = vsub.s32 32, %v6597_v25  ;;  %v6602_v37 = vsub.s32 4294967266, %v6597_v25  ;;  %v3554_v33 = vsel %vm3542_vm12, %v3532_v49, %v3535_v55  ;;  %v6599_v8 = vshll.u32 %v12646_v53, %v6597_v25 }
 0x5ec   : > { %v3553_v43 = vsel %vm3543_vm1, %v3550_v63, %v3552_v57  ;;  %v3555_v1 = vsel %vm3545_vm15, %v3541_v34, 1326507024  ;;  %v6850_v21 = vsel %vm6849_vm10, %v6848_v44, 0  ;;  %v3549_v28 = vsel %vm3543_vm1, %v3546_v22, %v3548_v27 }
 0x5ed   : > { %v6600_v24 = vshrl.u32 %v6582_v0, %v6598_v38  ;;  %v6603_v26 = vadd.s32 127, %v6602_v37  ;;  %v3556_v13 = vsel %vm3544_vm14, %v3538_v15, %v3555_v1  ;;  %vm3294_vm2 = vcmp.eq.s32.totalorder %v12642_v35, 0 }
 0x5ee   : > { %v3557_v40 = vsel %vm3543_vm1, %v3554_v33, %v3556_v13  ;;  %v12687_v42 = vmul.u32.u64.low %v12651_v36, %v3553_v43  ;;  %v12688_v45 = vmul.u32.u64.high %v12651_v36, %v3553_v43, %v12687_v42  ;;  %v6852_v5 = vand.u32 31, %v6850_v21 }
 0x5ef   : > { %vm3293_vm3 = vcmp.lt.s32.totalorder %v12642_v35, 2  ;;  %vm12694_vm4 = vcmp.le.f32.partialorder %v6526_v19, 0.7853982  ;;  %v6601_v0 = vor.u32 %v6600_v24, %v6599_v8  ;;  %v6604_v11 = vshll.u32 %v6603_v26, 23 }
 0x5f0   : > { %v12699_v44 = vmul.u32.u64.low %v12651_v36, %v3557_v40  ;;  %v12700_v50 = vmul.u32.u64.high %v12651_v36, %v3557_v40, %v12699_v44  ;;  %vm3290_vm5 = vweird.f32 %v12435_v62  ;;  %vm3297_vm6 = vcmp.eq.s32.totalorder %v12642_v35, 2 }
 0x5f1   : > { %v6613_v2 = vsel %vm6528_vm13, %v6612_v47, %v12630_v41  ;;  %v6853_v4 = vsub.s32 32, %v6852_v5  ;;  %v12709_v19 = vshll.u32 %v6846_v51, 8  ;;  %v6605_v39 = vor.u32 4788187, %v6604_v11 }
 0x5f2   : > { %v3565_v61 = vmul.u32 %v12651_v36, %v3549_v28  ;;  %v12712_v54 = vshrl.u32 %v6850_v21, 5  ;;  %v6855_v49 = vshll.u32 %v8550_v6, %v6852_v5  ;;  %v3568_v48 = vadd.s32 1, %v12688_v45 }
 0x5f3   : > { %v6856_v9 = vshrl.u32 %v8551_v10, %v6853_v4  ;;  %v6858_v58 = vshll.u32 %v8551_v10, %v6852_v5  ;;  %v6861_v41 = vshll.u32 %v8552_v12, %v6852_v5  ;;  %v6606_v55 = vand.u32 2147483647, %v6605_v39 }
 0x5f4   : > { %v8423_v47 = vpop.eup %8422  ;;  %v6608_v7 = vcvt.s32.f32 %v6601_v0  ;;  %vm3567_vm7 = vc.u32 %v12700_v50, %v12687_v42  ;;  %v6859_v36 = vshrl.u32 %v8552_v12, %v6853_v4  ;;  %v6862_v60 = vshrl.u32 %v8553_v14, %v6853_v4 }
 0x5f5   : > { %v8425_v51 = vpop.eup %8424  ;;  %v3298_v15 = vxor.u32 2147483648, %v8423_v47  ;;  %v3569_v30 = vsel %vm3567_vm7, %v3568_v48, %v12688_v45  ;;  %v6864_v52 = vshll.u32 %v8553_v14, %v6852_v5  ;;  %v6867_v46 = vshll.u32 %v8554_v16, %v6852_v5 }
 0x5f6   : > { %v3295_v20 = vxor.u32 2147483648, %v8425_v51  ;;  %v6609_v63 = vmul.f32 %v6608_v7, %v6606_v55  ;;  %v3570_v34 = vadd.s32 %v3569_v30, %v3565_v61  ;;  %v6857_v25 = vor.u32 %v6856_v9, %v6855_v49 }
 0x5f7   : > { %v3299_v29 = vsel %vm3297_vm6, %v3298_v15, %v8425_v51  ;;  %v6865_v22 = vshrl.u32 %v8554_v16, %v6853_v4  ;;  %v6868_v27 = vshrl.u32 %v8555_v23, %v6853_v4  ;;  %v6860_v33 = vor.u32 %v6859_v36, %v6858_v58 }
 0x5f8   : > { %v3296_v57 = vsel %vm3294_vm2, %v8423_v47, %v3295_v20  ;;  %v6610_v38 = vxor.u32 2147483648, %v6609_v63  ;;  %v3571_v37 = vadd.s32 536870912, %v3570_v34  ;;  %v6615_v43 = vsel %vm12694_vm4, 0, %v6613_v2 }
 0x5f9   : > { %v3300_v8 = vsel %vm3293_vm3, %v3296_v57, %v3299_v29  ;;  %v6863_v1 = vor.u32 %v6862_v60, %v6861_v41  ;;  %v6866_v21 = vor.u32 %v6865_v22, %v6864_v52  ;;  %v6869_v13 = vor.u32 %v6868_v27, %v6867_v46  ;;  %v674_v27 = vpop.f32.mrf.mxu1 }
 0x5fa   : > { %v3301_v24 = vsel %vm3290_vm5, nan, %v3300_v8  ;;  %v6611_v26 = vsel %vm6528_vm13, %v6610_v38, %v6609_v63  ;;  %v3572_v28 = vshrl.u32 %v3571_v37, 30  ;;  %v6854_v35 = vshrl.u32 %v8550_v6, %v6853_v4 }
 0x5fb   : > { %7382 = vst [vmem:[%s9048_s11 + $0xc0] sm:$0xff] %v3301_v24  ;;  %v6614_v40 = vsel %vm12694_vm4, %v12457_v32, %v6611_v26  ;;  %vm6870_vm8 = vcmp.lt.s32.totalorder %v12712_v54, 1  ;;  %vm6872_vm9 = vcmp.lt.s32.totalorder %v12712_v54, 3  ;;  %vm6873_vm11 = vcmp.lt.s32.totalorder %v12712_v54, 4 }
 0x5fc   : > { %8426 = vcosq.f32 %v6614_v40  ;;  %v3573_v45 = vshll.u32 %v3572_v28, 30  ;;  %v6878_v62 = vsel %vm6870_vm8, %v6857_v25, %v6860_v33  ;;  %v6875_v5 = vsel %vm6873_vm11, %v6863_v1, 2102212464 }
 0x5fd   : > { %8428 = vsinq.f32 %v6614_v40  ;;  %v6879_v0 = vsel %vm6873_vm11, %v6866_v21, 920167782  ;;  %v6882_v53 = vsel %vm6870_vm8, %v6860_v33, %v6863_v1  ;;  %vm6871_vm10 = vcmp.lt.s32.totalorder %v12712_v54, 2 }
 0x5fe   : > { %v12752_v11 = vsub.s32 %v3570_v34, %v3573_v45  ;;  %v6880_v44 = vsel %vm6872_vm9, %v6863_v1, %v6879_v0  ;;  %v6883_v2 = vsel %vm6873_vm11, %v6869_v13, 1326507024  ;;  %v6619_v4 = vadd.s32 3, %v6615_v43 }
 0x5ff   : > { %v3596_v39 = vsub.s32 4, %v3572_v28  ;;  %v6881_v61 = vsel %vm6871_vm10, %v6878_v62, %v6880_v44  ;;  %v6884_v49 = vsel %vm6872_vm9, %v6866_v21, %v6883_v2  ;;  %v6874_v9 = vsel %vm6870_vm8, %v6854_v35, %v6857_v25 }
 0x600   : > { %v3576_v48 = vsub.s32 0, %v12752_v11  ;;  %v6876_v58 = vsel %vm6872_vm9, %v6860_v33, %v6875_v5  ;;  %v6885_v41 = vsel %vm6871_vm10, %v6882_v53, %v6884_v49  ;;  %vm3512_vm12 = vcmp.lt.s32.totalorder %v12571_v17, 0 }
 0x601   : > { %v12769_v47 = vmul.u32.u64.low %v12709_v19, %v6885_v41  ;;  %v12770_v55 = vmul.u32.u64.high %v12709_v19, %v6885_v41, %v12769_v47  ;;  %v12773_v7 = vmul.u32.u64.low %v12709_v19, %v6881_v61  ;;  %v12774_v36 = vmul.u32.u64.high %v12709_v19, %v6881_v61, %v12773_v7 }
 0x602   : > { %v7655_v51 = vmin.u32 %v3576_v48, %v12752_v11  ;;  %v6620_v15 = vand.u32 3, %v6619_v4  ;;  %v3597_v30 = vsel %vm3512_vm12, %v3596_v39, %v3572_v28  ;;  %v6877_v60 = vsel %vm6871_vm10, %v6874_v9, %v6876_v58 }
 0x603   : > { %v3305_v52 = vand.u32 2139095040, %v12649_v59  ;;  %vm12785_vm13 = vcmp.le.f32.partialorder %v3510_v3, 0.7853982  ;;  %vm6895_vm14 = vc.u32 %v12770_v55, %v12773_v7  ;;  %v6896_v34 = vadd.s32 1, %v12774_v36 }
 0x604   : > { %v3578_v20 = vclz %v7655_v51  ;;  %v3599_v25 = vsel %vm12785_vm13, 0, %v3597_v30  ;;  %v6893_v54 = vmul.u32 %v12709_v19, %v6877_v60  ;;  %v3302_v22 = vand.u32 2147483647, %v12649_v59 }
 0x605   : > { %v3306_v46 = vshrl.u32 %v3305_v52, 23  ;;  %vm6621_vm15 = vcmp.lt.s32.totalorder %v6620_v15, 2  ;;  %vm6622_vm0 = vcmp.eq.s32.totalorder %v6620_v15, 0  ;;  %v6897_v3 = vsel %vm6895_vm14, %v6896_v34, %v12774_v36 }
 0x606   : > { %v7656_v29 = vadd.s32 4294967294, %v3578_v20  ;;  %vm6625_vm1 = vcmp.eq.s32.totalorder %v6620_v15, 2  ;;  %v3566_v38 = vadd.s32 %v12687_v42, %v12700_v50  ;;  %v6898_v37 = vadd.s32 %v6897_v3, %v6893_v54 }
 0x607   : > { %v7646_v57 = vadd.s32 4294967169, %v3306_v46  ;;  %v3603_v43 = vadd.s32 3, %v3599_v25  ;;  %v12799_v19 = vadd.f32 %v12568_v18, %v674_v27  ;;  %v3309_v13 = vand.u32 8388607, %v3302_v22 }
 0x608   : > { %vm7657_vm2 = vcmp.lt.s32.totalorder %v7656_v29, 0  ;;  %v6899_v42 = vadd.s32 536870912, %v6898_v37  ;;  %vm6618_vm4 = vweird.f32 %v12457_v32  ;;  %vm6840_vm5 = vcmp.lt.s32.totalorder %v12595_v56, 0 }
 0x609   : > { %v8427_v33 = vpop.eup %8426  ;;  %v3581_v8 = vsel %vm7657_vm2, 0, %v7656_v29  ;;  %v3312_v1 = vadd.s32 1, %v7646_v57  ;;  %v6633_v2 = vand.u32 2139095040, %v12799_v19  ;;  %v12811_v58 = vand.u32 3, %v3603_v43 }
 0x60a   : > { %v8429_v21 = vpop.eup %8428  ;;  %v6626_v24 = vxor.u32 2147483648, %v8427_v33  ;;  %v3582_v26 = vsub.s32 32, %v3581_v8  ;;  %v3586_v28 = vsub.s32 4294967266, %v3581_v8  ;;  %v3583_v35 = vshll.u32 %v12752_v11, %v3581_v8 }
 0x60b   : > { %v6623_v40 = vxor.u32 2147483648, %v8429_v21  ;;  %vm3313_vm3 = vcmp.gt.s32.totalorder %v3312_v1, 0  ;;  %v6900_v53 = vshrl.u32 %v6899_v42, 30  ;;  %v6894_v41 = vadd.s32 %v12773_v7, %v12770_v55 }
 0x60c   : > { %v6627_v50 = vsel %vm6625_vm1, %v6626_v24, %v8429_v21  ;;  %v3584_v45 = vshrl.u32 %v3566_v38, %v3582_v26  ;;  %v3587_v62 = vadd.s32 127, %v3586_v28  ;;  %v3314_v5 = vsel %vm3313_vm3, %v3312_v1, 0 }
 0x60d   : > { %v6624_v0 = vsel %vm6622_vm0, %v8427_v33, %v6623_v40  ;;  %v3316_v44 = vand.u32 31, %v3314_v5  ;;  %v6901_v49 = vshll.u32 %v6900_v53, 30  ;;  %v3310_v47 = vor.u32 8388608, %v3309_v13 }
 0x60e   : > { %v6628_v4 = vsel %vm6621_vm15, %v6624_v0, %v6627_v50  ;;  %v3585_v39 = vor.u32 %v3584_v45, %v3583_v35  ;;  %v3588_v11 = vshll.u32 %v3587_v62, 23  ;;  %v6924_v51 = vsub.s32 4, %v6900_v53 }
 0x60f   : > { %v6629_v61 = vsel %vm6618_vm4, nan, %v6628_v4  ;;  %v3317_v48 = vsub.s32 32, %v3316_v44  ;;  %v12814_v36 = vsub.s32 %v6898_v37, %v6901_v49  ;;  %v6634_v15 = vshrl.u32 %v6633_v2, 23 }
 0x610   : > { %7414 = vst [vmem:[%s9048_s11 + $0x1c0] sm:$0xff] %v6629_v61  ;;  %v3589_v9 = vor.u32 4788187, %v3588_v11  ;;  %v3592_v60 = vcvt.s32.f32 %v3585_v39  ;;  %v3319_v52 = vshll.u32 %v8550_v6, %v3316_v44  ;;  %v3322_v46 = vshll.u32 %v8551_v10, %v3316_v44 }
 0x611   : > { %v3320_v32 = vshrl.u32 %v8551_v10, %v3317_v48  ;;  %v3323_v20 = vshrl.u32 %v8552_v12, %v3317_v48  ;;  %v6904_v34 = vsub.s32 0, %v12814_v36  ;;  %v3325_v29 = vshll.u32 %v8552_v12, %v3316_v44 }
 0x612   : > { %v3590_v30 = vand.u32 2147483647, %v3589_v9  ;;  %v3326_v55 = vshrl.u32 %v8553_v14, %v3317_v48  ;;  %v3315_v25 = vshrl.u32 %v3314_v5, 5  ;;  %v3328_v54 = vshll.u32 %v8553_v14, %v3316_v44 }
 0x613   : > { %v3329_v27 = vshrl.u32 %v8554_v16, %v3317_v48  ;;  %v7783_v3 = vmin.u32 %v6904_v34, %v12814_v36  ;;  %v3321_v57 = vor.u32 %v3320_v32, %v3319_v52  ;;  %v3324_v38 = vor.u32 %v3323_v20, %v3322_v46 }
 0x614   : > { %v3593_v7 = vmul.f32 %v3592_v60, %v3590_v30  ;;  %v3327_v37 = vor.u32 %v3326_v55, %v3325_v29  ;;  %v3331_v43 = vshll.u32 %v8554_v16, %v3316_v44  ;;  %v3332_v1 = vshrl.u32 %v8555_v23, %v3317_v48 }
 0x615   : > { %v3330_v8 = vor.u32 %v3329_v27, %v3328_v54  ;;  %vm12830_vm6 = vcmp.le.f32.partialorder %v6838_v31, 0.7853982  ;;  %v6906_v24 = vclz %v7783_v3  ;;  %v6925_v26 = vsel %vm6840_vm5, %v6924_v51, %v6900_v53  ;;  %v7880_v27 = vpop.f32.mrf.mxu0 }
 0x616   : > { %v3594_v33 = vxor.u32 2147483648, %v3593_v7  ;;  %v3350_v28 = vshll.u32 %v3310_v47, 8  ;;  %v7774_v13 = vadd.s32 4294967169, %v6634_v15  ;;  %v3318_v35 = vshrl.u32 %v8550_v6, %v3317_v48 }
 0x617   : > { %v3333_v42 = vor.u32 %v3332_v1, %v3331_v43  ;;  %vm3334_vm7 = vcmp.lt.s32.totalorder %v3315_v25, 1  ;;  %v7784_v50 = vadd.s32 4294967294, %v6906_v24  ;;  %vm3336_vm8 = vcmp.lt.s32.totalorder %v3315_v25, 3 }
 0x618   : > { %v3595_v40 = vsel %vm3512_vm12, %v3594_v33, %v3593_v7  ;;  %vm3337_vm9 = vcmp.lt.s32.totalorder %v3315_v25, 4  ;;  %v3342_v62 = vsel %vm3334_vm7, %v3321_v57, %v3324_v38  ;;  %vm3335_vm10 = vcmp.lt.s32.totalorder %v3315_v25, 2 }
 0x619   : > { %v3598_v31 = vsel %vm12785_vm13, %v12571_v17, %v3595_v40  ;;  %v3339_v45 = vsel %vm3337_vm9, %v3327_v37, 2102212464  ;;  %v3343_v5 = vsel %vm3337_vm9, %v3330_v8, 920167782  ;;  %vm7785_vm11 = vcmp.lt.s32.totalorder %v7784_v50, 0 }
 0x61a   : > { %8430 = vcosq.f32 %v3598_v31  ;;  %v3344_v0 = vsel %vm3336_vm8, %v3327_v37, %v3343_v5  ;;  %v6909_v53 = vsel %vm7785_vm11, 0, %v7784_v50  ;;  %v3338_v44 = vsel %vm3334_vm7, %v3318_v35, %v3321_v57 }
 0x61b   : > { %8432 = vsinq.f32 %v3598_v31  ;;  %v3345_v63 = vsel %vm3335_vm10, %v3342_v62, %v3344_v0  ;;  %v3346_v2 = vsel %vm3334_vm7, %v3324_v38, %v3327_v37  ;;  %v6910_v4 = vsub.s32 32, %v6909_v53 }
 0x61c   : > { %v6914_v39 = vsub.s32 4294967266, %v6909_v53  ;;  %v3340_v11 = vsel %vm3336_vm8, %v3324_v38, %v3339_v45  ;;  %v3347_v61 = vsel %vm3337_vm9, %v3333_v42, 1326507024  ;;  %v6911_v49 = vshll.u32 %v12814_v36, %v6909_v53 }
 0x61d   : > { %v3348_v48 = vsel %vm3336_vm8, %v3330_v8, %v3347_v61  ;;  %v12853_v9 = vmul.u32.u64.low %v3350_v28, %v3345_v63  ;;  %v12854_v47 = vmul.u32.u64.high %v3350_v28, %v3345_v63, %v12853_v9  ;;  %v6912_v51 = vshrl.u32 %v6894_v41, %v6910_v4 }
 0x61e   : > { %v6915_v32 = vadd.s32 127, %v6914_v39  ;;  %v3349_v15 = vsel %vm3335_vm10, %v3346_v2, %v3348_v48  ;;  %v6640_v30 = vadd.s32 1, %v7774_v13  ;;  %v6927_v60 = vsel %vm12830_vm6, 0, %v6925_v26 }
 0x61f   : > { %v12860_v52 = vmul.u32.u64.low %v3350_v28, %v3349_v15  ;;  %v12861_v20 = vmul.u32.u64.high %v3350_v28, %v3349_v15, %v12860_v52  ;;  %v6630_v34 = vand.u32 2147483647, %v12799_v19  ;;  %v6913_v36 = vor.u32 %v6912_v51, %v6911_v49 }
 0x620   : > { %v6916_v46 = vshll.u32 %v6915_v32, 23  ;;  %v3341_v29 = vsel %vm3335_vm10, %v3338_v44, %v3340_v11  ;;  %vm6641_vm12 = vcmp.gt.s32.totalorder %v6640_v30, 0  ;;  %v3360_v55 = vadd.s32 1, %v12854_v47 }
 0x621   : > { %v6642_v41 = vsel %vm6641_vm12, %v6640_v30, 0  ;;  %vm3605_vm13 = vcmp.lt.s32.totalorder %v12811_v58, 2  ;;  %vm3606_vm14 = vcmp.eq.s32.totalorder %v12811_v58, 0  ;;  %vm3609_vm15 = vcmp.eq.s32.totalorder %v12811_v58, 2 }
 0x622   : > { %v6917_v7 = vor.u32 4788187, %v6916_v46  ;;  %v6644_v54 = vand.u32 31, %v6642_v41  ;;  %vm3602_vm0 = vweird.f32 %v12571_v17  ;;  %v6931_v3 = vadd.s32 3, %v6927_v60 }
 0x623   : > { %v3357_v57 = vmul.u32 %v3350_v28, %v3341_v29  ;;  %vm3359_vm1 = vc.u32 %v12861_v20, %v12853_v9  ;;  %v6637_v25 = vand.u32 8388607, %v6630_v34  ;;  %v6920_v37 = vcvt.s32.f32 %v6913_v36 }
 0x624   : > { %v6918_v38 = vand.u32 2147483647, %v6917_v7  ;;  %v3361_v33 = vsel %vm3359_vm1, %v3360_v55, %v12854_v47  ;;  %v6645_v8 = vsub.s32 32, %v6644_v54  ;;  %v12875_v1 = vshrl.u32 %v6642_v41, 5 }
 0x625   : > { %v3362_v43 = vadd.s32 %v3361_v33, %v3357_v57  ;;  %v6647_v24 = vshll.u32 %v8550_v6, %v6644_v54  ;;  %v12879_v26 = vadd.f32 %v12568_v18, %v7880_v27  ;;  %v6650_v35 = vshll.u32 %v8551_v10, %v6644_v54 }
 0x626   : > { %v6921_v13 = vmul.f32 %v6920_v37, %v6918_v38  ;;  %v6648_v40 = vshrl.u32 %v8551_v10, %v6645_v8  ;;  %v6651_v42 = vshrl.u32 %v8552_v12, %v6645_v8  ;;  %v6653_v62 = vshll.u32 %v8552_v12, %v6644_v54 }
 0x627   : > { %v8431_v28 = vpop.eup %8430  ;;  %v3363_v45 = vadd.s32 536870912, %v3362_v43  ;;  %v6654_v5 = vshrl.u32 %v8553_v14, %v6645_v8  ;;  %v6656_v44 = vshll.u32 %v8553_v14, %v6644_v54  ;;  %v6657_v63 = vshrl.u32 %v8554_v16, %v6645_v8 }
 0x628   : > { %v8433_v31 = vpop.eup %8432  ;;  %v3610_v50 = vxor.u32 2147483648, %v8431_v28  ;;  %v6922_v53 = vxor.u32 2147483648, %v6921_v13  ;;  %v6649_v39 = vor.u32 %v6648_v40, %v6647_v24  ;;  %v6652_v11 = vor.u32 %v6651_v42, %v6650_v35 }
 0x629   : > { %v3607_v0 = vxor.u32 2147483648, %v8433_v31  ;;  %v12890_v4 = vshrl.u32 %v3363_v45, 30  ;;  %v6659_v48 = vshll.u32 %v8554_v16, %v6644_v54  ;;  %v6660_v47 = vshrl.u32 %v8555_v23, %v6645_v8 }
 0x62a   : > { %v3611_v2 = vsel %vm3609_vm15, %v3610_v50, %v8433_v31  ;;  %v6923_v49 = vsel %vm6840_vm5, %v6922_v53, %v6921_v13  ;;  %v6655_v30 = vor.u32 %v6654_v5, %v6653_v62  ;;  %v6658_v52 = vor.u32 %v6657_v63, %v6656_v44  ;;  %v7912_v31 = vpop.f32.mrf.mxu1 }
 0x62b   : > { %v3608_v61 = vsel %vm3606_vm14, %v8431_v28, %v3607_v0  ;;  %v6926_v32 = vsel %vm12830_vm6, %v12595_v56, %v6923_v49  ;;  %v3365_v15 = vshll.u32 %v12890_v4, 30  ;;  %v6661_v36 = vor.u32 %v6660_v47, %v6659_v48 }
 0x62c   : > { %v3612_v51 = vsel %vm3605_vm13, %v3608_v61, %v3611_v2  ;;  %8434 = vcosq.f32 %v6926_v32  ;;  %v12909_v29 = vand.u32 3, %v6931_v3  ;;  %v6638_v58 = vor.u32 8388608, %v6637_v25 }
 0x62d   : > { %v3613_v60 = vsel %vm3602_vm0, nan, %v3612_v51  ;;  %8436 = vsinq.f32 %v6926_v32  ;;  %v12907_v46 = vsub.s32 %v3362_v43, %v3365_v15  ;;  %vm6662_vm2 = vcmp.lt.s32.totalorder %v12875_v1, 1 }
 0x62e   : > { %7385 = vst [vmem:[%s9048_s11 + $0xd8] sm:$0xff] %v3613_v60  ;;  %v3825_v21 = vand.u32 2139095040, %v12879_v26  ;;  %vm6664_vm3 = vcmp.lt.s32.totalorder %v12875_v1, 3  ;;  %vm6665_vm4 = vcmp.lt.s32.totalorder %v12875_v1, 4  ;;  %v6670_v17 = vsel %vm6662_vm2, %v6649_v39, %v6652_v11 }
 0x62f   : > { %v3368_v55 = vsub.s32 0, %v12907_v46  ;;  %v6646_v41 = vshrl.u32 %v8550_v6, %v6645_v8  ;;  %v6667_v7 = vsel %vm6665_vm4, %v6655_v30, 2102212464  ;;  %v6671_v54 = vsel %vm6665_vm4, %v6658_v52, 920167782 }
 0x630   : > { %v6675_v27 = vsel %vm6665_vm4, %v6661_v36, 1326507024  ;;  %vm6663_vm5 = vcmp.lt.s32.totalorder %v12875_v1, 2  ;;  %v6672_v57 = vsel %vm6664_vm3, %v6655_v30, %v6671_v54  ;;  %v6674_v25 = vsel %vm6662_vm2, %v6652_v11, %v6655_v30 }
 0x631   : > { %v7647_v3 = vmin.u32 %v3368_v55, %v12907_v46  ;;  %v6673_v38 = vsel %vm6663_vm5, %v6670_v17, %v6672_v57  ;;  %v6676_v37 = vsel %vm6664_vm3, %v6658_v52, %v6675_v27  ;;  %v6678_v33 = vshll.u32 %v6638_v58, 8 }
 0x632   : > { %v3826_v8 = vshrl.u32 %v3825_v21, 23  ;;  %v6666_v24 = vsel %vm6662_vm2, %v6646_v41, %v6649_v39  ;;  %v6668_v28 = vsel %vm6664_vm3, %v6652_v11, %v6667_v7  ;;  %v6677_v13 = vsel %vm6663_vm5, %v6674_v25, %v6676_v37 }
 0x633   : > { %v3370_v43 = vclz %v7647_v3  ;;  %v12935_v40 = vmul.u32.u64.low %v6678_v33, %v6673_v38  ;;  %v12936_v35 = vmul.u32.u64.high %v6678_v33, %v6673_v38, %v12935_v40  ;;  %v3388_v45 = vsub.s32 4, %v12890_v4 }
 0x634   : > { %v7666_v42 = vadd.s32 4294967169, %v3826_v8  ;;  %v12940_v62 = vmul.u32.u64.low %v6678_v33, %v6677_v13  ;;  %v12941_v5 = vmul.u32.u64.high %v6678_v33, %v6677_v13, %v12940_v62  ;;  %vm6930_vm6 = vweird.f32 %v12595_v56 }
 0x635   : > { %v7648_v50 = vadd.s32 4294967294, %v3370_v43  ;;  %vm6934_vm7 = vcmp.eq.s32.totalorder %v12909_v29, 0  ;;  %vm3304_vm8 = vcmp.lt.s32.totalorder %v12649_v59, 0  ;;  %v6669_v0 = vsel %vm6663_vm5, %v6666_v24, %v6668_v28 }
 0x636   : > { %v3832_v53 = vadd.s32 1, %v7666_v42  ;;  %vm6937_vm9 = vcmp.eq.s32.totalorder %v12909_v29, 2  ;;  %v3822_v44 = vand.u32 2147483647, %v12879_v26  ;;  %v12951_v63 = vadd.f32 %v12568_v18, %v7912_v31 }
 0x637   : > { %vm7649_vm11 = vcmp.lt.s32.totalorder %v7648_v50, 0  ;;  %v3358_v2 = vadd.s32 %v12853_v9, %v12861_v20  ;;  %v6688_v11 = vadd.s32 1, %v12936_v35  ;;  %v3389_v48 = vsel %vm3304_vm8, %v3388_v45, %v12890_v4 }
 0x638   : > { %v3373_v39 = vsel %vm7649_vm11, 0, %v7648_v50  ;;  %vm3833_vm10 = vcmp.gt.s32.totalorder %v3832_v53, 0  ;;  %v6685_v47 = vmul.u32 %v6678_v33, %v6669_v0  ;;  %vm6687_vm12 = vc.u32 %v12941_v5, %v12935_v40 }
 0x639   : > { %v8435_v61 = vpop.eup %8434  ;;  %v3374_v49 = vsub.s32 32, %v3373_v39  ;;  %v3378_v1 = vsub.s32 4294967266, %v3373_v39  ;;  %v3375_v18 = vshll.u32 %v12907_v46, %v3373_v39  ;;  %v3834_v9 = vsel %vm3833_vm10, %v3832_v53, 0 }
 0x63a   : > { %v8437_v51 = vpop.eup %8436  ;;  %v6938_v32 = vxor.u32 2147483648, %v8435_v61  ;;  %v6689_v60 = vsel %vm6687_vm12, %v6688_v11, %v12936_v35  ;;  %v3829_v4 = vand.u32 8388607, %v3822_v44  ;;  %v3836_v58 = vand.u32 31, %v3834_v9 }
 0x63b   : > { %v6935_v20 = vxor.u32 2147483648, %v8437_v51  ;;  %v3376_v15 = vshrl.u32 %v3358_v2, %v3374_v49  ;;  %v3379_v30 = vadd.s32 127, %v3378_v1  ;;  %v6690_v36 = vadd.s32 %v6689_v60, %v6685_v47 }
 0x63c   : > { %v6939_v52 = vsel %vm6937_vm9, %v6938_v32, %v8437_v51  ;;  %vm6933_vm13 = vcmp.lt.s32.totalorder %v12909_v29, 2  ;;  %vm12972_vm14 = vcmp.le.f32.partialorder %v3302_v22, 0.7853982  ;;  %v3837_v54 = vsub.s32 32, %v3836_v58 }
 0x63d   : > { %v6936_v46 = vsel %vm6934_vm7, %v8435_v61, %v6935_v20  ;;  %v3377_v21 = vor.u32 %v3376_v15, %v3375_v18  ;;  %v3380_v55 = vshll.u32 %v3379_v30, 23  ;;  %v6691_v7 = vadd.s32 536870912, %v6690_v36 }
 0x63e   : > { %v6940_v17 = vsel %vm6933_vm13, %v6936_v46, %v6939_v52  ;;  %v3391_v57 = vsel %vm12972_vm14, 0, %v3389_v48  ;;  %v3830_v25 = vor.u32 8388608, %v3829_v4  ;;  %v3840_v38 = vshrl.u32 %v8551_v10, %v3837_v54 }
 0x63f   : > { %v6941_v27 = vsel %vm6930_vm6, nan, %v6940_v17  ;;  %v3381_v3 = vor.u32 4788187, %v3380_v55  ;;  %v12981_v29 = vshrl.u32 %v6691_v7, 30  ;;  %v7153_v22 = vand.u32 2139095040, %v12951_v63 }
 0x640   : > { %7417 = vst [vmem:[%s9048_s11 + $0x1d8] sm:$0xff] %v6941_v27  ;;  %v3384_v33 = vcvt.s32.f32 %v3377_v21  ;;  %v3843_v8 = vshrl.u32 %v8552_v12, %v3837_v54  ;;  %v3846_v43 = vshrl.u32 %v8553_v14, %v3837_v54  ;;  %v3835_v24 = vshrl.u32 %v3834_v9, 5 }
 0x641   : > { %v3382_v37 = vand.u32 2147483647, %v3381_v3  ;;  %v6693_v56 = vshll.u32 %v12981_v29, 30  ;;  %v3839_v28 = vshll.u32 %v8550_v6, %v3836_v58  ;;  %v3845_v13 = vshll.u32 %v8552_v12, %v3836_v58 }
 0x642   : > { %v3842_v42 = vshll.u32 %v8551_v10, %v3836_v58  ;;  %v3848_v31 = vshll.u32 %v8553_v14, %v3836_v58  ;;  %v3849_v50 = vshrl.u32 %v8554_v16, %v3837_v54  ;;  %v3852_v53 = vshrl.u32 %v8555_v23, %v3837_v54 }
 0x643   : > { %v3385_v35 = vmul.f32 %v3384_v33, %v3382_v37  ;;  %v12993_v45 = vsub.s32 %v6690_v36, %v6693_v56  ;;  %v3841_v62 = vor.u32 %v3840_v38, %v3839_v28  ;;  %v3847_v0 = vor.u32 %v3846_v43, %v3845_v13 }
 0x644   : > { %v3844_v39 = vor.u32 %v3843_v8, %v3842_v42  ;;  %v3850_v11 = vor.u32 %v3849_v50, %v3848_v31  ;;  %v3851_v61 = vshll.u32 %v8554_v16, %v3836_v58  ;;  %v3395_v49 = vadd.s32 3, %v3391_v57 }
 0x645   : > { %v3386_v2 = vxor.u32 2147483648, %v3385_v35  ;;  %v6696_v1 = vsub.s32 0, %v12993_v45  ;;  %v3870_v48 = vshll.u32 %v3830_v25, 8  ;;  %v7154_v47 = vshrl.u32 %v7153_v22, 23 }
 0x646   : > { %v3838_v32 = vshrl.u32 %v8550_v6, %v3837_v54  ;;  %v3853_v18 = vor.u32 %v3852_v53, %v3851_v61  ;;  %vm3857_vm15 = vcmp.lt.s32.totalorder %v3835_v24, 4  ;;  %vm3854_vm0 = vcmp.lt.s32.totalorder %v3835_v24, 1 }
 0x647   : > { %v3387_v51 = vsel %vm3304_vm8, %v3386_v2, %v3385_v35  ;;  %v7775_v20 = vmin.u32 %v6696_v1, %v12993_v45  ;;  %v3859_v15 = vsel %vm3857_vm15, %v3847_v0, 2102212464  ;;  %vm3855_vm1 = vcmp.lt.s32.totalorder %v3835_v24, 2  ;;  %v559_v1 = vpop.f32.mrf.mxu0 }
 0x648   : > { %v3390_v9 = vsel %vm12972_vm14, %v12649_v59, %v3387_v51  ;;  %v3862_v30 = vsel %vm3854_vm0, %v3841_v62, %v3844_v39  ;;  %v3863_v60 = vsel %vm3857_vm15, %v3850_v11, 920167782  ;;  %vm3856_vm2 = vcmp.lt.s32.totalorder %v3835_v24, 3 }
 0x649   : > { %8438 = vcosq.f32 %v3390_v9  ;;  %v6698_v52 = vclz %v7775_v20  ;;  %v3866_v36 = vsel %vm3854_vm0, %v3844_v39, %v3847_v0  ;;  %v3858_v4 = vsel %vm3854_vm0, %v3838_v32, %v3841_v62 }
 0x64a   : > { %8440 = vsinq.f32 %v3390_v9  ;;  %v3860_v58 = vsel %vm3856_vm2, %v3844_v39, %v3859_v15  ;;  %v3864_v46 = vsel %vm3856_vm2, %v3847_v0, %v3863_v60  ;;  %v3867_v21 = vsel %vm3857_vm15, %v3853_v18, 1326507024 }
 0x64b   : > { %v7776_v55 = vadd.s32 4294967294, %v6698_v52  ;;  %v6716_v17 = vsub.s32 4, %v12981_v29  ;;  %v3865_v41 = vsel %vm3855_vm1, %v3862_v30, %v3864_v46  ;;  %v3868_v7 = vsel %vm3856_vm2, %v3850_v11, %v3867_v21 }
 0x64c   : > { %v3869_v54 = vsel %vm3855_vm1, %v3866_v36, %v3868_v7  ;;  %v13011_v27 = vmul.u32.u64.low %v3870_v48, %v3865_v41  ;;  %v13012_v3 = vmul.u32.u64.high %v3870_v48, %v3865_v41, %v13011_v27  ;;  %v7794_v57 = vadd.s32 4294967169, %v7154_v47  ;;  %v13050_v36 = vld [vmem:[%s13586_s2] ss:$0 sm:$0xff] }
 0x64d   : > { %vm7777_vm3 = vcmp.lt.s32.totalorder %v7776_v55, 0  ;;  %v3861_v25 = vsel %vm3855_vm1, %v3858_v4, %v3860_v58  ;;  %v13016_v38 = vmul.u32.u64.low %v3870_v48, %v3869_v54  ;;  %v13017_v22 = vmul.u32.u64.high %v3870_v48, %v3869_v54, %v13016_v38 }
 0x64e   : > { %v3396_v37 = vand.u32 3, %v3395_v49  ;;  %vm6632_vm4 = vcmp.lt.s32.totalorder %v12799_v19, 0  ;;  %v6701_v33 = vsel %vm7777_vm3, 0, %v7776_v55  ;;  %v7160_v8 = vadd.s32 1, %v7794_v57 }
 0x64f   : > { %v6686_v43 = vadd.s32 %v12935_v40, %v12941_v5  ;;  %v6702_v56 = vsub.s32 32, %v6701_v33  ;;  %v6706_v28 = vsub.s32 4294967266, %v6701_v33  ;;  %v7150_v13 = vand.u32 2147483647, %v12951_v63 }
 0x650   : > { %v6717_v24 = vsel %vm6632_vm4, %v6716_v17, %v12981_v29  ;;  %v3877_v35 = vmul.u32 %v3870_v48, %v3861_v25  ;;  %v3880_v42 = vadd.s32 1, %v13012_v3  ;;  %vm7161_vm5 = vcmp.gt.s32.totalorder %v7160_v8, 0 }
 0x651   : > { %v6703_v31 = vshll.u32 %v12993_v45, %v6701_v33  ;;  %v6704_v50 = vshrl.u32 %v6686_v43, %v6702_v56  ;;  %v6707_v62 = vadd.s32 127, %v6706_v28  ;;  %vm3879_vm6 = vc.u32 %v13017_v22, %v13011_v27 }
 0x652   : > { %vm13032_vm7 = vcmp.le.f32.partialorder %v6630_v34, 0.7853982  ;;  %v3881_v5 = vsel %vm3879_vm6, %v3880_v42, %v13012_v3  ;;  %v7162_v29 = vsel %vm7161_vm5, %v7160_v8, 0  ;;  %vm3394_vm8 = vweird.f32 %v12649_v59 }
 0x653   : > { %v6705_v0 = vor.u32 %v6704_v50, %v6703_v31  ;;  %v6708_v53 = vshll.u32 %v6707_v62, 23  ;;  %v6719_v2 = vsel %vm13032_vm7, 0, %v6717_v24  ;;  %v3882_v45 = vadd.s32 %v3881_v5, %v3877_v35 }
 0x654   : > { %v7157_v39 = vand.u32 8388607, %v7150_v13  ;;  %v7164_v11 = vand.u32 31, %v7162_v29  ;;  %vm3397_vm9 = vcmp.lt.s32.totalorder %v3396_v37, 2  ;;  %vm3398_vm11 = vcmp.eq.s32.totalorder %v3396_v37, 0 }
 0x655   : > { %v6709_v34 = vor.u32 4788187, %v6708_v53  ;;  %v3883_v49 = vadd.s32 536870912, %v3882_v45  ;;  %vm3401_vm10 = vcmp.eq.s32.totalorder %v3396_v37, 2  ;;  %v13042_v51 = vadd.s32 3, %v6719_v2 }
 0x656   : > { %v8439_v61 = vpop.eup %8438  ;;  %v7165_v32 = vsub.s32 32, %v7164_v11  ;;  %v6712_v20 = vcvt.s32.f32 %v6705_v0  ;;  %v7158_v60 = vor.u32 8388608, %v7157_v39  ;;  %v13053_v4 = vadd.f32 %v13050_v36, %v559_v1 }
 0x657   : > { %v8441_v48 = vpop.eup %8440  ;;  %v3402_v47 = vxor.u32 2147483648, %v8439_v61  ;;  %v6710_v9 = vand.u32 2147483647, %v6709_v34  ;;  %v13044_v15 = vshrl.u32 %v3883_v49, 30  ;;  %v7167_v41 = vshll.u32 %v8550_v6, %v7164_v11 }
 0x658   : > { %v3399_v18 = vxor.u32 2147483648, %v8441_v48  ;;  %v7168_v52 = vshrl.u32 %v8551_v10, %v7165_v32  ;;  %v7171_v55 = vshrl.u32 %v8552_v12, %v7165_v32  ;;  %v7170_v7 = vshll.u32 %v8551_v10, %v7164_v11 }
 0x659   : > { %v3403_v30 = vsel %vm3401_vm10, %v3402_v47, %v8441_v48  ;;  %v6713_v46 = vmul.f32 %v6712_v20, %v6710_v9  ;;  %v3885_v21 = vshll.u32 %v13044_v15, 30  ;;  %v7174_v54 = vshrl.u32 %v8553_v14, %v7165_v32 }
 0x65a   : > { %v3400_v58 = vsel %vm3398_vm11, %v8439_v61, %v3399_v18  ;;  %v7173_v38 = vshll.u32 %v8552_v12, %v7164_v11  ;;  %v7163_v33 = vshrl.u32 %v7162_v29, 5  ;;  %v7169_v8 = vor.u32 %v7168_v52, %v7167_v41 }
 0x65b   : > { %v3404_v17 = vsel %vm3397_vm9, %v3400_v58, %v3403_v30  ;;  %v6714_v57 = vxor.u32 2147483648, %v6713_v46  ;;  %v13064_v25 = vsub.s32 %v3882_v45, %v3885_v21  ;;  %v7176_v37 = vshll.u32 %v8553_v14, %v7164_v11 }
 0x65c   : > { %v3405_v3 = vsel %vm3394_vm8, nan, %v3404_v17  ;;  %v7177_v43 = vshrl.u32 %v8554_v16, %v7165_v32  ;;  %v7172_v24 = vor.u32 %v7171_v55, %v7170_v7  ;;  %v7175_v59 = vor.u32 %v7174_v54, %v7173_v38  ;;  %v687_v7 = vpop.f32.mrf.mxu1 }
 0x65d   : > { %7383 = vst [vmem:[%s9048_s11 + $0xc8] sm:$0xff] %v3405_v3  ;;  %v6715_v56 = vsel %vm6632_vm4, %v6714_v57, %v6713_v46  ;;  %v3888_v28 = vsub.s32 0, %v13064_v25  ;;  %v7179_v31 = vshll.u32 %v8554_v16, %v7164_v11  ;;  %v7180_v50 = vshrl.u32 %v8555_v23, %v7165_v32 }
 0x65e   : > { %v6718_v35 = vsel %vm13032_vm7, %v12799_v19, %v6715_v56  ;;  %v7178_v42 = vor.u32 %v7177_v43, %v7176_v37  ;;  %v7198_v5 = vshll.u32 %v7158_v60, 8  ;;  %v3617_v29 = vand.u32 2139095040, %v13053_v4 }
 0x65f   : > { %8442 = vcosq.f32 %v6718_v35  ;;  %v7667_v62 = vmin.u32 %v3888_v28, %v13064_v25  ;;  %v7166_v0 = vshrl.u32 %v8550_v6, %v7165_v32  ;;  %v7181_v53 = vor.u32 %v7180_v50, %v7179_v31 }
 0x660   : > { %8444 = vsinq.f32 %v6718_v35  ;;  %vm7182_vm12 = vcmp.lt.s32.totalorder %v7163_v33, 1  ;;  %vm7183_vm13 = vcmp.lt.s32.totalorder %v7163_v33, 2  ;;  %vm7184_vm14 = vcmp.lt.s32.totalorder %v7163_v33, 3 }
 0x661   : > { %v3890_v2 = vclz %v7667_v62  ;;  %vm7185_vm15 = vcmp.lt.s32.totalorder %v7163_v33, 4  ;;  %v7190_v45 = vsel %vm7182_vm12, %v7169_v8, %v7172_v24  ;;  %v7194_v11 = vsel %vm7182_vm12, %v7172_v24, %v7175_v59 }
 0x662   : > { %v7187_v40 = vsel %vm7185_vm15, %v7175_v59, 2102212464  ;;  %v7191_v39 = vsel %vm7185_vm15, %v7178_v42, 920167782  ;;  %v7186_v34 = vsel %vm7182_vm12, %v7166_v0, %v7169_v8  ;;  %v7195_v1 = vsel %vm7185_vm15, %v7181_v53, 1326507024 }
 0x663   : > { %v7668_v61 = vadd.s32 4294967294, %v3890_v2  ;;  %v7192_v49 = vsel %vm7184_vm14, %v7175_v59, %v7191_v39  ;;  %v7188_v48 = vsel %vm7184_vm14, %v7172_v24, %v7187_v40  ;;  %v7196_v18 = vsel %vm7184_vm14, %v7178_v42, %v7195_v1 }
 0x664   : > { %v7193_v47 = vsel %vm7183_vm13, %v7190_v45, %v7192_v49  ;;  %v3618_v9 = vshrl.u32 %v3617_v29, 23  ;;  %v7197_v32 = vsel %vm7183_vm13, %v7194_v11, %v7196_v18  ;;  %v3878_v60 = vadd.s32 %v13011_v27, %v13017_v22 }
 0x665   : > { %vm7669_vm0 = vcmp.lt.s32.totalorder %v7668_v61, 0  ;;  %v13083_v20 = vmul.u32.u64.low %v7198_v5, %v7193_v47  ;;  %v13084_v30 = vmul.u32.u64.high %v7198_v5, %v7193_v47, %v13083_v20  ;;  %v7189_v17 = vsel %vm7183_vm13, %v7186_v34, %v7188_v48 }
 0x666   : > { %v3893_v52 = vsel %vm7669_vm0, 0, %v7668_v61  ;;  %v13089_v58 = vmul.u32.u64.low %v7198_v5, %v7197_v32  ;;  %v13090_v46 = vmul.u32.u64.high %v7198_v5, %v7197_v32, %v13089_v58  ;;  %v7658_v41 = vadd.s32 4294967169, %v3618_v9 }
 0x667   : > { %v3894_v21 = vsub.s32 32, %v3893_v52  ;;  %v3898_v55 = vsub.s32 4294967266, %v3893_v52  ;;  %v6724_v54 = vand.u32 3, %v13042_v51  ;;  %v3895_v3 = vshll.u32 %v13064_v25, %v3893_v52 }
 0x668   : > { %v3908_v57 = vsub.s32 4, %v13044_v15  ;;  %v3614_v38 = vand.u32 2147483647, %v13053_v4  ;;  %vm6722_vm1 = vweird.f32 %v12799_v19  ;;  %v7208_v8 = vadd.s32 1, %v13084_v30 }
 0x669   : > { %v3896_v27 = vshrl.u32 %v3878_v60, %v3894_v21  ;;  %v3899_v22 = vadd.s32 127, %v3898_v55  ;;  %v3624_v37 = vadd.s32 1, %v7658_v41  ;;  %vm3824_vm2 = vcmp.lt.s32.totalorder %v12879_v26, 0 }
 0x66a   : > { %v7205_v33 = vmul.u32 %v7198_v5, %v7189_v17  ;;  %vm7207_vm3 = vc.u32 %v13090_v46, %v13083_v20  ;;  %v13103_v51 = vadd.f32 %v13050_v36, %v687_v7  ;;  %vm6729_vm5 = vcmp.eq.s32.totalorder %v6724_v54, 2 }
 0x66b   : > { %v3897_v25 = vor.u32 %v3896_v27, %v3895_v3  ;;  %v3900_v43 = vshll.u32 %v3899_v22, 23  ;;  %v7209_v56 = vsel %vm7207_vm3, %v7208_v8, %v13084_v30  ;;  %vm3625_vm4 = vcmp.gt.s32.totalorder %v3624_v37, 0 }
 0x66c   : > { %v8443_v28 = vpop.eup %8442  ;;  %vm13108_vm6 = vcmp.le.f32.partialorder %v3822_v44, 0.7853982  ;;  %v7210_v59 = vadd.s32 %v7209_v56, %v7205_v33  ;;  %v3626_v35 = vsel %vm3625_vm4, %v3624_v37, 0  ;;  %v13115_v62 = vsel %vm3824_vm2, %v3908_v57, %v13044_v15 }
 0x66d   : > { %v8445_v42 = vpop.eup %8444  ;;  %v6730_v31 = vxor.u32 2147483648, %v8443_v28  ;;  %v3901_v50 = vor.u32 4788187, %v3900_v43  ;;  %v3621_v5 = vand.u32 8388607, %v3614_v38  ;;  %v3628_v53 = vand.u32 31, %v3626_v35 }
 0x66e   : > { %v6727_v29 = vxor.u32 2147483648, %v8445_v42  ;;  %v7211_v0 = vadd.s32 536870912, %v7210_v59  ;;  %v6945_v44 = vand.u32 2139095040, %v13103_v51  ;;  %vm6726_vm7 = vcmp.eq.s32.totalorder %v6724_v54, 0 }
 0x66f   : > { %v6731_v2 = vsel %vm6729_vm5, %v6730_v31, %v8445_v42  ;;  %v3902_v40 = vand.u32 2147483647, %v3901_v50  ;;  %v3904_v45 = vcvt.s32.f32 %v3897_v25  ;;  %vm6725_vm8 = vcmp.lt.s32.totalorder %v6724_v54, 2 }
 0x670   : > { %v6728_v39 = vsel %vm6726_vm7, %v8443_v28, %v6727_v29  ;;  %v13120_v11 = vshrl.u32 %v7211_v0, 30  ;;  %v3629_v61 = vsub.s32 32, %v3628_v53  ;;  %v3911_v49 = vsel %vm13108_vm6, 0, %v13115_v62 }
 0x671   : > { %v6732_v15 = vsel %vm6725_vm8, %v6728_v39, %v6731_v2  ;;  %v3905_v34 = vmul.f32 %v3904_v45, %v3902_v40  ;;  %v3622_v1 = vor.u32 8388608, %v3621_v5  ;;  %v3631_v18 = vshll.u32 %v8550_v6, %v3628_v53 }
 0x672   : > { %v6733_v48 = vsel %vm6722_vm1, nan, %v6732_v15  ;;  %v7213_v47 = vshll.u32 %v13120_v11, 30  ;;  %v6946_v9 = vshrl.u32 %v6945_v44, 23  ;;  %v3632_v30 = vshrl.u32 %v8551_v10, %v3629_v61 }
 0x673   : > { %7415 = vst [vmem:[%s9048_s11 + $0x1c8] sm:$0xff] %v6733_v48  ;;  %v3906_v32 = vxor.u32 2147483648, %v3905_v34  ;;  %v3635_v60 = vshrl.u32 %v8552_v12, %v3629_v61  ;;  %v3638_v52 = vshrl.u32 %v8553_v14, %v3629_v61  ;;  %v3634_v21 = vshll.u32 %v8551_v10, %v3628_v53 }
 0x674   : > { %v13133_v58 = vsub.s32 %v7210_v59, %v7213_v47  ;;  %v3637_v19 = vshll.u32 %v8552_v12, %v3628_v53  ;;  %v3641_v55 = vshrl.u32 %v8554_v16, %v3629_v61  ;;  %v3627_v41 = vshrl.u32 %v3626_v35, 5 }
 0x675   : > { %v3907_v17 = vsel %vm3824_vm2, %v3906_v32, %v3905_v34  ;;  %v3633_v7 = vor.u32 %v3632_v30, %v3631_v18  ;;  %v3640_v54 = vshll.u32 %v8553_v14, %v3628_v53  ;;  %v3636_v27 = vor.u32 %v3635_v60, %v3634_v21 }
 0x676   : > { %v3910_v3 = vsel %vm13108_vm6, %v12879_v26, %v3907_v17  ;;  %v7216_v57 = vsub.s32 0, %v13133_v58  ;;  %v3639_v22 = vor.u32 %v3638_v52, %v3637_v19  ;;  %vm7152_vm9 = vcmp.lt.s32.totalorder %v12951_v63, 0 }
 0x677   : > { %8446 = vcosq.f32 %v3910_v3  ;;  %v3642_v8 = vor.u32 %v3641_v55, %v3640_v54  ;;  %v3643_v37 = vshll.u32 %v8554_v16, %v3628_v53  ;;  %v3644_v33 = vshrl.u32 %v8555_v23, %v3629_v61 }
 0x678   : > { %8448 = vsinq.f32 %v3910_v3  ;;  %v7795_v25 = vmin.u32 %v7216_v57, %v13133_v58  ;;  %v3662_v43 = vshll.u32 %v3622_v1, 8  ;;  %v7786_v56 = vadd.s32 4294967169, %v6946_v9 }
 0x679   : > { %v3630_v28 = vshrl.u32 %v8550_v6, %v3629_v61  ;;  %v3645_v24 = vor.u32 %v3644_v33, %v3643_v37  ;;  %vm3646_vm11 = vcmp.lt.s32.totalorder %v3627_v41, 1  ;;  %vm3647_vm10 = vcmp.lt.s32.totalorder %v3627_v41, 2  ;;  %v7881_v33 = vpop.f32.mrf.mxu0 }
 0x67a   : > { %v7218_v59 = vclz %v7795_v25  ;;  %vm3648_vm12 = vcmp.lt.s32.totalorder %v3627_v41, 3  ;;  %vm3649_vm13 = vcmp.lt.s32.totalorder %v3627_v41, 4  ;;  %v3654_v35 = vsel %vm3646_vm11, %v3633_v7, %v3636_v27 }
 0x67b   : > { %v3651_v42 = vsel %vm3649_vm13, %v3639_v22, 2102212464  ;;  %v3655_v31 = vsel %vm3649_vm13, %v3642_v8, 920167782  ;;  %v3658_v50 = vsel %vm3646_vm11, %v3636_v27, %v3639_v22  ;;  %v3659_v62 = vsel %vm3649_vm13, %v3645_v24, 1326507024 }
 0x67c   : > { %v7796_v5 = vadd.s32 4294967294, %v7218_v59  ;;  %v7236_v29 = vsub.s32 4, %v13120_v11  ;;  %v3656_v0 = vsel %vm3648_vm12, %v3639_v22, %v3655_v31  ;;  %v3660_v53 = vsel %vm3648_vm12, %v3642_v8, %v3659_v62 }
 0x67d   : > { %v3915_v44 = vadd.s32 3, %v3911_v49  ;;  %v3650_v2 = vsel %vm3646_vm11, %v3630_v28, %v3633_v7  ;;  %v3657_v40 = vsel %vm3647_vm10, %v3654_v35, %v3656_v0  ;;  %v3661_v45 = vsel %vm3647_vm10, %v3658_v50, %v3660_v53 }
 0x67e   : > { %vm7797_vm14 = vcmp.lt.s32.totalorder %v7796_v5, 0  ;;  %v3652_v39 = vsel %vm3648_vm12, %v3636_v27, %v3651_v42  ;;  %v13156_v61 = vmul.u32.u64.low %v3662_v43, %v3661_v45  ;;  %v13157_v15 = vmul.u32.u64.high %v3662_v43, %v3661_v45, %v13156_v61 }
 0x67f   : > { %v7221_v34 = vsel %vm7797_vm14, 0, %v7796_v5  ;;  %v13159_v1 = vmul.u32.u64.low %v3662_v43, %v3657_v40  ;;  %v13160_v48 = vmul.u32.u64.high %v3662_v43, %v3657_v40, %v13159_v1  ;;  %v6952_v47 = vadd.s32 1, %v7786_v56 }
 0x680   : > { %v7206_v49 = vadd.s32 %v13083_v20, %v13090_v46  ;;  %v7222_v18 = vsub.s32 32, %v7221_v34  ;;  %v7226_v9 = vsub.s32 4294967266, %v7221_v34  ;;  %v7237_v32 = vsel %vm7152_vm9, %v7236_v29, %v13120_v11 }
 0x681   : > { %vm3914_vm15 = vweird.f32 %v12879_v26  ;;  %v3916_v30 = vand.u32 3, %v3915_v44  ;;  %vm13171_vm0 = vcmp.le.f32.partialorder %v7150_v13, 0.7853982  ;;  %v3653_v52 = vsel %vm3647_vm10, %v3650_v2, %v3652_v39 }
 0x682   : > { %vm6953_vm1 = vcmp.gt.s32.totalorder %v6952_v47, 0  ;;  %v7223_v20 = vshll.u32 %v13133_v58, %v7221_v34  ;;  %v7224_v46 = vshrl.u32 %v7206_v49, %v7222_v18  ;;  %v7227_v21 = vadd.s32 127, %v7226_v9 }
 0x683   : > { %vm3671_vm2 = vc.u32 %v13157_v15, %v13159_v1  ;;  %v7239_v11 = vsel %vm13171_vm0, 0, %v7237_v32  ;;  %v3672_v19 = vadd.s32 1, %v13160_v48  ;;  %v6942_v13 = vand.u32 2147483647, %v13103_v51 }
 0x684   : > { %v6954_v55 = vsel %vm6953_vm1, %v6952_v47, 0  ;;  %v8447_v17 = vpop.eup %8446  ;;  %v7225_v7 = vor.u32 %v7224_v46, %v7223_v20  ;;  %v7228_v41 = vshll.u32 %v7227_v21, 23  ;;  %v3669_v54 = vmul.u32 %v3662_v43, %v3653_v52 }
 0x685   : > { %v6956_v3 = vand.u32 31, %v6954_v55  ;;  %v8449_v57 = vpop.eup %8448  ;;  %vm3917_vm3 = vcmp.lt.s32.totalorder %v3916_v30, 2  ;;  %vm3918_vm4 = vcmp.eq.s32.totalorder %v3916_v30, 0  ;;  %v3922_v58 = vxor.u32 2147483648, %v8447_v17 }
 0x686   : > { %v3673_v27 = vsel %vm3671_vm2, %v3672_v19, %v13160_v48  ;;  %v3919_v22 = vxor.u32 2147483648, %v8449_v57  ;;  %vm3921_vm5 = vcmp.eq.s32.totalorder %v3916_v30, 2  ;;  %v7229_v8 = vor.u32 4788187, %v7228_v41 }
 0x687   : > { %v3674_v37 = vadd.s32 %v3673_v27, %v3669_v54  ;;  %v3923_v25 = vsel %vm3921_vm5, %v3922_v58, %v8449_v57  ;;  %v7243_v56 = vadd.s32 3, %v7239_v11  ;;  %v6949_v28 = vand.u32 8388607, %v6942_v13 }
 0x688   : > { %v6957_v24 = vsub.s32 32, %v6956_v3  ;;  %v3920_v43 = vsel %vm3918_vm4, %v8447_v17, %v3919_v22  ;;  %v7230_v59 = vand.u32 2147483647, %v7229_v8  ;;  %v7232_v35 = vcvt.s32.f32 %v7225_v7 }
 0x689   : > { %v3675_v42 = vadd.s32 536870912, %v3674_v37  ;;  %v3924_v31 = vsel %vm3917_vm3, %v3920_v43, %v3923_v25  ;;  %v13190_v5 = vadd.f32 %v13050_v36, %v7881_v33  ;;  %v6955_v2 = vshrl.u32 %v6954_v55, 5  ;;  %v7913_v43 = vpop.f32.mrf.mxu1 }
 0x68a   : > { %v6960_v50 = vshrl.u32 %v8551_v10, %v6957_v24  ;;  %v6963_v62 = vshrl.u32 %v8552_v12, %v6957_v24  ;;  %v3925_v29 = vsel %vm3914_vm15, nan, %v3924_v31  ;;  %v7233_v0 = vmul.f32 %v7232_v35, %v7230_v59 }
 0x68b   : > { %v13194_v53 = vshrl.u32 %v3675_v42, 30  ;;  %v6966_v44 = vshrl.u32 %v8553_v14, %v6957_v24  ;;  %7388 = vst [vmem:[%s9048_s11 + $0xf0] sm:$0xff] %v3925_v29  ;;  %v6959_v40 = vshll.u32 %v8550_v6, %v6956_v3  ;;  %v6962_v45 = vshll.u32 %v8551_v10, %v6956_v3 }
 0x68c   : > { %v6969_v39 = vshrl.u32 %v8554_v16, %v6957_v24  ;;  %v7234_v61 = vxor.u32 2147483648, %v7233_v0  ;;  %v6965_v48 = vshll.u32 %v8552_v12, %v6956_v3  ;;  %v6968_v26 = vshll.u32 %v8553_v14, %v6956_v3 }
 0x68d   : > { %v3677_v34 = vshll.u32 %v13194_v53, 30  ;;  %v6961_v47 = vor.u32 %v6960_v50, %v6959_v40  ;;  %v6964_v49 = vor.u32 %v6963_v62, %v6962_v45  ;;  %v6971_v18 = vshll.u32 %v8554_v16, %v6956_v3 }
 0x68e   : > { %v6972_v9 = vshrl.u32 %v8555_v23, %v6957_v24  ;;  %v7235_v32 = vsel %vm7152_vm9, %v7234_v61, %v7233_v0  ;;  %v6967_v52 = vor.u32 %v6966_v44, %v6965_v48  ;;  %v6970_v20 = vor.u32 %v6969_v39, %v6968_v26 }
 0x68f   : > { %v13208_v30 = vsub.s32 %v3674_v37, %v3677_v34  ;;  %v7238_v46 = vsel %vm13171_vm0, %v12951_v63, %v7235_v32  ;;  %v13213_v21 = vand.u32 3, %v7243_v56  ;;  %v6950_v11 = vor.u32 8388608, %v6949_v28 }
 0x690   : > { %v6973_v19 = vor.u32 %v6972_v9, %v6971_v18  ;;  %8450 = vcosq.f32 %v7238_v46  ;;  %v6958_v17 = vshrl.u32 %v8550_v6, %v6957_v24  ;;  %v3929_v7 = vand.u32 2139095040, %v13190_v5 }
 0x691   : > { %v3680_v55 = vsub.s32 0, %v13208_v30  ;;  %8452 = vsinq.f32 %v7238_v46  ;;  %vm6974_vm6 = vcmp.lt.s32.totalorder %v6955_v2, 1  ;;  %vm6976_vm7 = vcmp.lt.s32.totalorder %v6955_v2, 3 }
 0x692   : > { %vm6977_vm8 = vcmp.lt.s32.totalorder %v6955_v2, 4  ;;  %v6982_v60 = vsel %vm6974_vm6, %v6961_v47, %v6964_v49  ;;  %v6986_v58 = vsel %vm6974_vm6, %v6964_v49, %v6967_v52  ;;  %v6990_v22 = vshll.u32 %v6950_v11, 8 }
 0x693   : > { %v7659_v41 = vmin.u32 %v3680_v55, %v13208_v30  ;;  %v6979_v54 = vsel %vm6977_vm8, %v6967_v52, 2102212464  ;;  %v6983_v3 = vsel %vm6977_vm8, %v6970_v20, 920167782  ;;  %v6987_v27 = vsel %vm6977_vm8, %v6973_v19, 1326507024 }
 0x694   : > { %v6984_v57 = vsel %vm6976_vm7, %v6967_v52, %v6983_v3  ;;  %v3700_v37 = vsub.s32 4, %v13194_v53  ;;  %vm6975_vm9 = vcmp.lt.s32.totalorder %v6955_v2, 2  ;;  %v6978_v33 = vsel %vm6974_vm6, %v6958_v17, %v6961_v47 }
 0x695   : > { %v3682_v8 = vclz %v7659_v41  ;;  %v6980_v25 = vsel %vm6976_vm7, %v6964_v49, %v6979_v54  ;;  %v6985_v56 = vsel %vm6975_vm9, %v6982_v60, %v6984_v57  ;;  %v6988_v28 = vsel %vm6976_vm7, %v6970_v20, %v6987_v27 }
 0x696   : > { %v3930_v24 = vshrl.u32 %v3929_v7, 23  ;;  %v6989_v35 = vsel %vm6975_vm9, %v6986_v58, %v6988_v28  ;;  %v13223_v42 = vmul.u32.u64.low %v6990_v22, %v6985_v56  ;;  %v13224_v31 = vmul.u32.u64.high %v6990_v22, %v6985_v56, %v13223_v42 }
 0x697   : > { %v7660_v59 = vadd.s32 4294967294, %v3682_v8  ;;  %vm3616_vm11 = vcmp.lt.s32.totalorder %v13053_v4, 0  ;;  %v13227_v50 = vmul.u32.u64.low %v6990_v22, %v6989_v35  ;;  %v13228_v62 = vmul.u32.u64.high %v6990_v22, %v6989_v35, %v13227_v50 }
 0x698   : > { %v7670_v29 = vadd.s32 4294967169, %v3930_v24  ;;  %vm13232_vm10 = vcmp.le.f32.partialorder %v3614_v38, 0.7853982  ;;  %v6981_v44 = vsel %vm6975_vm9, %v6978_v33, %v6980_v25  ;;  %v13237_v2 = vadd.f32 %v13050_v36, %v7913_v43 }
 0x699   : > { %vm7661_vm12 = vcmp.lt.s32.totalorder %v7660_v59, 0  ;;  %vm7245_vm13 = vcmp.lt.s32.totalorder %v13213_v21, 2  ;;  %v3670_v40 = vadd.s32 %v13159_v1, %v13157_v15  ;;  %v3926_v39 = vand.u32 2147483647, %v13190_v5 }
 0x69a   : > { %v3685_v45 = vsel %vm7661_vm12, 0, %v7660_v59  ;;  %v3936_v61 = vadd.s32 1, %v7670_v29  ;;  %vm7242_vm14 = vweird.f32 %v12951_v63  ;;  %v3701_v48 = vsel %vm3616_vm11, %v3700_v37, %v13194_v53 }
 0x69b   : > { %v3686_v38 = vsub.s32 32, %v3685_v45  ;;  %v3690_v34 = vsub.s32 4294967266, %v3685_v45  ;;  %v7000_v26 = vadd.s32 1, %v13224_v31  ;;  %v3687_v47 = vshll.u32 %v13208_v30, %v3685_v45 }
 0x69c   : > { %v6997_v49 = vmul.u32 %v6990_v22, %v6981_v44  ;;  %vm6999_vm15 = vc.u32 %v13228_v62, %v13223_v42  ;;  %vm3937_vm0 = vcmp.gt.s32.totalorder %v3936_v61, 0  ;;  %v3703_v52 = vsel %vm13232_vm10, 0, %v3701_v48 }
 0x69d   : > { %v3688_v15 = vshrl.u32 %v3670_v40, %v3686_v38  ;;  %v3691_v1 = vadd.s32 127, %v3690_v34  ;;  %v7001_v18 = vsel %vm6999_vm15, %v7000_v26, %v13224_v31  ;;  %v3938_v9 = vsel %vm3937_vm0, %v3936_v61, 0  ;;  %v8451_v32 = vpop.eup %8450 }
 0x69e   : > { %v7002_v20 = vadd.s32 %v7001_v18, %v6997_v49  ;;  %v3933_v53 = vand.u32 8388607, %v3926_v39  ;;  %v3940_v46 = vand.u32 31, %v3938_v9  ;;  %v8453_v11 = vpop.eup %8452  ;;  %vm7246_vm1 = vcmp.eq.s32.totalorder %v13213_v21, 0 }
 0x69f   : > { %v7250_v30 = vxor.u32 2147483648, %v8451_v32  ;;  %v3689_v19 = vor.u32 %v3688_v15, %v3687_v47  ;;  %v3692_v55 = vshll.u32 %v3691_v1, 23  ;;  %v7247_v17 = vxor.u32 2147483648, %v8453_v11 }
 0x6a0   : > { %vm7249_vm2 = vcmp.eq.s32.totalorder %v13213_v21, 2  ;;  %v7003_v7 = vadd.s32 536870912, %v7002_v20  ;;  %v3941_v41 = vsub.s32 32, %v3940_v46  ;;  %v13257_v3 = vadd.s32 3, %v3703_v52 }
 0x6a1   : > { %v7251_v54 = vsel %vm7249_vm2, %v7250_v30, %v8453_v11  ;;  %v3693_v60 = vor.u32 4788187, %v3692_v55  ;;  %v7254_v57 = vand.u32 2147483647, %v13237_v2  ;;  %v7248_v58 = vsel %vm7246_vm1, %v8451_v32, %v7247_v17 }
 0x6a2   : > { %v7004_v27 = vshrl.u32 %v7003_v7, 30  ;;  %v3934_v22 = vor.u32 8388608, %v3933_v53  ;;  %v7257_v8 = vand.u32 2139095040, %v13237_v2  ;;  %v7252_v37 = vsel %vm7245_vm13, %v7248_v58, %v7251_v54 }
 0x6a3   : > { %v3694_v33 = vand.u32 2147483647, %v3693_v60  ;;  %v3696_v25 = vcvt.s32.f32 %v3689_v19  ;;  %v3944_v56 = vshrl.u32 %v8551_v10, %v3941_v41  ;;  %v7253_v28 = vsel %vm7242_vm14, nan, %v7252_v37 }
 0x6a4   : > { %v13267_v24 = vadd.s32 %v13223_v42, %v13228_v62  ;;  %v7005_v43 = vshll.u32 %v7004_v27, 30  ;;  %v3947_v59 = vshrl.u32 %v8552_v12, %v3941_v41  ;;  %7420 = vst [vmem:[%s9048_s11 + $0x1f0] sm:$0xff] %v7253_v28  ;;  %v3939_v31 = vshrl.u32 %v3938_v9, 5 }
 0x6a5   : > { %v3697_v35 = vmul.f32 %v3696_v25, %v3694_v33  ;;  %v3943_v50 = vshll.u32 %v8550_v6, %v3940_v46  ;;  %v3950_v21 = vshrl.u32 %v8553_v14, %v3941_v41  ;;  %v3946_v44 = vshll.u32 %v8551_v10, %v3940_v46 }
 0x6a6   : > { %v13273_v29 = vsub.s32 %v7002_v20, %v7005_v43  ;;  %v3949_v63 = vshll.u32 %v8552_v12, %v3940_v46  ;;  %v3953_v40 = vshrl.u32 %v8554_v16, %v3941_v41  ;;  %v3952_v45 = vshll.u32 %v8553_v14, %v3940_v46 }
 0x6a7   : > { %v3698_v42 = vxor.u32 2147483648, %v3697_v35  ;;  %v3945_v62 = vor.u32 %v3944_v56, %v3943_v50  ;;  %v3956_v61 = vshrl.u32 %v8555_v23, %v3941_v41  ;;  %vm6944_vm3 = vcmp.lt.s32.totalorder %v13103_v51, 0 }
 0x6a8   : > { %v7008_v38 = vsub.s32 0, %v13273_v29  ;;  %v3948_v34 = vor.u32 %v3947_v59, %v3946_v44  ;;  %v3951_v48 = vor.u32 %v3950_v21, %v3949_v63  ;;  %v3955_v26 = vshll.u32 %v8554_v16, %v3940_v46 }
 0x6a9   : > { %v3699_v47 = vsel %vm3616_vm11, %v3698_v42, %v3697_v35  ;;  %v3954_v49 = vor.u32 %v3953_v40, %v3952_v45  ;;  %v3974_v15 = vshll.u32 %v3934_v22, 8  ;;  %v7258_v1 = vshrl.u32 %v7257_v8, 23 }
 0x6aa   : > { %v3702_v18 = vsel %vm13232_vm10, %v13053_v4, %v3699_v47  ;;  %v7787_v9 = vmin.u32 %v7008_v38, %v13273_v29  ;;  %v3942_v32 = vshrl.u32 %v8550_v6, %v3941_v41  ;;  %v3957_v52 = vor.u32 %v3956_v61, %v3955_v26 }
 0x6ab   : > { %8454 = vcosq.f32 %v3702_v18  ;;  %v7028_v20 = vsub.s32 4, %v7004_v27  ;;  %vm3958_vm4 = vcmp.lt.s32.totalorder %v3939_v31, 1  ;;  %vm3961_vm5 = vcmp.lt.s32.totalorder %v3939_v31, 4 }
 0x6ac   : > { %8456 = vsinq.f32 %v3702_v18  ;;  %v7010_v53 = vclz %v7787_v9  ;;  %v3963_v46 = vsel %vm3961_vm5, %v3951_v48, 2102212464  ;;  %v3966_v11 = vsel %vm3958_vm4, %v3945_v62, %v3948_v34 }
 0x6ad   : > { %vm3959_vm6 = vcmp.lt.s32.totalorder %v3939_v31, 2  ;;  %vm3960_vm7 = vcmp.lt.s32.totalorder %v3939_v31, 3  ;;  %v3967_v30 = vsel %vm3961_vm5, %v3954_v49, 920167782  ;;  %v3970_v19 = vsel %vm3958_vm4, %v3948_v34, %v3951_v48 }
 0x6ae   : > { %v7788_v55 = vadd.s32 4294967294, %v7010_v53  ;;  %v3962_v0 = vsel %vm3958_vm4, %v3942_v32, %v3945_v62  ;;  %v3968_v17 = vsel %vm3960_vm7, %v3951_v48, %v3967_v30  ;;  %v3971_v7 = vsel %vm3961_vm5, %v3957_v52, 1326507024 }
 0x6af   : > { %v3964_v54 = vsel %vm3960_vm7, %v3948_v34, %v3963_v46  ;;  %v3969_v41 = vsel %vm3959_vm6, %v3966_v11, %v3968_v17  ;;  %v3972_v60 = vsel %vm3960_vm7, %v3954_v49, %v3971_v7  ;;  %v7798_v58 = vadd.s32 4294967169, %v7258_v1 }
 0x6b0   : > { %vm7789_vm8 = vcmp.lt.s32.totalorder %v7788_v55, 0  ;;  %v3973_v22 = vsel %vm3959_vm6, %v3970_v19, %v3972_v60  ;;  %v13292_v8 = vmul.u32.u64.low %v3974_v15, %v3969_v41  ;;  %v13293_v37 = vmul.u32.u64.high %v3974_v15, %v3969_v41, %v13292_v8 }
 0x6b1   : > { %v7013_v33 = vsel %vm7789_vm8, 0, %v7788_v55  ;;  %v7029_v25 = vsel %vm6944_vm3, %v7028_v20, %v7004_v27  ;;  %v13298_v56 = vmul.u32.u64.low %v3974_v15, %v3973_v22  ;;  %v13299_v28 = vmul.u32.u64.high %v3974_v15, %v3973_v22, %v13298_v56 }
 0x6b2   : > { %v7014_v43 = vsub.s32 32, %v7013_v33  ;;  %v7018_v59 = vsub.s32 4294967266, %v7013_v33  ;;  %v3965_v35 = vsel %vm3959_vm6, %v3962_v0, %v3964_v54  ;;  %v7264_v50 = vadd.s32 1, %v7798_v58 }
 0x6b3   : > { %v3708_v21 = vand.u32 3, %v13257_v3  ;;  %vm13305_vm9 = vcmp.le.f32.partialorder %v6942_v13, 0.7853982  ;;  %v7015_v63 = vshll.u32 %v13273_v29, %v7013_v33  ;;  %v3984_v42 = vadd.s32 1, %v13293_v37 }
 0x6b4   : > { %v7016_v27 = vshrl.u32 %v13267_v24, %v7014_v43  ;;  %v7019_v40 = vadd.s32 127, %v7018_v59  ;;  %vm7265_vm11 = vcmp.gt.s32.totalorder %v7264_v50, 0  ;;  %v7031_v31 = vsel %vm13305_vm9, 0, %v7029_v25  ;;  %v562_v59 = vpop.f32.mrf.mxu0 }
 0x6b5   : > { %v3981_v62 = vmul.u32 %v3974_v15, %v3965_v35  ;;  %vm3983_vm10 = vc.u32 %v13299_v28, %v13292_v8  ;;  %v7266_v3 = vsel %vm7265_vm11, %v7264_v50, 0  ;;  %v7261_v29 = vand.u32 8388607, %v7254_v57 }
 0x6b6   : > { %v7017_v13 = vor.u32 %v7016_v27, %v7015_v63  ;;  %v7020_v45 = vshll.u32 %v7019_v40, 23  ;;  %v3985_v61 = vsel %vm3983_vm10, %v3984_v42, %v13293_v37  ;;  %vm3706_vm12 = vweird.f32 %v13053_v4 }
 0x6b7   : > { %v3986_v24 = vadd.s32 %v3985_v61, %v3981_v62  ;;  %v7268_v38 = vand.u32 31, %v7266_v3  ;;  %vm3709_vm13 = vcmp.lt.s32.totalorder %v3708_v21, 2  ;;  %vm3710_vm14 = vcmp.eq.s32.totalorder %v3708_v21, 0 }
 0x6b8   : > { %v8455_v34 = vpop.eup %8454  ;;  %vm3713_vm15 = vcmp.eq.s32.totalorder %v3708_v21, 2  ;;  %v7021_v48 = vor.u32 4788187, %v7020_v45  ;;  %v7035_v49 = vadd.s32 3, %v7031_v31  ;;  %v7024_v32 = vcvt.s32.f32 %v7017_v13 }
 0x6b9   : > { %v8457_v26 = vpop.eup %8456  ;;  %v3714_v47 = vxor.u32 2147483648, %v8455_v34  ;;  %v3987_v15 = vadd.s32 536870912, %v3986_v24  ;;  %v7269_v1 = vsub.s32 32, %v7268_v38  ;;  %v7262_v52 = vor.u32 8388608, %v7261_v29 }
 0x6ba   : > { %v3711_v18 = vxor.u32 2147483648, %v8457_v26  ;;  %v7022_v9 = vand.u32 2147483647, %v7021_v48  ;;  %v7271_v46 = vshll.u32 %v8550_v6, %v7268_v38  ;;  %v7267_v54 = vshrl.u32 %v7266_v3, 5 }
 0x6bb   : > { %v3715_v20 = vsel %vm3713_vm15, %v3714_v47, %v8457_v26  ;;  %v13320_v53 = vshrl.u32 %v3987_v15, 30  ;;  %v7272_v11 = vshrl.u32 %v8551_v10, %v7269_v1  ;;  %v7275_v55 = vshrl.u32 %v8552_v12, %v7269_v1 }
 0x6bc   : > { %v3712_v30 = vsel %vm3710_vm14, %v8455_v34, %v3711_v18  ;;  %v7025_v19 = vmul.f32 %v7024_v32, %v7022_v9  ;;  %v7278_v0 = vshrl.u32 %v8553_v14, %v7269_v1  ;;  %v7274_v41 = vshll.u32 %v8551_v10, %v7268_v38  ;;  %v690_v32 = vpop.f32.mrf.mxu1 }
 0x6bd   : > { %v3716_v17 = vsel %vm3709_vm13, %v3712_v30, %v3715_v20  ;;  %v3989_v7 = vshll.u32 %v13320_v53, 30  ;;  %v7273_v22 = vor.u32 %v7272_v11, %v7271_v46  ;;  %v7277_v37 = vshll.u32 %v8552_v12, %v7268_v38 }
 0x6be   : > { %v3717_v60 = vsel %vm3706_vm12, nan, %v3716_v17  ;;  %v7026_v58 = vxor.u32 2147483648, %v7025_v19  ;;  %v7276_v25 = vor.u32 %v7275_v55, %v7274_v41  ;;  %v7280_v56 = vshll.u32 %v8553_v14, %v7268_v38 }
 0x6bf   : > { %7386 = vst [vmem:[%s9048_s11 + $0xe0] sm:$0xff] %v3717_v60  ;;  %v13334_v33 = vsub.s32 %v3986_v24, %v3989_v7  ;;  %v7281_v43 = vshrl.u32 %v8554_v16, %v7269_v1  ;;  %v7279_v50 = vor.u32 %v7278_v0, %v7277_v37  ;;  %v7283_v4 = vshll.u32 %v8554_v16, %v7268_v38 }
 0x6c0   : > { %v7027_v35 = vsel %vm6944_vm3, %v7026_v58, %v7025_v19  ;;  %v7284_v21 = vshrl.u32 %v8555_v23, %v7269_v1  ;;  %v13345_v27 = vand.u32 3, %v7035_v49  ;;  %vm7286_vm0 = vcmp.lt.s32.totalorder %v7267_v54, 1 }
 0x6c1   : > { %v7030_v63 = vsel %vm13305_vm9, %v13103_v51, %v7027_v35  ;;  %v3992_v40 = vsub.s32 0, %v13334_v33  ;;  %v7282_v42 = vor.u32 %v7281_v43, %v7280_v56  ;;  %v13349_v62 = vadd.f32 %v13050_v36, %v562_v59 }
 0x6c2   : > { %8458 = vcosq.f32 %v7030_v63  ;;  %v7285_v31 = vor.u32 %v7284_v21, %v7283_v4  ;;  %v7270_v13 = vshrl.u32 %v8550_v6, %v7269_v1  ;;  %vm7289_vm1 = vcmp.lt.s32.totalorder %v7267_v54, 4 }
 0x6c3   : > { %8460 = vsinq.f32 %v7030_v63  ;;  %v7671_v3 = vmin.u32 %v3992_v40, %v13334_v33  ;;  %v7291_v45 = vsel %vm7289_vm1, %v7279_v50, 2102212464  ;;  %v7294_v44 = vsel %vm7286_vm0, %v7273_v22, %v7276_v25 }
 0x6c4   : > { %v7295_v61 = vsel %vm7289_vm1, %v7282_v42, 920167782  ;;  %v7302_v29 = vshll.u32 %v7262_v52, 8  ;;  %vm7288_vm2 = vcmp.lt.s32.totalorder %v7267_v54, 3  ;;  %v7290_v38 = vsel %vm7286_vm0, %v7270_v13, %v7273_v22 }
 0x6c5   : > { %v3994_v24 = vclz %v7671_v3  ;;  %v7298_v34 = vsel %vm7286_vm0, %v7276_v25, %v7279_v50  ;;  %vm7287_vm3 = vcmp.lt.s32.totalorder %v7267_v54, 2  ;;  %v7292_v48 = vsel %vm7288_vm2, %v7276_v25, %v7291_v45 }
 0x6c6   : > { %v7296_v26 = vsel %vm7288_vm2, %v7279_v50, %v7295_v61  ;;  %v7299_v47 = vsel %vm7289_vm1, %v7285_v31, 1326507024  ;;  %v4012_v15 = vsub.s32 4, %v13320_v53  ;;  %v7293_v1 = vsel %vm7287_vm3, %v7290_v38, %v7292_v48 }
 0x6c7   : > { %v7672_v49 = vadd.s32 4294967294, %v3994_v24  ;;  %v7297_v18 = vsel %vm7287_vm3, %v7294_v44, %v7296_v26  ;;  %v7300_v9 = vsel %vm7288_vm2, %v7282_v42, %v7299_v47  ;;  %v3721_v19 = vand.u32 2139095040, %v13349_v62 }
 0x6c8   : > { %v7301_v20 = vsel %vm7287_vm3, %v7298_v34, %v7300_v9  ;;  %v13354_v46 = vmul.u32.u64.low %v7302_v29, %v7297_v18  ;;  %v13355_v11 = vmul.u32.u64.high %v7302_v29, %v7297_v18, %v13354_v46  ;;  %vm3928_vm5 = vcmp.lt.s32.totalorder %v13190_v5, 0 }
 0x6c9   : > { %vm7673_vm4 = vcmp.lt.s32.totalorder %v7672_v49, 0  ;;  %v13358_v52 = vmul.u32.u64.low %v7302_v29, %v7301_v20  ;;  %v13359_v30 = vmul.u32.u64.high %v7302_v29, %v7301_v20, %v13358_v52  ;;  %v3982_v55 = vadd.s32 %v13292_v8, %v13299_v28 }
 0x6ca   : > { %v3997_v0 = vsel %vm7673_vm4, 0, %v7672_v49  ;;  %v13366_v17 = vadd.f32 %v13050_v36, %v690_v32  ;;  %v4013_v41 = vsel %vm3928_vm5, %v4012_v15, %v13320_v53  ;;  %v3722_v60 = vshrl.u32 %v3721_v19, 23 }
 0x6cb   : > { %v3998_v7 = vsub.s32 32, %v3997_v0  ;;  %v4002_v54 = vsub.s32 4294967266, %v3997_v0  ;;  %vm7037_vm6 = vcmp.lt.s32.totalorder %v13345_v27, 2  ;;  %vm13374_vm7 = vcmp.le.f32.partialorder %v3926_v39, 0.7853982 }
 0x6cc   : > { %v7309_v8 = vmul.u32 %v7302_v29, %v7293_v1  ;;  %v7312_v28 = vadd.s32 1, %v13355_v11  ;;  %v3999_v36 = vshll.u32 %v13334_v33, %v3997_v0  ;;  %vm7311_vm8 = vc.u32 %v13359_v30, %v13354_v46 }
 0x6cd   : > { %v4000_v22 = vshrl.u32 %v3982_v55, %v3998_v7  ;;  %v4003_v37 = vadd.s32 127, %v4002_v54  ;;  %v4015_v53 = vsel %vm13374_vm7, 0, %v4013_v41  ;;  %v7662_v56 = vadd.s32 4294967169, %v3722_v60 }
 0x6ce   : > { %v7313_v25 = vsel %vm7311_vm8, %v7312_v28, %v13355_v11  ;;  %v7049_v39 = vand.u32 2139095040, %v13366_v17  ;;  %vm7038_vm9 = vcmp.eq.s32.totalorder %v13345_v27, 0  ;;  %vm7041_vm11 = vcmp.eq.s32.totalorder %v13345_v27, 2 }
 0x6cf   : > { %v8459_v43 = vpop.eup %8458  ;;  %v4001_v59 = vor.u32 %v4000_v22, %v3999_v36  ;;  %v4004_v35 = vshll.u32 %v4003_v37, 23  ;;  %v7314_v50 = vadd.s32 %v7313_v25, %v7309_v8  ;;  %v3718_v21 = vand.u32 2147483647, %v13349_v62 }
 0x6d0   : > { %v8461_v33 = vpop.eup %8460  ;;  %v7042_v4 = vxor.u32 2147483648, %v8459_v43  ;;  %v3728_v63 = vadd.s32 1, %v7662_v56  ;;  %v4019_v31 = vadd.s32 3, %v4015_v53  ;;  %v7050_v44 = vshrl.u32 %v7049_v39, 23 }
 0x6d1   : > { %v7039_v40 = vxor.u32 2147483648, %v8461_v33  ;;  %v4005_v42 = vor.u32 4788187, %v4004_v35  ;;  %v7315_v3 = vadd.s32 536870912, %v7314_v50  ;;  %v4008_v45 = vcvt.s32.f32 %v4001_v59 }
 0x6d2   : > { %v7043_v13 = vsel %vm7041_vm11, %v7042_v4, %v8461_v33  ;;  %vm3729_vm10 = vcmp.gt.s32.totalorder %v3728_v63, 0  ;;  %vm7034_vm12 = vweird.f32 %v13103_v51  ;;  %v13398_v15 = vand.u32 3, %v4019_v31 }
 0x6d3   : > { %v7040_v61 = vsel %vm7038_vm9, %v8459_v43, %v7039_v40  ;;  %v4006_v29 = vand.u32 2147483647, %v4005_v42  ;;  %v13391_v24 = vshrl.u32 %v7315_v3, 30  ;;  %v3730_v38 = vsel %vm3729_vm10, %v3728_v63, 0 }
 0x6d4   : > { %v7044_v34 = vsel %vm7037_vm6, %v7040_v61, %v7043_v13  ;;  %v3732_v48 = vand.u32 31, %v3730_v38  ;;  %v3725_v18 = vand.u32 8388607, %v3718_v21  ;;  %v3731_v20 = vshrl.u32 %v3730_v38, 5 }
 0x6d5   : > { %v7045_v26 = vsel %vm7034_vm12, nan, %v7044_v34  ;;  %v4009_v47 = vmul.f32 %v4008_v45, %v4006_v29  ;;  %v7317_v49 = vshll.u32 %v13391_v24, 30  ;;  %v7790_v51 = vadd.s32 4294967169, %v7050_v44 }
 0x6d6   : > { %7418 = vst [vmem:[%s9048_s11 + $0x1e0] sm:$0xff] %v7045_v26  ;;  %v3733_v9 = vsub.s32 32, %v3732_v48  ;;  %v3735_v27 = vshll.u32 %v8550_v6, %v3732_v48  ;;  %v3738_v52 = vshll.u32 %v8551_v10, %v3732_v48  ;;  %v3741_v7 = vshll.u32 %v8552_v12, %v3732_v48 }
 0x6d7   : > { %v4010_v32 = vxor.u32 2147483648, %v4009_v47  ;;  %v13402_v1 = vsub.s32 %v7314_v50, %v7317_v49  ;;  %v3744_v8 = vshll.u32 %v8553_v14, %v3732_v48  ;;  %v3747_v25 = vshll.u32 %v8554_v16, %v3732_v48 }
 0x6d8   : > { %v3736_v11 = vshrl.u32 %v8551_v10, %v3733_v9  ;;  %v3739_v19 = vshrl.u32 %v8552_v12, %v3733_v9  ;;  %v3742_v54 = vshrl.u32 %v8553_v14, %v3733_v9  ;;  %v3745_v28 = vshrl.u32 %v8554_v16, %v3733_v9 }
 0x6d9   : > { %v4011_v55 = vsel %vm3928_vm5, %v4010_v32, %v4009_v47  ;;  %v7320_v0 = vsub.s32 0, %v13402_v1  ;;  %v3748_v56 = vshrl.u32 %v8555_v23, %v3733_v9  ;;  %v7310_v58 = vadd.s32 %v13354_v46, %v13359_v30 }
 0x6da   : > { %v4014_v41 = vsel %vm13374_vm7, %v13190_v5, %v4011_v55  ;;  %v3737_v60 = vor.u32 %v3736_v11, %v3735_v27  ;;  %v3740_v22 = vor.u32 %v3739_v19, %v3738_v52  ;;  %v3743_v37 = vor.u32 %v3742_v54, %v3741_v7 }
 0x6db   : > { %8462 = vcosq.f32 %v4014_v41  ;;  %v7799_v36 = vmin.u32 %v7320_v0, %v13402_v1  ;;  %v3746_v53 = vor.u32 %v3745_v28, %v3744_v8  ;;  %v3726_v43 = vor.u32 8388608, %v3725_v18 }
 0x6dc   : > { %8464 = vsinq.f32 %v4014_v41  ;;  %v7046_v59 = vand.u32 2147483647, %v13366_v17  ;;  %v3734_v35 = vshrl.u32 %v8550_v6, %v3733_v9  ;;  %v3749_v50 = vor.u32 %v3748_v56, %v3747_v25 }
 0x6dd   : > { %v7322_v39 = vclz %v7799_v36  ;;  %vm3750_vm13 = vcmp.lt.s32.totalorder %v3731_v20, 1  ;;  %v7056_v33 = vadd.s32 1, %v7790_v51  ;;  %vm3752_vm14 = vcmp.lt.s32.totalorder %v3731_v20, 3 }
 0x6de   : > { %vm3753_vm15 = vcmp.lt.s32.totalorder %v3731_v20, 4  ;;  %v3758_v63 = vsel %vm3750_vm13, %v3737_v60, %v3740_v22  ;;  %v3762_v31 = vsel %vm3750_vm13, %v3740_v22, %v3743_v37  ;;  %vm7256_vm0 = vcmp.lt.s32.totalorder %v13237_v2, 0 }
 0x6df   : > { %v7800_v4 = vadd.s32 4294967294, %v7322_v39  ;;  %v3755_v40 = vsel %vm3753_vm15, %v3743_v37, 2102212464  ;;  %v3759_v42 = vsel %vm3753_vm15, %v3746_v53, 920167782  ;;  %vm3751_vm2 = vcmp.lt.s32.totalorder %v3731_v20, 2 }
 0x6e0   : > { %v3763_v3 = vsel %vm3753_vm15, %v3749_v50, 1326507024  ;;  %v3760_v46 = vsel %vm3752_vm14, %v3743_v37, %v3759_v42  ;;  %v3766_v61 = vshll.u32 %v3726_v43, 8  ;;  %v3754_v34 = vsel %vm3750_vm13, %v3734_v35, %v3737_v60 }
 0x6e1   : > { %vm7801_vm1 = vcmp.lt.s32.totalorder %v7800_v4, 0  ;;  %v3764_v30 = vsel %vm3752_vm14, %v3746_v53, %v3763_v3  ;;  %v3761_v45 = vsel %vm3751_vm2, %v3758_v63, %v3760_v46  ;;  %v3756_v48 = vsel %vm3752_vm14, %v3740_v22, %v3755_v40 }
 0x6e2   : > { %v7325_v13 = vsel %vm7801_vm1, 0, %v7800_v4  ;;  %v3765_v44 = vsel %vm3751_vm2, %v3762_v31, %v3764_v30  ;;  %v13437_v49 = vmul.u32.u64.low %v3766_v61, %v3761_v45  ;;  %v13438_v18 = vmul.u32.u64.high %v3766_v61, %v3761_v45, %v13437_v49 }
 0x6e3   : > { %v7326_v29 = vsub.s32 32, %v7325_v13  ;;  %v7330_v38 = vsub.s32 4294967266, %v7325_v13  ;;  %v13434_v26 = vmul.u32.u64.low %v3766_v61, %v3765_v44  ;;  %v13435_v47 = vmul.u32.u64.high %v3766_v61, %v3765_v44, %v13434_v26 }
 0x6e4   : > { %vm4018_vm3 = vweird.f32 %v13190_v5  ;;  %v7327_v9 = vshll.u32 %v13402_v1, %v7325_v13  ;;  %vm7057_vm4 = vcmp.gt.s32.totalorder %v7056_v33, 0  ;;  %v7340_v27 = vsub.s32 4, %v13391_v24 }
 0x6e5   : > { %v7328_v32 = vshrl.u32 %v7310_v58, %v7326_v29  ;;  %v7331_v51 = vadd.s32 127, %v7330_v38  ;;  %v3757_v11 = vsel %vm3751_vm2, %v3754_v34, %v3756_v48  ;;  %v7053_v52 = vand.u32 8388607, %v7046_v59 }
 0x6e6   : > { %v7058_v19 = vsel %vm7057_vm4, %v7056_v33, 0  ;;  %vm4021_vm5 = vcmp.lt.s32.totalorder %v13398_v15, 2  ;;  %vm4022_vm6 = vcmp.eq.s32.totalorder %v13398_v15, 0  ;;  %vm4025_vm7 = vcmp.eq.s32.totalorder %v13398_v15, 2 }
 0x6e7   : > { %v7329_v55 = vor.u32 %v7328_v32, %v7327_v9  ;;  %v7332_v0 = vshll.u32 %v7331_v51, 23  ;;  %v7060_v7 = vand.u32 31, %v7058_v19  ;;  %vm3775_vm8 = vc.u32 %v13435_v47, %v13437_v49 }
 0x6e8   : > { %v8463_v54 = vpop.eup %8462  ;;  %v3776_v1 = vadd.s32 1, %v13438_v18  ;;  %vm13455_vm9 = vcmp.le.f32.partialorder %v7254_v57, 0.7853982  ;;  %v3773_v28 = vmul.u32 %v3766_v61, %v3757_v11  ;;  %v7341_v37 = vsel %vm7256_vm0, %v7340_v27, %v13391_v24 }
 0x6e9   : > { %v8465_v20 = vpop.eup %8464  ;;  %v4026_v41 = vxor.u32 2147483648, %v8463_v54  ;;  %v7333_v8 = vor.u32 4788187, %v7332_v0  ;;  %v7061_v36 = vsub.s32 32, %v7060_v7  ;;  %v7054_v25 = vor.u32 8388608, %v7053_v52 }
 0x6ea   : > { %v4023_v22 = vxor.u32 2147483648, %v8465_v20  ;;  %v3777_v53 = vsel %vm3775_vm8, %v3776_v1, %v13438_v18  ;;  %v7336_v39 = vcvt.s32.f32 %v7329_v55  ;;  %v7059_v35 = vshrl.u32 %v7058_v19, 5 }
 0x6eb   : > { %v4027_v56 = vsel %vm4025_vm7, %v4026_v41, %v8465_v20  ;;  %v7334_v58 = vand.u32 2147483647, %v7333_v8  ;;  %v3778_v43 = vadd.s32 %v3777_v53, %v3773_v28  ;;  %v7064_v50 = vshrl.u32 %v8551_v10, %v7061_v36 }
 0x6ec   : > { %v4024_v57 = vsel %vm4022_vm6, %v8463_v54, %v4023_v22  ;;  %v7067_v33 = vshrl.u32 %v8552_v12, %v7061_v36  ;;  %v7070_v40 = vshrl.u32 %v8553_v14, %v7061_v36  ;;  %v7063_v31 = vshll.u32 %v8550_v6, %v7060_v7 }
 0x6ed   : > { %v4028_v4 = vsel %vm4021_vm5, %v4024_v57, %v4027_v56  ;;  %v7337_v24 = vmul.f32 %v7336_v39, %v7334_v58  ;;  %v3779_v63 = vadd.s32 536870912, %v3778_v43  ;;  %v7066_v3 = vshll.u32 %v8551_v10, %v7060_v7 }
 0x6ee   : > { %v4029_v42 = vsel %vm4018_vm3, nan, %v4028_v4  ;;  %v7069_v46 = vshll.u32 %v8552_v12, %v7060_v7  ;;  %v7072_v15 = vshll.u32 %v8553_v14, %v7060_v7  ;;  %v7073_v45 = vshrl.u32 %v8554_v16, %v7061_v36 }
 0x6ef   : > { %7389 = vst [vmem:[%s9048_s11 + $0xf8] sm:$0xff] %v4029_v42  ;;  %v7338_v30 = vxor.u32 2147483648, %v7337_v24  ;;  %v13476_v13 = vshrl.u32 %v3779_v63, 30  ;;  %v7065_v44 = vor.u32 %v7064_v50, %v7063_v31  ;;  %v7068_v61 = vor.u32 %v7067_v33, %v7066_v3 }
 0x6f0   : > { %v7075_v29 = vshll.u32 %v8554_v16, %v7060_v7  ;;  %v7076_v5 = vshrl.u32 %v8555_v23, %v7061_v36  ;;  %v7071_v12 = vor.u32 %v7070_v40, %v7069_v46  ;;  %v7074_v34 = vor.u32 %v7073_v45, %v7072_v15 }
 0x6f1   : > { %v7339_v38 = vsel %vm7256_vm0, %v7338_v30, %v7337_v24  ;;  %v3781_v10 = vshll.u32 %v13476_v13, 30  ;;  %v7343_v14 = vsel %vm13455_vm9, 0, %v7341_v37  ;;  %vm7078_vm11 = vcmp.lt.s32.totalorder %v7059_v35, 1 }
 0x6f2   : > { %v7342_v48 = vsel %vm13455_vm9, %v13237_v2, %v7339_v38  ;;  %v7077_v26 = vor.u32 %v7076_v5, %v7075_v29  ;;  %v7094_v16 = vshll.u32 %v7054_v25, 8  ;;  %v7062_v23 = vshrl.u32 %v8550_v6, %v7061_v36 }
 0x6f3   : > { %8466 = vcosq.f32 %v7342_v48  ;;  %v3782_v18 = vsub.s32 %v3778_v43, %v3781_v10  ;;  %vm7081_vm10 = vcmp.lt.s32.totalorder %v7059_v35, 4  ;;  %v7086_v9 = vsel %vm7078_vm11, %v7065_v44, %v7068_v61 }
 0x6f4   : > { %8468 = vsinq.f32 %v7342_v48  ;;  %vm7080_vm12 = vcmp.lt.s32.totalorder %v7059_v35, 3  ;;  %v7083_v51 = vsel %vm7081_vm10, %v7071_v12, 2102212464  ;;  %v7087_v27 = vsel %vm7081_vm10, %v7074_v34, 920167782 }
 0x6f5   : > { %v3784_v32 = vsub.s32 0, %v3782_v18  ;;  %vm7079_vm13 = vcmp.lt.s32.totalorder %v7059_v35, 2  ;;  %v7088_v11 = vsel %vm7080_vm12, %v7071_v12, %v7087_v27  ;;  %v7090_v52 = vsel %vm7078_vm11, %v7068_v61, %v7071_v12 }
 0x6f6   : > { %v7091_v19 = vsel %vm7081_vm10, %v7077_v26, 1326507024  ;;  %v7082_v0 = vsel %vm7078_vm11, %v7062_v23, %v7065_v44  ;;  %v7089_v7 = vsel %vm7079_vm13, %v7086_v9, %v7088_v11  ;;  %v7084_v1 = vsel %vm7080_vm12, %v7068_v61, %v7083_v51 }
 0x6f7   : > { %v7663_v55 = vmin.u32 %v3784_v32, %v3782_v18  ;;  %v7092_v54 = vsel %vm7080_vm12, %v7074_v34, %v7091_v19  ;;  %v13493_v41 = vmul.u32.u64.low %v7094_v16, %v7089_v7  ;;  %v13494_v6 = vmul.u32.u64.high %v7094_v16, %v7089_v7, %v13493_v41 }
 0x6f8   : > { %v7093_v20 = vsel %vm7079_vm13, %v7090_v52, %v7092_v54  ;;  %v7347_v8 = vadd.s32 3, %v7343_v14  ;;  %v7085_v37 = vsel %vm7079_vm13, %v7082_v0, %v7084_v1  ;;  %v3774_v39 = vadd.s32 %v13437_v49, %v13435_v47 }
 0x6f9   : > { %v3786_v60 = vclz %v7663_v55  ;;  %v13496_v28 = vmul.u32.u64.low %v7094_v16, %v7093_v20  ;;  %v13497_v36 = vmul.u32.u64.high %v7094_v16, %v7093_v20, %v13496_v28  ;;  %v7104_v53 = vadd.s32 1, %v13494_v6 }
 0x6fa   : > { %v7348_v25 = vand.u32 3, %v7347_v8  ;;  %v7101_v58 = vmul.u32 %v7094_v16, %v7085_v37  ;;  %vm7346_vm3 = vweird.f32 %v13237_v2  ;;  %vm3720_vm4 = vcmp.lt.s32.totalorder %v13349_v62, 0 }
 0x6fb   : > { %v7664_v22 = vadd.s32 4294967294, %v3786_v60  ;;  %vm7103_vm15 = vc.u32 %v13497_v36, %v13493_v41  ;;  %v3804_v14 = vsub.s32 4, %v13476_v13  ;;  %vm3719_vm5 = vcmp.le.f32.partialorder %v3718_v21, 0.7853982 }
 0x6fc   : > { %v7105_v50 = vsel %vm7103_vm15, %v7104_v53, %v13494_v6  ;;  %vm7353_vm0 = vcmp.eq.s32.totalorder %v7348_v25, 2  ;;  %vm7350_vm1 = vcmp.eq.s32.totalorder %v7348_v25, 0  ;;  %vm7349_vm2 = vcmp.lt.s32.totalorder %v7348_v25, 2 }
 0x6fd   : > { %vm7665_vm14 = vcmp.lt.s32.totalorder %v7664_v22, 0  ;;  %v7106_v4 = vadd.s32 %v7105_v50, %v7101_v58  ;;  %v3805_v23 = vsel %vm3720_vm4, %v3804_v14, %v13476_v13  ;;  %v7102_v27 = vadd.s32 %v13493_v41, %v13497_v36 }
 0x6fe   : > { %v3789_v56 = vsel %vm7665_vm14, 0, %v7664_v22  ;;  %v3807_v32 = vsel %vm3719_vm5, 0, %v3805_v23  ;;  %vm3810_vm11 = vweird.f32 %v13349_v62  ;;  %vm7048_vm10 = vcmp.lt.s32.totalorder %v13366_v17, 0 }
 0x6ff   : > { %v3790_v43 = vsub.s32 32, %v3789_v56  ;;  %v3794_v57 = vsub.s32 4294967266, %v3789_v56  ;;  %v3791_v63 = vshll.u32 %v3782_v18, %v3789_v56  ;;  %v7107_v3 = vadd.s32 536870912, %v7106_v4 }
 0x700   : > { %v8467_v33 = vpop.eup %8466  ;;  %v3811_v19 = vadd.s32 3, %v3807_v32  ;;  %vm7047_vm12 = vcmp.le.f32.partialorder %v7046_v59, 0.7853982 }
 0x701   : > { %v8469_v24 = vpop.eup %8468  ;;  %v7354_v35 = vxor.u32 2147483648, %v8467_v33  ;;  %v3792_v40 = vshrl.u32 %v3774_v39, %v3790_v43  ;;  %v3795_v42 = vadd.s32 127, %v3794_v57  ;;  %v7108_v49 = vshrl.u32 %v7107_v3, 30 }
 0x702   : > { %v7351_v31 = vxor.u32 2147483648, %v8469_v24  ;;  %v3812_v1 = vand.u32 3, %v3811_v19 }
 0x703   : > { %v7355_v46 = vsel %vm7353_vm0, %v7354_v35, %v8469_v24  ;;  %v3793_v30 = vor.u32 %v3792_v40, %v3791_v63  ;;  %v3796_v15 = vshll.u32 %v3795_v42, 23  ;;  %v7109_v29 = vshll.u32 %v7108_v49, 30 }
 0x704   : > { %v7352_v47 = vsel %vm7350_vm1, %v8467_v33, %v7351_v31  ;;  %vm3817_vm7 = vcmp.eq.s32.totalorder %v3812_v1, 2  ;;  %vm3814_vm8 = vcmp.eq.s32.totalorder %v3812_v1, 0  ;;  %vm3813_vm9 = vcmp.lt.s32.totalorder %v3812_v1, 2 }
 0x705   : > { %v7356_v45 = vsel %vm7349_vm2, %v7352_v47, %v7355_v46  ;;  %v3797_v44 = vor.u32 4788187, %v3796_v15  ;;  %v3800_v38 = vcvt.s32.f32 %v3793_v30  ;;  %v7110_v10 = vsub.s32 %v7106_v4, %v7109_v29 }
 0x706   : > { %v7357_v61 = vsel %vm7346_vm3, nan, %v7356_v45  ;;  %v7132_v56 = vsub.s32 4, %v7108_v49  ;;  %vm7138_vm0 = vweird.f32 %v13366_v17 }
 0x707   : > { %7421 = vst [vmem:[%s9048_s11 + $0x1f8] sm:$0xff] %v7357_v61  ;;  %v3798_v5 = vand.u32 2147483647, %v3797_v44  ;;  %v7112_v34 = vsub.s32 0, %v7110_v10 }
 0x708   : > { %v7133_v57 = vsel %vm7048_vm10, %v7132_v56, %v7108_v49 }
 0x709   : > { %v3801_v12 = vmul.f32 %v3800_v38, %v3798_v5  ;;  %v7791_v26 = vmin.u32 %v7112_v34, %v7110_v10  ;;  %v7135_v50 = vsel %vm7047_vm12, 0, %v7133_v57 }
 0x70a   : > { %v7139_v33 = vadd.s32 3, %v7135_v50 }
 0x70b   : > { %v3802_v48 = vxor.u32 2147483648, %v3801_v12  ;;  %v7114_v16 = vclz %v7791_v26 }
 0x70d   : > { %v3803_v2 = vsel %vm3720_vm4, %v3802_v48, %v3801_v12  ;;  %v7792_v9 = vadd.s32 4294967294, %v7114_v16 }
 0x70e   : > { %v3806_v18 = vsel %vm3719_vm5, %v13349_v62, %v3803_v2  ;;  %v7140_v62 = vand.u32 3, %v7139_v33 }
 0x70f   : > { %8470 = vcosq.f32 %v3806_v18  ;;  %vm7793_vm6 = vcmp.lt.s32.totalorder %v7792_v9, 0 }
 0x710   : > { %8472 = vsinq.f32 %v3806_v18  ;;  %v7117_v51 = vsel %vm7793_vm6, 0, %v7792_v9  ;;  %vm7145_vm13 = vcmp.eq.s32.totalorder %v7140_v62, 2  ;;  %vm7142_vm14 = vcmp.eq.s32.totalorder %v7140_v62, 0 }
 0x711   : > { %v7118_v11 = vsub.s32 32, %v7117_v51  ;;  %v7122_v52 = vsub.s32 4294967266, %v7117_v51  ;;  %v7119_v55 = vshll.u32 %v7110_v10, %v7117_v51  ;;  %vm7141_vm15 = vcmp.lt.s32.totalorder %v7140_v62, 2 }
 0x713   : > { %v7120_v0 = vshrl.u32 %v7102_v27, %v7118_v11  ;;  %v7123_v21 = vadd.s32 127, %v7122_v52 }
 0x715   : > { %v7121_v7 = vor.u32 %v7120_v0, %v7119_v55  ;;  %v7124_v54 = vshll.u32 %v7123_v21, 23 }
 0x717   : > { %v7125_v20 = vor.u32 4788187, %v7124_v54  ;;  %v7128_v13 = vcvt.s32.f32 %v7121_v7 }
 0x719   : > { %v7126_v60 = vand.u32 2147483647, %v7125_v20 }
 0x71b   : > { %v7129_v37 = vmul.f32 %v7128_v13, %v7126_v60 }
 0x71c   : > { %v8471_v6 = vpop.eup %8470 }
 0x71d   : > { %v8473_v8 = vpop.eup %8472  ;;  %v3818_v28 = vxor.u32 2147483648, %v8471_v6  ;;  %v7130_v53 = vxor.u32 2147483648, %v7129_v37 }
 0x71e   : > { %v3815_v22 = vxor.u32 2147483648, %v8473_v8 }
 0x71f   : > { %v3819_v41 = vsel %vm3817_vm7, %v3818_v28, %v8473_v8  ;;  %v7131_v39 = vsel %vm7048_vm10, %v7130_v53, %v7129_v37 }
 0x720   : > { %v3816_v36 = vsel %vm3814_vm8, %v8471_v6, %v3815_v22  ;;  %v7134_v43 = vsel %vm7047_vm12, %v13366_v17, %v7131_v39 }
 0x721   : > { %v3820_v25 = vsel %vm3813_vm9, %v3816_v36, %v3819_v41  ;;  %8474 = vcosq.f32 %v7134_v43 }
 0x722   : > { %v3821_v58 = vsel %vm3810_vm11, nan, %v3820_v25  ;;  %8476 = vsinq.f32 %v7134_v43 }
 0x723   : > { %7387 = vst [vmem:[%s9048_s11 + $0xe8] sm:$0xff] %v3821_v58 }
 0x72e   : > { %v8475_v4 = vpop.eup %8474 }
 0x72f   : > { %v8477_v24 = vpop.eup %8476  ;;  %v7146_v35 = vxor.u32 2147483648, %v8475_v4 }
 0x730   : > { %v7143_v63 = vxor.u32 2147483648, %v8477_v24 }
 0x731   : > { %v7147_v40 = vsel %vm7145_vm13, %v7146_v35, %v8477_v24  ;;  %7429 = sbr.rel (!%p8617_p5) target bundleno = 1873 (0x751), region = 36 }
 0x732   : > { %v7144_v59 = vsel %vm7142_vm14, %v8475_v4, %v7143_v63 }
 0x733   : > { %v7148_v42 = vsel %vm7141_vm15, %v7144_v59, %v7147_v40 }
 0x734   : > { %v7149_v31 = vsel %vm7138_vm0, nan, %v7148_v42 }
 0x735   : > { %7419 = vst [vmem:[%s9048_s11 + $0x1e8] sm:$0xff] %v7149_v31 }
 0x736   : > { %s13719_s28 = smov (!%p7432_p11, %s7431_s28), 64 }
 0x737   : > { %s13529_s29 = sshll.u32 %s13719_s28, 7 }
 0x738   : > { %s7436_s30 = ssub.s32 8192, %s13529_s29 }
 0x739   : > { %7437 = vsyncadd %s13524_s27, %s7436_s30  ;;  %p7805_p12 = scmp.ne.s32.totalorder %s13529_s29, 0  ;;  %s7811_s7 = sshll.u32 %s8600_s16, 13 }
 0x73a   : > { %s13538_s5 = scalar_lea.hbm %s13587_s3, %s7811_s7  ;;  %s7442_s26 = sshll.u32 %s9048_s11, 4  ;;  %s13541_s26 = int_to_ptr.vmem [resolvable:$true] %s7442_s26 }
 0x73b   : > { %s8488_s6 = scalar_lea.vmem %s13541_s26, %s13529_s29  ;;  %s8556_s8 = smov [#allocation2]  }
 0x73c   : > { %p8489_p13 = scmp.ne.s32.totalorder %s13541_s26, %s8488_s6  ;;  %s8492_s9 = sshll.u32 %s8556_s8, 4  ;;  %s8493_s9 = int_to_ptr.vmem [resolvable:$false] %s8492_s9 }
 0x73d   : > { %s8494_s16 = scalar_lea.vmem %s8493_s9, 16384  ;;  %p8495_p2 = scmp.lt.s32.totalorder %s13541_s26, %s8493_s9 }
 0x73e   : > { %p8490_p0 = pnand %p8489_p13, %p7805_p12  ;;  %p8496_p3 = scmp.lt.s32.totalorder %s8494_s16, %s8488_s6 }
 0x740   : > { %p8491_p1 = pneg %p8490_p0  ;;  %p8497_p4 = por %p8496_p3, %p8495_p2 }
 0x742   : > { %p8498_p5 = pnand %p8497_p4, %p8491_p1 }
 0x744   : > { %8501 = shalt.err (!%p8498_p5)
}
 0x745   : > { %s8502_s11 = scalar_lea.hbm %s13538_s5, %s13529_s29  ;;  %s8506_s19 = scalar_lea.hbm %s13587_s3, 16000 }
 0x746   : > { %p8503_p7 = scmp.ne.s32.totalorder %s13538_s5, %s8502_s11  ;;  %p8507_p10 = scmp.lt.s32.totalorder %s13538_s5, %s13587_s3 }
 0x747   : > { %p8508_p11 = scmp.lt.s32.totalorder %s8506_s19, %s8502_s11 }
 0x748   : > { %p8504_p8 = pnand %p8503_p7, %p7805_p12 }
 0x749   : > { %p8509_p13 = por %p8508_p11, %p8507_p10 }
 0x74a   : > { %p8505_p9 = pneg %p8504_p8 }
 0x74c   : > { %p8510_p0 = pnand %p8509_p13, %p8505_p9 }
 0x74e   : > { %8513 = shalt.err (!%p8510_p0)
}
 0x74f   : > { %s8557_s25 = smov 128   ;;  %s8558_s28 = smov 8  }
 0x750   : > { %7448 = dma.vmem_to_hbm [thread:$0]  (%p7805_p12), %s13541_s26, %s13529_s29, %s13538_s5, %s13524_s27, %s8557_s25, %s8557_s25, %s8558_s28  }
 0x751 PF: > { %p8179_p1 = scmp.ge.s32.totalorder %s8548_s15, 2  ;;  %s7457_s30 = sand.u32 1, %s8536_s12  }
 0x752   : > { %s7458_s7 = scalar_lea.sflag [#allocation3], %s7457_s30 }
 0x753   : > { %p8176_p2 = pnand %p8179_p1, %p8621_p6 }
 0x755   : > { %p8177_p3 = pneg %p8176_p2 }
 0x757   : > { %8531 = dma.done.wait (%p8177_p3), %s7458_s7, 8192  }
 0x758   : > { %8533 = vsyncadd (%p8177_p3), %s7458_s7, 4294959104  ;;  %p13_p4 = scmp.ge.s32.totalorder %s8604_s18, 4   ;;  %s13714_s12 = smov %s8540_s13 }
 0x759   : > { %s13715_s13 = smov %s8544_s14  ;;  %s13716_s14 = smov %s8615_s21 }
 0x75a   : > { %s13717_s15 = smov %s8604_s18  ;;  %15 = sbr.rel (!%p13_p4) target bundleno = 3 (0x3), region = 67 }
 0x75f   :  { %7463 = vsyncpa [#allocation3], 1 }
 0x760   :  { %7465 = vsyncpa [#allocation3 + $0x1], 1 }

</bundles_post_ra>
